<compile_context>
chip_gen: v6e
topology: v6e:2x2x1
jax: 0.10.0
libtpu: 0.0.40
codegen_flags: <defaults>
</compile_context>

<pallas_src>
import functools

import jax
import jax.numpy as jnp
from jax.experimental import pallas as pl
from jax.experimental.pallas import tpu as pltpu

KW = 4            # kernel size
PAD = 2           # int(ceil((4-1)/2)) = 2
LRELU_SLOPE = 0.2
IN_EPS = 1e-5     # InstanceNorm2d default eps
LANE = 128


def _round_up(x, m):
    return ((x + m - 1) // m) * m


def _pick_tile(dim, pref, quantum):
    """Largest divisor of `dim` that is <= pref and a multiple of `quantum`,
    falling back to the full extent."""
    if dim <= pref:
        return dim
    t = (pref // quantum) * quantum
    while t >= quantum:
        if dim % t == 0:
            return t
        t -= quantum
    return dim


# ---------------------------------------------------------------------------
# Kernels
# ---------------------------------------------------------------------------

def _conv_matmul_kernel(x_ref, w_ref, b_ref, y_ref, stats_ref, acc_ref,
                        *, p_valid, tile_p, apply_lrelu):
    """Tiled im2col matmul with f32 accumulator (P3 pattern).

    x_ref:     (1, tp, tk)  bf16 im2col patches tile
    w_ref:     (tk, tc)     bf16 weight tile
    b_ref:     (1, tc)      f32 bias (zeros for biasless layers)
    y_ref:     (1, tp, tc)  output tile (bf16 intermediate / f32 final)
    stats_ref: (1, 1, 2, tc) f32 per-(P-tile, channel) [sum, sum_sq]
    acc_ref:   (tp, tc)     f32 VMEM accumulator scratch
    """
    pi = pl.program_id(2)
    ki = pl.program_id(3)
    nk = pl.num_programs(3)

    @pl.when(ki == 0)
    def _init():
        acc_ref[...] = jnp.zeros_like(acc_ref)

    acc_ref[...] += jnp.dot(x_ref[0], w_ref[...],
                            preferred_element_type=jnp.float32)

    @pl.when(ki == nk - 1)
    def _finalize():
        y = acc_ref[...] + b_ref[...]                       # (tp, tc) f32

        # Per-channel sum / sum-of-squares over the *valid* spatial rows of this
        # P tile (padded rows masked out).  Used by the InstanceNorm second pass.
        rows = jax.lax.broadcasted_iota(jnp.int32, (tile_p, 1), 0)
        valid = (pi * tile_p + rows) < p_valid
        ym = jnp.where(valid, y, 0.0)
        stats_ref[0, 0] = jnp.concatenate(
            [jnp.sum(ym, axis=0, keepdims=True),
             jnp.sum(ym * ym, axis=0, keepdims=True)], axis=0)

        if apply_lrelu:                                      # only for non-norm layers
            y = jnp.where(y > 0, y, LRELU_SLOPE * y)
        y_ref[0] = y.astype(y_ref.dtype)


def _instnorm_lrelu_kernel(y_ref, s_ref, o_ref, *, inv_count, apply_lrelu):
    """Apply InstanceNorm (from precomputed channel stats) + LeakyReLU.

    y_ref: (1, tp, C)  bf16 pre-norm conv output tile
    s_ref: (1, 2, C)   f32 [sum, sum_sq] over the full spatial extent
    o_ref: (1, tp, C)  normalized + activated output tile
    """
    y = y_ref[0].astype(jnp.float32)          # (tp, C)
    s = s_ref[0]                              # (2, C)
    mean = s[0:1, :] * inv_count
    var = jnp.maximum(s[1:2, :] * inv_count - mean * mean, 0.0)
    y = (y - mean) * jax.lax.rsqrt(var + IN_EPS)
    if apply_lrelu:
        y = jnp.where(y > 0, y, LRELU_SLOPE * y)
    o_ref[0] = y.astype(o_ref.dtype)


# ---------------------------------------------------------------------------
# Layer wrapper (layout glue is plain JAX inside the same jit)
# ---------------------------------------------------------------------------

def _im2col_nhwc(x, stride):
    """x: (N, H, W, C) -> patches (N, P, K) with K ordered (kh, kw, c)."""
    n, h, w, c = x.shape
    ho = (h + 2 * PAD - KW) // stride + 1
    wo = (w + 2 * PAD - KW) // stride + 1
    xp = jnp.pad(x, ((0, 0), (PAD, PAD), (PAD, PAD), (0, 0)))
    cols = []
    for kh in range(KW):
        for kw_ in range(KW):
            cols.append(xp[:, kh:kh + stride * (ho - 1) + 1:stride,
                           kw_:kw_ + stride * (wo - 1) + 1:stride, :])
    p = jnp.stack(cols, axis=3)               # (N, Ho, Wo, 16, C)
    p = p.reshape(n, ho * wo, KW * KW * c)    # (N, P, K)
    return p, ho, wo


def conv_block(x_nhwc, weight, bias, *, stride, use_norm, use_lrelu, out_dtype):
    """One discriminator block: conv [+ InstanceNorm] [+ LeakyReLU].

    x_nhwc: (N, H, W, Cin_act) bf16 — channels may already be zero-padded past
            the true weight C_in (padded channels pick up zero weight rows).
    Returns ((N, Ho, Wo, Cout_pad) activation, true C_out).
    """
    n, _, _, c_act = x_nhwc.shape
    c_out, c_in = weight.shape[0], weight.shape[1]
    assert c_act >= c_in
    c_out_pad = _round_up(c_out, LANE)

    patches, ho, wo = _im2col_nhwc(x_nhwc.astype(jnp.bfloat16), stride)
    p = ho * wo
    k = KW * KW * c_act

    if p <= 512:
        p_pad = _round_up(p, 8)
        tp = p_pad
    else:
        p_pad = _round_up(p, 512)
        tp = 512
    tk = _pick_tile(k, 2048, LANE)
    tc = _pick_tile(c_out_pad, 256, LANE)

    patches = jnp.pad(patches, ((0, 0), (0, p_pad - p), (0, 0)))

    # weight (Cout, Cin, KW, KW) -> (K, Cout_pad) with K ordered (kh, kw, c);
    # zero-pad the extra input channels (carried padding) and output channels.
    w_mat = jnp.transpose(weight, (2, 3, 1, 0))                      # (KW,KW,Cin,Cout)
    w_mat = jnp.pad(w_mat, ((0, 0), (0, 0),
                            (0, c_act - c_in), (0, c_out_pad - c_out)))
    w_mat = w_mat.reshape(k, c_out_pad).astype(jnp.bfloat16)
    b_mat = jnp.pad(bias, (0, c_out_pad - c_out)).reshape(1, c_out_pad)
    b_mat = b_mat.astype(jnp.float32)

    y_dtype = jnp.bfloat16 if use_norm else out_dtype
    grid = (n, c_out_pad // tc, p_pad // tp, k // tk)

    kern = functools.partial(_conv_matmul_kernel, p_valid=p, tile_p=tp,
                             apply_lrelu=(use_lrelu and not use_norm))

    y, part_stats = pl.pallas_call(
        kern,
        out_shape=(jax.ShapeDtypeStruct((n, p_pad, c_out_pad), y_dtype),
                   jax.ShapeDtypeStruct((n, p_pad // tp, 2, c_out_pad),
                                        jnp.float32)),
        grid_spec=pltpu.PrefetchScalarGridSpec(
            num_scalar_prefetch=0,
            grid=grid,
            in_specs=[
                pl.BlockSpec((1, tp, tk), lambda b, co, pi, ki: (b, pi, ki)),
                pl.BlockSpec((tk, tc), lambda b, co, pi, ki: (ki, co)),
                pl.BlockSpec((1, tc), lambda b, co, pi, ki: (0, co)),
            ],
            out_specs=[
                pl.BlockSpec((1, tp, tc), lambda b, co, pi, ki: (b, pi, co)),
                pl.BlockSpec((1, 1, 2, tc), lambda b, co, pi, ki: (b, pi, 0, co)),
            ],
            scratch_shapes=[pltpu.VMEM((tp, tc), jnp.float32)],
        ),
        compiler_params=pltpu.CompilerParams(
            dimension_semantics=("parallel", "parallel", "parallel", "arbitrary"),
            vmem_limit_bytes=48 * 1024 * 1024,
        ),
    )(patches, w_mat, b_mat)

    if use_norm:
        # Fold the per-P-tile partial stats (tiny) and run the apply pass.
        ch_stats = jnp.sum(part_stats, axis=1)               # (N, 2, Cout_pad) f32
        y = pl.pallas_call(
            functools.partial(_instnorm_lrelu_kernel,
                              inv_count=1.0 / float(p), apply_lrelu=use_lrelu),
            out_shape=jax.ShapeDtypeStruct((n, p_pad, c_out_pad), out_dtype),
            grid_spec=pltpu.PrefetchScalarGridSpec(
                num_scalar_prefetch=0,
                grid=(n, p_pad // tp),
                in_specs=[
                    pl.BlockSpec((1, tp, c_out_pad), lambda b, pi: (b, pi, 0)),
                    pl.BlockSpec((1, 2, c_out_pad), lambda b, pi: (b, 0, 0)),
                ],
                out_specs=pl.BlockSpec((1, tp, c_out_pad),
                                       lambda b, pi: (b, pi, 0)),
            ),
            compiler_params=pltpu.CompilerParams(
                dimension_semantics=("parallel", "parallel")),
        )(y, ch_stats)

    out = y[:, :p, :].reshape(n, ho, wo, c_out_pad)
    return out, c_out


# ---------------------------------------------------------------------------
# Parameters (spectral norm is one-shot weight preprocessing in plain JAX)
# ---------------------------------------------------------------------------

def spectral_normalize(weight, key, eps=1e-12):
    """PyTorch-style spectral norm: one power iteration on deterministic random u."""
    c_out = weight.shape[0]
    w_mat = weight.reshape(c_out, -1)
    u = jax.random.normal(key, (c_out,), dtype=jnp.float32)
    u = u / (jnp.linalg.norm(u) + eps)
    v = w_mat.T @ u
    v = v / (jnp.linalg.norm(v) + eps)
    u = w_mat @ v
    u = u / (jnp.linalg.norm(u) + eps)
    sigma = u @ (w_mat @ v)
    return weight / sigma


def init_params(key, input_nc, ndf=64, n_layers=3):
    """Deterministic synthetic parameters matching NLayerDiscriminator.__init__."""
    params = []
    keys = jax.random.split(key, 16)
    ki = 0

    def mk_w(k, c_out, c_in):
        return 0.05 * jax.random.normal(k, (c_out, c_in, KW, KW), dtype=jnp.float32)

    # Layer 0: Conv(input_nc, ndf) with bias, no norm, LeakyReLU.
    w0 = mk_w(keys[ki], ndf, input_nc); ki += 1
    b0 = 0.05 * jax.random.normal(keys[ki], (ndf,), dtype=jnp.float32); ki += 1
    params.append(dict(w=w0, b=b0, stride=2, use_norm=False, use_lrelu=True))

    # Layers 1..n_layers-1: spectral-norm conv (no bias) + InstanceNorm, stride 2.
    nf = ndf
    for _ in range(1, n_layers):
        nf_prev, nf = nf, min(nf * 2, 512)
        w = mk_w(keys[ki], nf, nf_prev); ki += 1
        w = spectral_normalize(w, keys[ki]); ki += 1
        params.append(dict(w=w, b=jnp.zeros((nf,), jnp.float32),
                           stride=2, use_norm=True, use_lrelu=True))

    # Pre-final: spectral-norm conv (no bias) + InstanceNorm, stride 1.
    nf_prev, nf = nf, min(nf * 2, 512)
    w = mk_w(keys[ki], nf, nf_prev); ki += 1
    w = spectral_normalize(w, keys[ki]); ki += 1
    params.append(dict(w=w, b=jnp.zeros((nf,), jnp.float32),
                       stride=1, use_norm=True, use_lrelu=True))

    # Final: Conv(nf, 1) with bias, stride 1, no norm, no activation.
    wf = mk_w(keys[ki], 1, nf); ki += 1
    bf = 0.05 * jax.random.normal(keys[ki], (1,), dtype=jnp.float32); ki += 1
    params.append(dict(w=wf, b=bf, stride=1, use_norm=False, use_lrelu=False))

    return params


# ---------------------------------------------------------------------------
# Forward (getIntermFeat=False, use_sigmoid=False)
# ---------------------------------------------------------------------------

def nlayer_discriminator_forward(x_nchw, params):
    """x_nchw: (N, C, H, W) f32 -> (N, 1, Ho, Wo) f32."""
    act = jnp.transpose(x_nchw, (0, 2, 3, 1)).astype(jnp.bfloat16)   # NHWC, bf16
    c_true = act.shape[-1]
    n_layers = len(params)
    for i, layer in enumerate(params):
        is_last = (i == n_layers - 1)
        act, c_true = conv_block(
            act, layer["w"], layer["b"],
            stride=layer["stride"],
            use_norm=layer["use_norm"],
            use_lrelu=layer["use_lrelu"],
            out_dtype=jnp.float32 if is_last else jnp.bfloat16)
    out = act[..., :c_true]                                          # drop lane padding
    return jnp.transpose(out, (0, 3, 1, 2)).astype(jnp.float32)      # back to NCHW


if __name__ == "__main__":
    key = jax.random.PRNGKey(0)
    k_x, k_p = jax.random.split(key)

    N, C, H, W = 2, 4, 16, 16
    x = jax.random.normal(k_x, (N, C, H, W), dtype=jnp.float32)
    params = init_params(k_p, input_nc=C, ndf=64, n_layers=3)

    fwd = jax.jit(lambda inp: nlayer_discriminator_forward(inp, params))
    out = fwd(x)
    jax.block_until_ready(out)

    # 16x16 input: 16->9->5->3->4->5 spatial, 1 output channel.
    assert out.shape == (N, 1, 5, 5), out.shape
    assert bool(jnp.isfinite(out).all())
    print("KERNEL_OK")
</pallas_src>

<mosaic_0001>
module attributes {stable_mosaic.version = 11 : i64} {
  func.func @_conv_matmul_kernel(%arg0: i32, %arg1: i32, %arg2: i32, %arg3: i32, %arg4: memref<1x88x64xbf16, #tpu.memory_space<vmem>>, %arg5: memref<64x128xbf16, #tpu.memory_space<vmem>>, %arg6: memref<1x128xf32, #tpu.memory_space<vmem>>, %arg7: memref<1x88x128xbf16, #tpu.memory_space<vmem>>, %arg8: memref<1x1x2x128xf32, #tpu.memory_space<vmem>>, %arg9: memref<88x128xf32, #tpu.memory_space<vmem>>) attributes {dimension_semantics = [#tpu.dimension_semantics<parallel>, #tpu.dimension_semantics<parallel>, #tpu.dimension_semantics<parallel>, #tpu.dimension_semantics<arbitrary>], iteration_bounds = array<i64: 2, 1, 1, 1>, scalar_prefetch = 0 : i64, scratch_operands = 1 : i64, tpu.core_type = #tpu.core_type<tc>, window_params = [{transform_indices = @transform_0, window_bounds = array<i64: 1, 88, 64>}, {transform_indices = @transform_1, window_bounds = array<i64: 64, 128>}, {transform_indices = @transform_2, window_bounds = array<i64: 1, 128>}, {transform_indices = @transform_3, window_bounds = array<i64: 1, 88, 128>}, {transform_indices = @transform_4, window_bounds = array<i64: 1, 1, 2, 128>}]} {
    %c0_i32 = arith.constant 0 : i32
    %0 = arith.cmpi eq, %arg3, %c0_i32 : i32
    %1 = arith.extui %0 : i1 to i32
    %c0_i32_0 = arith.constant 0 : i32
    %2 = arith.cmpi ne, %1, %c0_i32_0 : i32
    scf.if %2 {
      %cst_11 = arith.constant 0.000000e+00 : f32
      %13 = vector.broadcast %cst_11 : f32 to vector<88x128xf32>
      %c0_12 = arith.constant 0 : index
      %c0_13 = arith.constant 0 : index
      %14 = vector.load %arg9[%c0_12, %c0_13] : memref<88x128xf32, #tpu.memory_space<vmem>>, vector<88x128xf32>
      tpu.vector_store %arg9[%c0_12, %c0_13], %13 {strides = array<i32>} : memref<88x128xf32, #tpu.memory_space<vmem>>, vector<88x128xf32>,
    } else {
    }
    %c0 = arith.constant 0 : index
    %c0_1 = arith.constant 0 : index
    %3 = vector.load %arg9[%c0, %c0_1] : memref<88x128xf32, #tpu.memory_space<vmem>>, vector<88x128xf32>
    %c0_2 = arith.constant 0 : index
    %c0_3 = arith.constant 0 : index
    %c0_4 = arith.constant 0 : index
    %4 = vector.load %arg4[%c0_2, %c0_3, %c0_4] : memref<1x88x64xbf16, #tpu.memory_space<vmem>>, vector<1x88x64xbf16>
    %5 = vector.shape_cast %4 : vector<1x88x64xbf16> to vector<88x64xbf16>
    %c0_5 = arith.constant 0 : index
    %c0_6 = arith.constant 0 : index
    %6 = vector.load %arg5[%c0_5, %c0_6] : memref<64x128xbf16, #tpu.memory_space<vmem>>, vector<64x128xbf16>
    %cst = arith.constant dense<0.000000e+00> : vector<88x128xf32>
    %7 = tpu.matmul %5, %6, %cst {dimension_numbers = #tpu.dot_dimension_numbers<[1], [0], [0], [1], [0, 0, 1, 1], [], []>} : vector<88x64xbf16>, vector<64x128xbf16>, vector<88x128xf32> -> vector<88x128xf32>
    %8 = arith.addf %3, %7 : vector<88x128xf32>
    %c0_7 = arith.constant 0 : index
    %c0_8 = arith.constant 0 : index
    %9 = vector.load %arg9[%c0_7, %c0_8] : memref<88x128xf32, #tpu.memory_space<vmem>>, vector<88x128xf32>
    tpu.vector_store %arg9[%c0_7, %c0_8], %8 {strides = array<i32>} : memref<88x128xf32, #tpu.memory_space<vmem>>, vector<88x128xf32>,
    %c0_i32_9 = arith.constant 0 : i32
    %10 = arith.cmpi eq, %arg3, %c0_i32_9 : i32
    %11 = arith.extui %10 : i1 to i32
    %c0_i32_10 = arith.constant 0 : i32
    %12 = arith.cmpi ne, %11, %c0_i32_10 : i32
    scf.if %12 {
      %c0_11 = arith.constant 0 : index
      %c0_12 = arith.constant 0 : index
      %13 = vector.load %arg9[%c0_11, %c0_12] : memref<88x128xf32, #tpu.memory_space<vmem>>, vector<88x128xf32>
      %c0_13 = arith.constant 0 : index
      %c0_14 = arith.constant 0 : index
      %14 = vector.load %arg6[%c0_13, %c0_14] : memref<1x128xf32, #tpu.memory_space<vmem>>, vector<1x128xf32>
      %15 = vector.broadcast %14 : vector<1x128xf32> to vector<88x128xf32>
      %16 = arith.addf %13, %15 : vector<88x128xf32>
      %17 = tpu.iota {dimensions = array<i32: 0>} : vector<88x1xi32>
      %c88_i32 = arith.constant 88 : i32
      %18 = arith.muli %arg2, %c88_i32 : i32
      %19 = vector.broadcast %18 : i32 to vector<88x1xi32>
      %20 = arith.addi %19, %17 : vector<88x1xi32>
      %c81_i32 = arith.constant 81 : i32
      %21 = vector.broadcast %c81_i32 : i32 to vector<88x1xi32>
      %22 = arith.cmpi slt, %20, %21 : vector<88x1xi32>
      %cst_15 = arith.constant 0.000000e+00 : f32
      %23 = vector.shape_cast %22 : vector<88x1xi1> to vector<88x1xi1>
      %24 = vector.broadcast %23 : vector<88x1xi1> to vector<88x128xi1>
      %25 = vector.broadcast %cst_15 : f32 to vector<88x128xf32>
      %26 = arith.select %24, %16, %25 : vector<88x128xi1>, vector<88x128xf32>
      %cst_16 = arith.constant dense<0.000000e+00> : vector<128xf32>
      %27 = vector.multi_reduction <add>, %26, %cst_16 [0] : vector<88x128xf32> to vector<128xf32>
      %28 = vector.shape_cast %27 : vector<128xf32> to vector<1x128xf32>
      %29 = arith.mulf %26, %26 : vector<88x128xf32>
      %cst_17 = arith.constant dense<0.000000e+00> : vector<128xf32>
      %30 = vector.multi_reduction <add>, %29, %cst_17 [0] : vector<88x128xf32> to vector<128xf32>
      %31 = vector.shape_cast %30 : vector<128xf32> to vector<1x128xf32>
      %32 = tpu.concatenate %28, %31 in 0 : vector<1x128xf32>, vector<1x128xf32> -> vector<2x128xf32>
      %c0_18 = arith.constant 0 : index
      %c0_19 = arith.constant 0 : index
      %c0_20 = arith.constant 0 : index
      %c0_21 = arith.constant 0 : index
      %33 = vector.load %arg8[%c0_18, %c0_19, %c0_20, %c0_21] : memref<1x1x2x128xf32, #tpu.memory_space<vmem>>, vector<1x1x2x128xf32>
      %34 = vector.shape_cast %33 : vector<1x1x2x128xf32> to vector<2x128xf32>
      %35 = vector.shape_cast %32 : vector<2x128xf32> to vector<1x1x2x128xf32>
      tpu.vector_store %arg8[%c0_18, %c0_19, %c0_20, %c0_21], %35 {strides = array<i32>} : memref<1x1x2x128xf32, #tpu.memory_space<vmem>>, vector<1x1x2x128xf32>,
      %cst_22 = arith.constant 0.000000e+00 : f32
      %36 = vector.broadcast %cst_22 : f32 to vector<88x128xf32>
      %37 = arith.cmpf ogt, %16, %36 : vector<88x128xf32>
      %cst_23 = arith.constant 2.000000e-01 : f32
      %38 = vector.broadcast %cst_23 : f32 to vector<88x128xf32>
      %39 = arith.mulf %38, %16 : vector<88x128xf32>
      %40 = arith.select %37, %16, %39 : vector<88x128xi1>, vector<88x128xf32>
      %41 = arith.truncf %40 : vector<88x128xf32> to vector<88x128xbf16>
      %c0_24 = arith.constant 0 : index
      %c0_25 = arith.constant 0 : index
      %c0_26 = arith.constant 0 : index
      %42 = vector.load %arg7[%c0_24, %c0_25, %c0_26] : memref<1x88x128xbf16, #tpu.memory_space<vmem>>, vector<1x88x128xbf16>
      %43 = vector.shape_cast %42 : vector<1x88x128xbf16> to vector<88x128xbf16>
      %44 = vector.shape_cast %41 : vector<88x128xbf16> to vector<1x88x128xbf16>
      tpu.vector_store %arg7[%c0_24, %c0_25, %c0_26], %44 {strides = array<i32>} : memref<1x88x128xbf16, #tpu.memory_space<vmem>>, vector<1x88x128xbf16>,
    } else {
    }
    return
  }
  func.func @transform_0(%arg0: i32, %arg1: i32, %arg2: i32, %arg3: i32) -> (i32, i32, i32) {
    %c0_i32 = arith.constant 0 : i32
    return %arg0, %arg2, %arg3 : i32, i32, i32
  }
  func.func @transform_1(%arg0: i32, %arg1: i32, %arg2: i32, %arg3: i32) -> (i32, i32) {
    %c0_i32 = arith.constant 0 : i32
    return %arg3, %arg1 : i32, i32
  }
  func.func @transform_2(%arg0: i32, %arg1: i32, %arg2: i32, %arg3: i32) -> (i32, i32) {
    %c0_i32 = arith.constant 0 : i32
    %c0_i32_0 = arith.constant 0 : i32
    return %c0_i32, %arg1 : i32, i32
  }
  func.func @transform_3(%arg0: i32, %arg1: i32, %arg2: i32, %arg3: i32) -> (i32, i32, i32) {
    %c0_i32 = arith.constant 0 : i32
    return %arg0, %arg2, %arg1 : i32, i32, i32
  }
  func.func @transform_4(%arg0: i32, %arg1: i32, %arg2: i32, %arg3: i32) -> (i32, i32, i32, i32) {
    %c0_i32 = arith.constant 0 : i32
    %c0_i32_0 = arith.constant 0 : i32
    return %arg0, %arg2, %c0_i32, %arg1 : i32, i32, i32, i32
  }
}

module attributes {stable_mosaic.version = 11 : i64} {
  func.func @_conv_matmul_kernel(%arg0: i32, %arg1: i32, %arg2: i32, %arg3: i32, %arg4: memref<1x32x2048xbf16, #tpu.memory_space<vmem>>, %arg5: memref<2048x128xbf16, #tpu.memory_space<vmem>>, %arg6: memref<1x128xf32, #tpu.memory_space<vmem>>, %arg7: memref<1x32x128xbf16, #tpu.memory_space<vmem>>, %arg8: memref<1x1x2x128xf32, #tpu.memory_space<vmem>>, %arg9: memref<32x128xf32, #tpu.memory_space<vmem>>) attributes {dimension_semantics = [#tpu.dimension_semantics<parallel>, #tpu.dimension_semantics<parallel>, #tpu.dimension_semantics<parallel>, #tpu.dimension_semantics<arbitrary>], iteration_bounds = array<i64: 2, 1, 1, 1>, scalar_prefetch = 0 : i64, scratch_operands = 1 : i64, tpu.core_type = #tpu.core_type<tc>, window_params = [{transform_indices = @transform_0, window_bounds = array<i64: 1, 32, 2048>}, {transform_indices = @transform_1, window_bounds = array<i64: 2048, 128>}, {transform_indices = @transform_2, window_bounds = array<i64: 1, 128>}, {transform_indices = @transform_3, window_bounds = array<i64: 1, 32, 128>}, {transform_indices = @transform_4, window_bounds = array<i64: 1, 1, 2, 128>}]} {
    %c0_i32 = arith.constant 0 : i32
    %0 = arith.cmpi eq, %arg3, %c0_i32 : i32
    %1 = arith.extui %0 : i1 to i32
    %c0_i32_0 = arith.constant 0 : i32
    %2 = arith.cmpi ne, %1, %c0_i32_0 : i32
    scf.if %2 {
      %cst_11 = arith.constant 0.000000e+00 : f32
      %13 = vector.broadcast %cst_11 : f32 to vector<32x128xf32>
      %c0_12 = arith.constant 0 : index
      %c0_13 = arith.constant 0 : index
      %14 = vector.load %arg9[%c0_12, %c0_13] : memref<32x128xf32, #tpu.memory_space<vmem>>, vector<32x128xf32>
      tpu.vector_store %arg9[%c0_12, %c0_13], %13 {strides = array<i32>} : memref<32x128xf32, #tpu.memory_space<vmem>>, vector<32x128xf32>,
    } else {
    }
    %c0 = arith.constant 0 : index
    %c0_1 = arith.constant 0 : index
    %3 = vector.load %arg9[%c0, %c0_1] : memref<32x128xf32, #tpu.memory_space<vmem>>, vector<32x128xf32>
    %c0_2 = arith.constant 0 : index
    %c0_3 = arith.constant 0 : index
    %c0_4 = arith.constant 0 : index
    %4 = vector.load %arg4[%c0_2, %c0_3, %c0_4] : memref<1x32x2048xbf16, #tpu.memory_space<vmem>>, vector<1x32x2048xbf16>
    %5 = vector.shape_cast %4 : vector<1x32x2048xbf16> to vector<32x2048xbf16>
    %c0_5 = arith.constant 0 : index
    %c0_6 = arith.constant 0 : index
    %6 = vector.load %arg5[%c0_5, %c0_6] : memref<2048x128xbf16, #tpu.memory_space<vmem>>, vector<2048x128xbf16>
    %cst = arith.constant dense<0.000000e+00> : vector<32x128xf32>
    %7 = tpu.matmul %5, %6, %cst {dimension_numbers = #tpu.dot_dimension_numbers<[1], [0], [0], [1], [0, 0, 1, 1], [], []>} : vector<32x2048xbf16>, vector<2048x128xbf16>, vector<32x128xf32> -> vector<32x128xf32>
    %8 = arith.addf %3, %7 : vector<32x128xf32>
    %c0_7 = arith.constant 0 : index
    %c0_8 = arith.constant 0 : index
    %9 = vector.load %arg9[%c0_7, %c0_8] : memref<32x128xf32, #tpu.memory_space<vmem>>, vector<32x128xf32>
    tpu.vector_store %arg9[%c0_7, %c0_8], %8 {strides = array<i32>} : memref<32x128xf32, #tpu.memory_space<vmem>>, vector<32x128xf32>,
    %c0_i32_9 = arith.constant 0 : i32
    %10 = arith.cmpi eq, %arg3, %c0_i32_9 : i32
    %11 = arith.extui %10 : i1 to i32
    %c0_i32_10 = arith.constant 0 : i32
    %12 = arith.cmpi ne, %11, %c0_i32_10 : i32
    scf.if %12 {
      %c0_11 = arith.constant 0 : index
      %c0_12 = arith.constant 0 : index
      %13 = vector.load %arg9[%c0_11, %c0_12] : memref<32x128xf32, #tpu.memory_space<vmem>>, vector<32x128xf32>
      %c0_13 = arith.constant 0 : index
      %c0_14 = arith.constant 0 : index
      %14 = vector.load %arg6[%c0_13, %c0_14] : memref<1x128xf32, #tpu.memory_space<vmem>>, vector<1x128xf32>
      %15 = vector.broadcast %14 : vector<1x128xf32> to vector<32x128xf32>
      %16 = arith.addf %13, %15 : vector<32x128xf32>
      %17 = tpu.iota {dimensions = array<i32: 0>} : vector<32x1xi32>
      %c32_i32 = arith.constant 32 : i32
      %18 = arith.muli %arg2, %c32_i32 : i32
      %19 = vector.broadcast %18 : i32 to vector<32x1xi32>
      %20 = arith.addi %19, %17 : vector<32x1xi32>
      %c25_i32 = arith.constant 25 : i32
      %21 = vector.broadcast %c25_i32 : i32 to vector<32x1xi32>
      %22 = arith.cmpi slt, %20, %21 : vector<32x1xi32>
      %cst_15 = arith.constant 0.000000e+00 : f32
      %23 = vector.shape_cast %22 : vector<32x1xi1> to vector<32x1xi1>
      %24 = vector.broadcast %23 : vector<32x1xi1> to vector<32x128xi1>
      %25 = vector.broadcast %cst_15 : f32 to vector<32x128xf32>
      %26 = arith.select %24, %16, %25 : vector<32x128xi1>, vector<32x128xf32>
      %cst_16 = arith.constant dense<0.000000e+00> : vector<128xf32>
      %27 = vector.multi_reduction <add>, %26, %cst_16 [0] : vector<32x128xf32> to vector<128xf32>
      %28 = vector.shape_cast %27 : vector<128xf32> to vector<1x128xf32>
      %29 = arith.mulf %26, %26 : vector<32x128xf32>
      %cst_17 = arith.constant dense<0.000000e+00> : vector<128xf32>
      %30 = vector.multi_reduction <add>, %29, %cst_17 [0] : vector<32x128xf32> to vector<128xf32>
      %31 = vector.shape_cast %30 : vector<128xf32> to vector<1x128xf32>
      %32 = tpu.concatenate %28, %31 in 0 : vector<1x128xf32>, vector<1x128xf32> -> vector<2x128xf32>
      %c0_18 = arith.constant 0 : index
      %c0_19 = arith.constant 0 : index
      %c0_20 = arith.constant 0 : index
      %c0_21 = arith.constant 0 : index
      %33 = vector.load %arg8[%c0_18, %c0_19, %c0_20, %c0_21] : memref<1x1x2x128xf32, #tpu.memory_space<vmem>>, vector<1x1x2x128xf32>
      %34 = vector.shape_cast %33 : vector<1x1x2x128xf32> to vector<2x128xf32>
      %35 = vector.shape_cast %32 : vector<2x128xf32> to vector<1x1x2x128xf32>
      tpu.vector_store %arg8[%c0_18, %c0_19, %c0_20, %c0_21], %35 {strides = array<i32>} : memref<1x1x2x128xf32, #tpu.memory_space<vmem>>, vector<1x1x2x128xf32>,
      %36 = arith.truncf %16 : vector<32x128xf32> to vector<32x128xbf16>
      %c0_22 = arith.constant 0 : index
      %c0_23 = arith.constant 0 : index
      %c0_24 = arith.constant 0 : index
      %37 = vector.load %arg7[%c0_22, %c0_23, %c0_24] : memref<1x32x128xbf16, #tpu.memory_space<vmem>>, vector<1x32x128xbf16>
      %38 = vector.shape_cast %37 : vector<1x32x128xbf16> to vector<32x128xbf16>
      %39 = vector.shape_cast %36 : vector<32x128xbf16> to vector<1x32x128xbf16>
      tpu.vector_store %arg7[%c0_22, %c0_23, %c0_24], %39 {strides = array<i32>} : memref<1x32x128xbf16, #tpu.memory_space<vmem>>, vector<1x32x128xbf16>,
    } else {
    }
    return
  }
  func.func @transform_0(%arg0: i32, %arg1: i32, %arg2: i32, %arg3: i32) -> (i32, i32, i32) {
    %c0_i32 = arith.constant 0 : i32
    return %arg0, %arg2, %arg3 : i32, i32, i32
  }
  func.func @transform_1(%arg0: i32, %arg1: i32, %arg2: i32, %arg3: i32) -> (i32, i32) {
    %c0_i32 = arith.constant 0 : i32
    return %arg3, %arg1 : i32, i32
  }
  func.func @transform_2(%arg0: i32, %arg1: i32, %arg2: i32, %arg3: i32) -> (i32, i32) {
    %c0_i32 = arith.constant 0 : i32
    %c0_i32_0 = arith.constant 0 : i32
    return %c0_i32, %arg1 : i32, i32
  }
  func.func @transform_3(%arg0: i32, %arg1: i32, %arg2: i32, %arg3: i32) -> (i32, i32, i32) {
    %c0_i32 = arith.constant 0 : i32
    return %arg0, %arg2, %arg1 : i32, i32, i32
  }
  func.func @transform_4(%arg0: i32, %arg1: i32, %arg2: i32, %arg3: i32) -> (i32, i32, i32, i32) {
    %c0_i32 = arith.constant 0 : i32
    %c0_i32_0 = arith.constant 0 : i32
    return %arg0, %arg2, %c0_i32, %arg1 : i32, i32, i32, i32
  }
}

module attributes {stable_mosaic.version = 11 : i64} {
  func.func @_instnorm_lrelu_kernel(%arg0: i32, %arg1: i32, %arg2: memref<1x32x128xbf16, #tpu.memory_space<vmem>>, %arg3: memref<1x2x128xf32, #tpu.memory_space<vmem>>, %arg4: memref<1x32x128xbf16, #tpu.memory_space<vmem>>) attributes {dimension_semantics = [#tpu.dimension_semantics<parallel>, #tpu.dimension_semantics<parallel>], iteration_bounds = array<i64: 2, 1>, scalar_prefetch = 0 : i64, scratch_operands = 0 : i64, tpu.core_type = #tpu.core_type<tc>, window_params = [{transform_indices = @transform_0, window_bounds = array<i64: 1, 32, 128>}, {transform_indices = @transform_1, window_bounds = array<i64: 1, 2, 128>}, {transform_indices = @transform_2, window_bounds = array<i64: 1, 32, 128>}]} {
    %c0 = arith.constant 0 : index
    %c0_0 = arith.constant 0 : index
    %c0_1 = arith.constant 0 : index
    %0 = vector.load %arg2[%c0, %c0_0, %c0_1] : memref<1x32x128xbf16, #tpu.memory_space<vmem>>, vector<1x32x128xbf16>
    %1 = vector.shape_cast %0 : vector<1x32x128xbf16> to vector<32x128xbf16>
    %2 = arith.extf %1 : vector<32x128xbf16> to vector<32x128xf32>
    %c0_2 = arith.constant 0 : index
    %c0_3 = arith.constant 0 : index
    %c0_4 = arith.constant 0 : index
    %3 = vector.load %arg3[%c0_2, %c0_3, %c0_4] : memref<1x2x128xf32, #tpu.memory_space<vmem>>, vector<1x2x128xf32>
    %4 = vector.shape_cast %3 : vector<1x2x128xf32> to vector<2x128xf32>
    %5 = vector.extract_strided_slice %4 {offsets = [0, 0], sizes = [1, 128], strides = [1, 1]} : vector<2x128xf32> to vector<1x128xf32>
    %cst = arith.constant 4.000000e-02 : f32
    %6 = vector.broadcast %cst : f32 to vector<1x128xf32>
    %7 = arith.mulf %5, %6 : vector<1x128xf32>
    %8 = vector.extract_strided_slice %4 {offsets = [1, 0], sizes = [1, 128], strides = [1, 1]} : vector<2x128xf32> to vector<1x128xf32>
    %cst_5 = arith.constant 4.000000e-02 : f32
    %9 = vector.broadcast %cst_5 : f32 to vector<1x128xf32>
    %10 = arith.mulf %8, %9 : vector<1x128xf32>
    %11 = arith.mulf %7, %7 : vector<1x128xf32>
    %12 = arith.subf %10, %11 : vector<1x128xf32>
    %cst_6 = arith.constant 0.000000e+00 : f32
    %13 = vector.broadcast %cst_6 : f32 to vector<1x128xf32>
    %14 = arith.maximumf %12, %13 : vector<1x128xf32>
    %15 = vector.broadcast %7 : vector<1x128xf32> to vector<32x128xf32>
    %16 = arith.subf %2, %15 : vector<32x128xf32>
    %cst_7 = arith.constant 9.99999974E-6 : f32
    %17 = vector.broadcast %cst_7 : f32 to vector<1x128xf32>
    %18 = arith.addf %14, %17 : vector<1x128xf32>
    %19 = math.rsqrt %18 : vector<1x128xf32>
    %20 = vector.broadcast %19 : vector<1x128xf32> to vector<32x128xf32>
    %21 = arith.mulf %16, %20 : vector<32x128xf32>
    %cst_8 = arith.constant 0.000000e+00 : f32
    %22 = vector.broadcast %cst_8 : f32 to vector<32x128xf32>
    %23 = arith.cmpf ogt, %21, %22 : vector<32x128xf32>
    %cst_9 = arith.constant 2.000000e-01 : f32
    %24 = vector.broadcast %cst_9 : f32 to vector<32x128xf32>
    %25 = arith.mulf %24, %21 : vector<32x128xf32>
    %26 = arith.select %23, %21, %25 : vector<32x128xi1>, vector<32x128xf32>
    %27 = arith.truncf %26 : vector<32x128xf32> to vector<32x128xbf16>
    %c0_10 = arith.constant 0 : index
    %c0_11 = arith.constant 0 : index
    %c0_12 = arith.constant 0 : index
    %28 = vector.load %arg4[%c0_10, %c0_11, %c0_12] : memref<1x32x128xbf16, #tpu.memory_space<vmem>>, vector<1x32x128xbf16>
    %29 = vector.shape_cast %28 : vector<1x32x128xbf16> to vector<32x128xbf16>
    %30 = vector.shape_cast %27 : vector<32x128xbf16> to vector<1x32x128xbf16>
    tpu.vector_store %arg4[%c0_10, %c0_11, %c0_12], %30 {strides = array<i32>} : memref<1x32x128xbf16, #tpu.memory_space<vmem>>, vector<1x32x128xbf16>,
    return
  }
  func.func @transform_0(%arg0: i32, %arg1: i32) -> (i32, i32, i32) {
    %c0_i32 = arith.constant 0 : i32
    %c0_i32_0 = arith.constant 0 : i32
    return %arg0, %arg1, %c0_i32 : i32, i32, i32
  }
  func.func @transform_1(%arg0: i32, %arg1: i32) -> (i32, i32, i32) {
    %c0_i32 = arith.constant 0 : i32
    %c0_i32_0 = arith.constant 0 : i32
    %c0_i32_1 = arith.constant 0 : i32
    return %arg0, %c0_i32, %c0_i32_0 : i32, i32, i32
  }
  func.func @transform_2(%arg0: i32, %arg1: i32) -> (i32, i32, i32) {
    %c0_i32 = arith.constant 0 : i32
    %c0_i32_0 = arith.constant 0 : i32
    return %arg0, %arg1, %c0_i32 : i32, i32, i32
  }
}

module attributes {stable_mosaic.version = 11 : i64} {
  func.func @_conv_matmul_kernel(%arg0: i32, %arg1: i32, %arg2: i32, %arg3: i32, %arg4: memref<1x16x2048xbf16, #tpu.memory_space<vmem>>, %arg5: memref<2048x256xbf16, #tpu.memory_space<vmem>>, %arg6: memref<1x256xf32, #tpu.memory_space<vmem>>, %arg7: memref<1x16x256xbf16, #tpu.memory_space<vmem>>, %arg8: memref<1x1x2x256xf32, #tpu.memory_space<vmem>>, %arg9: memref<16x256xf32, #tpu.memory_space<vmem>>) attributes {dimension_semantics = [#tpu.dimension_semantics<parallel>, #tpu.dimension_semantics<parallel>, #tpu.dimension_semantics<parallel>, #tpu.dimension_semantics<arbitrary>], iteration_bounds = array<i64: 2, 1, 1, 1>, scalar_prefetch = 0 : i64, scratch_operands = 1 : i64, tpu.core_type = #tpu.core_type<tc>, window_params = [{transform_indices = @transform_0, window_bounds = array<i64: 1, 16, 2048>}, {transform_indices = @transform_1, window_bounds = array<i64: 2048, 256>}, {transform_indices = @transform_2, window_bounds = array<i64: 1, 256>}, {transform_indices = @transform_3, window_bounds = array<i64: 1, 16, 256>}, {transform_indices = @transform_4, window_bounds = array<i64: 1, 1, 2, 256>}]} {
    %c0_i32 = arith.constant 0 : i32
    %0 = arith.cmpi eq, %arg3, %c0_i32 : i32
    %1 = arith.extui %0 : i1 to i32
    %c0_i32_0 = arith.constant 0 : i32
    %2 = arith.cmpi ne, %1, %c0_i32_0 : i32
    scf.if %2 {
      %cst_11 = arith.constant 0.000000e+00 : f32
      %13 = vector.broadcast %cst_11 : f32 to vector<16x256xf32>
      %c0_12 = arith.constant 0 : index
      %c0_13 = arith.constant 0 : index
      %14 = vector.load %arg9[%c0_12, %c0_13] : memref<16x256xf32, #tpu.memory_space<vmem>>, vector<16x256xf32>
      tpu.vector_store %arg9[%c0_12, %c0_13], %13 {strides = array<i32>} : memref<16x256xf32, #tpu.memory_space<vmem>>, vector<16x256xf32>,
    } else {
    }
    %c0 = arith.constant 0 : index
    %c0_1 = arith.constant 0 : index
    %3 = vector.load %arg9[%c0, %c0_1] : memref<16x256xf32, #tpu.memory_space<vmem>>, vector<16x256xf32>
    %c0_2 = arith.constant 0 : index
    %c0_3 = arith.constant 0 : index
    %c0_4 = arith.constant 0 : index
    %4 = vector.load %arg4[%c0_2, %c0_3, %c0_4] : memref<1x16x2048xbf16, #tpu.memory_space<vmem>>, vector<1x16x2048xbf16>
    %5 = vector.shape_cast %4 : vector<1x16x2048xbf16> to vector<16x2048xbf16>
    %c0_5 = arith.constant 0 : index
    %c0_6 = arith.constant 0 : index
    %6 = vector.load %arg5[%c0_5, %c0_6] : memref<2048x256xbf16, #tpu.memory_space<vmem>>, vector<2048x256xbf16>
    %cst = arith.constant dense<0.000000e+00> : vector<16x256xf32>
    %7 = tpu.matmul %5, %6, %cst {dimension_numbers = #tpu.dot_dimension_numbers<[1], [0], [0], [1], [0, 0, 1, 1], [], []>} : vector<16x2048xbf16>, vector<2048x256xbf16>, vector<16x256xf32> -> vector<16x256xf32>
    %8 = arith.addf %3, %7 : vector<16x256xf32>
    %c0_7 = arith.constant 0 : index
    %c0_8 = arith.constant 0 : index
    %9 = vector.load %arg9[%c0_7, %c0_8] : memref<16x256xf32, #tpu.memory_space<vmem>>, vector<16x256xf32>
    tpu.vector_store %arg9[%c0_7, %c0_8], %8 {strides = array<i32>} : memref<16x256xf32, #tpu.memory_space<vmem>>, vector<16x256xf32>,
    %c0_i32_9 = arith.constant 0 : i32
    %10 = arith.cmpi eq, %arg3, %c0_i32_9 : i32
    %11 = arith.extui %10 : i1 to i32
    %c0_i32_10 = arith.constant 0 : i32
    %12 = arith.cmpi ne, %11, %c0_i32_10 : i32
    scf.if %12 {
      %c0_11 = arith.constant 0 : index
      %c0_12 = arith.constant 0 : index
      %13 = vector.load %arg9[%c0_11, %c0_12] : memref<16x256xf32, #tpu.memory_space<vmem>>, vector<16x256xf32>
      %c0_13 = arith.constant 0 : index
      %c0_14 = arith.constant 0 : index
      %14 = vector.load %arg6[%c0_13, %c0_14] : memref<1x256xf32, #tpu.memory_space<vmem>>, vector<1x256xf32>
      %15 = vector.broadcast %14 : vector<1x256xf32> to vector<16x256xf32>
      %16 = arith.addf %13, %15 : vector<16x256xf32>
      %17 = tpu.iota {dimensions = array<i32: 0>} : vector<16x1xi32>
      %c16_i32 = arith.constant 16 : i32
      %18 = arith.muli %arg2, %c16_i32 : i32
      %19 = vector.broadcast %18 : i32 to vector<16x1xi32>
      %20 = arith.addi %19, %17 : vector<16x1xi32>
      %c9_i32 = arith.constant 9 : i32
      %21 = vector.broadcast %c9_i32 : i32 to vector<16x1xi32>
      %22 = arith.cmpi slt, %20, %21 : vector<16x1xi32>
      %cst_15 = arith.constant 0.000000e+00 : f32
      %23 = vector.shape_cast %22 : vector<16x1xi1> to vector<16x1xi1>
      %24 = vector.broadcast %23 : vector<16x1xi1> to vector<16x256xi1>
      %25 = vector.broadcast %cst_15 : f32 to vector<16x256xf32>
      %26 = arith.select %24, %16, %25 : vector<16x256xi1>, vector<16x256xf32>
      %cst_16 = arith.constant dense<0.000000e+00> : vector<256xf32>
      %27 = vector.multi_reduction <add>, %26, %cst_16 [0] : vector<16x256xf32> to vector<256xf32>
      %28 = vector.shape_cast %27 : vector<256xf32> to vector<1x256xf32>
      %29 = arith.mulf %26, %26 : vector<16x256xf32>
      %cst_17 = arith.constant dense<0.000000e+00> : vector<256xf32>
      %30 = vector.multi_reduction <add>, %29, %cst_17 [0] : vector<16x256xf32> to vector<256xf32>
      %31 = vector.shape_cast %30 : vector<256xf32> to vector<1x256xf32>
      %32 = tpu.concatenate %28, %31 in 0 : vector<1x256xf32>, vector<1x256xf32> -> vector<2x256xf32>
      %c0_18 = arith.constant 0 : index
      %c0_19 = arith.constant 0 : index
      %c0_20 = arith.constant 0 : index
      %c0_21 = arith.constant 0 : index
      %33 = vector.load %arg8[%c0_18, %c0_19, %c0_20, %c0_21] : memref<1x1x2x256xf32, #tpu.memory_space<vmem>>, vector<1x1x2x256xf32>
      %34 = vector.shape_cast %33 : vector<1x1x2x256xf32> to vector<2x256xf32>
      %35 = vector.shape_cast %32 : vector<2x256xf32> to vector<1x1x2x256xf32>
      tpu.vector_store %arg8[%c0_18, %c0_19, %c0_20, %c0_21], %35 {strides = array<i32>} : memref<1x1x2x256xf32, #tpu.memory_space<vmem>>, vector<1x1x2x256xf32>,
      %36 = arith.truncf %16 : vector<16x256xf32> to vector<16x256xbf16>
      %c0_22 = arith.constant 0 : index
      %c0_23 = arith.constant 0 : index
      %c0_24 = arith.constant 0 : index
      %37 = vector.load %arg7[%c0_22, %c0_23, %c0_24] : memref<1x16x256xbf16, #tpu.memory_space<vmem>>, vector<1x16x256xbf16>
      %38 = vector.shape_cast %37 : vector<1x16x256xbf16> to vector<16x256xbf16>
      %39 = vector.shape_cast %36 : vector<16x256xbf16> to vector<1x16x256xbf16>
      tpu.vector_store %arg7[%c0_22, %c0_23, %c0_24], %39 {strides = array<i32>} : memref<1x16x256xbf16, #tpu.memory_space<vmem>>, vector<1x16x256xbf16>,
    } else {
    }
    return
  }
  func.func @transform_0(%arg0: i32, %arg1: i32, %arg2: i32, %arg3: i32) -> (i32, i32, i32) {
    %c0_i32 = arith.constant 0 : i32
    return %arg0, %arg2, %arg3 : i32, i32, i32
  }
  func.func @transform_1(%arg0: i32, %arg1: i32, %arg2: i32, %arg3: i32) -> (i32, i32) {
    %c0_i32 = arith.constant 0 : i32
    return %arg3, %arg1 : i32, i32
  }
  func.func @transform_2(%arg0: i32, %arg1: i32, %arg2: i32, %arg3: i32) -> (i32, i32) {
    %c0_i32 = arith.constant 0 : i32
    %c0_i32_0 = arith.constant 0 : i32
    return %c0_i32, %arg1 : i32, i32
  }
  func.func @transform_3(%arg0: i32, %arg1: i32, %arg2: i32, %arg3: i32) -> (i32, i32, i32) {
    %c0_i32 = arith.constant 0 : i32
    return %arg0, %arg2, %arg1 : i32, i32, i32
  }
  func.func @transform_4(%arg0: i32, %arg1: i32, %arg2: i32, %arg3: i32) -> (i32, i32, i32, i32) {
    %c0_i32 = arith.constant 0 : i32
    %c0_i32_0 = arith.constant 0 : i32
    return %arg0, %arg2, %c0_i32, %arg1 : i32, i32, i32, i32
  }
}

module attributes {stable_mosaic.version = 11 : i64} {
  func.func @_instnorm_lrelu_kernel(%arg0: i32, %arg1: i32, %arg2: memref<1x16x256xbf16, #tpu.memory_space<vmem>>, %arg3: memref<1x2x256xf32, #tpu.memory_space<vmem>>, %arg4: memref<1x16x256xbf16, #tpu.memory_space<vmem>>) attributes {dimension_semantics = [#tpu.dimension_semantics<parallel>, #tpu.dimension_semantics<parallel>], iteration_bounds = array<i64: 2, 1>, scalar_prefetch = 0 : i64, scratch_operands = 0 : i64, tpu.core_type = #tpu.core_type<tc>, window_params = [{transform_indices = @transform_0, window_bounds = array<i64: 1, 16, 256>}, {transform_indices = @transform_1, window_bounds = array<i64: 1, 2, 256>}, {transform_indices = @transform_2, window_bounds = array<i64: 1, 16, 256>}]} {
    %c0 = arith.constant 0 : index
    %c0_0 = arith.constant 0 : index
    %c0_1 = arith.constant 0 : index
    %0 = vector.load %arg2[%c0, %c0_0, %c0_1] : memref<1x16x256xbf16, #tpu.memory_space<vmem>>, vector<1x16x256xbf16>
    %1 = vector.shape_cast %0 : vector<1x16x256xbf16> to vector<16x256xbf16>
    %2 = arith.extf %1 : vector<16x256xbf16> to vector<16x256xf32>
    %c0_2 = arith.constant 0 : index
    %c0_3 = arith.constant 0 : index
    %c0_4 = arith.constant 0 : index
    %3 = vector.load %arg3[%c0_2, %c0_3, %c0_4] : memref<1x2x256xf32, #tpu.memory_space<vmem>>, vector<1x2x256xf32>
    %4 = vector.shape_cast %3 : vector<1x2x256xf32> to vector<2x256xf32>
    %5 = vector.extract_strided_slice %4 {offsets = [0, 0], sizes = [1, 256], strides = [1, 1]} : vector<2x256xf32> to vector<1x256xf32>
    %cst = arith.constant 0.111111112 : f32
    %6 = vector.broadcast %cst : f32 to vector<1x256xf32>
    %7 = arith.mulf %5, %6 : vector<1x256xf32>
    %8 = vector.extract_strided_slice %4 {offsets = [1, 0], sizes = [1, 256], strides = [1, 1]} : vector<2x256xf32> to vector<1x256xf32>
    %cst_5 = arith.constant 0.111111112 : f32
    %9 = vector.broadcast %cst_5 : f32 to vector<1x256xf32>
    %10 = arith.mulf %8, %9 : vector<1x256xf32>
    %11 = arith.mulf %7, %7 : vector<1x256xf32>
    %12 = arith.subf %10, %11 : vector<1x256xf32>
    %cst_6 = arith.constant 0.000000e+00 : f32
    %13 = vector.broadcast %cst_6 : f32 to vector<1x256xf32>
    %14 = arith.maximumf %12, %13 : vector<1x256xf32>
    %15 = vector.broadcast %7 : vector<1x256xf32> to vector<16x256xf32>
    %16 = arith.subf %2, %15 : vector<16x256xf32>
    %cst_7 = arith.constant 9.99999974E-6 : f32
    %17 = vector.broadcast %cst_7 : f32 to vector<1x256xf32>
    %18 = arith.addf %14, %17 : vector<1x256xf32>
    %19 = math.rsqrt %18 : vector<1x256xf32>
    %20 = vector.broadcast %19 : vector<1x256xf32> to vector<16x256xf32>
    %21 = arith.mulf %16, %20 : vector<16x256xf32>
    %cst_8 = arith.constant 0.000000e+00 : f32
    %22 = vector.broadcast %cst_8 : f32 to vector<16x256xf32>
    %23 = arith.cmpf ogt, %21, %22 : vector<16x256xf32>
    %cst_9 = arith.constant 2.000000e-01 : f32
    %24 = vector.broadcast %cst_9 : f32 to vector<16x256xf32>
    %25 = arith.mulf %24, %21 : vector<16x256xf32>
    %26 = arith.select %23, %21, %25 : vector<16x256xi1>, vector<16x256xf32>
    %27 = arith.truncf %26 : vector<16x256xf32> to vector<16x256xbf16>
    %c0_10 = arith.constant 0 : index
    %c0_11 = arith.constant 0 : index
    %c0_12 = arith.constant 0 : index
    %28 = vector.load %arg4[%c0_10, %c0_11, %c0_12] : memref<1x16x256xbf16, #tpu.memory_space<vmem>>, vector<1x16x256xbf16>
    %29 = vector.shape_cast %28 : vector<1x16x256xbf16> to vector<16x256xbf16>
    %30 = vector.shape_cast %27 : vector<16x256xbf16> to vector<1x16x256xbf16>
    tpu.vector_store %arg4[%c0_10, %c0_11, %c0_12], %30 {strides = array<i32>} : memref<1x16x256xbf16, #tpu.memory_space<vmem>>, vector<1x16x256xbf16>,
    return
  }
  func.func @transform_0(%arg0: i32, %arg1: i32) -> (i32, i32, i32) {
    %c0_i32 = arith.constant 0 : i32
    %c0_i32_0 = arith.constant 0 : i32
    return %arg0, %arg1, %c0_i32 : i32, i32, i32
  }
  func.func @transform_1(%arg0: i32, %arg1: i32) -> (i32, i32, i32) {
    %c0_i32 = arith.constant 0 : i32
    %c0_i32_0 = arith.constant 0 : i32
    %c0_i32_1 = arith.constant 0 : i32
    return %arg0, %c0_i32, %c0_i32_0 : i32, i32, i32
  }
  func.func @transform_2(%arg0: i32, %arg1: i32) -> (i32, i32, i32) {
    %c0_i32 = arith.constant 0 : i32
    %c0_i32_0 = arith.constant 0 : i32
    return %arg0, %arg1, %c0_i32 : i32, i32, i32
  }
}

module attributes {stable_mosaic.version = 11 : i64} {
  func.func @_conv_matmul_kernel(%arg0: i32, %arg1: i32, %arg2: i32, %arg3: i32, %arg4: memref<1x16x2048xbf16, #tpu.memory_space<vmem>>, %arg5: memref<2048x256xbf16, #tpu.memory_space<vmem>>, %arg6: memref<1x256xf32, #tpu.memory_space<vmem>>, %arg7: memref<1x16x256xbf16, #tpu.memory_space<vmem>>, %arg8: memref<1x1x2x256xf32, #tpu.memory_space<vmem>>, %arg9: memref<16x256xf32, #tpu.memory_space<vmem>>) attributes {dimension_semantics = [#tpu.dimension_semantics<parallel>, #tpu.dimension_semantics<parallel>, #tpu.dimension_semantics<parallel>, #tpu.dimension_semantics<arbitrary>], iteration_bounds = array<i64: 2, 2, 1, 2>, scalar_prefetch = 0 : i64, scratch_operands = 1 : i64, tpu.core_type = #tpu.core_type<tc>, window_params = [{transform_indices = @transform_0, window_bounds = array<i64: 1, 16, 2048>}, {transform_indices = @transform_1, window_bounds = array<i64: 2048, 256>}, {transform_indices = @transform_2, window_bounds = array<i64: 1, 256>}, {transform_indices = @transform_3, window_bounds = array<i64: 1, 16, 256>}, {transform_indices = @transform_4, window_bounds = array<i64: 1, 1, 2, 256>}]} {
    %c0_i32 = arith.constant 0 : i32
    %0 = arith.cmpi eq, %arg3, %c0_i32 : i32
    %1 = arith.extui %0 : i1 to i32
    %c0_i32_0 = arith.constant 0 : i32
    %2 = arith.cmpi ne, %1, %c0_i32_0 : i32
    scf.if %2 {
      %cst_10 = arith.constant 0.000000e+00 : f32
      %13 = vector.broadcast %cst_10 : f32 to vector<16x256xf32>
      %c0_11 = arith.constant 0 : index
      %c0_12 = arith.constant 0 : index
      %14 = vector.load %arg9[%c0_11, %c0_12] : memref<16x256xf32, #tpu.memory_space<vmem>>, vector<16x256xf32>
      tpu.vector_store %arg9[%c0_11, %c0_12], %13 {strides = array<i32>} : memref<16x256xf32, #tpu.memory_space<vmem>>, vector<16x256xf32>,
    } else {
    }
    %c0 = arith.constant 0 : index
    %c0_1 = arith.constant 0 : index
    %3 = vector.load %arg9[%c0, %c0_1] : memref<16x256xf32, #tpu.memory_space<vmem>>, vector<16x256xf32>
    %c0_2 = arith.constant 0 : index
    %c0_3 = arith.constant 0 : index
    %c0_4 = arith.constant 0 : index
    %4 = vector.load %arg4[%c0_2, %c0_3, %c0_4] : memref<1x16x2048xbf16, #tpu.memory_space<vmem>>, vector<1x16x2048xbf16>
    %5 = vector.shape_cast %4 : vector<1x16x2048xbf16> to vector<16x2048xbf16>
    %c0_5 = arith.constant 0 : index
    %c0_6 = arith.constant 0 : index
    %6 = vector.load %arg5[%c0_5, %c0_6] : memref<2048x256xbf16, #tpu.memory_space<vmem>>, vector<2048x256xbf16>
    %cst = arith.constant dense<0.000000e+00> : vector<16x256xf32>
    %7 = tpu.matmul %5, %6, %cst {dimension_numbers = #tpu.dot_dimension_numbers<[1], [0], [0], [1], [0, 0, 1, 1], [], []>} : vector<16x2048xbf16>, vector<2048x256xbf16>, vector<16x256xf32> -> vector<16x256xf32>
    %8 = arith.addf %3, %7 : vector<16x256xf32>
    %c0_7 = arith.constant 0 : index
    %c0_8 = arith.constant 0 : index
    %9 = vector.load %arg9[%c0_7, %c0_8] : memref<16x256xf32, #tpu.memory_space<vmem>>, vector<16x256xf32>
    tpu.vector_store %arg9[%c0_7, %c0_8], %8 {strides = array<i32>} : memref<16x256xf32, #tpu.memory_space<vmem>>, vector<16x256xf32>,
    %c1_i32 = arith.constant 1 : i32
    %10 = arith.cmpi eq, %arg3, %c1_i32 : i32
    %11 = arith.extui %10 : i1 to i32
    %c0_i32_9 = arith.constant 0 : i32
    %12 = arith.cmpi ne, %11, %c0_i32_9 : i32
    scf.if %12 {
      %c0_10 = arith.constant 0 : index
      %c0_11 = arith.constant 0 : index
      %13 = vector.load %arg9[%c0_10, %c0_11] : memref<16x256xf32, #tpu.memory_space<vmem>>, vector<16x256xf32>
      %c0_12 = arith.constant 0 : index
      %c0_13 = arith.constant 0 : index
      %14 = vector.load %arg6[%c0_12, %c0_13] : memref<1x256xf32, #tpu.memory_space<vmem>>, vector<1x256xf32>
      %15 = vector.broadcast %14 : vector<1x256xf32> to vector<16x256xf32>
      %16 = arith.addf %13, %15 : vector<16x256xf32>
      %17 = tpu.iota {dimensions = array<i32: 0>} : vector<16x1xi32>
      %c16_i32 = arith.constant 16 : i32
      %18 = arith.muli %arg2, %c16_i32 : i32
      %19 = vector.broadcast %18 : i32 to vector<16x1xi32>
      %20 = arith.addi %19, %17 : vector<16x1xi32>
      %c16_i32_14 = arith.constant 16 : i32
      %21 = vector.broadcast %c16_i32_14 : i32 to vector<16x1xi32>
      %22 = arith.cmpi slt, %20, %21 : vector<16x1xi32>
      %cst_15 = arith.constant 0.000000e+00 : f32
      %23 = vector.shape_cast %22 : vector<16x1xi1> to vector<16x1xi1>
      %24 = vector.broadcast %23 : vector<16x1xi1> to vector<16x256xi1>
      %25 = vector.broadcast %cst_15 : f32 to vector<16x256xf32>
      %26 = arith.select %24, %16, %25 : vector<16x256xi1>, vector<16x256xf32>
      %cst_16 = arith.constant dense<0.000000e+00> : vector<256xf32>
      %27 = vector.multi_reduction <add>, %26, %cst_16 [0] : vector<16x256xf32> to vector<256xf32>
      %28 = vector.shape_cast %27 : vector<256xf32> to vector<1x256xf32>
      %29 = arith.mulf %26, %26 : vector<16x256xf32>
      %cst_17 = arith.constant dense<0.000000e+00> : vector<256xf32>
      %30 = vector.multi_reduction <add>, %29, %cst_17 [0] : vector<16x256xf32> to vector<256xf32>
      %31 = vector.shape_cast %30 : vector<256xf32> to vector<1x256xf32>
      %32 = tpu.concatenate %28, %31 in 0 : vector<1x256xf32>, vector<1x256xf32> -> vector<2x256xf32>
      %c0_18 = arith.constant 0 : index
      %c0_19 = arith.constant 0 : index
      %c0_20 = arith.constant 0 : index
      %c0_21 = arith.constant 0 : index
      %33 = vector.load %arg8[%c0_18, %c0_19, %c0_20, %c0_21] : memref<1x1x2x256xf32, #tpu.memory_space<vmem>>, vector<1x1x2x256xf32>
      %34 = vector.shape_cast %33 : vector<1x1x2x256xf32> to vector<2x256xf32>
      %35 = vector.shape_cast %32 : vector<2x256xf32> to vector<1x1x2x256xf32>
      tpu.vector_store %arg8[%c0_18, %c0_19, %c0_20, %c0_21], %35 {strides = array<i32>} : memref<1x1x2x256xf32, #tpu.memory_space<vmem>>, vector<1x1x2x256xf32>,
      %36 = arith.truncf %16 : vector<16x256xf32> to vector<16x256xbf16>
      %c0_22 = arith.constant 0 : index
      %c0_23 = arith.constant 0 : index
      %c0_24 = arith.constant 0 : index
      %37 = vector.load %arg7[%c0_22, %c0_23, %c0_24] : memref<1x16x256xbf16, #tpu.memory_space<vmem>>, vector<1x16x256xbf16>
      %38 = vector.shape_cast %37 : vector<1x16x256xbf16> to vector<16x256xbf16>
      %39 = vector.shape_cast %36 : vector<16x256xbf16> to vector<1x16x256xbf16>
      tpu.vector_store %arg7[%c0_22, %c0_23, %c0_24], %39 {strides = array<i32>} : memref<1x16x256xbf16, #tpu.memory_space<vmem>>, vector<1x16x256xbf16>,
    } else {
    }
    return
  }
  func.func @transform_0(%arg0: i32, %arg1: i32, %arg2: i32, %arg3: i32) -> (i32, i32, i32) {
    %c0_i32 = arith.constant 0 : i32
    return %arg0, %arg2, %arg3 : i32, i32, i32
  }
  func.func @transform_1(%arg0: i32, %arg1: i32, %arg2: i32, %arg3: i32) -> (i32, i32) {
    %c0_i32 = arith.constant 0 : i32
    return %arg3, %arg1 : i32, i32
  }
  func.func @transform_2(%arg0: i32, %arg1: i32, %arg2: i32, %arg3: i32) -> (i32, i32) {
    %c0_i32 = arith.constant 0 : i32
    %c0_i32_0 = arith.constant 0 : i32
    return %c0_i32, %arg1 : i32, i32
  }
  func.func @transform_3(%arg0: i32, %arg1: i32, %arg2: i32, %arg3: i32) -> (i32, i32, i32) {
    %c0_i32 = arith.constant 0 : i32
    return %arg0, %arg2, %arg1 : i32, i32, i32
  }
  func.func @transform_4(%arg0: i32, %arg1: i32, %arg2: i32, %arg3: i32) -> (i32, i32, i32, i32) {
    %c0_i32 = arith.constant 0 : i32
    %c0_i32_0 = arith.constant 0 : i32
    return %arg0, %arg2, %c0_i32, %arg1 : i32, i32, i32, i32
  }
}

module attributes {stable_mosaic.version = 11 : i64} {
  func.func @_instnorm_lrelu_kernel(%arg0: i32, %arg1: i32, %arg2: memref<1x16x512xbf16, #tpu.memory_space<vmem>>, %arg3: memref<1x2x512xf32, #tpu.memory_space<vmem>>, %arg4: memref<1x16x512xbf16, #tpu.memory_space<vmem>>) attributes {dimension_semantics = [#tpu.dimension_semantics<parallel>, #tpu.dimension_semantics<parallel>], iteration_bounds = array<i64: 2, 1>, scalar_prefetch = 0 : i64, scratch_operands = 0 : i64, tpu.core_type = #tpu.core_type<tc>, window_params = [{transform_indices = @transform_0, window_bounds = array<i64: 1, 16, 512>}, {transform_indices = @transform_1, window_bounds = array<i64: 1, 2, 512>}, {transform_indices = @transform_2, window_bounds = array<i64: 1, 16, 512>}]} {
    %c0 = arith.constant 0 : index
    %c0_0 = arith.constant 0 : index
    %c0_1 = arith.constant 0 : index
    %0 = vector.load %arg2[%c0, %c0_0, %c0_1] : memref<1x16x512xbf16, #tpu.memory_space<vmem>>, vector<1x16x512xbf16>
    %1 = vector.shape_cast %0 : vector<1x16x512xbf16> to vector<16x512xbf16>
    %2 = arith.extf %1 : vector<16x512xbf16> to vector<16x512xf32>
    %c0_2 = arith.constant 0 : index
    %c0_3 = arith.constant 0 : index
    %c0_4 = arith.constant 0 : index
    %3 = vector.load %arg3[%c0_2, %c0_3, %c0_4] : memref<1x2x512xf32, #tpu.memory_space<vmem>>, vector<1x2x512xf32>
    %4 = vector.shape_cast %3 : vector<1x2x512xf32> to vector<2x512xf32>
    %5 = vector.extract_strided_slice %4 {offsets = [0, 0], sizes = [1, 512], strides = [1, 1]} : vector<2x512xf32> to vector<1x512xf32>
    %cst = arith.constant 6.250000e-02 : f32
    %6 = vector.broadcast %cst : f32 to vector<1x512xf32>
    %7 = arith.mulf %5, %6 : vector<1x512xf32>
    %8 = vector.extract_strided_slice %4 {offsets = [1, 0], sizes = [1, 512], strides = [1, 1]} : vector<2x512xf32> to vector<1x512xf32>
    %cst_5 = arith.constant 6.250000e-02 : f32
    %9 = vector.broadcast %cst_5 : f32 to vector<1x512xf32>
    %10 = arith.mulf %8, %9 : vector<1x512xf32>
    %11 = arith.mulf %7, %7 : vector<1x512xf32>
    %12 = arith.subf %10, %11 : vector<1x512xf32>
    %cst_6 = arith.constant 0.000000e+00 : f32
    %13 = vector.broadcast %cst_6 : f32 to vector<1x512xf32>
    %14 = arith.maximumf %12, %13 : vector<1x512xf32>
    %15 = vector.broadcast %7 : vector<1x512xf32> to vector<16x512xf32>
    %16 = arith.subf %2, %15 : vector<16x512xf32>
    %cst_7 = arith.constant 9.99999974E-6 : f32
    %17 = vector.broadcast %cst_7 : f32 to vector<1x512xf32>
    %18 = arith.addf %14, %17 : vector<1x512xf32>
    %19 = math.rsqrt %18 : vector<1x512xf32>
    %20 = vector.broadcast %19 : vector<1x512xf32> to vector<16x512xf32>
    %21 = arith.mulf %16, %20 : vector<16x512xf32>
    %cst_8 = arith.constant 0.000000e+00 : f32
    %22 = vector.broadcast %cst_8 : f32 to vector<16x512xf32>
    %23 = arith.cmpf ogt, %21, %22 : vector<16x512xf32>
    %cst_9 = arith.constant 2.000000e-01 : f32
    %24 = vector.broadcast %cst_9 : f32 to vector<16x512xf32>
    %25 = arith.mulf %24, %21 : vector<16x512xf32>
    %26 = arith.select %23, %21, %25 : vector<16x512xi1>, vector<16x512xf32>
    %27 = arith.truncf %26 : vector<16x512xf32> to vector<16x512xbf16>
    %c0_10 = arith.constant 0 : index
    %c0_11 = arith.constant 0 : index
    %c0_12 = arith.constant 0 : index
    %28 = vector.load %arg4[%c0_10, %c0_11, %c0_12] : memref<1x16x512xbf16, #tpu.memory_space<vmem>>, vector<1x16x512xbf16>
    %29 = vector.shape_cast %28 : vector<1x16x512xbf16> to vector<16x512xbf16>
    %30 = vector.shape_cast %27 : vector<16x512xbf16> to vector<1x16x512xbf16>
    tpu.vector_store %arg4[%c0_10, %c0_11, %c0_12], %30 {strides = array<i32>} : memref<1x16x512xbf16, #tpu.memory_space<vmem>>, vector<1x16x512xbf16>,
    return
  }
  func.func @transform_0(%arg0: i32, %arg1: i32) -> (i32, i32, i32) {
    %c0_i32 = arith.constant 0 : i32
    %c0_i32_0 = arith.constant 0 : i32
    return %arg0, %arg1, %c0_i32 : i32, i32, i32
  }
  func.func @transform_1(%arg0: i32, %arg1: i32) -> (i32, i32, i32) {
    %c0_i32 = arith.constant 0 : i32
    %c0_i32_0 = arith.constant 0 : i32
    %c0_i32_1 = arith.constant 0 : i32
    return %arg0, %c0_i32, %c0_i32_0 : i32, i32, i32
  }
  func.func @transform_2(%arg0: i32, %arg1: i32) -> (i32, i32, i32) {
    %c0_i32 = arith.constant 0 : i32
    %c0_i32_0 = arith.constant 0 : i32
    return %arg0, %arg1, %c0_i32 : i32, i32, i32
  }
}

module attributes {stable_mosaic.version = 11 : i64} {
  func.func @_conv_matmul_kernel(%arg0: i32, %arg1: i32, %arg2: i32, %arg3: i32, %arg4: memref<1x32x2048xbf16, #tpu.memory_space<vmem>>, %arg5: memref<2048x128xbf16, #tpu.memory_space<vmem>>, %arg6: memref<1x128xf32, #tpu.memory_space<vmem>>, %arg7: memref<1x32x128xf32, #tpu.memory_space<vmem>>, %arg8: memref<1x1x2x128xf32, #tpu.memory_space<vmem>>, %arg9: memref<32x128xf32, #tpu.memory_space<vmem>>) attributes {dimension_semantics = [#tpu.dimension_semantics<parallel>, #tpu.dimension_semantics<parallel>, #tpu.dimension_semantics<parallel>, #tpu.dimension_semantics<arbitrary>], iteration_bounds = array<i64: 2, 1, 1, 4>, scalar_prefetch = 0 : i64, scratch_operands = 1 : i64, tpu.core_type = #tpu.core_type<tc>, window_params = [{transform_indices = @transform_0, window_bounds = array<i64: 1, 32, 2048>}, {transform_indices = @transform_1, window_bounds = array<i64: 2048, 128>}, {transform_indices = @transform_2, window_bounds = array<i64: 1, 128>}, {transform_indices = @transform_3, window_bounds = array<i64: 1, 32, 128>}, {transform_indices = @transform_4, window_bounds = array<i64: 1, 1, 2, 128>}]} {
    %c0_i32 = arith.constant 0 : i32
    %0 = arith.cmpi eq, %arg3, %c0_i32 : i32
    %1 = arith.extui %0 : i1 to i32
    %c0_i32_0 = arith.constant 0 : i32
    %2 = arith.cmpi ne, %1, %c0_i32_0 : i32
    scf.if %2 {
      %cst_10 = arith.constant 0.000000e+00 : f32
      %13 = vector.broadcast %cst_10 : f32 to vector<32x128xf32>
      %c0_11 = arith.constant 0 : index
      %c0_12 = arith.constant 0 : index
      %14 = vector.load %arg9[%c0_11, %c0_12] : memref<32x128xf32, #tpu.memory_space<vmem>>, vector<32x128xf32>
      tpu.vector_store %arg9[%c0_11, %c0_12], %13 {strides = array<i32>} : memref<32x128xf32, #tpu.memory_space<vmem>>, vector<32x128xf32>,
    } else {
    }
    %c0 = arith.constant 0 : index
    %c0_1 = arith.constant 0 : index
    %3 = vector.load %arg9[%c0, %c0_1] : memref<32x128xf32, #tpu.memory_space<vmem>>, vector<32x128xf32>
    %c0_2 = arith.constant 0 : index
    %c0_3 = arith.constant 0 : index
    %c0_4 = arith.constant 0 : index
    %4 = vector.load %arg4[%c0_2, %c0_3, %c0_4] : memref<1x32x2048xbf16, #tpu.memory_space<vmem>>, vector<1x32x2048xbf16>
    %5 = vector.shape_cast %4 : vector<1x32x2048xbf16> to vector<32x2048xbf16>
    %c0_5 = arith.constant 0 : index
    %c0_6 = arith.constant 0 : index
    %6 = vector.load %arg5[%c0_5, %c0_6] : memref<2048x128xbf16, #tpu.memory_space<vmem>>, vector<2048x128xbf16>
    %cst = arith.constant dense<0.000000e+00> : vector<32x128xf32>
    %7 = tpu.matmul %5, %6, %cst {dimension_numbers = #tpu.dot_dimension_numbers<[1], [0], [0], [1], [0, 0, 1, 1], [], []>} : vector<32x2048xbf16>, vector<2048x128xbf16>, vector<32x128xf32> -> vector<32x128xf32>
    %8 = arith.addf %3, %7 : vector<32x128xf32>
    %c0_7 = arith.constant 0 : index
    %c0_8 = arith.constant 0 : index
    %9 = vector.load %arg9[%c0_7, %c0_8] : memref<32x128xf32, #tpu.memory_space<vmem>>, vector<32x128xf32>
    tpu.vector_store %arg9[%c0_7, %c0_8], %8 {strides = array<i32>} : memref<32x128xf32, #tpu.memory_space<vmem>>, vector<32x128xf32>,
    %c3_i32 = arith.constant 3 : i32
    %10 = arith.cmpi eq, %arg3, %c3_i32 : i32
    %11 = arith.extui %10 : i1 to i32
    %c0_i32_9 = arith.constant 0 : i32
    %12 = arith.cmpi ne, %11, %c0_i32_9 : i32
    scf.if %12 {
      %c0_10 = arith.constant 0 : index
      %c0_11 = arith.constant 0 : index
      %13 = vector.load %arg9[%c0_10, %c0_11] : memref<32x128xf32, #tpu.memory_space<vmem>>, vector<32x128xf32>
      %c0_12 = arith.constant 0 : index
      %c0_13 = arith.constant 0 : index
      %14 = vector.load %arg6[%c0_12, %c0_13] : memref<1x128xf32, #tpu.memory_space<vmem>>, vector<1x128xf32>
      %15 = vector.broadcast %14 : vector<1x128xf32> to vector<32x128xf32>
      %16 = arith.addf %13, %15 : vector<32x128xf32>
      %17 = tpu.iota {dimensions = array<i32: 0>} : vector<32x1xi32>
      %c32_i32 = arith.constant 32 : i32
      %18 = arith.muli %arg2, %c32_i32 : i32
      %19 = vector.broadcast %18 : i32 to vector<32x1xi32>
      %20 = arith.addi %19, %17 : vector<32x1xi32>
      %c25_i32 = arith.constant 25 : i32
      %21 = vector.broadcast %c25_i32 : i32 to vector<32x1xi32>
      %22 = arith.cmpi slt, %20, %21 : vector<32x1xi32>
      %cst_14 = arith.constant 0.000000e+00 : f32
      %23 = vector.shape_cast %22 : vector<32x1xi1> to vector<32x1xi1>
      %24 = vector.broadcast %23 : vector<32x1xi1> to vector<32x128xi1>
      %25 = vector.broadcast %cst_14 : f32 to vector<32x128xf32>
      %26 = arith.select %24, %16, %25 : vector<32x128xi1>, vector<32x128xf32>
      %cst_15 = arith.constant dense<0.000000e+00> : vector<128xf32>
      %27 = vector.multi_reduction <add>, %26, %cst_15 [0] : vector<32x128xf32> to vector<128xf32>
      %28 = vector.shape_cast %27 : vector<128xf32> to vector<1x128xf32>
      %29 = arith.mulf %26, %26 : vector<32x128xf32>
      %cst_16 = arith.constant dense<0.000000e+00> : vector<128xf32>
      %30 = vector.multi_reduction <add>, %29, %cst_16 [0] : vector<32x128xf32> to vector<128xf32>
      %31 = vector.shape_cast %30 : vector<128xf32> to vector<1x128xf32>
      %32 = tpu.concatenate %28, %31 in 0 : vector<1x128xf32>, vector<1x128xf32> -> vector<2x128xf32>
      %c0_17 = arith.constant 0 : index
      %c0_18 = arith.constant 0 : index
      %c0_19 = arith.constant 0 : index
      %c0_20 = arith.constant 0 : index
      %33 = vector.load %arg8[%c0_17, %c0_18, %c0_19, %c0_20] : memref<1x1x2x128xf32, #tpu.memory_space<vmem>>, vector<1x1x2x128xf32>
      %34 = vector.shape_cast %33 : vector<1x1x2x128xf32> to vector<2x128xf32>
      %35 = vector.shape_cast %32 : vector<2x128xf32> to vector<1x1x2x128xf32>
      tpu.vector_store %arg8[%c0_17, %c0_18, %c0_19, %c0_20], %35 {strides = array<i32>} : memref<1x1x2x128xf32, #tpu.memory_space<vmem>>, vector<1x1x2x128xf32>,
      %c0_21 = arith.constant 0 : index
      %c0_22 = arith.constant 0 : index
      %c0_23 = arith.constant 0 : index
      %36 = vector.load %arg7[%c0_21, %c0_22, %c0_23] : memref<1x32x128xf32, #tpu.memory_space<vmem>>, vector<1x32x128xf32>
      %37 = vector.shape_cast %36 : vector<1x32x128xf32> to vector<32x128xf32>
      %38 = vector.shape_cast %16 : vector<32x128xf32> to vector<1x32x128xf32>
      tpu.vector_store %arg7[%c0_21, %c0_22, %c0_23], %38 {strides = array<i32>} : memref<1x32x128xf32, #tpu.memory_space<vmem>>, vector<1x32x128xf32>,
    } else {
    }
    return
  }
  func.func @transform_0(%arg0: i32, %arg1: i32, %arg2: i32, %arg3: i32) -> (i32, i32, i32) {
    %c0_i32 = arith.constant 0 : i32
    return %arg0, %arg2, %arg3 : i32, i32, i32
  }
  func.func @transform_1(%arg0: i32, %arg1: i32, %arg2: i32, %arg3: i32) -> (i32, i32) {
    %c0_i32 = arith.constant 0 : i32
    return %arg3, %arg1 : i32, i32
  }
  func.func @transform_2(%arg0: i32, %arg1: i32, %arg2: i32, %arg3: i32) -> (i32, i32) {
    %c0_i32 = arith.constant 0 : i32
    %c0_i32_0 = arith.constant 0 : i32
    return %c0_i32, %arg1 : i32, i32
  }
  func.func @transform_3(%arg0: i32, %arg1: i32, %arg2: i32, %arg3: i32) -> (i32, i32, i32) {
    %c0_i32 = arith.constant 0 : i32
    return %arg0, %arg2, %arg1 : i32, i32, i32
  }
  func.func @transform_4(%arg0: i32, %arg1: i32, %arg2: i32, %arg3: i32) -> (i32, i32, i32, i32) {
    %c0_i32 = arith.constant 0 : i32
    %c0_i32_0 = arith.constant 0 : i32
    return %arg0, %arg2, %c0_i32, %arg1 : i32, i32, i32, i32
  }
}

</mosaic_0001>

<bundles_post_ra>
// kernel: _lambda_.8
= control target key start
LH: loop header
LB: loop body
LE: loop exit
PB: predicated region body
PF: predicated region fallthrough
CT: control target
= control target key end

     0   :  { %10 = vsyncpa [#allocation4], 0  ;;  %s1557_s0 = inlined_call_operand.vmem [shape: bf16[2,88,64], index: 0, kind: input, shape index: {}]   ;;  %s1558_s1 = inlined_call_operand.hbm [shape: bf16[64,128], index: 1, kind: input, shape index: {}]   ;;  %s1559_s2 = inlined_call_operand.hbm [shape: f32[1,128], index: 2, kind: input, shape index: {}]   ;;  %s1560_s3 = inlined_call_operand.vmem [shape: bf16[2,88,128], index: 3, kind: output, shape index: {0}]   ;;  %s1561_s4 = inlined_call_operand.hbm [shape: f32[2,1,2,128], index: 4, kind: output, shape index: {1}]  }
   0x1   :  { %11 = vsyncpa [#allocation7], 0 }
   0x2   :  { %12 = vsyncpa [#allocation5], 0 }
   0x3   :  { %14 = vsyncpa [#allocation5 + $0x1], 0  ;;  %s1354_s15 = smov 0   ;;  %s1356_s16 = smov 0  }
   0x4   :  { %s1358_s17 = smov 0   ;;  %s1360_s18 = smov 0  }
   0x5   :  { %s1362_s19 = smov 0   ;;  %s1364_s20 = smov 0  }
   0x6 LB: > { %s975_s21 = sadd.s32 4294967295, %s1322_s20   ;;  %s976_s22 = sadd.s32 4294967294, %s1322_s20   ;;  %s1322_s20 = sphi %s1364_s20, %s20_s20   ;;  %s1318_s19 = sphi %s1362_s19, %s1572_s19   ;;  %s1314_s18 = sphi %s1360_s18, %s1571_s18   ;;  %s1310_s17 = sphi %s1358_s17, %s1570_s17   ;;  %s1306_s16 = sphi %s1356_s16, %s1569_s16   ;;  %s1302_s15 = sphi %s1354_s15, %s1568_s15  }
   0x7   : > { %s46_s23 = sadd.s32 1, %s1318_s19  ;;  %s171_s24 = sadd.s32 1, %s1310_s17 }
   0x8   : > { %p48_p0 = scmp.ge.s32.totalorder %s46_s23, 2  ;;  %p181_p1 = scmp.ne.s32.totalorder %s1310_s17, %s1306_s16 }
   0x9   : > { %p182_p2 = scmp.eq.s32.totalorder %s975_s21, 1  ;;  %p187_p3 = scmp.ne.s32.totalorder %s1306_s16, %s1302_s15 }
   0xa   : > { %s1574_s23 = smov (%p48_p0, %s46_s23), 0  ;;  %p188_p5 = scmp.eq.s32.totalorder %s976_s22, 1 }
   0xb   : > { %p1394_p4 = por %p182_p2, %p181_p1  ;;  %s164_s26 = ssub.s32 %s1318_s19, %s1574_s23 }
   0xc   : > { %p977_p6 = scmp.ge.s32.totalorder %s1322_s20, 1  ;;  %p169_p7 = scmp.eq.s32.totalorder %s164_s26, 0 }
   0xd   : > { %p1401_p8 = por %p188_p5, %p187_p3  ;;  %p195_p9 = scmp.lt.s32.totalorder %s1322_s20, 3 }
   0xe   : > { %s1407_s28 = scalar_select %p169_p7, %s1310_s17, %s171_s24  }
   0xf   : > { %s1563_s27 = scalar_select %p1401_p8, 1, 0 }
  0x10   : > { %p1409_p10 = pnand %p977_p6, %p195_p9  ;;  %p1413_p11 = scmp.eq.s32.totalorder %s975_s21, 0 }
  0x11   : > { %s1324_s5 = smov [#allocation3]   ;;  %s1325_s8 = smov [#allocation6]  }
  0x12   : > { %p1108_p12 = pneg %p1409_p10  ;;  %s211_s6 = sshll.u32 %s1324_s5, 4  ;;  %s212_s6 = int_to_ptr.vmem [resolvable:$true] %s211_s6 }
  0x13   : > { %s227_s9 = sshll.u32 %s1325_s8, 4  ;;  %s1197_s10 = scalar_lea.vmem %s212_s6, 512  ;;  %s228_s9 = int_to_ptr.vmem [resolvable:$true] %s227_s9 }
  0x14   : > { %p1421_p13 = pnand %p1413_p11, %p1108_p12  ;;  %p1198_p1 = scmp.ne.s32.totalorder %s212_s6, %s1197_s10 }
  0x15   : > { %p1205_p5 = scmp.lt.s32.totalorder %s212_s6, %s212_s6  ;;  %p1206_p6 = scmp.lt.s32.totalorder %s1197_s10, %s1197_s10 }
  0x16   : > { %p1188_p0 = pneg %p1421_p13 }
  0x17   : > { %p1207_p7 = por %p1206_p6, %p1205_p5 }
  0x18   : > { %p1200_p2 = pnand %p1198_p1, %p1188_p0 }
  0x1a   : > { %p1201_p3 = pneg %p1200_p2 }
  0x1c   : > { %p1208_p9 = pnand %p1207_p7, %p1201_p3 }
  0x1e   : > { %1211 = shalt.err (!%p1208_p9)
}
  0x1f   : > { %s1326_s11 = smov 64   ;;  %s1327_s12 = smov 4  }
  0x20   : > { %1111 = dma.hbm_to_vmem [thread:$0]  (!%p1421_p13), %s1558_s1, 512, %s212_s6, [#allocation4], %s1326_s11, %s1326_s11, %s1327_s12  }
  0x21   : > { %s1223_s21 = scalar_lea.vmem %s228_s9, 16  ;;  %s1230_s22 = scalar_lea.vmem %s228_s9, 32 }
  0x22   : > { %p1224_p12 = scmp.ne.s32.totalorder %s228_s9, %s1223_s21  ;;  %p1231_p8 = scmp.lt.s32.totalorder %s228_s9, %s228_s9 }
  0x23   : > { %p1232_p5 = scmp.lt.s32.totalorder %s1230_s22, %s1223_s21 }
  0x24   : > { %p1226_p1 = pnand %p1224_p12, %p1188_p0 }
  0x25   : > { %p1233_p3 = por %p1232_p5, %p1231_p8 }
  0x26   : > { %p1227_p2 = pneg %p1226_p1 }
  0x28   : > { %p1234_p6 = pnand %p1233_p3, %p1227_p2 }
  0x2a   : > { %1237 = shalt.err (!%p1234_p6)
}
  0x2b   : > { %1114 = dma.hbm_to_vmem [thread:$0]  (!%p1421_p13), %s1559_s2, 16, %s228_s9, [#allocation7]  }
  0x2c   : > { %256 = sbr.rel (%p1409_p10) target bundleno = 319 (0x13f), region = 32 }
  0x31   : > { %1289 = dma.done.wait (%p1413_p11), [#allocation4], 512  }
  0x32   : > { %1291 = vsyncadd (%p1413_p11), [#allocation4], 4294966784 }
  0x33   : > { %1293 = dma.done.wait (%p1413_p11), [#allocation7], 16  }
  0x34   : > { %1295 = vsyncadd (%p1413_p11), [#allocation7], 4294967280  ;;  %p306_p8 = scmp.lt.s32.totalorder %s1314_s18, 1  ;;  %v1176_v0 = vld [vmem:[#allocation3 + $0x18] sm:$0xff]   ;;  %v1177_v1 = vld [vmem:[#allocation3 + $0x10] sm:$0xff]   ;;  %vm430_vm0 = vcmask 523264   ;;  %v583_v17 = vlaneseq }
  0x35   : > { %1069 = vmatprep.subr.bf16.mxu0 %v1176_v0  ;;  %1089 = vmatprep.subr.bf16.mxu1 %v1176_v0  ;;  %v1178_v2 = vld [vmem:[#allocation3 + $0x8] sm:$0xff]   ;;  %v1179_v5 = vld [vmem:[#allocation3] sm:$0xff]   ;;  %s302_s11 = sand.u32 1, %s1306_s16   ;;  %s1016_s13 = sshll.u32 %s1314_s18, 5  ;;  %vm695_vm13 = vcmask 1040384  }
  0x36   : > { %s1455_s5 = scalar_select %p306_p8, %s1314_s18, 1  ;;  %1070 = vmatpush3.bf16.msra.mxu0 %v1176_v0  ;;  %1093 = vmatpush3.bf16.msra.mxu1 %v1176_v0  ;;  %v1469_v10 = vld [vmem:[#allocation6] ss:$0 sm:$0xff]  ;;  %v584_v29 = vshrl.u32 %v583_v17, 7 }
  0x37   : > { %1071 = vmatprep.subr.bf16.mxu0 %v1177_v1  ;;  %1090 = vmatprep.subr.bf16.mxu1 %v1177_v1  ;;  %s984_s12 = sshll.u32 %s302_s11, 1  ;;  %s1517_s26 = scalar_lea.hbm %s1561_s4, %s1016_s13 }
  0x38   : > { %s1097_s29 = smul.u32 44, %s1455_s5  ;;  %s304_s14 = scalar_lea.vmem [#allocation8], %s984_s12 }
  0x39   : > { %s819_s21 = sshll.u32 %s304_s14, 4  ;;  %s800_s5 = scalar_lea.sflag [#allocation5], %s302_s11  ;;  %s820_s21 = int_to_ptr.vmem [resolvable:$true] %s819_s21 }
  0x3a   : > { %s316_s8 = scalar_lea.vmem %s1557_s0, %s1097_s29  ;;  %1072 = vmatpush3.bf16.msra.mxu0 %v1177_v1  ;;  %1094 = vmatpush3.bf16.msra.mxu1 %v1177_v1  ;;  %s1492_s10 = scalar_lea.vmem %s1560_s3, %s1097_s29 }
  0x3b   : > { %v1180_v3 = vld [vmem:[%s316_s8] sm:$0xff]   ;;  %v1181_v4 = vld [vmem:[%s316_s8 + $0x10] sm:$0xff]   ;;  %1073 = vmatprep.subr.bf16.mxu0 %v1178_v2  ;;  %1091 = vmatprep.subr.bf16.mxu1 %v1178_v2  ;;  %v1182_v6 = vld [vmem:[%s316_s8 + $0x8] sm:$0xff]   ;;  %s1238_s29 = scalar_lea.vmem %s820_s21, 32  ;;  %s1328_s18 = smov [#allocation8]  }
  0x3c   : > { %1077 = vmatprep.mubr.msk.bf16.mxu0 %vm430_vm0, %v1180_v3  ;;  %1081 = vmatprep.mubr.msk.bf16.mxu1 %vm430_vm0, %v1181_v4  ;;  %v1183_v7 = vld [vmem:[%s316_s8 + $0x18] sm:$0xff]   ;;  %v1184_v8 = vld [vmem:[%s316_s8 + $0x20] sm:$0xff]   ;;  %v1185_v9 = vld [vmem:[%s316_s8 + $0x28] ss:$0 sps:$4 sm:$0xff]   ;;  %p1239_p10 = scmp.ne.s32.totalorder %s820_s21, %s1238_s29  ;;  %s1242_s6 = sshll.u32 %s1328_s18, 4  ;;  %s1243_s6 = int_to_ptr.vmem [resolvable:$false] %s1242_s6 }
  0x3d   : > { %s1244_s7 = scalar_lea.vmem %s1243_s6, 64  ;;  %p1245_p0 = scmp.lt.s32.totalorder %s820_s21, %s1243_s6 }
  0x3e   : > { %1074 = vmatpush3.bf16.msra.mxu0 %v1178_v2  ;;  %1095 = vmatpush3.bf16.msra.mxu1 %v1178_v2  ;;  %p1240_p11 = pnand %p1239_p10, %p1394_p4  ;;  %p1246_p7 = scmp.lt.s32.totalorder %s1244_s7, %s1238_s29 }
  0x3f   : > { %1075 = vmatprep.subr.bf16.mxu0 %v1179_v5  ;;  %1092 = vmatprep.subr.bf16.mxu1 %v1179_v5 }
  0x40   : > { %p1241_p13 = pneg %p1240_p11  ;;  %p1247_p9 = por %p1246_p7, %p1245_p0 }
  0x42   : > { %1076 = vmatpush3.bf16.msra.mxu0 %v1179_v5  ;;  %1096 = vmatpush3.bf16.msra.mxu1 %v1179_v5  ;;  %p1248_p12 = pnand %p1247_p9, %p1241_p13 }
  0x45   : > { %1078 = vmatmul.mubr.msk.bf16.vlgmr.msra.gmra.mxu0 %vm430_vm0, %v1182_v6  ;;  %1082 = vmatmul.mubr.msk.bf16.vlgmr.msra.gmra.mxu1 %vm430_vm0, %v1183_v7  ;;  %v594_v7 = vadd.s32 80, %v584_v29 }
  0x46   : > { %1085 = vmatprep.mubr.msk.bf16.mxu1 %vm430_vm0, %v1184_v8 }
  0x47   : > { %vm618_vm12 = vcmp.lt.s32.totalorder %v594_v7, 81 }
  0x4d   : > { %1086 = vmatmul.mubr.msk.bf16.gmra.mxu1 %vm430_vm0, %v1185_v9 }
 0x105   : > { %v1079_v11 = vpop.f32.mrf.mxu0  ;;  %v1083_v12 = vpop.f32.mrf.mxu1 }
 0x106   : > { %v574_v13 = vadd.f32 %v1079_v11, %v1469_v10  ;;  %v1473_v14 = vadd.f32 %v1083_v12, %v1469_v10 }
 0x107   : > { %v483_v15 = vpop.f32.mrf.mxu0  ;;  %v499_v16 = vpop.f32.mrf.mxu1 }
 0x108   : > { %vm700_vm1 = vcmp.gt.f32.partialorder %v574_v13, 0.0  ;;  %v711_v18 = vmul.f32 0.2, %v574_v13  ;;  %vm704_vm2 = vcmp.gt.f32.partialorder %v1473_v14, 0.0  ;;  %v715_v19 = vmul.f32 0.2, %v1473_v14 }
 0x109   : > { %v572_v20 = vadd.f32 %v1469_v10, %v483_v15  ;;  %v576_v21 = vadd.f32 %v1469_v10, %v499_v16  ;;  %v1080_v22 = vpop.f32.mrf.mxu0  ;;  %v1084_v23 = vpop.f32.mrf.mxu1  ;;  %v670_v26 = vmul.f32 %v574_v13, %v574_v13  ;;  %v674_v16 = vmul.f32 %v1473_v14, %v1473_v14 }
 0x10a   : > { %v575_v24 = vadd.f32 %v1080_v22, %v1469_v10  ;;  %v1481_v25 = vadd.f32 %v1084_v23, %v1469_v10  ;;  %v722_v30 = vsel %vm700_vm1, %v574_v13, %v711_v18  ;;  %v726_v31 = vsel %vm704_vm2, %v1473_v14, %v715_v19 }
 0x10b   : > { %v486_v27 = vpop.f32.mrf.mxu0  ;;  %v502_v28 = vpop.f32.mrf.mxu1  ;;  %v668_v32 = vmul.f32 %v572_v20, %v572_v20  ;;  %v709_v33 = vmul.f32 0.2, %v572_v20  ;;  %vm698_vm3 = vcmp.gt.f32.partialorder %v572_v20, 0.0  ;;  %v713_v34 = vmul.f32 0.2, %v576_v21 }
 0x10c   : > { %vm701_vm4 = vcmp.gt.f32.partialorder %v575_v24, 0.0  ;;  %v712_v35 = vmul.f32 0.2, %v575_v24  ;;  %vm702_vm5 = vcmp.gt.f32.partialorder %v576_v21, 0.0  ;;  %vm705_vm6 = vcmp.gt.f32.partialorder %v1481_v25, 0.0 }
 0x10d   : > { %v1087_v36 = vpop.f32.mrf.mxu1  ;;  %v716_v37 = vmul.f32 0.2, %v1481_v25  ;;  %v573_v38 = vadd.f32 %v1469_v10, %v486_v27  ;;  %v671_v39 = vmul.f32 %v575_v24, %v575_v24  ;;  %v577_v41 = vadd.f32 %v1469_v10, %v502_v28 }
 0x10e   : > { %v723_v40 = vsel %vm701_vm4, %v575_v24, %v712_v35  ;;  %v582_v42 = vadd.f32 %v1087_v36, %v1469_v10  ;;  %v724_v48 = vsel %vm702_vm5, %v576_v21, %v713_v34  ;;  %v720_v55 = vsel %vm698_vm3, %v572_v20, %v709_v33 }
 0x10f   : > { %v515_v43 = vpop.f32.mrf.mxu1  ;;  %v1038_v44 = vpack.c.bf16 %v723_v40, %v722_v30  ;;  %v727_v45 = vsel %vm705_vm6, %v1481_v25, %v716_v37  ;;  %v652_v46 = vadd.f32 %v573_v38, %v572_v20  ;;  %v669_v47 = vmul.f32 %v573_v38, %v573_v38 }
 0x110   : > { %v1048_v49 = vpack.c.bf16 %v727_v45, %v726_v31  ;;  %vm699_vm7 = vcmp.gt.f32.partialorder %v573_v38, 0.0  ;;  %v710_v50 = vmul.f32 0.2, %v573_v38  ;;  %vm703_vm8 = vcmp.gt.f32.partialorder %v577_v41, 0.0 }
 0x111   : > { %v1088_v51 = vpop.f32.mrf.mxu1  ;;  %1055 = vst [vmem:[%s1492_s10 + $0x8] sm:$0xff] %v1038_v44   ;;  %v653_v52 = vadd.f32 %v652_v46, %v574_v13  ;;  %v679_v53 = vadd.f32 %v669_v47, %v668_v32  ;;  %v714_v54 = vmul.f32 0.2, %v577_v41  ;;  %vm708_vm9 = vcmp.gt.f32.partialorder %v582_v42, 0.0 }
 0x112   : > { %1057 = vst [vmem:[%s1492_s10 + $0x18] sm:$0xff] %v1048_v49   ;;  %v721_v56 = vsel %vm699_vm7, %v573_v38, %v710_v50  ;;  %v719_v57 = vmul.f32 0.2, %v582_v42  ;;  %v672_v63 = vmul.f32 %v576_v21, %v576_v21  ;;  %v580_v2 = vadd.f32 %v1469_v10, %v515_v43 }
 0x113   : > { %v518_v58 = vpop.f32.mrf.mxu1  ;;  %v680_v59 = vadd.f32 %v679_v53, %v670_v26  ;;  %v1033_v60 = vpack.c.bf16 %v721_v56, %v720_v55  ;;  %v654_v61 = vadd.f32 %v653_v52, %v575_v24  ;;  %v725_v62 = vsel %vm703_vm8, %v577_v41, %v714_v54 }
 0x114   : > { %v1043_v0 = vpack.c.bf16 %v725_v62, %v724_v48  ;;  %v730_v1 = vsel %vm708_vm9, %v582_v42, %v719_v57  ;;  %v581_v6 = vadd.f32 %v1469_v10, %v518_v58  ;;  %vm706_vm10 = vcmp.gt.f32.partialorder %v580_v2, 0.0 }
 0x115   : > { %1034 = vst [vmem:[%s1492_s10] sm:$0xff] %v1033_v60   ;;  %v655_v3 = vadd.f32 %v654_v61, %v576_v21  ;;  %v681_v4 = vadd.f32 %v680_v59, %v671_v39  ;;  %v1029_v5 = vpack.c.bf16 %v730_v1, %v730_v1  ;;  %v717_v8 = vmul.f32 0.2, %v580_v2 }
 0x116   : > { %1056 = vst [vmem:[%s1492_s10 + $0x10] sm:$0xff] %v1043_v0   ;;  %v673_v11 = vmul.f32 %v577_v41, %v577_v41  ;;  %vm707_vm11 = vcmp.gt.f32.partialorder %v581_v6, 0.0  ;;  %v718_v15 = vmul.f32 0.2, %v581_v6  ;;  %v675_v19 = vmul.f32 %v1481_v25, %v1481_v25 }
 0x117   : > { %v656_v9 = vadd.f32 %v655_v3, %v577_v41  ;;  %v682_v12 = vadd.f32 %v681_v4, %v672_v63  ;;  %786 = vst [vmem:[%s1492_s10 + $0x28] sm:$0xf] %v1029_v5  ;;  %v728_v13 = vsel %vm706_vm10, %v580_v2, %v717_v8  ;;  %v676_v24 = vmul.f32 %v580_v2, %v580_v2 }
 0x118   : > { %v729_v10 = vsel %vm707_vm11, %v581_v6, %v718_v15  ;;  %v651_v27 = vsel %vm618_vm12, %v582_v42, 0.0  ;;  %v677_v30 = vmul.f32 %v581_v6, %v581_v6 }
 0x119   : > { %v657_v17 = vadd.f32 %v656_v9, %v1473_v14  ;;  %v683_v18 = vadd.f32 %v682_v12, %v673_v11  ;;  %v1053_v22 = vpack.c.bf16 %v729_v10, %v728_v13  ;;  %v678_v14 = vmul.f32 %v651_v27, %v651_v27 }
 0x11b   : > { %v684_v20 = vadd.f32 %v683_v18, %v674_v16  ;;  %v658_v21 = vadd.f32 %v657_v17, %v1481_v25  ;;  %1058 = vst [vmem:[%s1492_s10 + $0x20] sm:$0xff] %v1053_v22  }
 0x11d   : > { %v659_v23 = vadd.f32 %v658_v21, %v580_v2  ;;  %v685_v26 = vadd.f32 %v684_v20, %v675_v19 }
 0x11f   : > { %v686_v28 = vadd.f32 %v685_v26, %v676_v24  ;;  %v660_v29 = vadd.f32 %v659_v23, %v581_v6 }
 0x121   : > { %v661_v31 = vadd.f32 %v660_v29, %v651_v27  ;;  %v687_v32 = vadd.f32 %v686_v28, %v677_v30 }
 0x123   : > { %v662_v33 = vrot.slane %v661_v31, 4  ;;  %v688_v34 = vadd.f32 %v687_v32, %v678_v14 }
 0x125   : > { %v663_v35 = vadd.f32 %v662_v33, %v661_v31  ;;  %v689_v36 = vrot.slane %v688_v34, 4 }
 0x127   : > { %v664_v25 = vrot.slane %v663_v35, 2  ;;  %v690_v37 = vadd.f32 %v689_v36, %v688_v34 }
 0x129   : > { %v665_v38 = vadd.f32 %v664_v25, %v663_v35  ;;  %v691_v39 = vrot.slane %v690_v37, 2 }
 0x12b   : > { %v666_v40 = vrot.slane %v665_v38, 1  ;;  %v692_v41 = vadd.f32 %v691_v39, %v690_v37 }
 0x12d   : > { %v693_v42 = vrot.slane %v692_v41, 1  ;;  %v667_v43 = vadd.f32 %v666_v40, %v665_v38 }
 0x12f   : > { %v694_v44 = vadd.f32 %v693_v42, %v692_v41 }
 0x131   : > { %v696_v45 = vsel %vm695_vm13, %v667_v43, %v694_v44 }
 0x132   : > { %697 = vst [vmem:[%s304_s14] sm:$0x3] %v696_v45 }
 0x133   : > { %1251 = shalt.err (!%p1248_p12)
}
 0x134   : > { %s1252_s8 = scalar_lea.hbm %s1517_s26, 32  ;;  %s1256_s10 = scalar_lea.hbm %s1561_s4, 64 }
 0x135   : > { %p1253_p1 = scmp.ne.s32.totalorder %s1517_s26, %s1252_s8  ;;  %p1257_p3 = scmp.lt.s32.totalorder %s1517_s26, %s1561_s4 }
 0x136   : > { %p1258_p6 = scmp.lt.s32.totalorder %s1256_s10, %s1252_s8 }
 0x137   : > { %p1254_p2 = pnand %p1253_p1, %p1394_p4 }
 0x138   : > { %p1259_p8 = por %p1258_p6, %p1257_p3 }
 0x139   : > { %p1255_p5 = pneg %p1254_p2 }
 0x13b   : > { %p1260_p10 = pnand %p1259_p8, %p1255_p5 }
 0x13d   : > { %1263 = shalt.err (!%p1260_p10)
}
 0x13e   : > { %1106 = dma.vmem_to_hbm [thread:$0]  (%p1394_p4), %s820_s21, 32, %s1517_s26, %s800_s5  }
 0x13f PF: > { %p1123_p11 = scmp.ge.s32.totalorder %s1322_s20, 2  ;;  %s846_s13 = sand.u32 1, %s1302_s15  }
 0x140   : > { %p1567_p13 = scmp.ne.s32.totalorder %s1563_s27, 0  ;;  %s847_s14 = scalar_lea.sflag [#allocation5], %s846_s13 }
 0x142   : > { %p1116_p0 = pnand %p1123_p11, %p1567_p13 }
 0x144   : > { %p1117_p7 = pneg %p1116_p0 }
 0x146   : > { %1297 = dma.done.wait (%p1117_p7), %s847_s14, 32  }
 0x147   : > { %1299 = vsyncadd (%p1117_p7), %s847_s14, 4294967264  ;;  %s20_s20 = sadd.s32 1, %s1322_s20   ;;  %s1568_s15 = smov %s1306_s16 }
 0x148   : > { %p17_p9 = scmp.ge.s32.totalorder %s20_s20, 4   ;;  %s1569_s16 = smov %s1310_s17 }
 0x149   : > { %s1570_s17 = smov %s1407_s28  ;;  %s1571_s18 = smov %s1318_s19 }
 0x14a   : > { %s1572_s19 = smov %s1574_s23  ;;  %19 = sbr.rel (!%p17_p9) target bundleno = 6 (0x6), region = 98 }
 0x14f   :  { %852 = vsyncpa [#allocation4], 1 }
 0x150   :  { %854 = vsyncpa [#allocation4 + $0x1], 1 }
 0x151   :  { %855 = vsyncpa [#allocation7], 1 }
 0x152   :  { %856 = vsyncpa [#allocation5], 1 }
 0x153   :  { %858 = vsyncpa [#allocation5 + $0x1], 1 }

// kernel: _lambda_.10
= control target key start
LH: loop header
LB: loop body
LE: loop exit
PB: predicated region body
PF: predicated region fallthrough
CT: control target
= control target key end

     0   :  { %s472_s9 = smov 0   ;;  %s474_s10 = smov 0   ;;  %s516_s0 = inlined_call_operand.vmem [shape: bf16[2,32,128], index: 0, kind: input, shape index: {}]   ;;  %s517_s1 = inlined_call_operand.vmem [shape: f32[2,2,128], index: 1, kind: input, shape index: {}]   ;;  %s518_s2 = inlined_call_operand.vmem [shape: bf16[2,32,128], index: 2, kind: output, shape index: {}]  }
   0x1   :  { %s476_s11 = smov 0  }
   0x2 LB: > { %s24_s12 = sadd.s32 1, %s451_s10  ;;  %p369_p0 = scmp.ge.s32.totalorder %s455_s11, 1  ;;  %s455_s11 = sphi %s476_s11, %s12_s11   ;;  %s451_s10 = sphi %s474_s10, %s520_s10   ;;  %s447_s9 = sphi %s472_s9, %s519_s9  }
   0x3   : > { %p26_p1 = scmp.ge.s32.totalorder %s24_s12, 2  ;;  %p142_p2 = scmp.lt.s32.totalorder %s455_s11, 3 }
   0x5   : > { %s522_s12 = smov (%p26_p1, %s24_s12), 0  ;;  %p143_p3 = pnand %p369_p0, %p142_p2 }
   0x6   : > { %p177_p4 = scmp.lt.s32.totalorder (!%p143_p3), %s447_s9, 1 }
   0x7   : > { %146 = sbr.rel (%p143_p3) target bundleno = 53 (0x35), region = 28 }
   0xc   : > { %s524_s9 = smov (!%p177_p4, %s447_s9), 1  ;;  %v216_v6 = vlaneseq }
   0xd   : > { %s372_s13 = sshll.u32 %s524_s9, 1  ;;  %s381_s17 = sshll.u32 %s524_s9, 4 }
   0xe   : > { %s189_s16 = scalar_lea.vmem %s517_s1, %s372_s13  ;;  %v217_v8 = vshrl.u32 %v216_v6, 7  ;;  %s184_s20 = scalar_lea.vmem %s516_s0, %s381_s17 }
   0xf   : > { %v208_v0 = vld [vmem:[%s189_s16] sm:$0x3]  ;;  %v405_v11 = vld [vmem:[%s184_s20 + $0x8] sm:$0xff]   ;;  %s198_s23 = scalar_lea.vmem %s518_s2, %s381_s17 }
  0x10   : > { %v209_v1 = vmul.f32 0.04, %v208_v0  ;;  %v388_v9 = vld [vmem:[%s184_s20] sm:$0xff]   ;;  %v218_v10 = vsub.s32 0, %v217_v8  ;;  %v393_v14 = vunpack.c.l.bf16 %v405_v11  ;;  %v394_v15 = vunpack.c.h.bf16 %v405_v11 }
  0x11   : > { %v389_v12 = vunpack.c.l.bf16 %v388_v9  ;;  %v390_v13 = vunpack.c.h.bf16 %v388_v9  ;;  %v228_v17 = vsub.s32 1, %v217_v8 }
  0x12   : > { %v210_v2 = vmul.f32 %v209_v1, %v209_v1  ;;  %v219_v16 = vrot.slane %v209_v1, %v218_v10 }
  0x14   : > { %v212_v3 = vrot.slane %v210_v2, 7  ;;  %v220_v18 = vsub.f32 %v389_v12, %v219_v16  ;;  %v221_v19 = vsub.f32 %v390_v13, %v219_v16  ;;  %v222_v20 = vsub.f32 %v393_v14, %v219_v16 }
  0x15   : > { %v223_v21 = vsub.f32 %v394_v15, %v219_v16 }
  0x16   : > { %v214_v4 = vsub.f32 %v209_v1, %v212_v3 }
  0x18   : > { %v215_v5 = vmax.f32 %v214_v4, 0.0 }
  0x1a   : > { %v224_v7 = vadd.f32 1e-05, %v215_v5 }
  0x1c   : > { %431 = vrsqrt.f32 %v224_v7 }
  0x29   : > { %v432_v22 = vpop.eup %431 }
  0x2a   : > { %v229_v23 = vrot.slane %v432_v22, %v228_v17 }
  0x2c   : > { %v230_v24 = vmul.f32 %v229_v23, %v220_v18  ;;  %v231_v25 = vmul.f32 %v229_v23, %v221_v19  ;;  %v232_v26 = vmul.f32 %v229_v23, %v222_v20  ;;  %v233_v27 = vmul.f32 %v229_v23, %v223_v21 }
  0x2e   : > { %vm234_vm0 = vcmp.gt.f32.partialorder %v230_v24, 0.0  ;;  %vm235_vm1 = vcmp.gt.f32.partialorder %v231_v25, 0.0  ;;  %v238_v28 = vmul.f32 0.2, %v230_v24  ;;  %v239_v29 = vmul.f32 0.2, %v231_v25 }
  0x2f   : > { %vm236_vm2 = vcmp.gt.f32.partialorder %v232_v26, 0.0  ;;  %vm237_vm3 = vcmp.gt.f32.partialorder %v233_v27, 0.0  ;;  %v240_v30 = vmul.f32 0.2, %v232_v26  ;;  %v241_v31 = vmul.f32 0.2, %v233_v27 }
  0x30   : > { %v242_v32 = vsel %vm234_vm0, %v230_v24, %v238_v28  ;;  %v243_v33 = vsel %vm235_vm1, %v231_v25, %v239_v29 }
  0x31   : > { %v398_v34 = vpack.c.bf16 %v243_v33, %v242_v32  ;;  %v244_v35 = vsel %vm236_vm2, %v232_v26, %v240_v30  ;;  %v245_v36 = vsel %vm237_vm3, %v233_v27, %v241_v31 }
  0x32   : > { %v403_v37 = vpack.c.bf16 %v245_v36, %v244_v35 }
  0x33   : > { %399 = vst [vmem:[%s198_s23] sm:$0xff] %v398_v34  }
  0x34   : > { %406 = vst [vmem:[%s198_s23 + $0x8] sm:$0xff] %v403_v37  }
  0x35 PF: > { %s12_s11 = sadd.s32 1, %s455_s11   ;;  %s519_s9 = smov %s451_s10 }
  0x36   : > { %p9_p5 = scmp.ge.s32.totalorder %s12_s11, 4   ;;  %s520_s10 = smov %s522_s12 }
  0x38   :  { %11 = sbr.rel (!%p9_p5) target bundleno = 2 (0x2), region = 61 }

// kernel: _lambda_.9
= control target key start
LH: loop header
LB: loop body
LE: loop exit
PB: predicated region body
PF: predicated region fallthrough
CT: control target
= control target key end

     0   :  { %s2882_s15 = smov 0   ;;  %s2884_s16 = smov 0   ;;  %s3348_s0 = inlined_call_operand.vmem [shape: bf16[2,32,2048], index: 0, kind: input, shape index: {}]   ;;  %s3349_s1 = inlined_call_operand.vmem [shape: bf16[2048,128], index: 1, kind: input, shape index: {}]   ;;  %s3350_s2 = inlined_call_operand.vmem [shape: f32[1,128], index: 2, kind: input, shape index: {}]   ;;  %s3351_s3 = inlined_call_operand.vmem [shape: bf16[2,32,128], index: 3, kind: output, shape index: {0}]   ;;  %s3352_s4 = inlined_call_operand.vmem [shape: f32[2,1,2,128], index: 4, kind: output, shape index: {1}]  }
   0x1   :  { %s2886_s17 = smov 0  }
   0x2 LB: > { %s41_s18 = sadd.s32 1, %s2851_s16  ;;  %p2267_p0 = scmp.ge.s32.totalorder %s2855_s17, 1  ;;  %s2855_s17 = sphi %s2886_s17, %s15_s17   ;;  %s2851_s16 = sphi %s2884_s16, %s3354_s16   ;;  %s2847_s15 = sphi %s2882_s15, %s3353_s15  }
   0x3   : > { %p43_p1 = scmp.ge.s32.totalorder %s41_s18, 2  ;;  %p238_p2 = scmp.lt.s32.totalorder %s2855_s17, 3 }
   0x5   : > { %s3356_s18 = smov (%p43_p1, %s41_s18), 0  ;;  %p239_p3 = pnand %p2267_p0, %p238_p2 }
   0x6   : > { %p303_p4 = scmp.lt.s32.totalorder (!%p239_p3), %s2847_s15, 1 }
   0x7   : > { %242 = sbr.rel (%p239_p3) target bundleno = 376 (0x178), region = 32 }
   0xc   : > { %v2705_v0 = vld [vmem:[%s3349_s1 + $0x78] sm:$0xff]   ;;  %v2709_v4 = vld [vmem:[%s3349_s1 + $0x70] sm:$0xff]   ;;  %v2713_v8 = vld [vmem:[%s3349_s1 + $0x68] sm:$0xff]   ;;  %s3358_s15 = smov (!%p303_p4, %s2847_s15), 1  ;;  %vm2048_vm1 = vcmask 1040384  }
   0xd   : > { %v2706_v1 = vld [vmem:[%s3349_s1 + $0xf8] sm:$0xff]   ;;  %2457 = vmatprep.subr.bf16.mxu0 %v2705_v0  ;;  %v2710_v5 = vld [vmem:[%s3349_s1 + $0xf0] sm:$0xff]   ;;  %v2714_v9 = vld [vmem:[%s3349_s1 + $0xe8] sm:$0xff]   ;;  %s2440_s29 = sshll.u32 %s3358_s15, 8  ;;  %s2441_s25 = sshll.u32 %s3358_s15, 4 }
   0xe   : > { %v2707_v2 = vld [vmem:[%s3349_s1 + $0x38] sm:$0xff]   ;;  %2485 = vmatprep.subr.bf16.mxu1 %v2706_v1  ;;  %v2711_v6 = vld [vmem:[%s3349_s1 + $0x30] sm:$0xff]   ;;  %v2715_v10 = vld [vmem:[%s3349_s1 + $0x28] sm:$0xff]   ;;  %s3000_s12 = scalar_lea.vmem %s3348_s0, %s2440_s29  ;;  %s340_s28 = scalar_lea.vmem %s3351_s3, %s2441_s25 }
   0xf   : > { %v2708_v3 = vld [vmem:[%s3349_s1 + $0xb8] sm:$0xff]   ;;  %2458 = vmatpush3.bf16.msra.mxu0 %v2707_v2  ;;  %v2712_v7 = vld [vmem:[%s3349_s1 + $0xb0] sm:$0xff]   ;;  %v2716_v11 = vld [vmem:[%s3349_s1 + $0xa8] sm:$0xff]   ;;  %s2272_s29 = sshll.u32 %s3358_s15, 1 }
  0x10   : > { %2486 = vmatpush3.bf16.msra.mxu1 %v2708_v3  ;;  %2459 = vmatprep.subr.bf16.mxu0 %v2709_v4  ;;  %v2717_v12 = vld [vmem:[%s3349_s1 + $0x60] sm:$0xff]   ;;  %v2721_v16 = vld [vmem:[%s3349_s1 + $0x58] sm:$0xff]   ;;  %v2725_v20 = vld [vmem:[%s3349_s1 + $0x50] sm:$0xff]   ;;  %s351_s6 = scalar_lea.vmem %s3352_s4, %s2272_s29 }
  0x11   : > { %2487 = vmatprep.subr.bf16.mxu1 %v2710_v5  ;;  %v2718_v13 = vld [vmem:[%s3349_s1 + $0xe0] sm:$0xff]   ;;  %v2722_v17 = vld [vmem:[%s3349_s1 + $0xd8] sm:$0xff]   ;;  %v2726_v21 = vld [vmem:[%s3349_s1 + $0xd0] sm:$0xff]  }
  0x12   : > { %v2719_v14 = vld [vmem:[%s3349_s1 + $0x20] sm:$0xff]   ;;  %v2723_v18 = vld [vmem:[%s3349_s1 + $0x18] sm:$0xff]   ;;  %v2727_v22 = vld [vmem:[%s3349_s1 + $0x10] sm:$0xff]  }
  0x13   : > { %2460 = vmatpush3.bf16.msra.mxu0 %v2711_v6  ;;  %v2720_v15 = vld [vmem:[%s3349_s1 + $0xa0] sm:$0xff]   ;;  %v2724_v19 = vld [vmem:[%s3349_s1 + $0x98] sm:$0xff]   ;;  %v2728_v23 = vld [vmem:[%s3349_s1 + $0x90] sm:$0xff]  }
  0x14   : > { %2488 = vmatpush3.bf16.msra.mxu1 %v2712_v7  ;;  %2461 = vmatprep.subr.bf16.mxu0 %v2713_v8  ;;  %v2729_v24 = vld [vmem:[%s3349_s1 + $0x48] sm:$0xff]   ;;  %v2733_v28 = vld [vmem:[%s3349_s1 + $0x40] sm:$0xff]   ;;  %v2737_v40 = vld [vmem:[%s3349_s1 + $0x178] sm:$0xff]  }
  0x15   : > { %2489 = vmatprep.subr.bf16.mxu1 %v2714_v9  ;;  %v2730_v25 = vld [vmem:[%s3349_s1 + $0xc8] sm:$0xff]   ;;  %v2734_v29 = vld [vmem:[%s3349_s1 + $0xc0] sm:$0xff]   ;;  %v2738_v41 = vld [vmem:[%s3349_s1 + $0x1f8] sm:$0xff]  }
  0x16   : > { %v2731_v26 = vld [vmem:[%s3349_s1 + $0x8] sm:$0xff]   ;;  %v2735_v30 = vld [vmem:[%s3349_s1] sm:$0xff]   ;;  %v2739_v42 = vld [vmem:[%s3349_s1 + $0x138] sm:$0xff]  }
  0x17   : > { %2462 = vmatpush3.bf16.msra.mxu0 %v2715_v10  ;;  %v2732_v27 = vld [vmem:[%s3349_s1 + $0x88] sm:$0xff]   ;;  %v2736_v31 = vld [vmem:[%s3349_s1 + $0x80] sm:$0xff]   ;;  %v2740_v43 = vld [vmem:[%s3349_s1 + $0x1b8] sm:$0xff]  }
  0x18   : > { %2490 = vmatpush3.bf16.msra.mxu1 %v2716_v11  ;;  %2463 = vmatprep.subr.bf16.mxu0 %v2717_v12  ;;  %v365_v32 = vld [vmem:[%s3000_s12] sm:$0xff]  ;;  %v366_v34 = vld [vmem:[%s3000_s12 + $0x8] sm:$0xff]  ;;  %v2741_v44 = vld [vmem:[%s3349_s1 + $0x170] sm:$0xff]  }
  0x19   : > { %2491 = vmatprep.subr.bf16.mxu1 %v2718_v13  ;;  %v373_v33 = vld [vmem:[%s3000_s12 + $0x40] sm:$0xff]  ;;  %v374_v37 = vld [vmem:[%s3000_s12 + $0x48] sm:$0xff]  ;;  %v2742_v45 = vld [vmem:[%s3349_s1 + $0x1f0] sm:$0xff]  }
  0x1a   : > { %v2273_v35 = vcombine.low %v365_v32, %v373_v33  ;;  %v2274_v36 = vcombine.high %v365_v32, %v373_v33  ;;  %v2275_v38 = vcombine.low %v366_v34, %v374_v37  ;;  %v2276_v39 = vcombine.high %v366_v34, %v374_v37  ;;  %v2743_v46 = vld [vmem:[%s3349_s1 + $0x130] sm:$0xff]   ;;  %v2745_v48 = vld [vmem:[%s3349_s1 + $0x168] sm:$0xff]   ;;  %v2749_v52 = vld [vmem:[%s3349_s1 + $0x160] sm:$0xff]  }
  0x1b   : > { %2464 = vmatpush3.bf16.msra.mxu0 %v2719_v14  ;;  %v2744_v47 = vld [vmem:[%s3349_s1 + $0x1b0] sm:$0xff]   ;;  %v2746_v49 = vld [vmem:[%s3349_s1 + $0x1e8] sm:$0xff]   ;;  %v2750_v53 = vld [vmem:[%s3349_s1 + $0x1e0] sm:$0xff]  }
  0x1c   : > { %2492 = vmatpush3.bf16.msra.mxu1 %v2720_v15  ;;  %2465 = vmatprep.subr.bf16.mxu0 %v2721_v16  ;;  %v2747_v50 = vld [vmem:[%s3349_s1 + $0x128] sm:$0xff]   ;;  %v2751_v54 = vld [vmem:[%s3349_s1 + $0x120] sm:$0xff]   ;;  %v2753_v56 = vld [vmem:[%s3349_s1 + $0x158] sm:$0xff]  }
  0x1d   : > { %2493 = vmatprep.subr.bf16.mxu1 %v2722_v17  ;;  %1613 = vmatprep.mubr.bf16.mxu0 %v2274_v36  ;;  %v2748_v51 = vld [vmem:[%s3349_s1 + $0x1a8] sm:$0xff]   ;;  %v2752_v55 = vld [vmem:[%s3349_s1 + $0x1a0] sm:$0xff]   ;;  %v2754_v57 = vld [vmem:[%s3349_s1 + $0x1d8] sm:$0xff]  }
  0x1e   : > { %1662 = vmatprep.mubr.bf16.mxu1 %v2276_v39  ;;  %v2755_v58 = vld [vmem:[%s3349_s1 + $0x118] sm:$0xff]   ;;  %v381_v60 = vld [vmem:[%s3000_s12 + $0x80] sm:$0xff]  ;;  %v382_v63 = vld [vmem:[%s3000_s12 + $0x88] sm:$0xff] }
  0x1f   : > { %2466 = vmatpush3.bf16.msra.mxu0 %v2723_v18  ;;  %v2756_v59 = vld [vmem:[%s3349_s1 + $0x198] sm:$0xff]   ;;  %v389_v61 = vld [vmem:[%s3000_s12 + $0xc0] sm:$0xff]  ;;  %v390_v0 = vld [vmem:[%s3000_s12 + $0xc8] sm:$0xff] }
  0x20   : > { %2494 = vmatpush3.bf16.msra.mxu1 %v2724_v19  ;;  %2467 = vmatprep.subr.bf16.mxu0 %v2725_v20  ;;  %v2290_v62 = vcombine.high %v381_v60, %v389_v61  ;;  %v2289_v1 = vcombine.low %v381_v60, %v389_v61  ;;  %v2292_v2 = vcombine.high %v382_v63, %v390_v0  ;;  %v2757_v4 = vld [vmem:[%s3349_s1 + $0x150] sm:$0xff]   ;;  %v2761_v8 = vld [vmem:[%s3349_s1 + $0x148] sm:$0xff]   ;;  %v2765_v12 = vld [vmem:[%s3349_s1 + $0x140] sm:$0xff]  }
  0x21   : > { %2495 = vmatprep.subr.bf16.mxu1 %v2726_v21  ;;  %v2291_v3 = vcombine.low %v382_v63, %v390_v0  ;;  %v2758_v5 = vld [vmem:[%s3349_s1 + $0x1d0] sm:$0xff]   ;;  %v2762_v9 = vld [vmem:[%s3349_s1 + $0x1c8] sm:$0xff]   ;;  %v2766_v13 = vld [vmem:[%s3349_s1 + $0x1c0] sm:$0xff]  }
  0x22   : > { %v2759_v6 = vld [vmem:[%s3349_s1 + $0x110] sm:$0xff]   ;;  %v2763_v10 = vld [vmem:[%s3349_s1 + $0x108] sm:$0xff]   ;;  %v2767_v14 = vld [vmem:[%s3349_s1 + $0x100] sm:$0xff]  }
  0x23   : > { %2468 = vmatpush3.bf16.msra.mxu0 %v2727_v22  ;;  %v2760_v7 = vld [vmem:[%s3349_s1 + $0x190] sm:$0xff]   ;;  %v2764_v11 = vld [vmem:[%s3349_s1 + $0x188] sm:$0xff]   ;;  %v2768_v15 = vld [vmem:[%s3349_s1 + $0x180] sm:$0xff]  }
  0x24   : > { %2496 = vmatpush3.bf16.msra.mxu1 %v2728_v23  ;;  %2469 = vmatprep.subr.bf16.mxu0 %v2729_v24  ;;  %v367_v16 = vld [vmem:[%s3000_s12 + $0x10] sm:$0xff]  ;;  %v368_v18 = vld [vmem:[%s3000_s12 + $0x18] sm:$0xff]  ;;  %v2777_v36 = vld [vmem:[%s3349_s1 + $0x268] sm:$0xff]  }
  0x25   : > { %2497 = vmatprep.subr.bf16.mxu1 %v2730_v25  ;;  %v375_v17 = vld [vmem:[%s3000_s12 + $0x50] sm:$0xff]  ;;  %v376_v19 = vld [vmem:[%s3000_s12 + $0x58] sm:$0xff]  ;;  %v2778_v37 = vld [vmem:[%s3349_s1 + $0x2e8] sm:$0xff]  }
  0x26   : > { %v2277_v20 = vcombine.low %v367_v16, %v375_v17  ;;  %v2278_v21 = vcombine.high %v367_v16, %v375_v17  ;;  %v2279_v22 = vcombine.low %v368_v18, %v376_v19  ;;  %v2280_v23 = vcombine.high %v368_v18, %v376_v19  ;;  %v2769_v24 = vld [vmem:[%s3349_s1 + $0x278] sm:$0xff]   ;;  %v383_v32 = vld [vmem:[%s3000_s12 + $0x90] sm:$0xff]  ;;  %v2797_v60 = vld [vmem:[%s3349_s1 + $0x240] sm:$0xff]  }
  0x27   : > { %2470 = vmatpush3.bf16.msra.mxu0 %v2731_v26  ;;  %v2770_v25 = vld [vmem:[%s3349_s1 + $0x2f8] sm:$0xff]   ;;  %v391_v33 = vld [vmem:[%s3000_s12 + $0xd0] sm:$0xff]  ;;  %v2798_v61 = vld [vmem:[%s3349_s1 + $0x2c0] sm:$0xff]  }
  0x28   : > { %2498 = vmatpush3.bf16.msra.mxu1 %v2732_v27  ;;  %2471 = vmatprep.subr.bf16.mxu0 %v2733_v28  ;;  %v2771_v26 = vld [vmem:[%s3349_s1 + $0x238] sm:$0xff]   ;;  %v2773_v28 = vld [vmem:[%s3349_s1 + $0x270] sm:$0xff]   ;;  %v2294_v34 = vcombine.high %v383_v32, %v391_v33  ;;  %v2800_v63 = vld [vmem:[%s3349_s1 + $0x280] sm:$0xff]  }
  0x29   : > { %2499 = vmatprep.subr.bf16.mxu1 %v2734_v29  ;;  %v2772_v27 = vld [vmem:[%s3349_s1 + $0x2b8] sm:$0xff]   ;;  %v2774_v29 = vld [vmem:[%s3349_s1 + $0x2f0] sm:$0xff]   ;;  %v369_v0 = vld [vmem:[%s3000_s12 + $0x20] sm:$0xff] }
  0x2a   : > { %v392_v39 = vld [vmem:[%s3000_s12 + $0xd8] sm:$0xff]  ;;  %v385_v16 = vld [vmem:[%s3000_s12 + $0xa0] sm:$0xff] }
  0x2b   : > { %2472 = vmatpush3.bf16.msra.mxu0 %v2735_v30  ;;  %v2775_v30 = vld [vmem:[%s3349_s1 + $0x230] sm:$0xff]   ;;  %v393_v17 = vld [vmem:[%s3000_s12 + $0xe0] sm:$0xff] }
  0x2c   : > { %2500 = vmatpush3.bf16.msra.mxu1 %v2736_v31  ;;  %2513 = vmatprep.subr.bf16.mxu0 %v2737_v40  ;;  %v2776_v31 = vld [vmem:[%s3349_s1 + $0x2b0] sm:$0xff]   ;;  %v2298_v18 = vcombine.high %v385_v16, %v393_v17  ;;  %v2297_v19 = vcombine.low %v385_v16, %v393_v17 }
  0x2d   : > { %2541 = vmatprep.subr.bf16.mxu1 %v2738_v41  ;;  %v2779_v41 = vld [vmem:[%s3349_s1 + $0x228] sm:$0xff]  }
  0x2e   : > { %1614 = vmatmul.mubr.bf16.vlgmr.msra.gmra.mxu0 %v2273_v35  ;;  %v2293_v35 = vcombine.low %v383_v32, %v391_v33  ;;  %v2817_v32 = vld [vmem:[%s3349_s1 + $0x358] sm:$0xff]  }
  0x2f   : > { %1663 = vmatmul.mubr.bf16.vlgmr.msra.gmra.mxu1 %v2275_v38  ;;  %2514 = vmatpush3.bf16.msra.mxu0 %v2739_v42  ;;  %v384_v38 = vld [vmem:[%s3000_s12 + $0x98] sm:$0xff] }
  0x30   : > { %2542 = vmatpush3.bf16.msra.mxu1 %v2740_v43  ;;  %2515 = vmatprep.subr.bf16.mxu0 %v2741_v44  ;;  %v2296_v40 = vcombine.high %v384_v38, %v392_v39  ;;  %v2295_v42 = vcombine.low %v384_v38, %v392_v39  ;;  %v2780_v43 = vld [vmem:[%s3349_s1 + $0x2a8] sm:$0xff]   ;;  %v2781_v44 = vld [vmem:[%s3349_s1 + $0x260] sm:$0xff]   ;;  %v2818_v33 = vld [vmem:[%s3349_s1 + $0x3d8] sm:$0xff]  }
  0x31   : > { %2543 = vmatprep.subr.bf16.mxu1 %v2742_v45  ;;  %1621 = vmatprep.mubr.bf16.mxu0 %v2290_v62  ;;  %v2782_v45 = vld [vmem:[%s3349_s1 + $0x2e0] sm:$0xff]   ;;  %v2823_v38 = vld [vmem:[%s3349_s1 + $0x310] sm:$0xff]  }
  0x32   : > { %1670 = vmatprep.mubr.bf16.mxu1 %v2292_v2  ;;  %v2799_v62 = vld [vmem:[%s3349_s1 + $0x200] sm:$0xff]   ;;  %v2824_v39 = vld [vmem:[%s3349_s1 + $0x390] sm:$0xff]  }
  0x33   : > { %2516 = vmatpush3.bf16.msra.mxu0 %v2743_v46  ;;  %v2783_v46 = vld [vmem:[%s3349_s1 + $0x220] sm:$0xff]  }
  0x34   : > { %2544 = vmatpush3.bf16.msra.mxu1 %v2744_v47  ;;  %2517 = vmatprep.subr.bf16.mxu0 %v2745_v48  ;;  %v2784_v47 = vld [vmem:[%s3349_s1 + $0x2a0] sm:$0xff]   ;;  %v2785_v48 = vld [vmem:[%s3349_s1 + $0x258] sm:$0xff]  }
  0x35   : > { %2545 = vmatprep.subr.bf16.mxu1 %v2746_v49  ;;  %v2786_v49 = vld [vmem:[%s3349_s1 + $0x2d8] sm:$0xff]  }
  0x36   : > { %1622 = vmatmul.mubr.bf16.gmra.mxu0 %v2289_v1  ;;  %v377_v1 = vld [vmem:[%s3000_s12 + $0x60] sm:$0xff] }
  0x37   : > { %2518 = vmatpush3.bf16.msra.mxu0 %v2747_v50  ;;  %1671 = vmatmul.mubr.bf16.gmra.mxu1 %v2291_v3  ;;  %v2787_v50 = vld [vmem:[%s3349_s1 + $0x218] sm:$0xff]   ;;  %v2281_v2 = vcombine.low %v369_v0, %v377_v1  ;;  %v2282_v3 = vcombine.high %v369_v0, %v377_v1 }
  0x38   : > { %2546 = vmatpush3.bf16.msra.mxu1 %v2748_v51  ;;  %2519 = vmatprep.subr.bf16.mxu0 %v2749_v52  ;;  %v2788_v51 = vld [vmem:[%s3349_s1 + $0x298] sm:$0xff]   ;;  %v2789_v52 = vld [vmem:[%s3349_s1 + $0x250] sm:$0xff]  }
  0x39   : > { %2547 = vmatprep.subr.bf16.mxu1 %v2750_v53  ;;  %1711 = vmatprep.mubr.bf16.mxu0 %v2278_v21  ;;  %v2790_v53 = vld [vmem:[%s3349_s1 + $0x2d0] sm:$0xff]   ;;  %v2810_v21 = vld [vmem:[%s3349_s1 + $0x3e8] sm:$0xff]  }
  0x3a   : > { %1760 = vmatprep.mubr.bf16.mxu1 %v2280_v23  ;;  %v394_v23 = vld [vmem:[%s3000_s12 + $0xe8] sm:$0xff] }
  0x3b   : > { %2520 = vmatpush3.bf16.msra.mxu0 %v2751_v54  ;;  %v2791_v54 = vld [vmem:[%s3349_s1 + $0x210] sm:$0xff]  }
  0x3c   : > { %2548 = vmatpush3.bf16.msra.mxu1 %v2752_v55  ;;  %2521 = vmatprep.subr.bf16.mxu0 %v2753_v56  ;;  %v2792_v55 = vld [vmem:[%s3349_s1 + $0x290] sm:$0xff]   ;;  %v2793_v56 = vld [vmem:[%s3349_s1 + $0x248] sm:$0xff]  }
  0x3d   : > { %2549 = vmatprep.subr.bf16.mxu1 %v2754_v57  ;;  %v2794_v57 = vld [vmem:[%s3349_s1 + $0x2c8] sm:$0xff]  }
  0x3f   : > { %2522 = vmatpush3.bf16.msra.mxu0 %v2755_v58  ;;  %v2795_v58 = vld [vmem:[%s3349_s1 + $0x208] sm:$0xff]  }
  0x40   : > { %2550 = vmatpush3.bf16.msra.mxu1 %v2756_v59  ;;  %2523 = vmatprep.subr.bf16.mxu0 %v2757_v4  ;;  %v2796_v59 = vld [vmem:[%s3349_s1 + $0x288] sm:$0xff]  }
  0x41   : > { %2551 = vmatprep.subr.bf16.mxu1 %v2758_v5  ;;  %v370_v4 = vld [vmem:[%s3000_s12 + $0x28] sm:$0xff] }
  0x42   : > { %v378_v5 = vld [vmem:[%s3000_s12 + $0x68] sm:$0xff] }
  0x43   : > { %2524 = vmatpush3.bf16.msra.mxu0 %v2759_v6  ;;  %v2283_v6 = vcombine.low %v370_v4, %v378_v5 }
  0x44   : > { %2552 = vmatpush3.bf16.msra.mxu1 %v2760_v7  ;;  %2525 = vmatprep.subr.bf16.mxu0 %v2761_v8  ;;  %v2284_v7 = vcombine.high %v370_v4, %v378_v5  ;;  %v2801_v8 = vld [vmem:[%s3349_s1 + $0x378] sm:$0xff]  }
  0x45   : > { %2553 = vmatprep.subr.bf16.mxu1 %v2762_v9  ;;  %v2802_v9 = vld [vmem:[%s3349_s1 + $0x3f8] sm:$0xff]  }
  0x47   : > { %2526 = vmatpush3.bf16.msra.mxu0 %v2763_v10  ;;  %v2803_v10 = vld [vmem:[%s3349_s1 + $0x338] sm:$0xff]  }
  0x48   : > { %2554 = vmatpush3.bf16.msra.mxu1 %v2764_v11  ;;  %2527 = vmatprep.subr.bf16.mxu0 %v2765_v12  ;;  %v2804_v11 = vld [vmem:[%s3349_s1 + $0x3b8] sm:$0xff]   ;;  %v2805_v12 = vld [vmem:[%s3349_s1 + $0x370] sm:$0xff]  }
  0x49   : > { %2555 = vmatprep.subr.bf16.mxu1 %v2766_v13  ;;  %v2806_v13 = vld [vmem:[%s3349_s1 + $0x3f0] sm:$0xff]  }
  0x4b   : > { %2528 = vmatpush3.bf16.msra.mxu0 %v2767_v14  ;;  %v2807_v14 = vld [vmem:[%s3349_s1 + $0x330] sm:$0xff]  }
  0x4c   : > { %2556 = vmatpush3.bf16.msra.mxu1 %v2768_v15  ;;  %2569 = vmatprep.subr.bf16.mxu0 %v2769_v24  ;;  %v2808_v15 = vld [vmem:[%s3349_s1 + $0x3b0] sm:$0xff]  }
  0x4d   : > { %2597 = vmatprep.subr.bf16.mxu1 %v2770_v25  ;;  %v2811_v25 = vld [vmem:[%s3349_s1 + $0x328] sm:$0xff]  }
  0x4e   : > { %1712 = vmatmul.mubr.bf16.vlgmr.msra.gmra.mxu0 %v2277_v20  ;;  %v2809_v20 = vld [vmem:[%s3349_s1 + $0x368] sm:$0xff]  }
  0x4f   : > { %1761 = vmatmul.mubr.bf16.vlgmr.msra.gmra.mxu1 %v2279_v22  ;;  %2570 = vmatpush3.bf16.msra.mxu0 %v2771_v26  ;;  %v386_v22 = vld [vmem:[%s3000_s12 + $0xa8] sm:$0xff] }
  0x50   : > { %2598 = vmatpush3.bf16.msra.mxu1 %v2772_v27  ;;  %2571 = vmatprep.subr.bf16.mxu0 %v2773_v28  ;;  %v2300_v24 = vcombine.high %v386_v22, %v394_v23  ;;  %v2299_v26 = vcombine.low %v386_v22, %v394_v23  ;;  %v2812_v27 = vld [vmem:[%s3349_s1 + $0x3a8] sm:$0xff]   ;;  %v2813_v28 = vld [vmem:[%s3349_s1 + $0x360] sm:$0xff]  }
  0x51   : > { %2599 = vmatprep.subr.bf16.mxu1 %v2774_v29  ;;  %1719 = vmatprep.mubr.bf16.mxu0 %v2294_v34  ;;  %v2814_v29 = vld [vmem:[%s3349_s1 + $0x3e0] sm:$0xff]   ;;  %v2819_v34 = vld [vmem:[%s3349_s1 + $0x318] sm:$0xff]  }
  0x52   : > { %1768 = vmatprep.mubr.bf16.mxu1 %v2296_v40  ;;  %v2825_v40 = vld [vmem:[%s3349_s1 + $0x348] sm:$0xff]  }
  0x53   : > { %2572 = vmatpush3.bf16.msra.mxu0 %v2775_v30  ;;  %v2815_v30 = vld [vmem:[%s3349_s1 + $0x320] sm:$0xff]  }
  0x54   : > { %2600 = vmatpush3.bf16.msra.mxu1 %v2776_v31  ;;  %2573 = vmatprep.subr.bf16.mxu0 %v2777_v36  ;;  %v2816_v31 = vld [vmem:[%s3349_s1 + $0x3a0] sm:$0xff]   ;;  %v2821_v36 = vld [vmem:[%s3349_s1 + $0x350] sm:$0xff]  }
  0x55   : > { %2601 = vmatprep.subr.bf16.mxu1 %v2778_v37  ;;  %v2822_v37 = vld [vmem:[%s3349_s1 + $0x3d0] sm:$0xff]  }
  0x56   : > { %1720 = vmatmul.mubr.bf16.gmra.mxu0 %v2293_v35  ;;  %v2820_v35 = vld [vmem:[%s3349_s1 + $0x398] sm:$0xff]  }
  0x57   : > { %2574 = vmatpush3.bf16.msra.mxu0 %v2779_v41  ;;  %1769 = vmatmul.mubr.bf16.gmra.mxu1 %v2295_v42  ;;  %v2826_v41 = vld [vmem:[%s3349_s1 + $0x3c8] sm:$0xff]  }
  0x58   : > { %2602 = vmatpush3.bf16.msra.mxu1 %v2780_v43  ;;  %2575 = vmatprep.subr.bf16.mxu0 %v2781_v44  ;;  %v2827_v42 = vld [vmem:[%s3349_s1 + $0x308] sm:$0xff]   ;;  %v2829_v44 = vld [vmem:[%s3349_s1 + $0x340] sm:$0xff]  }
  0x59   : > { %2603 = vmatprep.subr.bf16.mxu1 %v2782_v45  ;;  %1809 = vmatprep.mubr.bf16.mxu0 %v2282_v3  ;;  %v2828_v43 = vld [vmem:[%s3349_s1 + $0x388] sm:$0xff]   ;;  %v2830_v45 = vld [vmem:[%s3349_s1 + $0x3c0] sm:$0xff]  }
  0x5a   : > { %1858 = vmatprep.mubr.bf16.mxu1 %v2284_v7 }
  0x5b   : > { %2576 = vmatpush3.bf16.msra.mxu0 %v2783_v46  ;;  %v2831_v46 = vld [vmem:[%s3349_s1 + $0x300] sm:$0xff]  }
  0x5c   : > { %2604 = vmatpush3.bf16.msra.mxu1 %v2784_v47  ;;  %2577 = vmatprep.subr.bf16.mxu0 %v2785_v48  ;;  %v2832_v47 = vld [vmem:[%s3349_s1 + $0x380] sm:$0xff]   ;;  %v371_v48 = vld [vmem:[%s3000_s12 + $0x30] sm:$0xff] }
  0x5d   : > { %2605 = vmatprep.subr.bf16.mxu1 %v2786_v49  ;;  %v379_v49 = vld [vmem:[%s3000_s12 + $0x70] sm:$0xff] }
  0x5f   : > { %2578 = vmatpush3.bf16.msra.mxu0 %v2787_v50  ;;  %v372_v50 = vld [vmem:[%s3000_s12 + $0x38] sm:$0xff] }
  0x60   : > { %2606 = vmatpush3.bf16.msra.mxu1 %v2788_v51  ;;  %2579 = vmatprep.subr.bf16.mxu0 %v2789_v52  ;;  %v2285_v51 = vcombine.low %v371_v48, %v379_v49  ;;  %v2286_v52 = vcombine.high %v371_v48, %v379_v49 }
  0x61   : > { %2607 = vmatprep.subr.bf16.mxu1 %v2790_v53  ;;  %v380_v53 = vld [vmem:[%s3000_s12 + $0x78] sm:$0xff] }
  0x63   : > { %2580 = vmatpush3.bf16.msra.mxu0 %v2791_v54  ;;  %v387_v54 = vld [vmem:[%s3000_s12 + $0xb0] sm:$0xff] }
  0x64   : > { %2608 = vmatpush3.bf16.msra.mxu1 %v2792_v55  ;;  %2581 = vmatprep.subr.bf16.mxu0 %v2793_v56  ;;  %v395_v55 = vld [vmem:[%s3000_s12 + $0xf0] sm:$0xff]  ;;  %v2287_v56 = vcombine.low %v372_v50, %v380_v53 }
  0x65   : > { %2609 = vmatprep.subr.bf16.mxu1 %v2794_v57  ;;  %v2288_v57 = vcombine.high %v372_v50, %v380_v53 }
  0x67   : > { %2582 = vmatpush3.bf16.msra.mxu0 %v2795_v58  ;;  %v2302_v58 = vcombine.high %v387_v54, %v395_v55 }
  0x68   : > { %2610 = vmatpush3.bf16.msra.mxu1 %v2796_v59  ;;  %2583 = vmatprep.subr.bf16.mxu0 %v2797_v60  ;;  %v388_v59 = vld [vmem:[%s3000_s12 + $0xb8] sm:$0xff] }
  0x69   : > { %2611 = vmatprep.subr.bf16.mxu1 %v2798_v61  ;;  %v396_v60 = vld [vmem:[%s3000_s12 + $0xf8] sm:$0xff] }
  0x6a   : > { %v2304_v61 = vcombine.high %v388_v59, %v396_v60 }
  0x6b   : > { %2584 = vmatpush3.bf16.msra.mxu0 %v2799_v62  ;;  %v2301_v62 = vcombine.low %v387_v54, %v395_v55 }
  0x6c   : > { %2612 = vmatpush3.bf16.msra.mxu1 %v2800_v63  ;;  %2625 = vmatprep.subr.bf16.mxu0 %v2801_v8  ;;  %v2303_v63 = vcombine.low %v388_v59, %v396_v60 }
  0x6d   : > { %2653 = vmatprep.subr.bf16.mxu1 %v2802_v9 }
  0x6e   : > { %1810 = vmatmul.mubr.bf16.vlgmr.msra.gmra.mxu0 %v2281_v2 }
  0x6f   : > { %1859 = vmatmul.mubr.bf16.vlgmr.msra.gmra.mxu1 %v2283_v6  ;;  %2626 = vmatpush3.bf16.msra.mxu0 %v2803_v10 }
  0x70   : > { %2654 = vmatpush3.bf16.msra.mxu1 %v2804_v11  ;;  %2627 = vmatprep.subr.bf16.mxu0 %v2805_v12 }
  0x71   : > { %2655 = vmatprep.subr.bf16.mxu1 %v2806_v13  ;;  %1817 = vmatprep.mubr.bf16.mxu0 %v2298_v18 }
  0x72   : > { %1866 = vmatprep.mubr.bf16.mxu1 %v2300_v24 }
  0x73   : > { %2628 = vmatpush3.bf16.msra.mxu0 %v2807_v14 }
  0x74   : > { %2656 = vmatpush3.bf16.msra.mxu1 %v2808_v15  ;;  %2629 = vmatprep.subr.bf16.mxu0 %v2809_v20 }
  0x75   : > { %2657 = vmatprep.subr.bf16.mxu1 %v2810_v21 }
  0x76   : > { %1818 = vmatmul.mubr.bf16.gmra.mxu0 %v2297_v19 }
  0x77   : > { %2630 = vmatpush3.bf16.msra.mxu0 %v2811_v25  ;;  %1867 = vmatmul.mubr.bf16.gmra.mxu1 %v2299_v26 }
  0x78   : > { %2658 = vmatpush3.bf16.msra.mxu1 %v2812_v27  ;;  %2631 = vmatprep.subr.bf16.mxu0 %v2813_v28 }
  0x79   : > { %2659 = vmatprep.subr.bf16.mxu1 %v2814_v29  ;;  %1907 = vmatprep.mubr.bf16.mxu0 %v2286_v52 }
  0x7a   : > { %1956 = vmatprep.mubr.bf16.mxu1 %v2288_v57 }
  0x7b   : > { %2632 = vmatpush3.bf16.msra.mxu0 %v2815_v30 }
  0x7c   : > { %2660 = vmatpush3.bf16.msra.mxu1 %v2816_v31  ;;  %2633 = vmatprep.subr.bf16.mxu0 %v2817_v32 }
  0x7d   : > { %2661 = vmatprep.subr.bf16.mxu1 %v2818_v33 }
  0x7f   : > { %2634 = vmatpush3.bf16.msra.mxu0 %v2819_v34 }
  0x80   : > { %2662 = vmatpush3.bf16.msra.mxu1 %v2820_v35  ;;  %2635 = vmatprep.subr.bf16.mxu0 %v2821_v36 }
  0x81   : > { %2663 = vmatprep.subr.bf16.mxu1 %v2822_v37 }
  0x83   : > { %2636 = vmatpush3.bf16.msra.mxu0 %v2823_v38 }
  0x84   : > { %2664 = vmatpush3.bf16.msra.mxu1 %v2824_v39  ;;  %2637 = vmatprep.subr.bf16.mxu0 %v2825_v40 }
  0x85   : > { %2665 = vmatprep.subr.bf16.mxu1 %v2826_v41 }
  0x87   : > { %2638 = vmatpush3.bf16.msra.mxu0 %v2827_v42 }
  0x88   : > { %2666 = vmatpush3.bf16.msra.mxu1 %v2828_v43  ;;  %2639 = vmatprep.subr.bf16.mxu0 %v2829_v44 }
  0x89   : > { %2667 = vmatprep.subr.bf16.mxu1 %v2830_v45 }
  0x8b   : > { %2640 = vmatpush3.bf16.msra.mxu0 %v2831_v46 }
  0x8c   : > { %2668 = vmatpush3.bf16.msra.mxu1 %v2832_v47 }
  0x8e   : > { %1908 = vmatmul.mubr.bf16.vlgmr.msra.gmra.mxu0 %v2285_v51 }
  0x8f   : > { %1957 = vmatmul.mubr.bf16.vlgmr.msra.gmra.mxu1 %v2287_v56  ;;  %1915 = vmatprep.mubr.bf16.mxu0 %v2302_v58 }
  0x90   : > { %1964 = vmatprep.mubr.bf16.mxu1 %v2304_v61 }
  0x96   : > { %1916 = vmatmul.mubr.bf16.gmra.mxu0 %v2301_v62 }
  0x97   : > { %1965 = vmatmul.mubr.bf16.gmra.mxu1 %v2303_v63 }
  0xee   : > { %v2473_v0 = vpop.f32.mrf.mxu0 }
  0xef   : > { %v2501_v2 = vpop.f32.mrf.mxu1 }
  0xf0   : > { %v2474_v1 = vpop.f32.mrf.mxu0 }
  0xf1   : > { %v2502_v4 = vpop.f32.mrf.mxu1  ;;  %v2475_v41 = vadd.f32 %v2474_v1, %v2473_v0 }
  0xf2   : > { %v2476_v3 = vpop.f32.mrf.mxu0  ;;  %v2503_v42 = vadd.f32 %v2502_v4, %v2501_v2 }
  0xf3   : > { %v2504_v6 = vpop.f32.mrf.mxu1 }
  0xf4   : > { %v2477_v5 = vpop.f32.mrf.mxu0  ;;  %v1665_v48 = vadd.f32 %v2503_v42, %v2475_v41 }
  0xf5   : > { %v2505_v8 = vpop.f32.mrf.mxu1  ;;  %v2478_v45 = vadd.f32 %v2477_v5, %v2476_v3 }
  0xf6   : > { %v2479_v7 = vpop.f32.mrf.mxu0  ;;  %v2506_v46 = vadd.f32 %v2505_v8, %v2504_v6 }
  0xf7   : > { %v2507_v10 = vpop.f32.mrf.mxu1 }
  0xf8   : > { %v2480_v9 = vpop.f32.mrf.mxu0  ;;  %v1668_v53 = vadd.f32 %v2506_v46, %v2478_v45 }
  0xf9   : > { %v2508_v12 = vpop.f32.mrf.mxu1  ;;  %v2481_v55 = vadd.f32 %v2480_v9, %v2479_v7 }
  0xfa   : > { %v2482_v11 = vpop.f32.mrf.mxu0  ;;  %v2509_v56 = vadd.f32 %v2508_v12, %v2507_v10 }
  0xfb   : > { %v2510_v14 = vpop.f32.mrf.mxu1 }
  0xfc   : > { %v2483_v13 = vpop.f32.mrf.mxu0  ;;  %v1673_v1 = vadd.f32 %v2509_v56, %v2481_v55 }
  0xfd   : > { %v2511_v16 = vpop.f32.mrf.mxu1  ;;  %v2484_v5 = vadd.f32 %v2483_v13, %v2482_v11 }
  0xfe   : > { %v2512_v6 = vadd.f32 %v2511_v16, %v2510_v14 }
 0x10e   : > { %v2529_v15 = vpop.f32.mrf.mxu0 }
 0x10f   : > { %v2557_v18 = vpop.f32.mrf.mxu1 }
 0x110   : > { %v2530_v17 = vpop.f32.mrf.mxu0 }
 0x111   : > { %v2558_v20 = vpop.f32.mrf.mxu1  ;;  %v2531_v44 = vadd.f32 %v2530_v17, %v2529_v15 }
 0x112   : > { %v2532_v19 = vpop.f32.mrf.mxu0  ;;  %v2559_v52 = vadd.f32 %v2558_v20, %v2557_v18 }
 0x113   : > { %v2560_v22 = vpop.f32.mrf.mxu1  ;;  %v1714_v51 = vadd.f32 %v2531_v44, %v1665_v48 }
 0x114   : > { %v2533_v21 = vpop.f32.mrf.mxu0 }
 0x115   : > { %v2561_v24 = vpop.f32.mrf.mxu1  ;;  %v2534_v50 = vadd.f32 %v2533_v21, %v2532_v19  ;;  %v1763_v60 = vadd.f32 %v2559_v52, %v1714_v51 }
 0x116   : > { %v2535_v23 = vpop.f32.mrf.mxu0  ;;  %v2562_v62 = vadd.f32 %v2561_v24, %v2560_v22 }
 0x117   : > { %v2563_v25 = vpop.f32.mrf.mxu1  ;;  %v1717_v59 = vadd.f32 %v2534_v50, %v1668_v53 }
 0x118   : > { %v2536_v26 = vpop.f32.mrf.mxu0 }
 0x119   : > { %v2564_v27 = vpop.f32.mrf.mxu1  ;;  %v2537_v61 = vadd.f32 %v2536_v26, %v2535_v23  ;;  %v1766_v8 = vadd.f32 %v2562_v62, %v1717_v59  ;;  %v1676_v23 = vadd.f32 %v2512_v6, %v2484_v5 }
 0x11a   : > { %v2538_v28 = vpop.f32.mrf.mxu0  ;;  %v2565_v18 = vadd.f32 %v2564_v27, %v2563_v25 }
 0x11b   : > { %v2566_v29 = vpop.f32.mrf.mxu1  ;;  %v1722_v17 = vadd.f32 %v2537_v61, %v1673_v1 }
 0x11c   : > { %v2539_v30 = vpop.f32.mrf.mxu0 }
 0x11d   : > { %v2567_v32 = vpop.f32.mrf.mxu1  ;;  %v2540_v9 = vadd.f32 %v2539_v30, %v2538_v28 }
 0x11e   : > { %v2568_v13 = vadd.f32 %v2567_v32, %v2566_v29  ;;  %v2433_v29 = vld [vmem:[%s3350_s2] ss:$0 sm:$0xff] }
 0x11f   : > { %v1725_v11 = vadd.f32 %v2540_v9, %v1676_v23 }
 0x121   : > { %v1774_v44 = vadd.f32 %v2568_v13, %v1725_v11 }
 0x12e   : > { %v2585_v31 = vpop.f32.mrf.mxu0 }
 0x12f   : > { %v2613_v33 = vpop.f32.mrf.mxu1 }
 0x130   : > { %v2586_v34 = vpop.f32.mrf.mxu0 }
 0x131   : > { %v2614_v35 = vpop.f32.mrf.mxu1  ;;  %v2587_v57 = vadd.f32 %v2586_v34, %v2585_v31  ;;  %v1771_v31 = vadd.f32 %v2565_v18, %v1722_v17 }
 0x132   : > { %v2588_v36 = vpop.f32.mrf.mxu0  ;;  %v2615_v3 = vadd.f32 %v2614_v35, %v2613_v33 }
 0x133   : > { %v2616_v37 = vpop.f32.mrf.mxu1  ;;  %v1812_v2 = vadd.f32 %v2587_v57, %v1763_v60 }
 0x134   : > { %v2589_v38 = vpop.f32.mrf.mxu0 }
 0x135   : > { %v2617_v39 = vpop.f32.mrf.mxu1  ;;  %v2590_v63 = vadd.f32 %v2589_v38, %v2588_v36  ;;  %v1861_v19 = vadd.f32 %v2615_v3, %v1812_v2 }
 0x136   : > { %v2591_v40 = vpop.f32.mrf.mxu0  ;;  %v2618_v24 = vadd.f32 %v2617_v39, %v2616_v37 }
 0x137   : > { %v2619_v43 = vpop.f32.mrf.mxu1  ;;  %v1815_v10 = vadd.f32 %v2590_v63, %v1766_v8 }
 0x138   : > { %v2592_v47 = vpop.f32.mrf.mxu0 }
 0x139   : > { %v2620_v49 = vpop.f32.mrf.mxu1  ;;  %v2593_v20 = vadd.f32 %v2592_v47, %v2591_v40  ;;  %v1864_v14 = vadd.f32 %v2618_v24, %v1815_v10  ;;  %v1999_v40 = vlaneseq }
 0x13a   : > { %v2594_v54 = vpop.f32.mrf.mxu0  ;;  %v2621_v25 = vadd.f32 %v2620_v49, %v2619_v43 }
 0x13b   : > { %v2622_v58 = vpop.f32.mrf.mxu1  ;;  %v1820_v35 = vadd.f32 %v2593_v20, %v1771_v31  ;;  %v2000_v51 = vshrl.u32 %v1999_v40, 7 }
 0x13c   : > { %v2595_v0 = vpop.f32.mrf.mxu0 }
 0x13d   : > { %v2623_v4 = vpop.f32.mrf.mxu1  ;;  %v2596_v36 = vadd.f32 %v2595_v0, %v2594_v54  ;;  %v1869_v45 = vadd.f32 %v2621_v25, %v1820_v35  ;;  %v2003_v1 = vadd.s32 24, %v2000_v51 }
 0x13e   : > { %v2624_v49 = vadd.f32 %v2623_v4, %v2622_v58 }
 0x13f   : > { %v1823_v48 = vadd.f32 %v2596_v36, %v1774_v44  ;;  %vm2013_vm0 = vcmp.lt.s32.totalorder %v2003_v1, 25 }
 0x141   : > { %v1872_v62 = vadd.f32 %v2624_v49, %v1823_v48 }
 0x14e   : > { %v2641_v15 = vpop.f32.mrf.mxu0 }
 0x14f   : > { %v2669_v7 = vpop.f32.mrf.mxu1 }
 0x150   : > { %v2642_v12 = vpop.f32.mrf.mxu0 }
 0x151   : > { %v2643_v21 = vadd.f32 %v2642_v12, %v2641_v15  ;;  %v2670_v22 = vpop.f32.mrf.mxu1 }
 0x152   : > { %v2644_v26 = vpop.f32.mrf.mxu0  ;;  %v2671_v27 = vadd.f32 %v2670_v22, %v2669_v7 }
 0x153   : > { %v1910_v33 = vadd.f32 %v2643_v21, %v1861_v19  ;;  %v2672_v34 = vpop.f32.mrf.mxu1 }
 0x154   : > { %v2645_v16 = vpop.f32.mrf.mxu0 }
 0x155   : > { %v2646_v28 = vadd.f32 %v2645_v16, %v2644_v26  ;;  %v2673_v30 = vpop.f32.mrf.mxu1  ;;  %v1959_v41 = vadd.f32 %v2671_v27, %v1910_v33 }
 0x156   : > { %v2647_v38 = vpop.f32.mrf.mxu0  ;;  %v2674_v37 = vadd.f32 %v2673_v30, %v2672_v34 }
 0x157   : > { %v1913_v42 = vadd.f32 %v2646_v28, %v1864_v14  ;;  %v2675_v39 = vpop.f32.mrf.mxu1  ;;  %v1995_v52 = vadd.f32 %v2433_v29, %v1959_v41 }
 0x158   : > { %v2648_v32 = vpop.f32.mrf.mxu0 }
 0x159   : > { %v1962_v46 = vadd.f32 %v2674_v37, %v1913_v42  ;;  %v2649_v43 = vadd.f32 %v2648_v32, %v2647_v38  ;;  %v2676_v47 = vpop.f32.mrf.mxu1  ;;  %v2035_v5 = vmul.f32 %v1995_v52, %v1995_v52 }
 0x15a   : > { %v2650_v50 = vpop.f32.mrf.mxu0  ;;  %v2677_v55 = vadd.f32 %v2676_v47, %v2675_v39 }
 0x15b   : > { %v1996_v53 = vadd.f32 %v2433_v29, %v1962_v46  ;;  %v1918_v54 = vadd.f32 %v2649_v43, %v1869_v45  ;;  %v2678_v56 = vpop.f32.mrf.mxu1 }
 0x15c   : > { %v2651_v57 = vpop.f32.mrf.mxu0 }
 0x15d   : > { %v2449_v59 = vpack.c.bf16 %v1996_v53, %v1995_v52  ;;  %v1967_v60 = vadd.f32 %v2677_v55, %v1918_v54  ;;  %v2679_v61 = vpop.f32.mrf.mxu1  ;;  %v2652_v63 = vadd.f32 %v2651_v57, %v2650_v50  ;;  %v2036_v3 = vmul.f32 %v1996_v53, %v1996_v53 }
 0x15e   : > { %v2680_v2 = vadd.f32 %v2679_v61, %v2678_v56  ;;  %v2026_v6 = vadd.f32 %v1996_v53, %v1995_v52 }
 0x15f   : > { %v1997_v0 = vadd.f32 %v2433_v29, %v1967_v60  ;;  %2450 = vst [vmem:[%s340_s28] sm:$0xff] %v2449_v59   ;;  %v1921_v58 = vadd.f32 %v2652_v63, %v1872_v62  ;;  %v2039_v17 = vadd.f32 %v2036_v3, %v2035_v5 }
 0x161   : > { %v1970_v4 = vadd.f32 %v2680_v2, %v1921_v58  ;;  %v2037_v8 = vmul.f32 %v1997_v0, %v1997_v0  ;;  %v2027_v18 = vadd.f32 %v2026_v6, %v1997_v0 }
 0x163   : > { %v1998_v15 = vadd.f32 %v2433_v29, %v1970_v4  ;;  %v2040_v10 = vadd.f32 %v2039_v17, %v2037_v8 }
 0x165   : > { %v2025_v7 = vsel %vm2013_vm0, %v1998_v15, 0.0  ;;  %v2454_v9 = vpack.c.bf16 %v1998_v15, %v1997_v0 }
 0x166   : > { %v2028_v12 = vadd.f32 %v2027_v18, %v2025_v7  ;;  %v2038_v19 = vmul.f32 %v2025_v7, %v2025_v7 }
 0x167   : > { %2456 = vst [vmem:[%s340_s28 + $0x8] sm:$0xff] %v2454_v9  }
 0x168   : > { %v2029_v20 = vrot.slane %v2028_v12, 4  ;;  %v2041_v21 = vadd.f32 %v2040_v10, %v2038_v19 }
 0x16a   : > { %v2030_v22 = vadd.f32 %v2029_v20, %v2028_v12  ;;  %v2042_v23 = vrot.slane %v2041_v21, 4 }
 0x16c   : > { %v2031_v24 = vrot.slane %v2030_v22, 2  ;;  %v2043_v26 = vadd.f32 %v2042_v23, %v2041_v21 }
 0x16e   : > { %v2032_v31 = vadd.f32 %v2031_v24, %v2030_v22  ;;  %v2044_v33 = vrot.slane %v2043_v26, 2 }
 0x170   : > { %v2033_v34 = vrot.slane %v2032_v31, 1  ;;  %v2045_v11 = vadd.f32 %v2044_v33, %v2043_v26 }
 0x172   : > { %v2046_v13 = vrot.slane %v2045_v11, 1  ;;  %v2034_v14 = vadd.f32 %v2033_v34, %v2032_v31 }
 0x174   : > { %v2047_v16 = vadd.f32 %v2046_v13, %v2045_v11 }
 0x176   : > { %v2049_v35 = vsel %vm2048_vm1, %v2034_v14, %v2047_v16 }
 0x177   : > { %2050 = vst [vmem:[%s351_s6] sm:$0x3] %v2049_v35 }
 0x178 PF: > { %s15_s17 = sadd.s32 1, %s2855_s17   ;;  %s3353_s15 = smov %s2851_s16 }
 0x179   : > { %p12_p5 = scmp.ge.s32.totalorder %s15_s17, 4   ;;  %s3354_s16 = smov %s3356_s18 }
 0x17b   :  { %14 = sbr.rel (!%p12_p5) target bundleno = 2 (0x2), region = 88 }

// kernel: _lambda_.12
= control target key start
LH: loop header
LB: loop body
LE: loop exit
PB: predicated region body
PF: predicated region fallthrough
CT: control target
= control target key end

     0   :  { %s489_s9 = smov 0   ;;  %s491_s10 = smov 0   ;;  %s533_s0 = inlined_call_operand.vmem [shape: bf16[2,16,256], index: 0, kind: input, shape index: {}]   ;;  %s534_s1 = inlined_call_operand.vmem [shape: f32[2,2,256], index: 1, kind: input, shape index: {}]   ;;  %s535_s2 = inlined_call_operand.vmem [shape: bf16[2,16,256], index: 2, kind: output, shape index: {}]  }
   0x1   :  { %s493_s11 = smov 0  }
   0x2 LB: > { %s24_s12 = sadd.s32 1, %s468_s10  ;;  %p408_p0 = scmp.ge.s32.totalorder %s472_s11, 1  ;;  %s472_s11 = sphi %s493_s11, %s12_s11   ;;  %s468_s10 = sphi %s491_s10, %s537_s10   ;;  %s464_s9 = sphi %s489_s9, %s536_s9  }
   0x3   : > { %p26_p1 = scmp.ge.s32.totalorder %s24_s12, 2  ;;  %p144_p2 = scmp.lt.s32.totalorder %s472_s11, 3 }
   0x5   : > { %s539_s12 = smov (%p26_p1, %s24_s12), 0  ;;  %p145_p3 = pnand %p408_p0, %p144_p2 }
   0x6   : > { %p182_p4 = scmp.lt.s32.totalorder (!%p145_p3), %s464_s9, 1 }
   0x7   : > { %148 = sbr.rel (%p145_p3) target bundleno = 55 (0x37), region = 28 }
   0xc   : > { %s541_s9 = smov (!%p182_p4, %s464_s9), 1  ;;  %v223_v4 = vlaneseq }
   0xd   : > { %s420_s13 = sshll.u32 %s541_s9, 2  ;;  %s419_s17 = sshll.u32 %s541_s9, 4 }
   0xe   : > { %s196_s16 = scalar_lea.vmem %s534_s1, %s420_s13  ;;  %v224_v7 = vshrl.u32 %v223_v4, 7  ;;  %s190_s20 = scalar_lea.vmem %s533_s0, %s419_s17 }
   0xf   : > { %v214_v0 = vld [vmem:[%s196_s16] sm:$0xf]  ;;  %v209_v14 = vld [vmem:[%s190_s20 + $0x8] sm:$0xff]  ;;  %s206_s23 = scalar_lea.vmem %s535_s2, %s419_s17 }
  0x10   : > { %v215_v1 = vmul.f32 0.11111111, %v214_v0  ;;  %v225_v9 = vsub.s32 0, %v224_v7  ;;  %v229_v10 = vsub.s32 2, %v224_v7  ;;  %v208_v13 = vld [vmem:[%s190_s20] sm:$0xff]  ;;  %v212_v19 = vunpack.c.l.bf16 %v209_v14 }
  0x11   : > { %v210_v15 = vunpack.c.l.bf16 %v208_v13  ;;  %v211_v16 = vunpack.c.h.bf16 %v208_v13  ;;  %v213_v20 = vunpack.c.h.bf16 %v209_v14  ;;  %v250_v21 = vsub.s32 1, %v224_v7 }
  0x12   : > { %v216_v2 = vmul.f32 %v215_v1, %v215_v1  ;;  %v226_v11 = vrot.slane %v215_v1, %v225_v9  ;;  %v230_v12 = vrot.slane %v215_v1, %v229_v10  ;;  %v254_v22 = vsub.s32 3, %v224_v7 }
  0x14   : > { %v218_v3 = vrot.slane %v216_v2, 7  ;;  %v236_v17 = vrot.slane %v226_v11, %v225_v9  ;;  %v240_v18 = vrot.slane %v230_v12, %v225_v9 }
  0x16   : > { %v220_v5 = vsub.f32 %v215_v1, %v218_v3  ;;  %v241_v24 = vsub.f32 %v210_v15, %v236_v17  ;;  %v242_v25 = vsub.f32 %v211_v16, %v240_v18  ;;  %v243_v26 = vsub.f32 %v212_v19, %v236_v17 }
  0x17   : > { %v244_v27 = vsub.f32 %v213_v20, %v240_v18 }
  0x18   : > { %v221_v6 = vmax.f32 %v220_v5, 0.0 }
  0x1a   : > { %v245_v8 = vadd.f32 1e-05, %v221_v6 }
  0x1c   : > { %448 = vrsqrt.f32 %v245_v8 }
  0x29   : > { %v449_v23 = vpop.eup %448 }
  0x2a   : > { %v251_v28 = vrot.slane %v449_v23, %v250_v21  ;;  %v255_v29 = vrot.slane %v449_v23, %v254_v22 }
  0x2c   : > { %v261_v30 = vrot.slane %v251_v28, %v250_v21  ;;  %v265_v31 = vrot.slane %v255_v29, %v250_v21 }
  0x2e   : > { %v266_v32 = vmul.f32 %v261_v30, %v241_v24  ;;  %v267_v33 = vmul.f32 %v265_v31, %v242_v25  ;;  %v268_v34 = vmul.f32 %v261_v30, %v243_v26  ;;  %v269_v35 = vmul.f32 %v265_v31, %v244_v27 }
  0x30   : > { %vm270_vm0 = vcmp.gt.f32.partialorder %v266_v32, 0.0  ;;  %vm271_vm1 = vcmp.gt.f32.partialorder %v267_v33, 0.0  ;;  %v274_v36 = vmul.f32 0.2, %v266_v32  ;;  %v275_v37 = vmul.f32 0.2, %v267_v33 }
  0x31   : > { %vm272_vm2 = vcmp.gt.f32.partialorder %v268_v34, 0.0  ;;  %vm273_vm3 = vcmp.gt.f32.partialorder %v269_v35, 0.0  ;;  %v276_v38 = vmul.f32 0.2, %v268_v34  ;;  %v277_v39 = vmul.f32 0.2, %v269_v35 }
  0x32   : > { %v278_v40 = vsel %vm270_vm0, %v266_v32, %v274_v36  ;;  %v279_v41 = vsel %vm271_vm1, %v267_v33, %v275_v37 }
  0x33   : > { %v422_v42 = vpack.c.bf16 %v279_v41, %v278_v40  ;;  %v280_v43 = vsel %vm272_vm2, %v268_v34, %v276_v38  ;;  %v281_v44 = vsel %vm273_vm3, %v269_v35, %v277_v39 }
  0x34   : > { %v423_v45 = vpack.c.bf16 %v281_v44, %v280_v43 }
  0x35   : > { %294 = vst [vmem:[%s206_s23] sm:$0xff] %v422_v42 }
  0x36   : > { %295 = vst [vmem:[%s206_s23 + $0x8] sm:$0xff] %v423_v45 }
  0x37 PF: > { %s12_s11 = sadd.s32 1, %s472_s11   ;;  %s536_s9 = smov %s468_s10 }
  0x38   : > { %p9_p5 = scmp.ge.s32.totalorder %s12_s11, 4   ;;  %s537_s10 = smov %s539_s12 }
  0x3a   :  { %11 = sbr.rel (!%p9_p5) target bundleno = 2 (0x2), region = 61 }

// kernel: _lambda_.11
= control target key start
LH: loop header
LB: loop body
LE: loop exit
PB: predicated region body
PF: predicated region fallthrough
CT: control target
= control target key end

     0   :  { %s3443_s15 = smov 0   ;;  %s3445_s16 = smov 0   ;;  %s4325_s0 = inlined_call_operand.vmem [shape: bf16[2,16,2048], index: 0, kind: input, shape index: {}]   ;;  %s4326_s1 = inlined_call_operand.vmem [shape: bf16[2048,256], index: 1, kind: input, shape index: {}]   ;;  %s4327_s2 = inlined_call_operand.vmem [shape: f32[1,256], index: 2, kind: input, shape index: {}]   ;;  %s4328_s3 = inlined_call_operand.vmem [shape: bf16[2,16,256], index: 3, kind: output, shape index: {0}]   ;;  %s4329_s4 = inlined_call_operand.vmem [shape: f32[2,1,2,256], index: 4, kind: output, shape index: {1}]  }
   0x1   :  { %s3447_s17 = smov 0  }
   0x2 LB: > { %s41_s18 = sadd.s32 1, %s3412_s16  ;;  %p2697_p0 = scmp.ge.s32.totalorder %s3416_s17, 1  ;;  %s3416_s17 = sphi %s3447_s17, %s15_s17   ;;  %s3412_s16 = sphi %s3445_s16, %s4331_s16   ;;  %s3408_s15 = sphi %s3443_s15, %s4330_s15  }
   0x3   : > { %p43_p1 = scmp.ge.s32.totalorder %s41_s18, 2  ;;  %p243_p2 = scmp.lt.s32.totalorder %s3416_s17, 3 }
   0x5   : > { %s4333_s18 = smov (%p43_p1, %s41_s18), 0  ;;  %p244_p3 = pnand %p2697_p0, %p243_p2 }
   0x6   : > { %p316_p4 = scmp.lt.s32.totalorder (!%p244_p3), %s3408_s15, 1 }
   0x7   : > { %247 = sbr.rel (%p244_p3) target bundleno = 495 (0x1ef), region = 32 }
   0xc   : > { %v3010_v0 = vld [vmem:[%s4326_s1 + $0x74] ss:$8 sps:$4 sm:$0xff]   ;;  %v3014_v2 = vld [vmem:[%s4326_s1 + $0x70] ss:$8 sps:$4 sm:$0xff]   ;;  %v3016_v4 = vld [vmem:[%s4326_s1 + $0x64] ss:$8 sps:$4 sm:$0xff]  }
   0xd   : > { %v3012_v1 = vld [vmem:[%s4326_s1 + $0x174] ss:$8 sps:$4 sm:$0xff]   ;;  %2021 = vmatprep.subr.bf16.mxu0 %v3010_v0  ;;  %v3015_v3 = vld [vmem:[%s4326_s1 + $0x170] ss:$8 sps:$4 sm:$0xff]   ;;  %v3018_v5 = vld [vmem:[%s4326_s1 + $0x164] ss:$8 sps:$4 sm:$0xff]  }
   0xe   : > { %2064 = vmatprep.subr.bf16.mxu1 %v3012_v1  ;;  %2022 = vmatpush1.bf16.msra.mxu0 %v3014_v2  ;;  %v3020_v6 = vld [vmem:[%s4326_s1 + $0x60] ss:$8 sps:$4 sm:$0xff]   ;;  %v3022_v8 = vld [vmem:[%s4326_s1 + $0x54] ss:$8 sps:$4 sm:$0xff]   ;;  %v3026_v10 = vld [vmem:[%s4326_s1 + $0x50] ss:$8 sps:$4 sm:$0xff]  }
   0xf   : > { %2065 = vmatpush1.bf16.msra.mxu1 %v3015_v3  ;;  %2023 = vmatprep.subr.bf16.mxu0 %v3016_v4  ;;  %v3021_v7 = vld [vmem:[%s4326_s1 + $0x160] ss:$8 sps:$4 sm:$0xff]   ;;  %v3024_v9 = vld [vmem:[%s4326_s1 + $0x154] ss:$8 sps:$4 sm:$0xff]   ;;  %v3027_v11 = vld [vmem:[%s4326_s1 + $0x150] ss:$8 sps:$4 sm:$0xff]  }
  0x10   : > { %2066 = vmatprep.subr.bf16.mxu1 %v3018_v5  ;;  %v3028_v12 = vld [vmem:[%s4326_s1 + $0x44] ss:$8 sps:$4 sm:$0xff]   ;;  %v3032_v14 = vld [vmem:[%s4326_s1 + $0x40] ss:$8 sps:$4 sm:$0xff]   ;;  %v3034_v16 = vld [vmem:[%s4326_s1 + $0x34] ss:$8 sps:$4 sm:$0xff]  }
  0x11   : > { %v3030_v13 = vld [vmem:[%s4326_s1 + $0x144] ss:$8 sps:$4 sm:$0xff]   ;;  %v3033_v15 = vld [vmem:[%s4326_s1 + $0x140] ss:$8 sps:$4 sm:$0xff]   ;;  %v3036_v17 = vld [vmem:[%s4326_s1 + $0x134] ss:$8 sps:$4 sm:$0xff]  }
  0x12   : > { %2024 = vmatpush1.bf16.msra.mxu0 %v3020_v6  ;;  %v3038_v18 = vld [vmem:[%s4326_s1 + $0x30] ss:$8 sps:$4 sm:$0xff]   ;;  %v3040_v20 = vld [vmem:[%s4326_s1 + $0x24] ss:$8 sps:$4 sm:$0xff]   ;;  %v3044_v22 = vld [vmem:[%s4326_s1 + $0x20] ss:$8 sps:$4 sm:$0xff]  }
  0x13   : > { %2067 = vmatpush1.bf16.msra.mxu1 %v3021_v7  ;;  %2025 = vmatprep.subr.bf16.mxu0 %v3022_v8  ;;  %v3039_v19 = vld [vmem:[%s4326_s1 + $0x130] ss:$8 sps:$4 sm:$0xff]   ;;  %v3042_v21 = vld [vmem:[%s4326_s1 + $0x124] ss:$8 sps:$4 sm:$0xff]   ;;  %v3045_v23 = vld [vmem:[%s4326_s1 + $0x120] ss:$8 sps:$4 sm:$0xff]  }
  0x14   : > { %2068 = vmatprep.subr.bf16.mxu1 %v3024_v9  ;;  %v3046_v24 = vld [vmem:[%s4326_s1 + $0x14] ss:$8 sps:$4 sm:$0xff]   ;;  %v3050_v26 = vld [vmem:[%s4326_s1 + $0x10] ss:$8 sps:$4 sm:$0xff]   ;;  %v3052_v28 = vld [vmem:[%s4326_s1 + $0x4] ss:$8 sps:$4 sm:$0xff]  }
  0x15   : > { %v3048_v25 = vld [vmem:[%s4326_s1 + $0x114] ss:$8 sps:$4 sm:$0xff]   ;;  %v3051_v27 = vld [vmem:[%s4326_s1 + $0x110] ss:$8 sps:$4 sm:$0xff]   ;;  %v3054_v29 = vld [vmem:[%s4326_s1 + $0x104] ss:$8 sps:$4 sm:$0xff]  }
  0x16   : > { %2026 = vmatpush1.bf16.msra.mxu0 %v3026_v10  ;;  %v3056_v30 = vld [vmem:[%s4326_s1] ss:$8 sps:$4 sm:$0xff]   ;;  %v3058_v32 = vld [vmem:[%s4326_s1 + $0xf4] ss:$8 sps:$4 sm:$0xff]   ;;  %v3062_v34 = vld [vmem:[%s4326_s1 + $0xf0] ss:$8 sps:$4 sm:$0xff]  }
  0x17   : > { %2069 = vmatpush1.bf16.msra.mxu1 %v3027_v11  ;;  %2027 = vmatprep.subr.bf16.mxu0 %v3028_v12  ;;  %v3057_v31 = vld [vmem:[%s4326_s1 + $0x100] ss:$8 sps:$4 sm:$0xff]   ;;  %v3060_v33 = vld [vmem:[%s4326_s1 + $0x1f4] ss:$8 sps:$4 sm:$0xff]   ;;  %v3063_v35 = vld [vmem:[%s4326_s1 + $0x1f0] ss:$8 sps:$4 sm:$0xff]  }
  0x18   : > { %2070 = vmatprep.subr.bf16.mxu1 %v3030_v13  ;;  %v3064_v36 = vld [vmem:[%s4326_s1 + $0xe4] ss:$8 sps:$4 sm:$0xff]   ;;  %s4335_s15 = smov (!%p316_p4, %s3408_s15), 1  ;;  %v3068_v38 = vld [vmem:[%s4326_s1 + $0xe0] ss:$8 sps:$4 sm:$0xff]   ;;  %vm2445_vm1 = vcmask 1040384  }
  0x19   : > { %v3066_v37 = vld [vmem:[%s4326_s1 + $0x1e4] ss:$8 sps:$4 sm:$0xff]   ;;  %v3069_v39 = vld [vmem:[%s4326_s1 + $0x1e0] ss:$8 sps:$4 sm:$0xff]   ;;  %v3070_v40 = vld [vmem:[%s4326_s1 + $0xd4] ss:$8 sps:$4 sm:$0xff]  }
  0x1a   : > { %2028 = vmatpush1.bf16.msra.mxu0 %v3032_v14  ;;  %s2981_s9 = sshll.u32 %s4335_s15, 7  ;;  %v3072_v41 = vld [vmem:[%s4326_s1 + $0x1d4] ss:$8 sps:$4 sm:$0xff]   ;;  %v3074_v42 = vld [vmem:[%s4326_s1 + $0xd0] ss:$8 sps:$4 sm:$0xff]   ;;  %s2982_s23 = sshll.u32 %s4335_s15, 4 }
  0x1b   : > { %2071 = vmatpush1.bf16.msra.mxu1 %v3033_v15  ;;  %2029 = vmatprep.subr.bf16.mxu0 %v3034_v16  ;;  %v3075_v43 = vld [vmem:[%s4326_s1 + $0x1d0] ss:$8 sps:$4 sm:$0xff]   ;;  %s3603_s22 = scalar_lea.vmem %s4325_s0, %s2981_s9  ;;  %v3076_v44 = vld [vmem:[%s4326_s1 + $0xc4] ss:$8 sps:$4 sm:$0xff]   ;;  %v3080_v46 = vld [vmem:[%s4326_s1 + $0xc0] ss:$8 sps:$4 sm:$0xff]   ;;  %s360_s26 = scalar_lea.vmem %s4328_s3, %s2982_s23 }
  0x1c   : > { %2072 = vmatprep.subr.bf16.mxu1 %v3036_v17  ;;  %v3078_v45 = vld [vmem:[%s4326_s1 + $0x1c4] ss:$8 sps:$4 sm:$0xff]   ;;  %v3081_v47 = vld [vmem:[%s4326_s1 + $0x1c0] ss:$8 sps:$4 sm:$0xff]   ;;  %v3082_v52 = vld [vmem:[%s4326_s1 + $0xb4] ss:$8 sps:$4 sm:$0xff]  }
  0x1d   : > { %v389_v48 = vld [vmem:[%s3603_s22] sm:$0xff]  ;;  %v390_v50 = vld [vmem:[%s3603_s22 + $0x8] sm:$0xff]  ;;  %v3084_v54 = vld [vmem:[%s4326_s1 + $0x1b4] ss:$8 sps:$4 sm:$0xff]   ;;  %s2983_s27 = sshll.u32 %s4335_s15, 2 }
  0x1e   : > { %2030 = vmatpush1.bf16.msra.mxu0 %v3038_v18  ;;  %v397_v49 = vld [vmem:[%s3603_s22 + $0x40] sm:$0xff]  ;;  %v398_v51 = vld [vmem:[%s3603_s22 + $0x48] sm:$0xff]  ;;  %v3086_v56 = vld [vmem:[%s4326_s1 + $0xb0] ss:$8 sps:$4 sm:$0xff]   ;;  %s375_s30 = scalar_lea.vmem %s4329_s4, %s2983_s27 }
  0x1f   : > { %2073 = vmatpush1.bf16.msra.mxu1 %v3039_v19  ;;  %2031 = vmatprep.subr.bf16.mxu0 %v3040_v20  ;;  %v2705_v53 = vcombine.high %v389_v48, %v397_v49  ;;  %v2707_v55 = vcombine.high %v390_v50, %v398_v51  ;;  %v3087_v57 = vld [vmem:[%s4326_s1 + $0x1b0] ss:$8 sps:$4 sm:$0xff]   ;;  %v3088_v58 = vld [vmem:[%s4326_s1 + $0xa4] ss:$8 sps:$4 sm:$0xff]   ;;  %v3092_v60 = vld [vmem:[%s4326_s1 + $0xa0] ss:$8 sps:$4 sm:$0xff]   ;;  %v2704_v8 = vcombine.low %v389_v48, %v397_v49 }
  0x20   : > { %2074 = vmatprep.subr.bf16.mxu1 %v3042_v21  ;;  %v3090_v59 = vld [vmem:[%s4326_s1 + $0x1a4] ss:$8 sps:$4 sm:$0xff]   ;;  %v3093_v61 = vld [vmem:[%s4326_s1 + $0x1a0] ss:$8 sps:$4 sm:$0xff]   ;;  %v3094_v62 = vld [vmem:[%s4326_s1 + $0x94] ss:$8 sps:$4 sm:$0xff]   ;;  %v2706_v9 = vcombine.low %v390_v50, %v398_v51 }
  0x21   : > { %2053 = vmatprep.mubr.bf16.mxu0 %v2705_v53  ;;  %2096 = vmatprep.mubr.bf16.mxu1 %v2707_v55  ;;  %v3096_v63 = vld [vmem:[%s4326_s1 + $0x194] ss:$8 sps:$4 sm:$0xff]   ;;  %v3098_v0 = vld [vmem:[%s4326_s1 + $0x90] ss:$8 sps:$4 sm:$0xff]   ;;  %v3100_v2 = vld [vmem:[%s4326_s1 + $0x84] ss:$8 sps:$4 sm:$0xff]  }
  0x22   : > { %2032 = vmatpush1.bf16.msra.mxu0 %v3044_v22  ;;  %v3099_v1 = vld [vmem:[%s4326_s1 + $0x190] ss:$8 sps:$4 sm:$0xff]   ;;  %v3102_v3 = vld [vmem:[%s4326_s1 + $0x184] ss:$8 sps:$4 sm:$0xff]   ;;  %v3104_v4 = vld [vmem:[%s4326_s1 + $0x80] ss:$8 sps:$4 sm:$0xff]  }
  0x23   : > { %2075 = vmatpush1.bf16.msra.mxu1 %v3045_v23  ;;  %2033 = vmatprep.subr.bf16.mxu0 %v3046_v24  ;;  %v3105_v5 = vld [vmem:[%s4326_s1 + $0x180] ss:$8 sps:$4 sm:$0xff]   ;;  %v3108_v6 = vld [vmem:[%s4326_s1 + $0x274] ss:$8 sps:$4 sm:$0xff]   ;;  %v3106_v10 = vld [vmem:[%s4326_s1 + $0x270] ss:$8 sps:$4 sm:$0xff]  }
  0x24   : > { %2076 = vmatprep.subr.bf16.mxu1 %v3048_v25  ;;  %v3111_v7 = vld [vmem:[%s4326_s1 + $0x374] ss:$8 sps:$4 sm:$0xff]   ;;  %v3109_v11 = vld [vmem:[%s4326_s1 + $0x370] ss:$8 sps:$4 sm:$0xff]   ;;  %v3114_v12 = vld [vmem:[%s4326_s1 + $0x264] ss:$8 sps:$4 sm:$0xff]  }
  0x25   : > { %v3117_v13 = vld [vmem:[%s4326_s1 + $0x364] ss:$8 sps:$4 sm:$0xff]   ;;  %v3112_v14 = vld [vmem:[%s4326_s1 + $0x260] ss:$8 sps:$4 sm:$0xff]   ;;  %v3120_v16 = vld [vmem:[%s4326_s1 + $0x254] ss:$8 sps:$4 sm:$0xff]  }
  0x26   : > { %2034 = vmatpush1.bf16.msra.mxu0 %v3050_v26  ;;  %v3115_v15 = vld [vmem:[%s4326_s1 + $0x360] ss:$8 sps:$4 sm:$0xff]   ;;  %v3123_v17 = vld [vmem:[%s4326_s1 + $0x354] ss:$8 sps:$4 sm:$0xff]   ;;  %v3118_v18 = vld [vmem:[%s4326_s1 + $0x250] ss:$8 sps:$4 sm:$0xff]  }
  0x27   : > { %2077 = vmatpush1.bf16.msra.mxu1 %v3051_v27  ;;  %2035 = vmatprep.subr.bf16.mxu0 %v3052_v28  ;;  %v3121_v19 = vld [vmem:[%s4326_s1 + $0x350] ss:$8 sps:$4 sm:$0xff]   ;;  %v3126_v20 = vld [vmem:[%s4326_s1 + $0x244] ss:$8 sps:$4 sm:$0xff]   ;;  %v3124_v22 = vld [vmem:[%s4326_s1 + $0x240] ss:$8 sps:$4 sm:$0xff]  }
  0x28   : > { %2078 = vmatprep.subr.bf16.mxu1 %v3054_v29  ;;  %v3129_v21 = vld [vmem:[%s4326_s1 + $0x344] ss:$8 sps:$4 sm:$0xff]   ;;  %v3127_v23 = vld [vmem:[%s4326_s1 + $0x340] ss:$8 sps:$4 sm:$0xff]   ;;  %v3132_v24 = vld [vmem:[%s4326_s1 + $0x234] ss:$8 sps:$4 sm:$0xff]  }
  0x29   : > { %v3135_v25 = vld [vmem:[%s4326_s1 + $0x334] ss:$8 sps:$4 sm:$0xff]   ;;  %v3130_v26 = vld [vmem:[%s4326_s1 + $0x230] ss:$8 sps:$4 sm:$0xff]   ;;  %v3138_v28 = vld [vmem:[%s4326_s1 + $0x224] ss:$8 sps:$4 sm:$0xff]  }
  0x2a   : > { %2036 = vmatpush1.bf16.msra.mxu0 %v3056_v30  ;;  %v3133_v27 = vld [vmem:[%s4326_s1 + $0x330] ss:$8 sps:$4 sm:$0xff]   ;;  %v3141_v29 = vld [vmem:[%s4326_s1 + $0x324] ss:$8 sps:$4 sm:$0xff]   ;;  %v3136_v30 = vld [vmem:[%s4326_s1 + $0x220] ss:$8 sps:$4 sm:$0xff]  }
  0x2b   : > { %2079 = vmatpush1.bf16.msra.mxu1 %v3057_v31  ;;  %2037 = vmatprep.subr.bf16.mxu0 %v3058_v32  ;;  %v3139_v31 = vld [vmem:[%s4326_s1 + $0x320] ss:$8 sps:$4 sm:$0xff]   ;;  %v3144_v32 = vld [vmem:[%s4326_s1 + $0x214] ss:$8 sps:$4 sm:$0xff]   ;;  %v3154_v48 = vld [vmem:[%s4326_s1 + $0x2f0] ss:$8 sps:$4 sm:$0xff]  }
  0x2c   : > { %2080 = vmatprep.subr.bf16.mxu1 %v3060_v33  ;;  %v3147_v33 = vld [vmem:[%s4326_s1 + $0x314] ss:$8 sps:$4 sm:$0xff]   ;;  %v3157_v49 = vld [vmem:[%s4326_s1 + $0x3f0] ss:$8 sps:$4 sm:$0xff]   ;;  %v3162_v50 = vld [vmem:[%s4326_s1 + $0x2e4] ss:$8 sps:$4 sm:$0xff]  }
  0x2d   : > { %v3165_v51 = vld [vmem:[%s4326_s1 + $0x3e4] ss:$8 sps:$4 sm:$0xff]   ;;  %v3163_v53 = vld [vmem:[%s4326_s1 + $0x3e0] ss:$8 sps:$4 sm:$0xff]   ;;  %v3171_v55 = vld [vmem:[%s4326_s1 + $0x3d4] ss:$8 sps:$4 sm:$0xff]  }
  0x2e   : > { %2038 = vmatpush2.bf16.msra.mxu0 %v3062_v34  ;;  %v3142_v34 = vld [vmem:[%s4326_s1 + $0x210] ss:$8 sps:$4 sm:$0xff]  }
  0x2f   : > { %2081 = vmatpush2.bf16.msra.mxu1 %v3063_v35  ;;  %2039 = vmatprep.subr.bf16.mxu0 %v3064_v36  ;;  %v3145_v35 = vld [vmem:[%s4326_s1 + $0x310] ss:$8 sps:$4 sm:$0xff]  }
  0x30   : > { %2082 = vmatprep.subr.bf16.mxu1 %v3066_v37  ;;  %v3754_v36 = vld [vmem:[%s3603_s22 + $0x10] sm:$0xff] }
  0x31   : > { %v3757_v37 = vld [vmem:[%s3603_s22 + $0x50] sm:$0xff] }
  0x32   : > { %2040 = vmatpush2.bf16.msra.mxu0 %v3068_v38  ;;  %v3760_v38 = vld [vmem:[%s3603_s22 + $0x18] sm:$0xff] }
  0x33   : > { %2083 = vmatpush2.bf16.msra.mxu1 %v3069_v39  ;;  %2041 = vmatprep.subr.bf16.mxu0 %v3070_v40  ;;  %v3763_v39 = vld [vmem:[%s3603_s22 + $0x58] sm:$0xff]  ;;  %v3150_v40 = vld [vmem:[%s4326_s1 + $0x204] ss:$8 sps:$4 sm:$0xff]  }
  0x34   : > { %2084 = vmatprep.subr.bf16.mxu1 %v3072_v41  ;;  %v2709_v41 = vcombine.high %v3754_v36, %v3757_v37 }
  0x36   : > { %2042 = vmatpush2.bf16.msra.mxu0 %v3074_v42  ;;  %v3153_v42 = vld [vmem:[%s4326_s1 + $0x304] ss:$8 sps:$4 sm:$0xff]  }
  0x37   : > { %2085 = vmatpush2.bf16.msra.mxu1 %v3075_v43  ;;  %2043 = vmatprep.subr.bf16.mxu0 %v3076_v44  ;;  %v2711_v43 = vcombine.high %v3760_v38, %v3763_v39  ;;  %v3148_v44 = vld [vmem:[%s4326_s1 + $0x200] ss:$8 sps:$4 sm:$0xff]  }
  0x38   : > { %2086 = vmatprep.subr.bf16.mxu1 %v3078_v45  ;;  %v3151_v45 = vld [vmem:[%s4326_s1 + $0x300] ss:$8 sps:$4 sm:$0xff]  }
  0x3a   : > { %2044 = vmatpush2.bf16.msra.mxu0 %v3080_v46  ;;  %v3156_v46 = vld [vmem:[%s4326_s1 + $0x2f4] ss:$8 sps:$4 sm:$0xff]  }
  0x3b   : > { %2087 = vmatpush2.bf16.msra.mxu1 %v3081_v47  ;;  %2045 = vmatprep.subr.bf16.mxu0 %v3082_v52  ;;  %v3159_v47 = vld [vmem:[%s4326_s1 + $0x3f4] ss:$8 sps:$4 sm:$0xff]   ;;  %v3160_v52 = vld [vmem:[%s4326_s1 + $0x2e0] ss:$8 sps:$4 sm:$0xff]  }
  0x3c   : > { %2088 = vmatprep.subr.bf16.mxu1 %v3084_v54  ;;  %v3168_v54 = vld [vmem:[%s4326_s1 + $0x2d4] ss:$8 sps:$4 sm:$0xff]  }
  0x3e   : > { %2046 = vmatpush2.bf16.msra.mxu0 %v3086_v56  ;;  %v3166_v56 = vld [vmem:[%s4326_s1 + $0x2d0] ss:$8 sps:$4 sm:$0xff]  }
  0x3f   : > { %2089 = vmatpush2.bf16.msra.mxu1 %v3087_v57  ;;  %2047 = vmatprep.subr.bf16.mxu0 %v3088_v58  ;;  %v3169_v57 = vld [vmem:[%s4326_s1 + $0x3d0] ss:$8 sps:$4 sm:$0xff]   ;;  %v3174_v58 = vld [vmem:[%s4326_s1 + $0x2c4] ss:$8 sps:$4 sm:$0xff]  }
  0x40   : > { %2090 = vmatprep.subr.bf16.mxu1 %v3090_v59  ;;  %v3177_v59 = vld [vmem:[%s4326_s1 + $0x3c4] ss:$8 sps:$4 sm:$0xff]  }
  0x42   : > { %2048 = vmatpush2.bf16.msra.mxu0 %v3092_v60  ;;  %v3172_v60 = vld [vmem:[%s4326_s1 + $0x2c0] ss:$8 sps:$4 sm:$0xff]  }
  0x43   : > { %2091 = vmatpush2.bf16.msra.mxu1 %v3093_v61  ;;  %2049 = vmatprep.subr.bf16.mxu0 %v3094_v62  ;;  %v3175_v61 = vld [vmem:[%s4326_s1 + $0x3c0] ss:$8 sps:$4 sm:$0xff]   ;;  %v3180_v62 = vld [vmem:[%s4326_s1 + $0x2b4] ss:$8 sps:$4 sm:$0xff]  }
  0x44   : > { %2092 = vmatprep.subr.bf16.mxu1 %v3096_v63  ;;  %v3183_v63 = vld [vmem:[%s4326_s1 + $0x3b4] ss:$8 sps:$4 sm:$0xff]  }
  0x46   : > { %2050 = vmatpush2.bf16.msra.mxu0 %v3098_v0  ;;  %v3178_v0 = vld [vmem:[%s4326_s1 + $0x2b0] ss:$8 sps:$4 sm:$0xff]  }
  0x47   : > { %2093 = vmatpush2.bf16.msra.mxu1 %v3099_v1  ;;  %2051 = vmatprep.subr.bf16.mxu0 %v3100_v2  ;;  %v3181_v1 = vld [vmem:[%s4326_s1 + $0x3b0] ss:$8 sps:$4 sm:$0xff]   ;;  %v3186_v2 = vld [vmem:[%s4326_s1 + $0x2a4] ss:$8 sps:$4 sm:$0xff]  }
  0x48   : > { %2094 = vmatprep.subr.bf16.mxu1 %v3102_v3  ;;  %v3189_v3 = vld [vmem:[%s4326_s1 + $0x3a4] ss:$8 sps:$4 sm:$0xff]  }
  0x4a   : > { %2052 = vmatpush2.bf16.msra.mxu0 %v3104_v4  ;;  %v3184_v4 = vld [vmem:[%s4326_s1 + $0x2a0] ss:$8 sps:$4 sm:$0xff]  }
  0x4b   : > { %2095 = vmatpush2.bf16.msra.mxu1 %v3105_v5  ;;  %2107 = vmatprep.subr.bf16.mxu0 %v3108_v6  ;;  %v3187_v5 = vld [vmem:[%s4326_s1 + $0x3a0] ss:$8 sps:$4 sm:$0xff]   ;;  %v3192_v6 = vld [vmem:[%s4326_s1 + $0x294] ss:$8 sps:$4 sm:$0xff]  }
  0x4c   : > { %2150 = vmatprep.subr.bf16.mxu1 %v3111_v7  ;;  %v3195_v7 = vld [vmem:[%s4326_s1 + $0x394] ss:$8 sps:$4 sm:$0xff]  }
  0x4d   : > { %2054 = vmatmul.mubr.bf16.vlgmr.msra.gmra.mxu0 %v2704_v8  ;;  %v3190_v8 = vld [vmem:[%s4326_s1 + $0x290] ss:$8 sps:$4 sm:$0xff]  }
  0x4e   : > { %2097 = vmatmul.mubr.bf16.vlgmr.msra.gmra.mxu1 %v2706_v9  ;;  %2108 = vmatpush1.bf16.msra.mxu0 %v3106_v10  ;;  %v3193_v9 = vld [vmem:[%s4326_s1 + $0x390] ss:$8 sps:$4 sm:$0xff]   ;;  %v3198_v10 = vld [vmem:[%s4326_s1 + $0x284] ss:$8 sps:$4 sm:$0xff]  }
  0x4f   : > { %2151 = vmatpush1.bf16.msra.mxu1 %v3109_v11  ;;  %2109 = vmatprep.subr.bf16.mxu0 %v3114_v12  ;;  %v3201_v11 = vld [vmem:[%s4326_s1 + $0x384] ss:$8 sps:$4 sm:$0xff]   ;;  %v3196_v12 = vld [vmem:[%s4326_s1 + $0x280] ss:$8 sps:$4 sm:$0xff]  }
  0x50   : > { %2152 = vmatprep.subr.bf16.mxu1 %v3117_v13  ;;  %2139 = vmatprep.mubr.bf16.mxu0 %v2709_v41  ;;  %v3199_v13 = vld [vmem:[%s4326_s1 + $0x380] ss:$8 sps:$4 sm:$0xff]   ;;  %v3229_v41 = vld [vmem:[%s4326_s1 + $0x530] ss:$8 sps:$4 sm:$0xff]  }
  0x51   : > { %2182 = vmatprep.mubr.bf16.mxu1 %v2711_v43  ;;  %v3237_v43 = vld [vmem:[%s4326_s1 + $0x524] ss:$8 sps:$4 sm:$0xff]  }
  0x52   : > { %2110 = vmatpush1.bf16.msra.mxu0 %v3112_v14  ;;  %v3204_v14 = vld [vmem:[%s4326_s1 + $0x474] ss:$8 sps:$4 sm:$0xff]  }
  0x53   : > { %2153 = vmatpush1.bf16.msra.mxu1 %v3115_v15  ;;  %2111 = vmatprep.subr.bf16.mxu0 %v3120_v16  ;;  %v3207_v15 = vld [vmem:[%s4326_s1 + $0x574] ss:$8 sps:$4 sm:$0xff]   ;;  %v2708_v16 = vcombine.low %v3754_v36, %v3757_v37  ;;  %v3220_v36 = vld [vmem:[%s4326_s1 + $0x440] ss:$8 sps:$4 sm:$0xff]  }
  0x54   : > { %2154 = vmatprep.subr.bf16.mxu1 %v3123_v17  ;;  %v2710_v17 = vcombine.low %v3760_v38, %v3763_v39  ;;  %v3223_v37 = vld [vmem:[%s4326_s1 + $0x540] ss:$8 sps:$4 sm:$0xff]   ;;  %v3228_v38 = vld [vmem:[%s4326_s1 + $0x434] ss:$8 sps:$4 sm:$0xff]  }
  0x55   : > { %v3231_v39 = vld [vmem:[%s4326_s1 + $0x534] ss:$8 sps:$4 sm:$0xff]  }
  0x56   : > { %2112 = vmatpush1.bf16.msra.mxu0 %v3118_v18  ;;  %v3202_v18 = vld [vmem:[%s4326_s1 + $0x470] ss:$8 sps:$4 sm:$0xff]  }
  0x57   : > { %2155 = vmatpush1.bf16.msra.mxu1 %v3121_v19  ;;  %2113 = vmatprep.subr.bf16.mxu0 %v3126_v20  ;;  %v3205_v19 = vld [vmem:[%s4326_s1 + $0x570] ss:$8 sps:$4 sm:$0xff]   ;;  %v3210_v20 = vld [vmem:[%s4326_s1 + $0x464] ss:$8 sps:$4 sm:$0xff]  }
  0x58   : > { %2156 = vmatprep.subr.bf16.mxu1 %v3129_v21  ;;  %v3213_v21 = vld [vmem:[%s4326_s1 + $0x564] ss:$8 sps:$4 sm:$0xff]  }
  0x5a   : > { %2114 = vmatpush1.bf16.msra.mxu0 %v3124_v22  ;;  %v3208_v22 = vld [vmem:[%s4326_s1 + $0x460] ss:$8 sps:$4 sm:$0xff]  }
  0x5b   : > { %2157 = vmatpush1.bf16.msra.mxu1 %v3127_v23  ;;  %2115 = vmatprep.subr.bf16.mxu0 %v3132_v24  ;;  %v3211_v23 = vld [vmem:[%s4326_s1 + $0x560] ss:$8 sps:$4 sm:$0xff]  }
  0x5c   : > { %2158 = vmatprep.subr.bf16.mxu1 %v3135_v25  ;;  %v3906_v24 = vld [vmem:[%s3603_s22 + $0x20] sm:$0xff] }
  0x5d   : > { %v3909_v25 = vld [vmem:[%s3603_s22 + $0x60] sm:$0xff] }
  0x5e   : > { %2116 = vmatpush1.bf16.msra.mxu0 %v3130_v26  ;;  %v3912_v26 = vld [vmem:[%s3603_s22 + $0x28] sm:$0xff] }
  0x5f   : > { %2159 = vmatpush1.bf16.msra.mxu1 %v3133_v27  ;;  %2117 = vmatprep.subr.bf16.mxu0 %v3138_v28  ;;  %v3915_v27 = vld [vmem:[%s3603_s22 + $0x68] sm:$0xff]  ;;  %v3216_v28 = vld [vmem:[%s4326_s1 + $0x454] ss:$8 sps:$4 sm:$0xff]  }
  0x60   : > { %2160 = vmatprep.subr.bf16.mxu1 %v3141_v29  ;;  %v2713_v29 = vcombine.high %v3906_v24, %v3909_v25 }
  0x62   : > { %2118 = vmatpush1.bf16.msra.mxu0 %v3136_v30  ;;  %v3219_v30 = vld [vmem:[%s4326_s1 + $0x554] ss:$8 sps:$4 sm:$0xff]  }
  0x63   : > { %2161 = vmatpush1.bf16.msra.mxu1 %v3139_v31  ;;  %2119 = vmatprep.subr.bf16.mxu0 %v3144_v32  ;;  %v2715_v31 = vcombine.high %v3912_v26, %v3915_v27  ;;  %v3214_v32 = vld [vmem:[%s4326_s1 + $0x450] ss:$8 sps:$4 sm:$0xff]  }
  0x64   : > { %2162 = vmatprep.subr.bf16.mxu1 %v3147_v33  ;;  %v3217_v33 = vld [vmem:[%s4326_s1 + $0x550] ss:$8 sps:$4 sm:$0xff]  }
  0x66   : > { %2120 = vmatpush1.bf16.msra.mxu0 %v3142_v34  ;;  %v3222_v34 = vld [vmem:[%s4326_s1 + $0x444] ss:$8 sps:$4 sm:$0xff]  }
  0x67   : > { %2163 = vmatpush1.bf16.msra.mxu1 %v3145_v35  ;;  %2121 = vmatprep.subr.bf16.mxu0 %v3150_v40  ;;  %v3225_v35 = vld [vmem:[%s4326_s1 + $0x544] ss:$8 sps:$4 sm:$0xff]   ;;  %v3226_v40 = vld [vmem:[%s4326_s1 + $0x430] ss:$8 sps:$4 sm:$0xff]  }
  0x68   : > { %2164 = vmatprep.subr.bf16.mxu1 %v3153_v42  ;;  %v3234_v42 = vld [vmem:[%s4326_s1 + $0x424] ss:$8 sps:$4 sm:$0xff]  }
  0x6a   : > { %2122 = vmatpush1.bf16.msra.mxu0 %v3148_v44  ;;  %v3232_v44 = vld [vmem:[%s4326_s1 + $0x420] ss:$8 sps:$4 sm:$0xff]  }
  0x6b   : > { %2165 = vmatpush1.bf16.msra.mxu1 %v3151_v45  ;;  %2123 = vmatprep.subr.bf16.mxu0 %v3156_v46  ;;  %v3235_v45 = vld [vmem:[%s4326_s1 + $0x520] ss:$8 sps:$4 sm:$0xff]   ;;  %v3240_v46 = vld [vmem:[%s4326_s1 + $0x414] ss:$8 sps:$4 sm:$0xff]  }
  0x6c   : > { %2166 = vmatprep.subr.bf16.mxu1 %v3159_v47  ;;  %v3243_v47 = vld [vmem:[%s4326_s1 + $0x514] ss:$8 sps:$4 sm:$0xff]  }
  0x6e   : > { %2124 = vmatpush2.bf16.msra.mxu0 %v3154_v48  ;;  %v3238_v48 = vld [vmem:[%s4326_s1 + $0x410] ss:$8 sps:$4 sm:$0xff]  }
  0x6f   : > { %2167 = vmatpush2.bf16.msra.mxu1 %v3157_v49  ;;  %2125 = vmatprep.subr.bf16.mxu0 %v3162_v50  ;;  %v3241_v49 = vld [vmem:[%s4326_s1 + $0x510] ss:$8 sps:$4 sm:$0xff]   ;;  %v3246_v50 = vld [vmem:[%s4326_s1 + $0x404] ss:$8 sps:$4 sm:$0xff]  }
  0x70   : > { %2168 = vmatprep.subr.bf16.mxu1 %v3165_v51  ;;  %v3249_v51 = vld [vmem:[%s4326_s1 + $0x504] ss:$8 sps:$4 sm:$0xff]  }
  0x72   : > { %2126 = vmatpush2.bf16.msra.mxu0 %v3160_v52  ;;  %v3244_v52 = vld [vmem:[%s4326_s1 + $0x400] ss:$8 sps:$4 sm:$0xff]  }
  0x73   : > { %2169 = vmatpush2.bf16.msra.mxu1 %v3163_v53  ;;  %2127 = vmatprep.subr.bf16.mxu0 %v3168_v54  ;;  %v3247_v53 = vld [vmem:[%s4326_s1 + $0x500] ss:$8 sps:$4 sm:$0xff]   ;;  %v3252_v54 = vld [vmem:[%s4326_s1 + $0x4f4] ss:$8 sps:$4 sm:$0xff]  }
  0x74   : > { %2170 = vmatprep.subr.bf16.mxu1 %v3171_v55  ;;  %v3255_v55 = vld [vmem:[%s4326_s1 + $0x5f4] ss:$8 sps:$4 sm:$0xff]  }
  0x76   : > { %2128 = vmatpush2.bf16.msra.mxu0 %v3166_v56  ;;  %v3250_v56 = vld [vmem:[%s4326_s1 + $0x4f0] ss:$8 sps:$4 sm:$0xff]  }
  0x77   : > { %2171 = vmatpush2.bf16.msra.mxu1 %v3169_v57  ;;  %2129 = vmatprep.subr.bf16.mxu0 %v3174_v58  ;;  %v3253_v57 = vld [vmem:[%s4326_s1 + $0x5f0] ss:$8 sps:$4 sm:$0xff]   ;;  %v3258_v58 = vld [vmem:[%s4326_s1 + $0x4e4] ss:$8 sps:$4 sm:$0xff]  }
  0x78   : > { %2172 = vmatprep.subr.bf16.mxu1 %v3177_v59  ;;  %v3261_v59 = vld [vmem:[%s4326_s1 + $0x5e4] ss:$8 sps:$4 sm:$0xff]  }
  0x7a   : > { %2130 = vmatpush2.bf16.msra.mxu0 %v3172_v60  ;;  %v3256_v60 = vld [vmem:[%s4326_s1 + $0x4e0] ss:$8 sps:$4 sm:$0xff]  }
  0x7b   : > { %2173 = vmatpush2.bf16.msra.mxu1 %v3175_v61  ;;  %2131 = vmatprep.subr.bf16.mxu0 %v3180_v62  ;;  %v3259_v61 = vld [vmem:[%s4326_s1 + $0x5e0] ss:$8 sps:$4 sm:$0xff]   ;;  %v3264_v62 = vld [vmem:[%s4326_s1 + $0x4d4] ss:$8 sps:$4 sm:$0xff]  }
  0x7c   : > { %2174 = vmatprep.subr.bf16.mxu1 %v3183_v63  ;;  %v3267_v63 = vld [vmem:[%s4326_s1 + $0x5d4] ss:$8 sps:$4 sm:$0xff]  }
  0x7e   : > { %2132 = vmatpush2.bf16.msra.mxu0 %v3178_v0  ;;  %v3262_v0 = vld [vmem:[%s4326_s1 + $0x4d0] ss:$8 sps:$4 sm:$0xff]  }
  0x7f   : > { %2175 = vmatpush2.bf16.msra.mxu1 %v3181_v1  ;;  %2133 = vmatprep.subr.bf16.mxu0 %v3186_v2  ;;  %v3265_v1 = vld [vmem:[%s4326_s1 + $0x5d0] ss:$8 sps:$4 sm:$0xff]   ;;  %v3270_v2 = vld [vmem:[%s4326_s1 + $0x4c4] ss:$8 sps:$4 sm:$0xff]  }
  0x80   : > { %2176 = vmatprep.subr.bf16.mxu1 %v3189_v3  ;;  %v3273_v3 = vld [vmem:[%s4326_s1 + $0x5c4] ss:$8 sps:$4 sm:$0xff]  }
  0x82   : > { %2134 = vmatpush2.bf16.msra.mxu0 %v3184_v4  ;;  %v3268_v4 = vld [vmem:[%s4326_s1 + $0x4c0] ss:$8 sps:$4 sm:$0xff]  }
  0x83   : > { %2177 = vmatpush2.bf16.msra.mxu1 %v3187_v5  ;;  %2135 = vmatprep.subr.bf16.mxu0 %v3192_v6  ;;  %v3271_v5 = vld [vmem:[%s4326_s1 + $0x5c0] ss:$8 sps:$4 sm:$0xff]   ;;  %v3276_v6 = vld [vmem:[%s4326_s1 + $0x4b4] ss:$8 sps:$4 sm:$0xff]  }
  0x84   : > { %2178 = vmatprep.subr.bf16.mxu1 %v3195_v7  ;;  %v3279_v7 = vld [vmem:[%s4326_s1 + $0x5b4] ss:$8 sps:$4 sm:$0xff]  }
  0x86   : > { %2136 = vmatpush2.bf16.msra.mxu0 %v3190_v8  ;;  %v3274_v8 = vld [vmem:[%s4326_s1 + $0x4b0] ss:$8 sps:$4 sm:$0xff]  }
  0x87   : > { %2179 = vmatpush2.bf16.msra.mxu1 %v3193_v9  ;;  %2137 = vmatprep.subr.bf16.mxu0 %v3198_v10  ;;  %v3277_v9 = vld [vmem:[%s4326_s1 + $0x5b0] ss:$8 sps:$4 sm:$0xff]   ;;  %v3282_v10 = vld [vmem:[%s4326_s1 + $0x4a4] ss:$8 sps:$4 sm:$0xff]  }
  0x88   : > { %2180 = vmatprep.subr.bf16.mxu1 %v3201_v11  ;;  %v3285_v11 = vld [vmem:[%s4326_s1 + $0x5a4] ss:$8 sps:$4 sm:$0xff]  }
  0x8a   : > { %2138 = vmatpush2.bf16.msra.mxu0 %v3196_v12  ;;  %v3280_v12 = vld [vmem:[%s4326_s1 + $0x4a0] ss:$8 sps:$4 sm:$0xff]  }
  0x8b   : > { %2181 = vmatpush2.bf16.msra.mxu1 %v3199_v13  ;;  %2193 = vmatprep.subr.bf16.mxu0 %v3204_v14  ;;  %v3283_v13 = vld [vmem:[%s4326_s1 + $0x5a0] ss:$8 sps:$4 sm:$0xff]   ;;  %v3288_v14 = vld [vmem:[%s4326_s1 + $0x494] ss:$8 sps:$4 sm:$0xff]  }
  0x8c   : > { %2236 = vmatprep.subr.bf16.mxu1 %v3207_v15  ;;  %v3291_v15 = vld [vmem:[%s4326_s1 + $0x594] ss:$8 sps:$4 sm:$0xff]  }
  0x8d   : > { %2140 = vmatmul.mubr.bf16.vlgmr.msra.gmra.mxu0 %v2708_v16  ;;  %v3286_v16 = vld [vmem:[%s4326_s1 + $0x490] ss:$8 sps:$4 sm:$0xff]  }
  0x8e   : > { %2183 = vmatmul.mubr.bf16.vlgmr.msra.gmra.mxu1 %v2710_v17  ;;  %2194 = vmatpush1.bf16.msra.mxu0 %v3202_v18  ;;  %v3289_v17 = vld [vmem:[%s4326_s1 + $0x590] ss:$8 sps:$4 sm:$0xff]   ;;  %v3294_v18 = vld [vmem:[%s4326_s1 + $0x484] ss:$8 sps:$4 sm:$0xff]  }
  0x8f   : > { %2237 = vmatpush1.bf16.msra.mxu1 %v3205_v19  ;;  %2195 = vmatprep.subr.bf16.mxu0 %v3210_v20  ;;  %v3297_v19 = vld [vmem:[%s4326_s1 + $0x584] ss:$8 sps:$4 sm:$0xff]   ;;  %v3292_v20 = vld [vmem:[%s4326_s1 + $0x480] ss:$8 sps:$4 sm:$0xff]  }
  0x90   : > { %2238 = vmatprep.subr.bf16.mxu1 %v3213_v21  ;;  %2225 = vmatprep.mubr.bf16.mxu0 %v2713_v29  ;;  %v3295_v21 = vld [vmem:[%s4326_s1 + $0x580] ss:$8 sps:$4 sm:$0xff]   ;;  %v2712_v29 = vcombine.low %v3906_v24, %v3909_v25  ;;  %v3306_v24 = vld [vmem:[%s4326_s1 + $0x664] ss:$8 sps:$4 sm:$0xff]  }
  0x91   : > { %2268 = vmatprep.mubr.bf16.mxu1 %v2715_v31  ;;  %v4103_v31 = vld [vmem:[%s3603_s22 + $0x70] sm:$0xff]  ;;  %v3309_v25 = vld [vmem:[%s4326_s1 + $0x764] ss:$8 sps:$4 sm:$0xff]  }
  0x92   : > { %2196 = vmatpush1.bf16.msra.mxu0 %v3208_v22  ;;  %v3300_v22 = vld [vmem:[%s4326_s1 + $0x674] ss:$8 sps:$4 sm:$0xff]  }
  0x93   : > { %2239 = vmatpush1.bf16.msra.mxu1 %v3211_v23  ;;  %2197 = vmatprep.subr.bf16.mxu0 %v3216_v28  ;;  %v3303_v23 = vld [vmem:[%s4326_s1 + $0x774] ss:$8 sps:$4 sm:$0xff]  }
  0x94   : > { %2240 = vmatprep.subr.bf16.mxu1 %v3219_v30  ;;  %v4096_v28 = vld [vmem:[%s3603_s22 + $0x30] sm:$0xff]  ;;  %v2714_v30 = vcombine.low %v3912_v26, %v3915_v27 }
  0x95   : > { %v2717_v26 = vcombine.high %v4096_v28, %v4103_v31 }
  0x96   : > { %2198 = vmatpush1.bf16.msra.mxu0 %v3214_v32  ;;  %v4106_v32 = vld [vmem:[%s3603_s22 + $0x38] sm:$0xff] }
  0x97   : > { %2241 = vmatpush1.bf16.msra.mxu1 %v3217_v33  ;;  %2199 = vmatprep.subr.bf16.mxu0 %v3222_v34  ;;  %v4109_v33 = vld [vmem:[%s3603_s22 + $0x78] sm:$0xff] }
  0x98   : > { %2242 = vmatprep.subr.bf16.mxu1 %v3225_v35  ;;  %v3298_v34 = vld [vmem:[%s4326_s1 + $0x670] ss:$8 sps:$4 sm:$0xff]   ;;  %v2719_v27 = vcombine.high %v4106_v32, %v4109_v33 }
  0x99   : > { %v3301_v35 = vld [vmem:[%s4326_s1 + $0x770] ss:$8 sps:$4 sm:$0xff]  }
  0x9a   : > { %2200 = vmatpush1.bf16.msra.mxu0 %v3220_v36  ;;  %v3304_v36 = vld [vmem:[%s4326_s1 + $0x660] ss:$8 sps:$4 sm:$0xff]  }
  0x9b   : > { %2243 = vmatpush1.bf16.msra.mxu1 %v3223_v37  ;;  %2201 = vmatprep.subr.bf16.mxu0 %v3228_v38  ;;  %v3307_v37 = vld [vmem:[%s4326_s1 + $0x760] ss:$8 sps:$4 sm:$0xff]   ;;  %v3312_v38 = vld [vmem:[%s4326_s1 + $0x654] ss:$8 sps:$4 sm:$0xff]  }
  0x9c   : > { %2244 = vmatprep.subr.bf16.mxu1 %v3231_v39  ;;  %v3315_v39 = vld [vmem:[%s4326_s1 + $0x754] ss:$8 sps:$4 sm:$0xff]  }
  0x9e   : > { %2202 = vmatpush1.bf16.msra.mxu0 %v3226_v40  ;;  %v3310_v40 = vld [vmem:[%s4326_s1 + $0x650] ss:$8 sps:$4 sm:$0xff]  }
  0x9f   : > { %2245 = vmatpush1.bf16.msra.mxu1 %v3229_v41  ;;  %2203 = vmatprep.subr.bf16.mxu0 %v3234_v42  ;;  %v3313_v41 = vld [vmem:[%s4326_s1 + $0x750] ss:$8 sps:$4 sm:$0xff]   ;;  %v3318_v42 = vld [vmem:[%s4326_s1 + $0x644] ss:$8 sps:$4 sm:$0xff]  }
  0xa0   : > { %2246 = vmatprep.subr.bf16.mxu1 %v3237_v43  ;;  %v3321_v43 = vld [vmem:[%s4326_s1 + $0x744] ss:$8 sps:$4 sm:$0xff]  }
  0xa2   : > { %2204 = vmatpush1.bf16.msra.mxu0 %v3232_v44  ;;  %v3316_v44 = vld [vmem:[%s4326_s1 + $0x640] ss:$8 sps:$4 sm:$0xff]  }
  0xa3   : > { %2247 = vmatpush1.bf16.msra.mxu1 %v3235_v45  ;;  %2205 = vmatprep.subr.bf16.mxu0 %v3240_v46  ;;  %v3319_v45 = vld [vmem:[%s4326_s1 + $0x740] ss:$8 sps:$4 sm:$0xff]   ;;  %v3324_v46 = vld [vmem:[%s4326_s1 + $0x634] ss:$8 sps:$4 sm:$0xff]  }
  0xa4   : > { %2248 = vmatprep.subr.bf16.mxu1 %v3243_v47  ;;  %v3327_v47 = vld [vmem:[%s4326_s1 + $0x734] ss:$8 sps:$4 sm:$0xff]  }
  0xa6   : > { %2206 = vmatpush1.bf16.msra.mxu0 %v3238_v48  ;;  %v3322_v48 = vld [vmem:[%s4326_s1 + $0x630] ss:$8 sps:$4 sm:$0xff]  }
  0xa7   : > { %2249 = vmatpush1.bf16.msra.mxu1 %v3241_v49  ;;  %2207 = vmatprep.subr.bf16.mxu0 %v3246_v50  ;;  %v3325_v49 = vld [vmem:[%s4326_s1 + $0x730] ss:$8 sps:$4 sm:$0xff]   ;;  %v3330_v50 = vld [vmem:[%s4326_s1 + $0x624] ss:$8 sps:$4 sm:$0xff]  }
  0xa8   : > { %2250 = vmatprep.subr.bf16.mxu1 %v3249_v51  ;;  %v3333_v51 = vld [vmem:[%s4326_s1 + $0x724] ss:$8 sps:$4 sm:$0xff]  }
  0xaa   : > { %2208 = vmatpush1.bf16.msra.mxu0 %v3244_v52  ;;  %v3328_v52 = vld [vmem:[%s4326_s1 + $0x620] ss:$8 sps:$4 sm:$0xff]  }
  0xab   : > { %2251 = vmatpush1.bf16.msra.mxu1 %v3247_v53  ;;  %2209 = vmatprep.subr.bf16.mxu0 %v3252_v54  ;;  %v3331_v53 = vld [vmem:[%s4326_s1 + $0x720] ss:$8 sps:$4 sm:$0xff]   ;;  %v3336_v54 = vld [vmem:[%s4326_s1 + $0x614] ss:$8 sps:$4 sm:$0xff]  }
  0xac   : > { %2252 = vmatprep.subr.bf16.mxu1 %v3255_v55  ;;  %v3339_v55 = vld [vmem:[%s4326_s1 + $0x714] ss:$8 sps:$4 sm:$0xff]  }
  0xae   : > { %2210 = vmatpush2.bf16.msra.mxu0 %v3250_v56  ;;  %v3334_v56 = vld [vmem:[%s4326_s1 + $0x610] ss:$8 sps:$4 sm:$0xff]  }
  0xaf   : > { %2253 = vmatpush2.bf16.msra.mxu1 %v3253_v57  ;;  %2211 = vmatprep.subr.bf16.mxu0 %v3258_v58  ;;  %v3337_v57 = vld [vmem:[%s4326_s1 + $0x710] ss:$8 sps:$4 sm:$0xff]   ;;  %v3342_v58 = vld [vmem:[%s4326_s1 + $0x604] ss:$8 sps:$4 sm:$0xff]  }
  0xb0   : > { %2254 = vmatprep.subr.bf16.mxu1 %v3261_v59  ;;  %v3345_v59 = vld [vmem:[%s4326_s1 + $0x704] ss:$8 sps:$4 sm:$0xff]  }
  0xb2   : > { %2212 = vmatpush2.bf16.msra.mxu0 %v3256_v60  ;;  %v3340_v60 = vld [vmem:[%s4326_s1 + $0x600] ss:$8 sps:$4 sm:$0xff]  }
  0xb3   : > { %2255 = vmatpush2.bf16.msra.mxu1 %v3259_v61  ;;  %2213 = vmatprep.subr.bf16.mxu0 %v3264_v62  ;;  %v3343_v61 = vld [vmem:[%s4326_s1 + $0x700] ss:$8 sps:$4 sm:$0xff]   ;;  %v3348_v62 = vld [vmem:[%s4326_s1 + $0x6f4] ss:$8 sps:$4 sm:$0xff]  }
  0xb4   : > { %2256 = vmatprep.subr.bf16.mxu1 %v3267_v63  ;;  %v3351_v63 = vld [vmem:[%s4326_s1 + $0x7f4] ss:$8 sps:$4 sm:$0xff]  }
  0xb6   : > { %2214 = vmatpush2.bf16.msra.mxu0 %v3262_v0  ;;  %v3346_v0 = vld [vmem:[%s4326_s1 + $0x6f0] ss:$8 sps:$4 sm:$0xff]  }
  0xb7   : > { %2257 = vmatpush2.bf16.msra.mxu1 %v3265_v1  ;;  %2215 = vmatprep.subr.bf16.mxu0 %v3270_v2  ;;  %v3349_v1 = vld [vmem:[%s4326_s1 + $0x7f0] ss:$8 sps:$4 sm:$0xff]   ;;  %v3354_v2 = vld [vmem:[%s4326_s1 + $0x6e4] ss:$8 sps:$4 sm:$0xff]  }
  0xb8   : > { %2258 = vmatprep.subr.bf16.mxu1 %v3273_v3  ;;  %v3357_v3 = vld [vmem:[%s4326_s1 + $0x7e4] ss:$8 sps:$4 sm:$0xff]  }
  0xba   : > { %2216 = vmatpush2.bf16.msra.mxu0 %v3268_v4  ;;  %v3352_v4 = vld [vmem:[%s4326_s1 + $0x6e0] ss:$8 sps:$4 sm:$0xff]  }
  0xbb   : > { %2259 = vmatpush2.bf16.msra.mxu1 %v3271_v5  ;;  %2217 = vmatprep.subr.bf16.mxu0 %v3276_v6  ;;  %v3355_v5 = vld [vmem:[%s4326_s1 + $0x7e0] ss:$8 sps:$4 sm:$0xff]   ;;  %v3360_v6 = vld [vmem:[%s4326_s1 + $0x6d4] ss:$8 sps:$4 sm:$0xff]  }
  0xbc   : > { %2260 = vmatprep.subr.bf16.mxu1 %v3279_v7  ;;  %v3363_v7 = vld [vmem:[%s4326_s1 + $0x7d4] ss:$8 sps:$4 sm:$0xff]  }
  0xbe   : > { %2218 = vmatpush2.bf16.msra.mxu0 %v3274_v8  ;;  %v3358_v8 = vld [vmem:[%s4326_s1 + $0x6d0] ss:$8 sps:$4 sm:$0xff]  }
  0xbf   : > { %2261 = vmatpush2.bf16.msra.mxu1 %v3277_v9  ;;  %2219 = vmatprep.subr.bf16.mxu0 %v3282_v10  ;;  %v3361_v9 = vld [vmem:[%s4326_s1 + $0x7d0] ss:$8 sps:$4 sm:$0xff]   ;;  %v3366_v10 = vld [vmem:[%s4326_s1 + $0x6c4] ss:$8 sps:$4 sm:$0xff]  }
  0xc0   : > { %2262 = vmatprep.subr.bf16.mxu1 %v3285_v11  ;;  %v3369_v11 = vld [vmem:[%s4326_s1 + $0x7c4] ss:$8 sps:$4 sm:$0xff]  }
  0xc2   : > { %2220 = vmatpush2.bf16.msra.mxu0 %v3280_v12  ;;  %v3364_v12 = vld [vmem:[%s4326_s1 + $0x6c0] ss:$8 sps:$4 sm:$0xff]  }
  0xc3   : > { %2263 = vmatpush2.bf16.msra.mxu1 %v3283_v13  ;;  %2221 = vmatprep.subr.bf16.mxu0 %v3288_v14  ;;  %v3367_v13 = vld [vmem:[%s4326_s1 + $0x7c0] ss:$8 sps:$4 sm:$0xff]   ;;  %v3372_v14 = vld [vmem:[%s4326_s1 + $0x6b4] ss:$8 sps:$4 sm:$0xff]  }
  0xc4   : > { %2264 = vmatprep.subr.bf16.mxu1 %v3291_v15  ;;  %v3375_v15 = vld [vmem:[%s4326_s1 + $0x7b4] ss:$8 sps:$4 sm:$0xff]  }
  0xc6   : > { %2222 = vmatpush2.bf16.msra.mxu0 %v3286_v16  ;;  %v3370_v16 = vld [vmem:[%s4326_s1 + $0x6b0] ss:$8 sps:$4 sm:$0xff]  }
  0xc7   : > { %2265 = vmatpush2.bf16.msra.mxu1 %v3289_v17  ;;  %2223 = vmatprep.subr.bf16.mxu0 %v3294_v18  ;;  %v3373_v17 = vld [vmem:[%s4326_s1 + $0x7b0] ss:$8 sps:$4 sm:$0xff]   ;;  %v3378_v18 = vld [vmem:[%s4326_s1 + $0x6a4] ss:$8 sps:$4 sm:$0xff]  }
  0xc8   : > { %2266 = vmatprep.subr.bf16.mxu1 %v3297_v19  ;;  %v3381_v19 = vld [vmem:[%s4326_s1 + $0x7a4] ss:$8 sps:$4 sm:$0xff]  }
  0xca   : > { %2224 = vmatpush2.bf16.msra.mxu0 %v3292_v20  ;;  %v3376_v20 = vld [vmem:[%s4326_s1 + $0x6a0] ss:$8 sps:$4 sm:$0xff]  }
  0xcb   : > { %2267 = vmatpush2.bf16.msra.mxu1 %v3295_v21  ;;  %2279 = vmatprep.subr.bf16.mxu0 %v3300_v22  ;;  %v3379_v21 = vld [vmem:[%s4326_s1 + $0x7a0] ss:$8 sps:$4 sm:$0xff]   ;;  %v3384_v22 = vld [vmem:[%s4326_s1 + $0x694] ss:$8 sps:$4 sm:$0xff]  }
  0xcc   : > { %2322 = vmatprep.subr.bf16.mxu1 %v3303_v23  ;;  %v3387_v23 = vld [vmem:[%s4326_s1 + $0x794] ss:$8 sps:$4 sm:$0xff]  }
  0xcd   : > { %2226 = vmatmul.mubr.bf16.vlgmr.msra.gmra.mxu0 %v2712_v29  ;;  %v3382_v29 = vld [vmem:[%s4326_s1 + $0x690] ss:$8 sps:$4 sm:$0xff]  }
  0xce   : > { %2269 = vmatmul.mubr.bf16.vlgmr.msra.gmra.mxu1 %v2714_v30  ;;  %2280 = vmatpush1.bf16.msra.mxu0 %v3298_v34  ;;  %v3385_v30 = vld [vmem:[%s4326_s1 + $0x790] ss:$8 sps:$4 sm:$0xff]   ;;  %v3390_v34 = vld [vmem:[%s4326_s1 + $0x684] ss:$8 sps:$4 sm:$0xff]  }
  0xcf   : > { %2323 = vmatpush1.bf16.msra.mxu1 %v3301_v35  ;;  %2281 = vmatprep.subr.bf16.mxu0 %v3306_v24  ;;  %v3393_v35 = vld [vmem:[%s4326_s1 + $0x784] ss:$8 sps:$4 sm:$0xff]   ;;  %v3388_v24 = vld [vmem:[%s4326_s1 + $0x680] ss:$8 sps:$4 sm:$0xff]  }
  0xd0   : > { %2324 = vmatprep.subr.bf16.mxu1 %v3309_v25  ;;  %2311 = vmatprep.mubr.bf16.mxu0 %v2717_v26  ;;  %v3391_v25 = vld [vmem:[%s4326_s1 + $0x780] ss:$8 sps:$4 sm:$0xff]   ;;  %v2716_v26 = vcombine.low %v4096_v28, %v4103_v31 }
  0xd1   : > { %2354 = vmatprep.mubr.bf16.mxu1 %v2719_v27  ;;  %v2718_v27 = vcombine.low %v4106_v32, %v4109_v33 }
  0xd2   : > { %2282 = vmatpush1.bf16.msra.mxu0 %v3304_v36 }
  0xd3   : > { %2325 = vmatpush1.bf16.msra.mxu1 %v3307_v37  ;;  %2283 = vmatprep.subr.bf16.mxu0 %v3312_v38 }
  0xd4   : > { %2326 = vmatprep.subr.bf16.mxu1 %v3315_v39 }
  0xd6   : > { %2284 = vmatpush1.bf16.msra.mxu0 %v3310_v40 }
  0xd7   : > { %2327 = vmatpush1.bf16.msra.mxu1 %v3313_v41  ;;  %2285 = vmatprep.subr.bf16.mxu0 %v3318_v42 }
  0xd8   : > { %2328 = vmatprep.subr.bf16.mxu1 %v3321_v43 }
  0xda   : > { %2286 = vmatpush1.bf16.msra.mxu0 %v3316_v44 }
  0xdb   : > { %2329 = vmatpush1.bf16.msra.mxu1 %v3319_v45  ;;  %2287 = vmatprep.subr.bf16.mxu0 %v3324_v46 }
  0xdc   : > { %2330 = vmatprep.subr.bf16.mxu1 %v3327_v47 }
  0xde   : > { %2288 = vmatpush1.bf16.msra.mxu0 %v3322_v48 }
  0xdf   : > { %2331 = vmatpush1.bf16.msra.mxu1 %v3325_v49  ;;  %2289 = vmatprep.subr.bf16.mxu0 %v3330_v50 }
  0xe0   : > { %2332 = vmatprep.subr.bf16.mxu1 %v3333_v51 }
  0xe2   : > { %2290 = vmatpush1.bf16.msra.mxu0 %v3328_v52 }
  0xe3   : > { %2333 = vmatpush1.bf16.msra.mxu1 %v3331_v53  ;;  %2291 = vmatprep.subr.bf16.mxu0 %v3336_v54 }
  0xe4   : > { %2334 = vmatprep.subr.bf16.mxu1 %v3339_v55  ;;  %v2382_v55 = vlaneseq }
  0xe6   : > { %2292 = vmatpush1.bf16.msra.mxu0 %v3334_v56 }
  0xe7   : > { %2335 = vmatpush1.bf16.msra.mxu1 %v3337_v57  ;;  %2293 = vmatprep.subr.bf16.mxu0 %v3342_v58 }
  0xe8   : > { %2336 = vmatprep.subr.bf16.mxu1 %v3345_v59 }
  0xea   : > { %2294 = vmatpush1.bf16.msra.mxu0 %v3340_v60 }
  0xeb   : > { %2337 = vmatpush1.bf16.msra.mxu1 %v3343_v61  ;;  %2295 = vmatprep.subr.bf16.mxu0 %v3348_v62 }
  0xec   : > { %2338 = vmatprep.subr.bf16.mxu1 %v3351_v63  ;;  %v2383_v63 = vshrl.u32 %v2382_v55, 7 }
  0xee   : > { %2296 = vmatpush2.bf16.msra.mxu0 %v3346_v0 }
  0xef   : > { %2339 = vmatpush2.bf16.msra.mxu1 %v3349_v1  ;;  %2297 = vmatprep.subr.bf16.mxu0 %v3354_v2 }
  0xf0   : > { %2340 = vmatprep.subr.bf16.mxu1 %v3357_v3 }
  0xf2   : > { %2298 = vmatpush2.bf16.msra.mxu0 %v3352_v4 }
  0xf3   : > { %2341 = vmatpush2.bf16.msra.mxu1 %v3355_v5  ;;  %2299 = vmatprep.subr.bf16.mxu0 %v3360_v6 }
  0xf4   : > { %2342 = vmatprep.subr.bf16.mxu1 %v3363_v7  ;;  %v2384_v7 = vsub.s32 0, %v2383_v63 }
  0xf6   : > { %2300 = vmatpush2.bf16.msra.mxu0 %v3358_v8 }
  0xf7   : > { %2343 = vmatpush2.bf16.msra.mxu1 %v3361_v9  ;;  %2301 = vmatprep.subr.bf16.mxu0 %v3366_v10 }
  0xf8   : > { %2344 = vmatprep.subr.bf16.mxu1 %v3369_v11  ;;  %v2380_v11 = vld [vmem:[%s4327_s2] sm:$0x3] }
  0xfa   : > { %2302 = vmatpush2.bf16.msra.mxu0 %v3364_v12  ;;  %v2388_v12 = vsub.s32 1, %v2383_v63 }
  0xfb   : > { %2345 = vmatpush2.bf16.msra.mxu1 %v3367_v13  ;;  %2303 = vmatprep.subr.bf16.mxu0 %v3372_v14 }
  0xfc   : > { %2346 = vmatprep.subr.bf16.mxu1 %v3375_v15 }
  0xfe   : > { %2304 = vmatpush2.bf16.msra.mxu0 %v3370_v16 }
  0xff   : > { %2347 = vmatpush2.bf16.msra.mxu1 %v3373_v17  ;;  %2305 = vmatprep.subr.bf16.mxu0 %v3378_v18  ;;  %v2385_v18 = vrot.slane %v2380_v11, %v2384_v7 }
 0x100   : > { %2348 = vmatprep.subr.bf16.mxu1 %v3381_v19 }
 0x102   : > { %2306 = vmatpush2.bf16.msra.mxu0 %v3376_v20 }
 0x103   : > { %2349 = vmatpush2.bf16.msra.mxu1 %v3379_v21  ;;  %2307 = vmatprep.subr.bf16.mxu0 %v3384_v22 }
 0x104   : > { %2350 = vmatprep.subr.bf16.mxu1 %v3387_v23 }
 0x106   : > { %2308 = vmatpush2.bf16.msra.mxu0 %v3382_v29  ;;  %v2389_v29 = vrot.slane %v2380_v11, %v2388_v12 }
 0x107   : > { %2351 = vmatpush2.bf16.msra.mxu1 %v3385_v30  ;;  %2309 = vmatprep.subr.bf16.mxu0 %v3390_v34 }
 0x108   : > { %2352 = vmatprep.subr.bf16.mxu1 %v3393_v35  ;;  %v2398_v35 = vadd.s32 8, %v2383_v63 }
 0x10a   : > { %2310 = vmatpush2.bf16.msra.mxu0 %v3388_v24  ;;  %vm2404_vm0 = vcmp.lt.s32.totalorder %v2398_v35, 9 }
 0x10b   : > { %2353 = vmatpush2.bf16.msra.mxu1 %v3391_v25 }
 0x10d   : > { %2312 = vmatmul.mubr.bf16.vlgmr.msra.gmra.mxu0 %v2716_v26  ;;  %v2055_v36 = vpop.f32.mrf.mxu0 }
 0x10e   : > { %2355 = vmatmul.mubr.bf16.vlgmr.msra.gmra.mxu1 %v2718_v27  ;;  %v2098_v37 = vpop.f32.mrf.mxu1 }
 0x10f   : > { %v2057_v38 = vpop.f32.mrf.mxu0  ;;  %v2099_v50 = vadd.f32 %v2098_v37, %v2055_v36 }
 0x110   : > { %v2100_v39 = vpop.f32.mrf.mxu1 }
 0x111   : > { %v2059_v40 = vpop.f32.mrf.mxu0  ;;  %v2101_v51 = vadd.f32 %v2100_v39, %v2057_v38 }
 0x112   : > { %v2102_v41 = vpop.f32.mrf.mxu1 }
 0x113   : > { %v2061_v42 = vpop.f32.mrf.mxu0  ;;  %v2103_v56 = vadd.f32 %v2102_v41, %v2059_v40 }
 0x114   : > { %v2104_v43 = vpop.f32.mrf.mxu1 }
 0x115   : > { %v2105_v58 = vadd.f32 %v2104_v43, %v2061_v42 }
 0x14d   : > { %v2141_v44 = vpop.f32.mrf.mxu0 }
 0x14e   : > { %v2184_v45 = vpop.f32.mrf.mxu1  ;;  %v2142_v52 = vadd.f32 %v2141_v44, %v2099_v50 }
 0x14f   : > { %v2143_v46 = vpop.f32.mrf.mxu0 }
 0x150   : > { %v2186_v47 = vpop.f32.mrf.mxu1  ;;  %v2144_v57 = vadd.f32 %v2143_v46, %v2101_v51  ;;  %v2185_v59 = vadd.f32 %v2184_v45, %v2142_v52 }
 0x151   : > { %v2145_v28 = vpop.f32.mrf.mxu0 }
 0x152   : > { %v2188_v31 = vpop.f32.mrf.mxu1  ;;  %v2146_v60 = vadd.f32 %v2145_v28, %v2103_v56  ;;  %v2187_v0 = vadd.f32 %v2186_v47, %v2144_v57 }
 0x153   : > { %v2147_v48 = vpop.f32.mrf.mxu0 }
 0x154   : > { %v2190_v32 = vpop.f32.mrf.mxu1  ;;  %v2148_v1 = vadd.f32 %v2147_v48, %v2105_v58  ;;  %v2189_v3 = vadd.f32 %v2188_v31, %v2146_v60 }
 0x156   : > { %v2191_v8 = vadd.f32 %v2190_v32, %v2148_v1 }
 0x18d   : > { %v2227_v33 = vpop.f32.mrf.mxu0 }
 0x18e   : > { %v2270_v49 = vpop.f32.mrf.mxu1  ;;  %v2228_v2 = vadd.f32 %v2227_v33, %v2185_v59 }
 0x18f   : > { %v2229_v53 = vpop.f32.mrf.mxu0 }
 0x190   : > { %v2272_v54 = vpop.f32.mrf.mxu1  ;;  %v2230_v4 = vadd.f32 %v2229_v53, %v2187_v0  ;;  %v2271_v9 = vadd.f32 %v2270_v49, %v2228_v2 }
 0x191   : > { %v2231_v61 = vpop.f32.mrf.mxu0 }
 0x192   : > { %v2274_v62 = vpop.f32.mrf.mxu1  ;;  %v2232_v10 = vadd.f32 %v2231_v61, %v2189_v3  ;;  %v2273_v15 = vadd.f32 %v2272_v54, %v2230_v4 }
 0x193   : > { %v2233_v5 = vpop.f32.mrf.mxu0 }
 0x194   : > { %v2276_v6 = vpop.f32.mrf.mxu1  ;;  %v2234_v16 = vadd.f32 %v2233_v5, %v2191_v8  ;;  %v2275_v21 = vadd.f32 %v2274_v62, %v2232_v10 }
 0x196   : > { %v2277_v24 = vadd.f32 %v2276_v6, %v2234_v16 }
 0x1cd   : > { %v2313_v13 = vpop.f32.mrf.mxu0 }
 0x1ce   : > { %v2356_v14 = vpop.f32.mrf.mxu1  ;;  %v2314_v17 = vadd.f32 %v2313_v13, %v2271_v9 }
 0x1cf   : > { %v2315_v19 = vpop.f32.mrf.mxu0 }
 0x1d0   : > { %v2358_v20 = vpop.f32.mrf.mxu1  ;;  %v2357_v22 = vadd.f32 %v2356_v14, %v2314_v17  ;;  %v2316_v23 = vadd.f32 %v2315_v19, %v2273_v15 }
 0x1d1   : > { %v2317_v30 = vpop.f32.mrf.mxu0 }
 0x1d2   : > { %v2360_v34 = vpop.f32.mrf.mxu1  ;;  %v2359_v25 = vadd.f32 %v2358_v20, %v2316_v23  ;;  %v2318_v26 = vadd.f32 %v2317_v30, %v2275_v21  ;;  %v2392_v36 = vadd.f32 %v2385_v18, %v2357_v22 }
 0x1d3   : > { %v2319_v27 = vpop.f32.mrf.mxu0 }
 0x1d4   : > { %v2393_v37 = vadd.f32 %v2389_v29, %v2359_v25  ;;  %v2361_v38 = vadd.f32 %v2360_v34, %v2318_v26  ;;  %v2320_v39 = vadd.f32 %v2319_v27, %v2277_v24  ;;  %v2362_v40 = vpop.f32.mrf.mxu1  ;;  %v2427_v46 = vmul.f32 %v2392_v36, %v2392_v36 }
 0x1d6   : > { %v2984_v41 = vpack.c.bf16 %v2393_v37, %v2392_v36  ;;  %v2394_v42 = vadd.f32 %v2385_v18, %v2361_v38  ;;  %v2363_v43 = vadd.f32 %v2362_v40, %v2320_v39  ;;  %v2428_v31 = vmul.f32 %v2393_v37, %v2393_v37 }
 0x1d8   : > { %v2411_v44 = vsel %vm2404_vm0, %v2394_v42, 0.0  ;;  %v2395_v45 = vadd.f32 %v2389_v29, %v2363_v43  ;;  %2472 = vst [vmem:[%s360_s26] sm:$0xff] %v2984_v41 }
 0x1d9   : > { %v2413_v47 = vadd.f32 %v2411_v44, %v2392_v36  ;;  %v2429_v28 = vmul.f32 %v2411_v44, %v2411_v44 }
 0x1da   : > { %v2412_v48 = vsel %vm2404_vm0, %v2395_v45, 0.0  ;;  %v2985_v32 = vpack.c.bf16 %v2395_v45, %v2394_v42 }
 0x1db   : > { %v2414_v33 = vrot.slane %v2413_v47, 4  ;;  %v2431_v49 = vadd.f32 %v2429_v28, %v2427_v46  ;;  %v2420_v50 = vadd.f32 %v2412_v48, %v2393_v37  ;;  %v2430_v51 = vmul.f32 %v2412_v48, %v2412_v48 }
 0x1dc   : > { %2473 = vst [vmem:[%s360_s26 + $0x8] sm:$0xff] %v2985_v32 }
 0x1dd   : > { %v2415_v52 = vadd.f32 %v2414_v33, %v2413_v47  ;;  %v2432_v53 = vrot.slane %v2431_v49, 4  ;;  %v2421_v54 = vrot.slane %v2420_v50, 4  ;;  %v2438_v55 = vadd.f32 %v2430_v51, %v2428_v31 }
 0x1df   : > { %v2416_v56 = vrot.slane %v2415_v52, 2  ;;  %v2433_v57 = vadd.f32 %v2432_v53, %v2431_v49  ;;  %v2422_v58 = vadd.f32 %v2421_v54, %v2420_v50  ;;  %v2439_v59 = vrot.slane %v2438_v55, 4 }
 0x1e1   : > { %v2417_v60 = vadd.f32 %v2416_v56, %v2415_v52  ;;  %v2434_v61 = vrot.slane %v2433_v57, 2  ;;  %v2423_v62 = vrot.slane %v2422_v58, 2  ;;  %v2440_v63 = vadd.f32 %v2439_v59, %v2438_v55 }
 0x1e3   : > { %v2435_v0 = vadd.f32 %v2434_v61, %v2433_v57  ;;  %v2424_v1 = vadd.f32 %v2423_v62, %v2422_v58  ;;  %v2441_v2 = vrot.slane %v2440_v63, 2  ;;  %v2418_v3 = vrot.slane %v2417_v60, 1 }
 0x1e5   : > { %v2436_v4 = vrot.slane %v2435_v0, 1  ;;  %v2425_v5 = vrot.slane %v2424_v1, 1  ;;  %v2442_v6 = vadd.f32 %v2441_v2, %v2440_v63  ;;  %v2419_v9 = vadd.f32 %v2418_v3, %v2417_v60 }
 0x1e7   : > { %v2437_v7 = vadd.f32 %v2436_v4, %v2435_v0  ;;  %v2443_v8 = vrot.slane %v2442_v6, 1  ;;  %v2426_v10 = vadd.f32 %v2425_v5, %v2424_v1 }
 0x1e9   : > { %v2444_v11 = vadd.f32 %v2443_v8, %v2442_v6  ;;  %v2446_v12 = vsel %vm2445_vm1, %v2419_v9, %v2437_v7 }
 0x1eb   : > { %v2447_v13 = vsel %vm2445_vm1, %v2426_v10, %v2444_v11 }
 0x1ec   : > { %v2450_v14 = vcombine.low %v2446_v12, %v2447_v13 }
 0x1ee   : > { %2976 = vst.sshfl [vmem:[%s375_s30] sm:$0x33 pattern:$0x76325410] %v2450_v14 }
 0x1ef PF: > { %s15_s17 = sadd.s32 1, %s3416_s17   ;;  %s4330_s15 = smov %s3412_s16 }
 0x1f0   : > { %p12_p5 = scmp.ge.s32.totalorder %s15_s17, 4   ;;  %s4331_s16 = smov %s4333_s18 }
 0x1f2   :  { %14 = sbr.rel (!%p12_p5) target bundleno = 2 (0x2), region = 88 }

// kernel: _lambda_.13
= control target key start
LH: loop header
LB: loop body
LE: loop exit
PB: predicated region body
PF: predicated region fallthrough
CT: control target
= control target key end

     0   :  { %s5761_s0 = inlined_call_operand.vmem [shape: bf16[2,16,4096], index: 0, kind: input, shape index: {}]   ;;  %s5762_s1 = inlined_call_operand.vmem [shape: bf16[4096,512], index: 1, kind: input, shape index: {}]   ;;  %s5763_s2 = inlined_call_operand.vmem [shape: f32[1,512], index: 2, kind: input, shape index: {}]   ;;  %s5764_s3 = inlined_call_operand.vmem [shape: bf16[2,16,512], index: 3, kind: output, shape index: {0}]   ;;  %s5765_s4 = inlined_call_operand.vmem [shape: f32[2,1,2,512], index: 4, kind: output, shape index: {1}]  }
   0x1   :  { %5771 = sst [smem:[#allocation12_spill]] %s5761_s0 }
   0x2   :  { %5772 = sst [smem:[#allocation13_spill]] %s5762_s1 }
   0x3   :  { %5773 = sst [smem:[#allocation14_spill]] %s5764_s3 }
   0x4   :  { %5774 = sst [smem:[#allocation15_spill]] %s5765_s4 }
   0x5   :  { %s4680_s15 = smov 0   ;;  %s4682_s16 = smov 0  }
   0x6   :  { %s4684_s17 = smov 0   ;;  %s4686_s18 = smov 0  }
   0x7   :  { %s4688_s19 = smov 0   ;;  %s4690_s20 = smov 0  }
   0x8   :  { %s4692_s21 = smov 0   ;;  %s4694_s22 = smov 0  }
   0x9   :  { %s4696_s23 = smov 0   ;;  %s4698_s24 = smov 0  }
   0xa   :  { %s4700_s25 = smov 0   ;;  %s4702_s26 = smov 0  }
   0xb   :  { %s4704_s27 = smov 0  }
   0xc LB: > { %5775 = sst [smem:[#allocation6_spill]] %s4628_s21  ;;  %s30_s29 = sadd.s32 1, %s4640_s24  ;;  %s4652_s27 = sphi %s4704_s27, %s15_s27   ;;  %s4648_s26 = sphi %s4702_s26, %s5796_s26   ;;  %s4644_s25 = sphi %s4700_s25, %s5795_s25   ;;  %s4640_s24 = sphi %s4698_s24, %s5804_s24   ;;  %s4636_s23 = sphi %s4696_s23, %s5793_s23   ;;  %s4632_s22 = sphi %s4694_s22, %s5792_s22   ;;  %s4628_s21 = sphi %s4692_s21, %s5803_s21   ;;  %s4624_s20 = sphi %s4690_s20, %s5802_s20   ;;  %s4620_s19 = sphi %s4688_s19, %s5801_s19   ;;  %s4616_s18 = sphi %s4686_s18, %s5800_s18   ;;  %s4612_s17 = sphi %s4684_s17, %s5799_s17   ;;  %s4608_s16 = sphi %s4682_s16, %s5798_s16   ;;  %s4604_s15 = sphi %s4680_s15, %s5797_s15  }
   0xd   : > { %5776 = sst [smem:[#allocation7_spill]] %s4644_s25  ;;  %p31_p0 = scmp.ge.s32.totalorder %s30_s29, 2 }
   0xe   : > { %5777 = sst [smem:[#allocation8_spill]] %s4648_s26  ;;  %s37_s30 = sadd.s32 1, %s4644_s25 }
   0xf   : > { %s41_s5 = sadd.s32 1, %s4648_s26  ;;  %s52_s6 = sadd.s32 1, %s4624_s20 }
  0x10   : > { %s5806_s29 = smov (%p31_p0, %s30_s29), 0  ;;  %s5808_s30 = smov (!%p31_p0, %s37_s30), %s4644_s25 }
  0x11   : > { %5778 = sst [smem:[#allocation9_spill]] %s5806_s29  ;;  %s48_s7 = ssub.s32 %s4640_s24, %s5806_s29 }
  0x12   : > { %p59_p1 = scmp.ne.s32.totalorder %s4624_s20, %s4620_s19  ;;  %p39_p2 = scmp.ge.s32.totalorder %s5808_s30, 2 }
  0x13   : > { %p60_p3 = scmp.eq.s32.totalorder %s4652_s27, 0  ;;  %s80_s8 = sadd.s32 1, %s4616_s18 }
  0x14   : > { %p87_p4 = scmp.ne.s32.totalorder %s4616_s18, %s4612_s17  ;;  %s5810_s30 = smov (%p39_p2, %s5808_s30), 0 }
  0x15   : > { %5779 = sst [smem:[#allocation10_spill]] %s5810_s30  ;;  %s5812_s5 = smov (!%p39_p2, %s41_s5), %s4648_s26 }
  0x16   : > { %p4764_p5 = por %p60_p3, %p59_p1  ;;  %s76_s10 = ssub.s32 %s4644_s25, %s5810_s30 }
  0x17   : > { %p43_p6 = scmp.ge.s32.totalorder %s5812_s5, 2  ;;  %s77_s11 = sor.u32 %s76_s10, %s48_s7 }
  0x18   : > { %p78_p7 = scmp.eq.s32.totalorder %s77_s11, 0  ;;  %p4770_p8 = por %p87_p4, %p60_p3 }
  0x19   : > { %s5814_s5 = smov (%p43_p6, %s5812_s5), 0  ;;  %s136_s28 = sadd.s32 1, %s4608_s16 }
  0x1a   : > { %5782 = sst [smem:[#allocation11_spill]] %s5814_s5  ;;  %s45_s14 = ssub.s32 %s4648_s26, %s5814_s5 }
  0x1b   : > { %s4777_s13 = scalar_select %p78_p7, %s4616_s18, %s80_s8  }
  0x1c   : > { %s49_s29 = sor.u32 %s48_s7, %s45_s14  ;;  %s133_s3 = sor.u32 %s76_s10, %s45_s14 }
  0x1d   : > { %p50_p9 = scmp.eq.s32.totalorder %s49_s29, 0  ;;  %p134_p10 = scmp.eq.s32.totalorder %s133_s3, 0 }
  0x1e   : > { %p146_p11 = scmp.ne.s32.totalorder %s4608_s16, %s4604_s15  ;;  %s5783_s30 = sadd.s32 4294967295, %s4652_s27  }
  0x1f   : > { %p147_p12 = scmp.eq.s32.totalorder %s5783_s30, 7  ;;  %p3757_p0 = scmp.ge.s32.totalorder %s4652_s27, 8 }
  0x20   : > { %s4787_s21 = scalar_select %p50_p9, %s4624_s20, %s52_s6  }
  0x21   : > { %s4790_s11 = scalar_select %p134_p10, %s4608_s16, %s136_s28  }
  0x22   : > { %p4792_p13 = por %p147_p12, %p146_p11  ;;  %199 = sbr.rel (%p3757_p0) target bundleno = 195 (0xc3), region = 16 }
  0x27   : > { %202 = sbr.rel (!%p4764_p5) target bundleno = 57 (0x39), region = 20  ;;  %s204_s3 = sand.u32 (%p4764_p5), 1, %s4624_s20  }
  0x28   : > { %s3759_s29 = sshll.u32 (%p4764_p5), %s4640_s24, 4  ;;  %s3758_s30 = sshll.u32 (%p4764_p5), %s204_s3, 7 }
  0x29   : > { %s3760_s6 = sshll.u32 (%p4764_p5), %s4648_s26, 6  ;;  %s5785_s0 = sld [smem:[#allocation12_spill]] (%p4764_p5) }
  0x2a   : > { %s212_s7 = sadd.s32 (%p4764_p5), %s3760_s6, %s3759_s29  ;;  %s206_s9 = scalar_lea.vmem (%p4764_p5), [#allocation3], %s3758_s30 }
  0x2b   : > { %s3761_s28 = sshll.u32 (%p4764_p5), %s212_s7, 2 }
  0x2f   : > { %s4805_s14 = scalar_lea.vmem %s5785_s0, %s3761_s28 }
  0x30   : > { %v227_v0 = vld [vmem:[%s4805_s14] sm:$0xff]  ;;  %v229_v1 = vld [vmem:[%s4805_s14 + $0x8] sm:$0xff]  ;;  %v231_v2 = vld [vmem:[%s4805_s14 + $0x10] sm:$0xff] }
  0x31   : > { %228 = vst [vmem:[%s206_s9] sm:$0xff] %v227_v0  ;;  %230 = vst [vmem:[%s206_s9 + $0x8] sm:$0xff] %v229_v1  ;;  %v233_v3 = vld [vmem:[%s4805_s14 + $0x18] sm:$0xff]  ;;  %v235_v4 = vld [vmem:[%s4805_s14 + $0x20] sm:$0xff] }
  0x32   : > { %232 = vst [vmem:[%s206_s9 + $0x10] sm:$0xff] %v231_v2  ;;  %v237_v5 = vld [vmem:[%s4805_s14 + $0x28] sm:$0xff]  ;;  %234 = vst [vmem:[%s206_s9 + $0x18] sm:$0xff] %v233_v3  ;;  %v239_v6 = vld [vmem:[%s4805_s14 + $0x30] sm:$0xff] }
  0x33   : > { %236 = vst [vmem:[%s206_s9 + $0x20] sm:$0xff] %v235_v4  ;;  %238 = vst [vmem:[%s206_s9 + $0x28] sm:$0xff] %v237_v5  ;;  %v241_v7 = vld [vmem:[%s4805_s14 + $0x38] sm:$0xff]  ;;  %v243_v8 = vld [vmem:[%s4805_s14 + $0x80] sm:$0xff] }
  0x34   : > { %240 = vst [vmem:[%s206_s9 + $0x30] sm:$0xff] %v239_v6  ;;  %242 = vst [vmem:[%s206_s9 + $0x38] sm:$0xff] %v241_v7  ;;  %v245_v9 = vld [vmem:[%s4805_s14 + $0x88] sm:$0xff]  ;;  %v247_v10 = vld [vmem:[%s4805_s14 + $0x90] sm:$0xff] }
  0x35   : > { %244 = vst [vmem:[%s206_s9 + $0x40] sm:$0xff] %v243_v8  ;;  %v249_v11 = vld [vmem:[%s4805_s14 + $0x98] sm:$0xff]  ;;  %246 = vst [vmem:[%s206_s9 + $0x48] sm:$0xff] %v245_v9  ;;  %v251_v12 = vld [vmem:[%s4805_s14 + $0xa0] sm:$0xff] }
  0x36   : > { %248 = vst [vmem:[%s206_s9 + $0x50] sm:$0xff] %v247_v10  ;;  %250 = vst [vmem:[%s206_s9 + $0x58] sm:$0xff] %v249_v11  ;;  %v253_v13 = vld [vmem:[%s4805_s14 + $0xa8] sm:$0xff]  ;;  %v255_v14 = vld [vmem:[%s4805_s14 + $0xb0] sm:$0xff] }
  0x37   : > { %252 = vst [vmem:[%s206_s9 + $0x60] sm:$0xff] %v251_v12  ;;  %254 = vst [vmem:[%s206_s9 + $0x68] sm:$0xff] %v253_v13  ;;  %v257_v15 = vld [vmem:[%s4805_s14 + $0xb8] sm:$0xff] }
  0x38   : > { %256 = vst [vmem:[%s206_s9 + $0x70] sm:$0xff] %v255_v14  ;;  %258 = vst [vmem:[%s206_s9 + $0x78] sm:$0xff] %v257_v15 }
  0x39 PF: > { %264 = sbr.rel (!%p4770_p8) target bundleno = 195 (0xc3), region = 43  ;;  %s266_s3 = sand.u32 (%p4770_p8), 1, %s4616_s18  }
  0x3a   : > { %s3764_s29 = sshll.u32 (%p4770_p8), %s4644_s25, 1  ;;  %s3762_s30 = sshll.u32 (%p4770_p8), %s266_s3, 11 }
  0x3b   : > { %s4058_s6 = sshll.u32 (%p4770_p8), %s4640_s24, 10  ;;  %s5786_s1 = sld [smem:[#allocation13_spill]] (%p4770_p8) }
  0x3c   : > { %s272_s7 = sadd.s32 (%p4770_p8), %s4058_s6, %s3764_s29  ;;  %s4836_s12 = scalar_lea.vmem (%p4770_p8), [#allocation4], %s3762_s30 }
  0x3d   : > { %s3766_s28 = sshll.u32 (%p4770_p8), %s272_s7, 2 }
  0x41   : > { %s4831_s0 = scalar_lea.vmem %s5786_s1, %s3766_s28 }
  0x42   : > { %v813_v16 = vld [vmem:[%s4831_s0] sm:$0xff]  ;;  %v815_v17 = vld [vmem:[%s4831_s0 + $0x10] sm:$0xff] }
  0x43   : > { %v817_v18 = vld [vmem:[%s4831_s0 + $0x20] sm:$0xff]  ;;  %814 = vst [vmem:[%s4836_s12] sm:$0xff] %v813_v16  ;;  %816 = vst [vmem:[%s4836_s12 + $0x8] sm:$0xff] %v815_v17  ;;  %v819_v19 = vld [vmem:[%s4831_s0 + $0x30] sm:$0xff] }
  0x44   : > { %818 = vst [vmem:[%s4836_s12 + $0x10] sm:$0xff] %v817_v18  ;;  %v821_v20 = vld [vmem:[%s4831_s0 + $0x40] sm:$0xff]  ;;  %v823_v21 = vld [vmem:[%s4831_s0 + $0x50] sm:$0xff]  ;;  %820 = vst [vmem:[%s4836_s12 + $0x18] sm:$0xff] %v819_v19 }
  0x45   : > { %822 = vst [vmem:[%s4836_s12 + $0x20] sm:$0xff] %v821_v20  ;;  %824 = vst [vmem:[%s4836_s12 + $0x28] sm:$0xff] %v823_v21  ;;  %v825_v22 = vld [vmem:[%s4831_s0 + $0x60] sm:$0xff]  ;;  %v827_v23 = vld [vmem:[%s4831_s0 + $0x70] sm:$0xff] }
  0x46   : > { %v829_v24 = vld [vmem:[%s4831_s0 + $0x80] sm:$0xff]  ;;  %826 = vst [vmem:[%s4836_s12 + $0x30] sm:$0xff] %v825_v22  ;;  %828 = vst [vmem:[%s4836_s12 + $0x38] sm:$0xff] %v827_v23  ;;  %v831_v25 = vld [vmem:[%s4831_s0 + $0x90] sm:$0xff] }
  0x47   : > { %830 = vst [vmem:[%s4836_s12 + $0x40] sm:$0xff] %v829_v24  ;;  %v833_v26 = vld [vmem:[%s4831_s0 + $0xa0] sm:$0xff]  ;;  %v835_v27 = vld [vmem:[%s4831_s0 + $0xb0] sm:$0xff]  ;;  %832 = vst [vmem:[%s4836_s12 + $0x48] sm:$0xff] %v831_v25 }
  0x48   : > { %834 = vst [vmem:[%s4836_s12 + $0x50] sm:$0xff] %v833_v26  ;;  %836 = vst [vmem:[%s4836_s12 + $0x58] sm:$0xff] %v835_v27  ;;  %v837_v28 = vld [vmem:[%s4831_s0 + $0xc0] sm:$0xff]  ;;  %v839_v29 = vld [vmem:[%s4831_s0 + $0xd0] sm:$0xff] }
  0x49   : > { %v841_v30 = vld [vmem:[%s4831_s0 + $0xe0] sm:$0xff]  ;;  %838 = vst [vmem:[%s4836_s12 + $0x60] sm:$0xff] %v837_v28  ;;  %840 = vst [vmem:[%s4836_s12 + $0x68] sm:$0xff] %v839_v29  ;;  %v843_v31 = vld [vmem:[%s4831_s0 + $0xf0] sm:$0xff] }
  0x4a   : > { %842 = vst [vmem:[%s4836_s12 + $0x70] sm:$0xff] %v841_v30  ;;  %v845_v32 = vld [vmem:[%s4831_s0 + $0x100] sm:$0xff]  ;;  %v847_v33 = vld [vmem:[%s4831_s0 + $0x110] sm:$0xff]  ;;  %844 = vst [vmem:[%s4836_s12 + $0x78] sm:$0xff] %v843_v31 }
  0x4b   : > { %846 = vst [vmem:[%s4836_s12 + $0x80] sm:$0xff] %v845_v32  ;;  %848 = vst [vmem:[%s4836_s12 + $0x88] sm:$0xff] %v847_v33  ;;  %v849_v34 = vld [vmem:[%s4831_s0 + $0x120] sm:$0xff]  ;;  %v851_v35 = vld [vmem:[%s4831_s0 + $0x130] sm:$0xff] }
  0x4c   : > { %v853_v36 = vld [vmem:[%s4831_s0 + $0x140] sm:$0xff]  ;;  %850 = vst [vmem:[%s4836_s12 + $0x90] sm:$0xff] %v849_v34  ;;  %852 = vst [vmem:[%s4836_s12 + $0x98] sm:$0xff] %v851_v35  ;;  %v855_v37 = vld [vmem:[%s4831_s0 + $0x150] sm:$0xff] }
  0x4d   : > { %854 = vst [vmem:[%s4836_s12 + $0xa0] sm:$0xff] %v853_v36  ;;  %v857_v38 = vld [vmem:[%s4831_s0 + $0x160] sm:$0xff]  ;;  %v859_v39 = vld [vmem:[%s4831_s0 + $0x170] sm:$0xff]  ;;  %856 = vst [vmem:[%s4836_s12 + $0xa8] sm:$0xff] %v855_v37 }
  0x4e   : > { %858 = vst [vmem:[%s4836_s12 + $0xb0] sm:$0xff] %v857_v38  ;;  %860 = vst [vmem:[%s4836_s12 + $0xb8] sm:$0xff] %v859_v39  ;;  %v861_v40 = vld [vmem:[%s4831_s0 + $0x180] sm:$0xff]  ;;  %v863_v41 = vld [vmem:[%s4831_s0 + $0x190] sm:$0xff] }
  0x4f   : > { %v865_v42 = vld [vmem:[%s4831_s0 + $0x1a0] sm:$0xff]  ;;  %862 = vst [vmem:[%s4836_s12 + $0xc0] sm:$0xff] %v861_v40  ;;  %864 = vst [vmem:[%s4836_s12 + $0xc8] sm:$0xff] %v863_v41  ;;  %v867_v43 = vld [vmem:[%s4831_s0 + $0x1b0] sm:$0xff] }
  0x50   : > { %866 = vst [vmem:[%s4836_s12 + $0xd0] sm:$0xff] %v865_v42  ;;  %v869_v44 = vld [vmem:[%s4831_s0 + $0x1c0] sm:$0xff]  ;;  %v871_v45 = vld [vmem:[%s4831_s0 + $0x1d0] sm:$0xff]  ;;  %868 = vst [vmem:[%s4836_s12 + $0xd8] sm:$0xff] %v867_v43 }
  0x51   : > { %870 = vst [vmem:[%s4836_s12 + $0xe0] sm:$0xff] %v869_v44  ;;  %872 = vst [vmem:[%s4836_s12 + $0xe8] sm:$0xff] %v871_v45  ;;  %v873_v46 = vld [vmem:[%s4831_s0 + $0x1e0] sm:$0xff]  ;;  %v875_v47 = vld [vmem:[%s4831_s0 + $0x1f0] sm:$0xff] }
  0x52   : > { %v877_v48 = vld [vmem:[%s4831_s0 + $0x200] sm:$0xff]  ;;  %874 = vst [vmem:[%s4836_s12 + $0xf0] sm:$0xff] %v873_v46  ;;  %876 = vst [vmem:[%s4836_s12 + $0xf8] sm:$0xff] %v875_v47  ;;  %v879_v49 = vld [vmem:[%s4831_s0 + $0x210] sm:$0xff] }
  0x53   : > { %878 = vst [vmem:[%s4836_s12 + $0x100] sm:$0xff] %v877_v48  ;;  %v881_v50 = vld [vmem:[%s4831_s0 + $0x220] sm:$0xff]  ;;  %v883_v51 = vld [vmem:[%s4831_s0 + $0x230] sm:$0xff]  ;;  %880 = vst [vmem:[%s4836_s12 + $0x108] sm:$0xff] %v879_v49 }
  0x54   : > { %882 = vst [vmem:[%s4836_s12 + $0x110] sm:$0xff] %v881_v50  ;;  %884 = vst [vmem:[%s4836_s12 + $0x118] sm:$0xff] %v883_v51  ;;  %v885_v52 = vld [vmem:[%s4831_s0 + $0x240] sm:$0xff]  ;;  %v887_v53 = vld [vmem:[%s4831_s0 + $0x250] sm:$0xff] }
  0x55   : > { %v889_v54 = vld [vmem:[%s4831_s0 + $0x260] sm:$0xff]  ;;  %886 = vst [vmem:[%s4836_s12 + $0x120] sm:$0xff] %v885_v52  ;;  %888 = vst [vmem:[%s4836_s12 + $0x128] sm:$0xff] %v887_v53  ;;  %v891_v55 = vld [vmem:[%s4831_s0 + $0x270] sm:$0xff] }
  0x56   : > { %890 = vst [vmem:[%s4836_s12 + $0x130] sm:$0xff] %v889_v54  ;;  %v893_v56 = vld [vmem:[%s4831_s0 + $0x280] sm:$0xff]  ;;  %v895_v57 = vld [vmem:[%s4831_s0 + $0x290] sm:$0xff]  ;;  %892 = vst [vmem:[%s4836_s12 + $0x138] sm:$0xff] %v891_v55 }
  0x57   : > { %894 = vst [vmem:[%s4836_s12 + $0x140] sm:$0xff] %v893_v56  ;;  %896 = vst [vmem:[%s4836_s12 + $0x148] sm:$0xff] %v895_v57  ;;  %v897_v58 = vld [vmem:[%s4831_s0 + $0x2a0] sm:$0xff]  ;;  %v899_v59 = vld [vmem:[%s4831_s0 + $0x2b0] sm:$0xff] }
  0x58   : > { %v901_v60 = vld [vmem:[%s4831_s0 + $0x2c0] sm:$0xff]  ;;  %898 = vst [vmem:[%s4836_s12 + $0x150] sm:$0xff] %v897_v58  ;;  %900 = vst [vmem:[%s4836_s12 + $0x158] sm:$0xff] %v899_v59  ;;  %v903_v61 = vld [vmem:[%s4831_s0 + $0x2d0] sm:$0xff] }
  0x59   : > { %902 = vst [vmem:[%s4836_s12 + $0x160] sm:$0xff] %v901_v60  ;;  %v905_v62 = vld [vmem:[%s4831_s0 + $0x2e0] sm:$0xff]  ;;  %v907_v63 = vld [vmem:[%s4831_s0 + $0x2f0] sm:$0xff]  ;;  %904 = vst [vmem:[%s4836_s12 + $0x168] sm:$0xff] %v903_v61 }
  0x5a   : > { %906 = vst [vmem:[%s4836_s12 + $0x170] sm:$0xff] %v905_v62  ;;  %908 = vst [vmem:[%s4836_s12 + $0x178] sm:$0xff] %v907_v63  ;;  %v909_v0 = vld [vmem:[%s4831_s0 + $0x300] sm:$0xff]  ;;  %v911_v1 = vld [vmem:[%s4831_s0 + $0x310] sm:$0xff] }
  0x5b   : > { %v913_v2 = vld [vmem:[%s4831_s0 + $0x320] sm:$0xff]  ;;  %910 = vst [vmem:[%s4836_s12 + $0x180] sm:$0xff] %v909_v0  ;;  %912 = vst [vmem:[%s4836_s12 + $0x188] sm:$0xff] %v911_v1  ;;  %v915_v3 = vld [vmem:[%s4831_s0 + $0x330] sm:$0xff] }
  0x5c   : > { %914 = vst [vmem:[%s4836_s12 + $0x190] sm:$0xff] %v913_v2  ;;  %v917_v4 = vld [vmem:[%s4831_s0 + $0x340] sm:$0xff]  ;;  %v919_v5 = vld [vmem:[%s4831_s0 + $0x350] sm:$0xff]  ;;  %916 = vst [vmem:[%s4836_s12 + $0x198] sm:$0xff] %v915_v3 }
  0x5d   : > { %918 = vst [vmem:[%s4836_s12 + $0x1a0] sm:$0xff] %v917_v4  ;;  %920 = vst [vmem:[%s4836_s12 + $0x1a8] sm:$0xff] %v919_v5  ;;  %v921_v6 = vld [vmem:[%s4831_s0 + $0x360] sm:$0xff]  ;;  %v923_v7 = vld [vmem:[%s4831_s0 + $0x370] sm:$0xff] }
  0x5e   : > { %v925_v8 = vld [vmem:[%s4831_s0 + $0x380] sm:$0xff]  ;;  %922 = vst [vmem:[%s4836_s12 + $0x1b0] sm:$0xff] %v921_v6  ;;  %924 = vst [vmem:[%s4836_s12 + $0x1b8] sm:$0xff] %v923_v7  ;;  %v927_v9 = vld [vmem:[%s4831_s0 + $0x390] sm:$0xff] }
  0x5f   : > { %926 = vst [vmem:[%s4836_s12 + $0x1c0] sm:$0xff] %v925_v8  ;;  %v929_v10 = vld [vmem:[%s4831_s0 + $0x3a0] sm:$0xff]  ;;  %v931_v11 = vld [vmem:[%s4831_s0 + $0x3b0] sm:$0xff]  ;;  %928 = vst [vmem:[%s4836_s12 + $0x1c8] sm:$0xff] %v927_v9 }
  0x60   : > { %930 = vst [vmem:[%s4836_s12 + $0x1d0] sm:$0xff] %v929_v10  ;;  %932 = vst [vmem:[%s4836_s12 + $0x1d8] sm:$0xff] %v931_v11  ;;  %v933_v12 = vld [vmem:[%s4831_s0 + $0x3c0] sm:$0xff]  ;;  %v935_v13 = vld [vmem:[%s4831_s0 + $0x3d0] sm:$0xff] }
  0x61   : > { %v937_v14 = vld [vmem:[%s4831_s0 + $0x3e0] sm:$0xff]  ;;  %934 = vst [vmem:[%s4836_s12 + $0x1e0] sm:$0xff] %v933_v12  ;;  %936 = vst [vmem:[%s4836_s12 + $0x1e8] sm:$0xff] %v935_v13  ;;  %v939_v15 = vld [vmem:[%s4831_s0 + $0x3f0] sm:$0xff] }
  0x62   : > { %938 = vst [vmem:[%s4836_s12 + $0x1f0] sm:$0xff] %v937_v14  ;;  %v941_v16 = vld [vmem:[%s4831_s0 + $0x400] sm:$0xff]  ;;  %v943_v17 = vld [vmem:[%s4831_s0 + $0x410] sm:$0xff]  ;;  %940 = vst [vmem:[%s4836_s12 + $0x1f8] sm:$0xff] %v939_v15 }
  0x63   : > { %942 = vst [vmem:[%s4836_s12 + $0x200] sm:$0xff] %v941_v16  ;;  %944 = vst [vmem:[%s4836_s12 + $0x208] sm:$0xff] %v943_v17  ;;  %v945_v18 = vld [vmem:[%s4831_s0 + $0x420] sm:$0xff]  ;;  %v947_v19 = vld [vmem:[%s4831_s0 + $0x430] sm:$0xff] }
  0x64   : > { %v949_v20 = vld [vmem:[%s4831_s0 + $0x440] sm:$0xff]  ;;  %946 = vst [vmem:[%s4836_s12 + $0x210] sm:$0xff] %v945_v18  ;;  %948 = vst [vmem:[%s4836_s12 + $0x218] sm:$0xff] %v947_v19  ;;  %v951_v21 = vld [vmem:[%s4831_s0 + $0x450] sm:$0xff] }
  0x65   : > { %950 = vst [vmem:[%s4836_s12 + $0x220] sm:$0xff] %v949_v20  ;;  %v953_v22 = vld [vmem:[%s4831_s0 + $0x460] sm:$0xff]  ;;  %v955_v23 = vld [vmem:[%s4831_s0 + $0x470] sm:$0xff]  ;;  %952 = vst [vmem:[%s4836_s12 + $0x228] sm:$0xff] %v951_v21 }
  0x66   : > { %954 = vst [vmem:[%s4836_s12 + $0x230] sm:$0xff] %v953_v22  ;;  %956 = vst [vmem:[%s4836_s12 + $0x238] sm:$0xff] %v955_v23  ;;  %v957_v24 = vld [vmem:[%s4831_s0 + $0x480] sm:$0xff]  ;;  %v959_v25 = vld [vmem:[%s4831_s0 + $0x490] sm:$0xff] }
  0x67   : > { %v961_v26 = vld [vmem:[%s4831_s0 + $0x4a0] sm:$0xff]  ;;  %958 = vst [vmem:[%s4836_s12 + $0x240] sm:$0xff] %v957_v24  ;;  %960 = vst [vmem:[%s4836_s12 + $0x248] sm:$0xff] %v959_v25  ;;  %v963_v27 = vld [vmem:[%s4831_s0 + $0x4b0] sm:$0xff] }
  0x68   : > { %962 = vst [vmem:[%s4836_s12 + $0x250] sm:$0xff] %v961_v26  ;;  %v965_v28 = vld [vmem:[%s4831_s0 + $0x4c0] sm:$0xff]  ;;  %v967_v29 = vld [vmem:[%s4831_s0 + $0x4d0] sm:$0xff]  ;;  %964 = vst [vmem:[%s4836_s12 + $0x258] sm:$0xff] %v963_v27 }
  0x69   : > { %966 = vst [vmem:[%s4836_s12 + $0x260] sm:$0xff] %v965_v28  ;;  %968 = vst [vmem:[%s4836_s12 + $0x268] sm:$0xff] %v967_v29  ;;  %v969_v30 = vld [vmem:[%s4831_s0 + $0x4e0] sm:$0xff]  ;;  %v971_v31 = vld [vmem:[%s4831_s0 + $0x4f0] sm:$0xff] }
  0x6a   : > { %v973_v32 = vld [vmem:[%s4831_s0 + $0x500] sm:$0xff]  ;;  %970 = vst [vmem:[%s4836_s12 + $0x270] sm:$0xff] %v969_v30  ;;  %972 = vst [vmem:[%s4836_s12 + $0x278] sm:$0xff] %v971_v31  ;;  %v975_v33 = vld [vmem:[%s4831_s0 + $0x510] sm:$0xff] }
  0x6b   : > { %974 = vst [vmem:[%s4836_s12 + $0x280] sm:$0xff] %v973_v32  ;;  %v977_v34 = vld [vmem:[%s4831_s0 + $0x520] sm:$0xff]  ;;  %v979_v35 = vld [vmem:[%s4831_s0 + $0x530] sm:$0xff]  ;;  %976 = vst [vmem:[%s4836_s12 + $0x288] sm:$0xff] %v975_v33 }
  0x6c   : > { %978 = vst [vmem:[%s4836_s12 + $0x290] sm:$0xff] %v977_v34  ;;  %980 = vst [vmem:[%s4836_s12 + $0x298] sm:$0xff] %v979_v35  ;;  %v981_v36 = vld [vmem:[%s4831_s0 + $0x540] sm:$0xff]  ;;  %v983_v37 = vld [vmem:[%s4831_s0 + $0x550] sm:$0xff] }
  0x6d   : > { %v985_v38 = vld [vmem:[%s4831_s0 + $0x560] sm:$0xff]  ;;  %982 = vst [vmem:[%s4836_s12 + $0x2a0] sm:$0xff] %v981_v36  ;;  %984 = vst [vmem:[%s4836_s12 + $0x2a8] sm:$0xff] %v983_v37  ;;  %v987_v39 = vld [vmem:[%s4831_s0 + $0x570] sm:$0xff] }
  0x6e   : > { %986 = vst [vmem:[%s4836_s12 + $0x2b0] sm:$0xff] %v985_v38  ;;  %v989_v40 = vld [vmem:[%s4831_s0 + $0x580] sm:$0xff]  ;;  %v991_v41 = vld [vmem:[%s4831_s0 + $0x590] sm:$0xff]  ;;  %988 = vst [vmem:[%s4836_s12 + $0x2b8] sm:$0xff] %v987_v39 }
  0x6f   : > { %990 = vst [vmem:[%s4836_s12 + $0x2c0] sm:$0xff] %v989_v40  ;;  %992 = vst [vmem:[%s4836_s12 + $0x2c8] sm:$0xff] %v991_v41  ;;  %v993_v42 = vld [vmem:[%s4831_s0 + $0x5a0] sm:$0xff]  ;;  %v995_v43 = vld [vmem:[%s4831_s0 + $0x5b0] sm:$0xff] }
  0x70   : > { %v997_v44 = vld [vmem:[%s4831_s0 + $0x5c0] sm:$0xff]  ;;  %994 = vst [vmem:[%s4836_s12 + $0x2d0] sm:$0xff] %v993_v42  ;;  %996 = vst [vmem:[%s4836_s12 + $0x2d8] sm:$0xff] %v995_v43  ;;  %v999_v45 = vld [vmem:[%s4831_s0 + $0x5d0] sm:$0xff] }
  0x71   : > { %998 = vst [vmem:[%s4836_s12 + $0x2e0] sm:$0xff] %v997_v44  ;;  %v1001_v46 = vld [vmem:[%s4831_s0 + $0x5e0] sm:$0xff]  ;;  %v1003_v47 = vld [vmem:[%s4831_s0 + $0x5f0] sm:$0xff]  ;;  %1000 = vst [vmem:[%s4836_s12 + $0x2e8] sm:$0xff] %v999_v45 }
  0x72   : > { %1002 = vst [vmem:[%s4836_s12 + $0x2f0] sm:$0xff] %v1001_v46  ;;  %1004 = vst [vmem:[%s4836_s12 + $0x2f8] sm:$0xff] %v1003_v47  ;;  %v1005_v48 = vld [vmem:[%s4831_s0 + $0x600] sm:$0xff]  ;;  %v1007_v49 = vld [vmem:[%s4831_s0 + $0x610] sm:$0xff] }
  0x73   : > { %v1009_v50 = vld [vmem:[%s4831_s0 + $0x620] sm:$0xff]  ;;  %1006 = vst [vmem:[%s4836_s12 + $0x300] sm:$0xff] %v1005_v48  ;;  %1008 = vst [vmem:[%s4836_s12 + $0x308] sm:$0xff] %v1007_v49  ;;  %v1011_v51 = vld [vmem:[%s4831_s0 + $0x630] sm:$0xff] }
  0x74   : > { %1010 = vst [vmem:[%s4836_s12 + $0x310] sm:$0xff] %v1009_v50  ;;  %v1013_v52 = vld [vmem:[%s4831_s0 + $0x640] sm:$0xff]  ;;  %v1015_v53 = vld [vmem:[%s4831_s0 + $0x650] sm:$0xff]  ;;  %1012 = vst [vmem:[%s4836_s12 + $0x318] sm:$0xff] %v1011_v51 }
  0x75   : > { %1014 = vst [vmem:[%s4836_s12 + $0x320] sm:$0xff] %v1013_v52  ;;  %1016 = vst [vmem:[%s4836_s12 + $0x328] sm:$0xff] %v1015_v53  ;;  %v1017_v54 = vld [vmem:[%s4831_s0 + $0x660] sm:$0xff]  ;;  %v1019_v55 = vld [vmem:[%s4831_s0 + $0x670] sm:$0xff] }
  0x76   : > { %v1021_v56 = vld [vmem:[%s4831_s0 + $0x680] sm:$0xff]  ;;  %1018 = vst [vmem:[%s4836_s12 + $0x330] sm:$0xff] %v1017_v54  ;;  %1020 = vst [vmem:[%s4836_s12 + $0x338] sm:$0xff] %v1019_v55  ;;  %v1023_v57 = vld [vmem:[%s4831_s0 + $0x690] sm:$0xff] }
  0x77   : > { %1022 = vst [vmem:[%s4836_s12 + $0x340] sm:$0xff] %v1021_v56  ;;  %v1025_v58 = vld [vmem:[%s4831_s0 + $0x6a0] sm:$0xff]  ;;  %v1027_v59 = vld [vmem:[%s4831_s0 + $0x6b0] sm:$0xff]  ;;  %1024 = vst [vmem:[%s4836_s12 + $0x348] sm:$0xff] %v1023_v57 }
  0x78   : > { %1026 = vst [vmem:[%s4836_s12 + $0x350] sm:$0xff] %v1025_v58  ;;  %1028 = vst [vmem:[%s4836_s12 + $0x358] sm:$0xff] %v1027_v59  ;;  %v1029_v60 = vld [vmem:[%s4831_s0 + $0x6c0] sm:$0xff]  ;;  %v1031_v61 = vld [vmem:[%s4831_s0 + $0x6d0] sm:$0xff] }
  0x79   : > { %v1033_v62 = vld [vmem:[%s4831_s0 + $0x6e0] sm:$0xff]  ;;  %1030 = vst [vmem:[%s4836_s12 + $0x360] sm:$0xff] %v1029_v60  ;;  %1032 = vst [vmem:[%s4836_s12 + $0x368] sm:$0xff] %v1031_v61  ;;  %v1035_v63 = vld [vmem:[%s4831_s0 + $0x6f0] sm:$0xff] }
  0x7a   : > { %1034 = vst [vmem:[%s4836_s12 + $0x370] sm:$0xff] %v1033_v62  ;;  %v1037_v0 = vld [vmem:[%s4831_s0 + $0x700] sm:$0xff]  ;;  %v1039_v1 = vld [vmem:[%s4831_s0 + $0x710] sm:$0xff]  ;;  %1036 = vst [vmem:[%s4836_s12 + $0x378] sm:$0xff] %v1035_v63 }
  0x7b   : > { %1038 = vst [vmem:[%s4836_s12 + $0x380] sm:$0xff] %v1037_v0  ;;  %1040 = vst [vmem:[%s4836_s12 + $0x388] sm:$0xff] %v1039_v1  ;;  %v1041_v2 = vld [vmem:[%s4831_s0 + $0x720] sm:$0xff]  ;;  %v1043_v3 = vld [vmem:[%s4831_s0 + $0x730] sm:$0xff] }
  0x7c   : > { %v1045_v4 = vld [vmem:[%s4831_s0 + $0x740] sm:$0xff]  ;;  %1042 = vst [vmem:[%s4836_s12 + $0x390] sm:$0xff] %v1041_v2  ;;  %1044 = vst [vmem:[%s4836_s12 + $0x398] sm:$0xff] %v1043_v3  ;;  %v1047_v5 = vld [vmem:[%s4831_s0 + $0x750] sm:$0xff] }
  0x7d   : > { %1046 = vst [vmem:[%s4836_s12 + $0x3a0] sm:$0xff] %v1045_v4  ;;  %v1049_v6 = vld [vmem:[%s4831_s0 + $0x760] sm:$0xff]  ;;  %v1051_v7 = vld [vmem:[%s4831_s0 + $0x770] sm:$0xff]  ;;  %1048 = vst [vmem:[%s4836_s12 + $0x3a8] sm:$0xff] %v1047_v5 }
  0x7e   : > { %1050 = vst [vmem:[%s4836_s12 + $0x3b0] sm:$0xff] %v1049_v6  ;;  %1052 = vst [vmem:[%s4836_s12 + $0x3b8] sm:$0xff] %v1051_v7  ;;  %v1053_v8 = vld [vmem:[%s4831_s0 + $0x780] sm:$0xff]  ;;  %v1055_v9 = vld [vmem:[%s4831_s0 + $0x790] sm:$0xff] }
  0x7f   : > { %v1057_v10 = vld [vmem:[%s4831_s0 + $0x7a0] sm:$0xff]  ;;  %1054 = vst [vmem:[%s4836_s12 + $0x3c0] sm:$0xff] %v1053_v8  ;;  %1056 = vst [vmem:[%s4836_s12 + $0x3c8] sm:$0xff] %v1055_v9  ;;  %v1059_v11 = vld [vmem:[%s4831_s0 + $0x7b0] sm:$0xff] }
  0x80   : > { %1058 = vst [vmem:[%s4836_s12 + $0x3d0] sm:$0xff] %v1057_v10  ;;  %v1061_v12 = vld [vmem:[%s4831_s0 + $0x7c0] sm:$0xff]  ;;  %v1063_v13 = vld [vmem:[%s4831_s0 + $0x7d0] sm:$0xff]  ;;  %1060 = vst [vmem:[%s4836_s12 + $0x3d8] sm:$0xff] %v1059_v11 }
  0x81   : > { %1062 = vst [vmem:[%s4836_s12 + $0x3e0] sm:$0xff] %v1061_v12  ;;  %1064 = vst [vmem:[%s4836_s12 + $0x3e8] sm:$0xff] %v1063_v13  ;;  %v1065_v14 = vld [vmem:[%s4831_s0 + $0x7e0] sm:$0xff]  ;;  %v1067_v15 = vld [vmem:[%s4831_s0 + $0x7f0] sm:$0xff] }
  0x82   : > { %v1069_v16 = vld [vmem:[%s4831_s0 + $0x800] sm:$0xff]  ;;  %1066 = vst [vmem:[%s4836_s12 + $0x3f0] sm:$0xff] %v1065_v14  ;;  %1068 = vst [vmem:[%s4836_s12 + $0x3f8] sm:$0xff] %v1067_v15  ;;  %v1071_v17 = vld [vmem:[%s4831_s0 + $0x810] sm:$0xff] }
  0x83   : > { %1070 = vst [vmem:[%s4836_s12 + $0x400] sm:$0xff] %v1069_v16  ;;  %v1073_v18 = vld [vmem:[%s4831_s0 + $0x820] sm:$0xff]  ;;  %v1075_v19 = vld [vmem:[%s4831_s0 + $0x830] sm:$0xff]  ;;  %1072 = vst [vmem:[%s4836_s12 + $0x408] sm:$0xff] %v1071_v17 }
  0x84   : > { %1074 = vst [vmem:[%s4836_s12 + $0x410] sm:$0xff] %v1073_v18  ;;  %1076 = vst [vmem:[%s4836_s12 + $0x418] sm:$0xff] %v1075_v19  ;;  %v1077_v20 = vld [vmem:[%s4831_s0 + $0x840] sm:$0xff]  ;;  %v1079_v21 = vld [vmem:[%s4831_s0 + $0x850] sm:$0xff] }
  0x85   : > { %v1081_v22 = vld [vmem:[%s4831_s0 + $0x860] sm:$0xff]  ;;  %1078 = vst [vmem:[%s4836_s12 + $0x420] sm:$0xff] %v1077_v20  ;;  %1080 = vst [vmem:[%s4836_s12 + $0x428] sm:$0xff] %v1079_v21  ;;  %v1083_v23 = vld [vmem:[%s4831_s0 + $0x870] sm:$0xff] }
  0x86   : > { %1082 = vst [vmem:[%s4836_s12 + $0x430] sm:$0xff] %v1081_v22  ;;  %v1085_v24 = vld [vmem:[%s4831_s0 + $0x880] sm:$0xff]  ;;  %v1087_v25 = vld [vmem:[%s4831_s0 + $0x890] sm:$0xff]  ;;  %1084 = vst [vmem:[%s4836_s12 + $0x438] sm:$0xff] %v1083_v23 }
  0x87   : > { %1086 = vst [vmem:[%s4836_s12 + $0x440] sm:$0xff] %v1085_v24  ;;  %1088 = vst [vmem:[%s4836_s12 + $0x448] sm:$0xff] %v1087_v25  ;;  %v1089_v26 = vld [vmem:[%s4831_s0 + $0x8a0] sm:$0xff]  ;;  %v1091_v27 = vld [vmem:[%s4831_s0 + $0x8b0] sm:$0xff] }
  0x88   : > { %v1093_v28 = vld [vmem:[%s4831_s0 + $0x8c0] sm:$0xff]  ;;  %1090 = vst [vmem:[%s4836_s12 + $0x450] sm:$0xff] %v1089_v26  ;;  %1092 = vst [vmem:[%s4836_s12 + $0x458] sm:$0xff] %v1091_v27  ;;  %v1095_v29 = vld [vmem:[%s4831_s0 + $0x8d0] sm:$0xff] }
  0x89   : > { %1094 = vst [vmem:[%s4836_s12 + $0x460] sm:$0xff] %v1093_v28  ;;  %v1097_v30 = vld [vmem:[%s4831_s0 + $0x8e0] sm:$0xff]  ;;  %v1099_v31 = vld [vmem:[%s4831_s0 + $0x8f0] sm:$0xff]  ;;  %1096 = vst [vmem:[%s4836_s12 + $0x468] sm:$0xff] %v1095_v29 }
  0x8a   : > { %1098 = vst [vmem:[%s4836_s12 + $0x470] sm:$0xff] %v1097_v30  ;;  %1100 = vst [vmem:[%s4836_s12 + $0x478] sm:$0xff] %v1099_v31  ;;  %v1101_v32 = vld [vmem:[%s4831_s0 + $0x900] sm:$0xff]  ;;  %v1103_v33 = vld [vmem:[%s4831_s0 + $0x910] sm:$0xff] }
  0x8b   : > { %v1105_v34 = vld [vmem:[%s4831_s0 + $0x920] sm:$0xff]  ;;  %1102 = vst [vmem:[%s4836_s12 + $0x480] sm:$0xff] %v1101_v32  ;;  %1104 = vst [vmem:[%s4836_s12 + $0x488] sm:$0xff] %v1103_v33  ;;  %v1107_v35 = vld [vmem:[%s4831_s0 + $0x930] sm:$0xff] }
  0x8c   : > { %1106 = vst [vmem:[%s4836_s12 + $0x490] sm:$0xff] %v1105_v34  ;;  %v1109_v36 = vld [vmem:[%s4831_s0 + $0x940] sm:$0xff]  ;;  %v1111_v37 = vld [vmem:[%s4831_s0 + $0x950] sm:$0xff]  ;;  %1108 = vst [vmem:[%s4836_s12 + $0x498] sm:$0xff] %v1107_v35 }
  0x8d   : > { %1110 = vst [vmem:[%s4836_s12 + $0x4a0] sm:$0xff] %v1109_v36  ;;  %1112 = vst [vmem:[%s4836_s12 + $0x4a8] sm:$0xff] %v1111_v37  ;;  %v1113_v38 = vld [vmem:[%s4831_s0 + $0x960] sm:$0xff]  ;;  %v1115_v39 = vld [vmem:[%s4831_s0 + $0x970] sm:$0xff] }
  0x8e   : > { %v1117_v40 = vld [vmem:[%s4831_s0 + $0x980] sm:$0xff]  ;;  %1114 = vst [vmem:[%s4836_s12 + $0x4b0] sm:$0xff] %v1113_v38  ;;  %1116 = vst [vmem:[%s4836_s12 + $0x4b8] sm:$0xff] %v1115_v39  ;;  %v1119_v41 = vld [vmem:[%s4831_s0 + $0x990] sm:$0xff] }
  0x8f   : > { %1118 = vst [vmem:[%s4836_s12 + $0x4c0] sm:$0xff] %v1117_v40  ;;  %v1121_v42 = vld [vmem:[%s4831_s0 + $0x9a0] sm:$0xff]  ;;  %v1123_v43 = vld [vmem:[%s4831_s0 + $0x9b0] sm:$0xff]  ;;  %1120 = vst [vmem:[%s4836_s12 + $0x4c8] sm:$0xff] %v1119_v41 }
  0x90   : > { %1122 = vst [vmem:[%s4836_s12 + $0x4d0] sm:$0xff] %v1121_v42  ;;  %1124 = vst [vmem:[%s4836_s12 + $0x4d8] sm:$0xff] %v1123_v43  ;;  %v1125_v44 = vld [vmem:[%s4831_s0 + $0x9c0] sm:$0xff]  ;;  %v1127_v45 = vld [vmem:[%s4831_s0 + $0x9d0] sm:$0xff] }
  0x91   : > { %v1129_v46 = vld [vmem:[%s4831_s0 + $0x9e0] sm:$0xff]  ;;  %1126 = vst [vmem:[%s4836_s12 + $0x4e0] sm:$0xff] %v1125_v44  ;;  %1128 = vst [vmem:[%s4836_s12 + $0x4e8] sm:$0xff] %v1127_v45  ;;  %v1131_v47 = vld [vmem:[%s4831_s0 + $0x9f0] sm:$0xff] }
  0x92   : > { %1130 = vst [vmem:[%s4836_s12 + $0x4f0] sm:$0xff] %v1129_v46  ;;  %v1133_v48 = vld [vmem:[%s4831_s0 + $0xa00] sm:$0xff]  ;;  %v1135_v49 = vld [vmem:[%s4831_s0 + $0xa10] sm:$0xff]  ;;  %1132 = vst [vmem:[%s4836_s12 + $0x4f8] sm:$0xff] %v1131_v47 }
  0x93   : > { %1134 = vst [vmem:[%s4836_s12 + $0x500] sm:$0xff] %v1133_v48  ;;  %1136 = vst [vmem:[%s4836_s12 + $0x508] sm:$0xff] %v1135_v49  ;;  %v1137_v50 = vld [vmem:[%s4831_s0 + $0xa20] sm:$0xff]  ;;  %v1139_v51 = vld [vmem:[%s4831_s0 + $0xa30] sm:$0xff] }
  0x94   : > { %v1141_v52 = vld [vmem:[%s4831_s0 + $0xa40] sm:$0xff]  ;;  %1138 = vst [vmem:[%s4836_s12 + $0x510] sm:$0xff] %v1137_v50  ;;  %1140 = vst [vmem:[%s4836_s12 + $0x518] sm:$0xff] %v1139_v51  ;;  %v1143_v53 = vld [vmem:[%s4831_s0 + $0xa50] sm:$0xff] }
  0x95   : > { %1142 = vst [vmem:[%s4836_s12 + $0x520] sm:$0xff] %v1141_v52  ;;  %v1145_v54 = vld [vmem:[%s4831_s0 + $0xa60] sm:$0xff]  ;;  %v1147_v55 = vld [vmem:[%s4831_s0 + $0xa70] sm:$0xff]  ;;  %1144 = vst [vmem:[%s4836_s12 + $0x528] sm:$0xff] %v1143_v53 }
  0x96   : > { %1146 = vst [vmem:[%s4836_s12 + $0x530] sm:$0xff] %v1145_v54  ;;  %1148 = vst [vmem:[%s4836_s12 + $0x538] sm:$0xff] %v1147_v55  ;;  %v1149_v56 = vld [vmem:[%s4831_s0 + $0xa80] sm:$0xff]  ;;  %v1151_v57 = vld [vmem:[%s4831_s0 + $0xa90] sm:$0xff] }
  0x97   : > { %v1153_v58 = vld [vmem:[%s4831_s0 + $0xaa0] sm:$0xff]  ;;  %1150 = vst [vmem:[%s4836_s12 + $0x540] sm:$0xff] %v1149_v56  ;;  %1152 = vst [vmem:[%s4836_s12 + $0x548] sm:$0xff] %v1151_v57  ;;  %v1155_v59 = vld [vmem:[%s4831_s0 + $0xab0] sm:$0xff] }
  0x98   : > { %1154 = vst [vmem:[%s4836_s12 + $0x550] sm:$0xff] %v1153_v58  ;;  %v1157_v60 = vld [vmem:[%s4831_s0 + $0xac0] sm:$0xff]  ;;  %v1159_v61 = vld [vmem:[%s4831_s0 + $0xad0] sm:$0xff]  ;;  %1156 = vst [vmem:[%s4836_s12 + $0x558] sm:$0xff] %v1155_v59 }
  0x99   : > { %1158 = vst [vmem:[%s4836_s12 + $0x560] sm:$0xff] %v1157_v60  ;;  %1160 = vst [vmem:[%s4836_s12 + $0x568] sm:$0xff] %v1159_v61  ;;  %v1161_v62 = vld [vmem:[%s4831_s0 + $0xae0] sm:$0xff]  ;;  %v1163_v63 = vld [vmem:[%s4831_s0 + $0xaf0] sm:$0xff] }
  0x9a   : > { %v1165_v0 = vld [vmem:[%s4831_s0 + $0xb00] sm:$0xff]  ;;  %1162 = vst [vmem:[%s4836_s12 + $0x570] sm:$0xff] %v1161_v62  ;;  %1164 = vst [vmem:[%s4836_s12 + $0x578] sm:$0xff] %v1163_v63  ;;  %v1167_v1 = vld [vmem:[%s4831_s0 + $0xb10] sm:$0xff] }
  0x9b   : > { %1166 = vst [vmem:[%s4836_s12 + $0x580] sm:$0xff] %v1165_v0  ;;  %v1169_v2 = vld [vmem:[%s4831_s0 + $0xb20] sm:$0xff]  ;;  %v1171_v3 = vld [vmem:[%s4831_s0 + $0xb30] sm:$0xff]  ;;  %1168 = vst [vmem:[%s4836_s12 + $0x588] sm:$0xff] %v1167_v1 }
  0x9c   : > { %1170 = vst [vmem:[%s4836_s12 + $0x590] sm:$0xff] %v1169_v2  ;;  %1172 = vst [vmem:[%s4836_s12 + $0x598] sm:$0xff] %v1171_v3  ;;  %v1173_v4 = vld [vmem:[%s4831_s0 + $0xb40] sm:$0xff]  ;;  %v1175_v5 = vld [vmem:[%s4831_s0 + $0xb50] sm:$0xff] }
  0x9d   : > { %v1177_v6 = vld [vmem:[%s4831_s0 + $0xb60] sm:$0xff]  ;;  %1174 = vst [vmem:[%s4836_s12 + $0x5a0] sm:$0xff] %v1173_v4  ;;  %1176 = vst [vmem:[%s4836_s12 + $0x5a8] sm:$0xff] %v1175_v5  ;;  %v1179_v7 = vld [vmem:[%s4831_s0 + $0xb70] sm:$0xff] }
  0x9e   : > { %1178 = vst [vmem:[%s4836_s12 + $0x5b0] sm:$0xff] %v1177_v6  ;;  %v1181_v8 = vld [vmem:[%s4831_s0 + $0xb80] sm:$0xff]  ;;  %v1183_v9 = vld [vmem:[%s4831_s0 + $0xb90] sm:$0xff]  ;;  %1180 = vst [vmem:[%s4836_s12 + $0x5b8] sm:$0xff] %v1179_v7 }
  0x9f   : > { %1182 = vst [vmem:[%s4836_s12 + $0x5c0] sm:$0xff] %v1181_v8  ;;  %1184 = vst [vmem:[%s4836_s12 + $0x5c8] sm:$0xff] %v1183_v9  ;;  %v1185_v10 = vld [vmem:[%s4831_s0 + $0xba0] sm:$0xff]  ;;  %v1187_v11 = vld [vmem:[%s4831_s0 + $0xbb0] sm:$0xff] }
  0xa0   : > { %v1189_v12 = vld [vmem:[%s4831_s0 + $0xbc0] sm:$0xff]  ;;  %1186 = vst [vmem:[%s4836_s12 + $0x5d0] sm:$0xff] %v1185_v10  ;;  %1188 = vst [vmem:[%s4836_s12 + $0x5d8] sm:$0xff] %v1187_v11  ;;  %v1191_v13 = vld [vmem:[%s4831_s0 + $0xbd0] sm:$0xff] }
  0xa1   : > { %1190 = vst [vmem:[%s4836_s12 + $0x5e0] sm:$0xff] %v1189_v12  ;;  %v1193_v14 = vld [vmem:[%s4831_s0 + $0xbe0] sm:$0xff]  ;;  %v1195_v15 = vld [vmem:[%s4831_s0 + $0xbf0] sm:$0xff]  ;;  %1192 = vst [vmem:[%s4836_s12 + $0x5e8] sm:$0xff] %v1191_v13 }
  0xa2   : > { %1194 = vst [vmem:[%s4836_s12 + $0x5f0] sm:$0xff] %v1193_v14  ;;  %1196 = vst [vmem:[%s4836_s12 + $0x5f8] sm:$0xff] %v1195_v15  ;;  %v1197_v16 = vld [vmem:[%s4831_s0 + $0xc00] sm:$0xff]  ;;  %v1199_v17 = vld [vmem:[%s4831_s0 + $0xc10] sm:$0xff] }
  0xa3   : > { %v1201_v18 = vld [vmem:[%s4831_s0 + $0xc20] sm:$0xff]  ;;  %1198 = vst [vmem:[%s4836_s12 + $0x600] sm:$0xff] %v1197_v16  ;;  %1200 = vst [vmem:[%s4836_s12 + $0x608] sm:$0xff] %v1199_v17  ;;  %v1203_v19 = vld [vmem:[%s4831_s0 + $0xc30] sm:$0xff] }
  0xa4   : > { %1202 = vst [vmem:[%s4836_s12 + $0x610] sm:$0xff] %v1201_v18  ;;  %v1205_v20 = vld [vmem:[%s4831_s0 + $0xc40] sm:$0xff]  ;;  %v1207_v21 = vld [vmem:[%s4831_s0 + $0xc50] sm:$0xff]  ;;  %1204 = vst [vmem:[%s4836_s12 + $0x618] sm:$0xff] %v1203_v19 }
  0xa5   : > { %1206 = vst [vmem:[%s4836_s12 + $0x620] sm:$0xff] %v1205_v20  ;;  %1208 = vst [vmem:[%s4836_s12 + $0x628] sm:$0xff] %v1207_v21  ;;  %v1209_v22 = vld [vmem:[%s4831_s0 + $0xc60] sm:$0xff]  ;;  %v1211_v23 = vld [vmem:[%s4831_s0 + $0xc70] sm:$0xff] }
  0xa6   : > { %v1213_v24 = vld [vmem:[%s4831_s0 + $0xc80] sm:$0xff]  ;;  %1210 = vst [vmem:[%s4836_s12 + $0x630] sm:$0xff] %v1209_v22  ;;  %1212 = vst [vmem:[%s4836_s12 + $0x638] sm:$0xff] %v1211_v23  ;;  %v1215_v25 = vld [vmem:[%s4831_s0 + $0xc90] sm:$0xff] }
  0xa7   : > { %1214 = vst [vmem:[%s4836_s12 + $0x640] sm:$0xff] %v1213_v24  ;;  %v1217_v26 = vld [vmem:[%s4831_s0 + $0xca0] sm:$0xff]  ;;  %v1219_v27 = vld [vmem:[%s4831_s0 + $0xcb0] sm:$0xff]  ;;  %1216 = vst [vmem:[%s4836_s12 + $0x648] sm:$0xff] %v1215_v25 }
  0xa8   : > { %1218 = vst [vmem:[%s4836_s12 + $0x650] sm:$0xff] %v1217_v26  ;;  %1220 = vst [vmem:[%s4836_s12 + $0x658] sm:$0xff] %v1219_v27  ;;  %v1221_v28 = vld [vmem:[%s4831_s0 + $0xcc0] sm:$0xff]  ;;  %v1223_v29 = vld [vmem:[%s4831_s0 + $0xcd0] sm:$0xff] }
  0xa9   : > { %v1225_v30 = vld [vmem:[%s4831_s0 + $0xce0] sm:$0xff]  ;;  %1222 = vst [vmem:[%s4836_s12 + $0x660] sm:$0xff] %v1221_v28  ;;  %1224 = vst [vmem:[%s4836_s12 + $0x668] sm:$0xff] %v1223_v29  ;;  %v1227_v31 = vld [vmem:[%s4831_s0 + $0xcf0] sm:$0xff] }
  0xaa   : > { %1226 = vst [vmem:[%s4836_s12 + $0x670] sm:$0xff] %v1225_v30  ;;  %v1229_v32 = vld [vmem:[%s4831_s0 + $0xd00] sm:$0xff]  ;;  %v1231_v33 = vld [vmem:[%s4831_s0 + $0xd10] sm:$0xff]  ;;  %1228 = vst [vmem:[%s4836_s12 + $0x678] sm:$0xff] %v1227_v31 }
  0xab   : > { %1230 = vst [vmem:[%s4836_s12 + $0x680] sm:$0xff] %v1229_v32  ;;  %1232 = vst [vmem:[%s4836_s12 + $0x688] sm:$0xff] %v1231_v33  ;;  %v1233_v34 = vld [vmem:[%s4831_s0 + $0xd20] sm:$0xff]  ;;  %v1235_v35 = vld [vmem:[%s4831_s0 + $0xd30] sm:$0xff] }
  0xac   : > { %v1237_v36 = vld [vmem:[%s4831_s0 + $0xd40] sm:$0xff]  ;;  %1234 = vst [vmem:[%s4836_s12 + $0x690] sm:$0xff] %v1233_v34  ;;  %1236 = vst [vmem:[%s4836_s12 + $0x698] sm:$0xff] %v1235_v35  ;;  %v1239_v37 = vld [vmem:[%s4831_s0 + $0xd50] sm:$0xff] }
  0xad   : > { %1238 = vst [vmem:[%s4836_s12 + $0x6a0] sm:$0xff] %v1237_v36  ;;  %v1241_v38 = vld [vmem:[%s4831_s0 + $0xd60] sm:$0xff]  ;;  %v1243_v39 = vld [vmem:[%s4831_s0 + $0xd70] sm:$0xff]  ;;  %1240 = vst [vmem:[%s4836_s12 + $0x6a8] sm:$0xff] %v1239_v37 }
  0xae   : > { %1242 = vst [vmem:[%s4836_s12 + $0x6b0] sm:$0xff] %v1241_v38  ;;  %1244 = vst [vmem:[%s4836_s12 + $0x6b8] sm:$0xff] %v1243_v39  ;;  %v1245_v40 = vld [vmem:[%s4831_s0 + $0xd80] sm:$0xff]  ;;  %v1247_v41 = vld [vmem:[%s4831_s0 + $0xd90] sm:$0xff] }
  0xaf   : > { %v1249_v42 = vld [vmem:[%s4831_s0 + $0xda0] sm:$0xff]  ;;  %1246 = vst [vmem:[%s4836_s12 + $0x6c0] sm:$0xff] %v1245_v40  ;;  %1248 = vst [vmem:[%s4836_s12 + $0x6c8] sm:$0xff] %v1247_v41  ;;  %v1251_v43 = vld [vmem:[%s4831_s0 + $0xdb0] sm:$0xff] }
  0xb0   : > { %1250 = vst [vmem:[%s4836_s12 + $0x6d0] sm:$0xff] %v1249_v42  ;;  %v1253_v44 = vld [vmem:[%s4831_s0 + $0xdc0] sm:$0xff]  ;;  %v1255_v45 = vld [vmem:[%s4831_s0 + $0xdd0] sm:$0xff]  ;;  %1252 = vst [vmem:[%s4836_s12 + $0x6d8] sm:$0xff] %v1251_v43 }
  0xb1   : > { %1254 = vst [vmem:[%s4836_s12 + $0x6e0] sm:$0xff] %v1253_v44  ;;  %1256 = vst [vmem:[%s4836_s12 + $0x6e8] sm:$0xff] %v1255_v45  ;;  %v1257_v46 = vld [vmem:[%s4831_s0 + $0xde0] sm:$0xff]  ;;  %v1259_v47 = vld [vmem:[%s4831_s0 + $0xdf0] sm:$0xff] }
  0xb2   : > { %v1261_v48 = vld [vmem:[%s4831_s0 + $0xe00] sm:$0xff]  ;;  %1258 = vst [vmem:[%s4836_s12 + $0x6f0] sm:$0xff] %v1257_v46  ;;  %1260 = vst [vmem:[%s4836_s12 + $0x6f8] sm:$0xff] %v1259_v47  ;;  %v1263_v49 = vld [vmem:[%s4831_s0 + $0xe10] sm:$0xff] }
  0xb3   : > { %1262 = vst [vmem:[%s4836_s12 + $0x700] sm:$0xff] %v1261_v48  ;;  %v1265_v50 = vld [vmem:[%s4831_s0 + $0xe20] sm:$0xff]  ;;  %v1267_v51 = vld [vmem:[%s4831_s0 + $0xe30] sm:$0xff]  ;;  %1264 = vst [vmem:[%s4836_s12 + $0x708] sm:$0xff] %v1263_v49 }
  0xb4   : > { %1266 = vst [vmem:[%s4836_s12 + $0x710] sm:$0xff] %v1265_v50  ;;  %1268 = vst [vmem:[%s4836_s12 + $0x718] sm:$0xff] %v1267_v51  ;;  %v1269_v52 = vld [vmem:[%s4831_s0 + $0xe40] sm:$0xff]  ;;  %v1271_v53 = vld [vmem:[%s4831_s0 + $0xe50] sm:$0xff] }
  0xb5   : > { %v1273_v54 = vld [vmem:[%s4831_s0 + $0xe60] sm:$0xff]  ;;  %1270 = vst [vmem:[%s4836_s12 + $0x720] sm:$0xff] %v1269_v52  ;;  %1272 = vst [vmem:[%s4836_s12 + $0x728] sm:$0xff] %v1271_v53  ;;  %v1275_v55 = vld [vmem:[%s4831_s0 + $0xe70] sm:$0xff] }
  0xb6   : > { %1274 = vst [vmem:[%s4836_s12 + $0x730] sm:$0xff] %v1273_v54  ;;  %v1277_v56 = vld [vmem:[%s4831_s0 + $0xe80] sm:$0xff]  ;;  %v1279_v57 = vld [vmem:[%s4831_s0 + $0xe90] sm:$0xff]  ;;  %1276 = vst [vmem:[%s4836_s12 + $0x738] sm:$0xff] %v1275_v55 }
  0xb7   : > { %1278 = vst [vmem:[%s4836_s12 + $0x740] sm:$0xff] %v1277_v56  ;;  %1280 = vst [vmem:[%s4836_s12 + $0x748] sm:$0xff] %v1279_v57  ;;  %v1281_v58 = vld [vmem:[%s4831_s0 + $0xea0] sm:$0xff]  ;;  %v1283_v59 = vld [vmem:[%s4831_s0 + $0xeb0] sm:$0xff] }
  0xb8   : > { %v1285_v60 = vld [vmem:[%s4831_s0 + $0xec0] sm:$0xff]  ;;  %1282 = vst [vmem:[%s4836_s12 + $0x750] sm:$0xff] %v1281_v58  ;;  %1284 = vst [vmem:[%s4836_s12 + $0x758] sm:$0xff] %v1283_v59  ;;  %v1287_v61 = vld [vmem:[%s4831_s0 + $0xed0] sm:$0xff] }
  0xb9   : > { %1286 = vst [vmem:[%s4836_s12 + $0x760] sm:$0xff] %v1285_v60  ;;  %v1289_v62 = vld [vmem:[%s4831_s0 + $0xee0] sm:$0xff]  ;;  %v1291_v63 = vld [vmem:[%s4831_s0 + $0xef0] sm:$0xff]  ;;  %1288 = vst [vmem:[%s4836_s12 + $0x768] sm:$0xff] %v1287_v61 }
  0xba   : > { %1290 = vst [vmem:[%s4836_s12 + $0x770] sm:$0xff] %v1289_v62  ;;  %1292 = vst [vmem:[%s4836_s12 + $0x778] sm:$0xff] %v1291_v63  ;;  %v1293_v0 = vld [vmem:[%s4831_s0 + $0xf00] sm:$0xff]  ;;  %v1295_v1 = vld [vmem:[%s4831_s0 + $0xf10] sm:$0xff] }
  0xbb   : > { %v1297_v2 = vld [vmem:[%s4831_s0 + $0xf20] sm:$0xff]  ;;  %1294 = vst [vmem:[%s4836_s12 + $0x780] sm:$0xff] %v1293_v0  ;;  %1296 = vst [vmem:[%s4836_s12 + $0x788] sm:$0xff] %v1295_v1  ;;  %v1299_v3 = vld [vmem:[%s4831_s0 + $0xf30] sm:$0xff] }
  0xbc   : > { %1298 = vst [vmem:[%s4836_s12 + $0x790] sm:$0xff] %v1297_v2  ;;  %v1301_v4 = vld [vmem:[%s4831_s0 + $0xf40] sm:$0xff]  ;;  %v1303_v5 = vld [vmem:[%s4831_s0 + $0xf50] sm:$0xff]  ;;  %1300 = vst [vmem:[%s4836_s12 + $0x798] sm:$0xff] %v1299_v3 }
  0xbd   : > { %1302 = vst [vmem:[%s4836_s12 + $0x7a0] sm:$0xff] %v1301_v4  ;;  %1304 = vst [vmem:[%s4836_s12 + $0x7a8] sm:$0xff] %v1303_v5  ;;  %v1305_v6 = vld [vmem:[%s4831_s0 + $0xf60] sm:$0xff]  ;;  %v1307_v7 = vld [vmem:[%s4831_s0 + $0xf70] sm:$0xff] }
  0xbe   : > { %v1309_v8 = vld [vmem:[%s4831_s0 + $0xf80] sm:$0xff]  ;;  %1306 = vst [vmem:[%s4836_s12 + $0x7b0] sm:$0xff] %v1305_v6  ;;  %1308 = vst [vmem:[%s4836_s12 + $0x7b8] sm:$0xff] %v1307_v7  ;;  %v1311_v9 = vld [vmem:[%s4831_s0 + $0xf90] sm:$0xff] }
  0xbf   : > { %1310 = vst [vmem:[%s4836_s12 + $0x7c0] sm:$0xff] %v1309_v8  ;;  %v1313_v10 = vld [vmem:[%s4831_s0 + $0xfa0] sm:$0xff]  ;;  %v1315_v11 = vld [vmem:[%s4831_s0 + $0xfb0] sm:$0xff]  ;;  %1312 = vst [vmem:[%s4836_s12 + $0x7c8] sm:$0xff] %v1311_v9 }
  0xc0   : > { %1314 = vst [vmem:[%s4836_s12 + $0x7d0] sm:$0xff] %v1313_v10  ;;  %1316 = vst [vmem:[%s4836_s12 + $0x7d8] sm:$0xff] %v1315_v11  ;;  %v1317_v12 = vld [vmem:[%s4831_s0 + $0xfc0] sm:$0xff]  ;;  %v1319_v13 = vld [vmem:[%s4831_s0 + $0xfd0] sm:$0xff] }
  0xc1   : > { %v1321_v14 = vld [vmem:[%s4831_s0 + $0xfe0] sm:$0xff]  ;;  %1318 = vst [vmem:[%s4836_s12 + $0x7e0] sm:$0xff] %v1317_v12  ;;  %1320 = vst [vmem:[%s4836_s12 + $0x7e8] sm:$0xff] %v1319_v13  ;;  %v1323_v15 = vld [vmem:[%s4831_s0 + $0xff0] sm:$0xff] }
  0xc2   : > { %1322 = vst [vmem:[%s4836_s12 + $0x7f0] sm:$0xff] %v1321_v14  ;;  %1324 = vst [vmem:[%s4836_s12 + $0x7f8] sm:$0xff] %v1323_v15 }
  0xc3 PF: > { %p3767_p1 = scmp.ge.s32.totalorder %s4652_s27, 1  ;;  %p1337_p2 = scmp.lt.s32.totalorder %s4652_s27, 9 }
  0xc5   : > { %p1338_p3 = pnand %p3767_p1, %p1337_p2 }
  0xc6   : > { %s1344_s14 = sand.u32 (!%p1338_p3), 1, %s4620_s19   ;;  %s1351_s9 = sand.u32 (!%p1338_p3), 1, %s4612_s17  }
  0xc7   : > { %1341 = sbr.rel (%p1338_p3) target bundleno = 727 (0x2d7), region = 85  ;;  %s3768_s3 = sshll.u32 (!%p1338_p3), %s1344_s14, 7 }
  0xc8   : > { %s3769_s29 = sshll.u32 (!%p1338_p3), %s1351_s9, 11  ;;  %s1378_s0 = sand.u32 (!%p1338_p3), 1, %s4604_s15  }
  0xc9   : > { %s5353_s30 = sshll.u32 (!%p1338_p3), %s4632_s22, 1  ;;  %s3770_s6 = sshll.u32 (!%p1338_p3), %s1378_s0, 4 }
  0xca   : > { %p1401_p4 = scmp.lt.s32.totalorder (!%p1338_p3), %s5353_s30, 3  ;;  %p1408_p5 = scmp.lt.s32.totalorder (!%p1338_p3), %s4636_s23, 1 }
  0xcb   : > { %s5787_s9 = sld [smem:[#allocation15_spill]] (!%p1338_p3)  ;;  %s5371_s0 = scalar_lea.vmem (!%p1338_p3), [#allocation3], %s3768_s3 }
  0xcc   : > { %s5358_s7 = scalar_select %p1401_p4, %s5353_s30, 3 }
  0xcd   : > { %s1409_s28 = scalar_select %p1408_p5, %s4636_s23, 1 }
  0xce   : > { %s1403_s19 = scalar_lea.vmem %s5763_s2, %s5358_s7  ;;  %s5373_s5 = scalar_lea.vmem [#allocation4], %s3769_s29 }
  0xcf   : > { %s3773_s17 = sshll.u32 %s1409_s28, 2  ;;  %s5375_s26 = scalar_lea.vmem [#allocation5], %s3770_s6 }
  0xd0   : > { %s1417_s12 = sadd.s32 %s3773_s17, %s5358_s7  ;;  %s5788_s25 = sld [smem:[#allocation6_spill]] }
  0xd1   : > { %s3774_s14 = sshll.u32 %s1417_s12, 1 }
  0xd2   : > { %s5369_s1 = scalar_lea.vmem %s5787_s9, %s3774_s14 }
  0xd6   : > { %p3775_p6 = scmp.ne.s32.totalorder %s5788_s25, 0 }
  0xd8   : > { %1424 = sbr.rel (%p3775_p6) target bundleno = 224 (0xe0), region = 97 }
  0xdd   : > { %v4654_v16 = vmov 0.0  }
  0xde   : > { %1425 = vst [vmem:[#allocation2 + $0x10] sm:$0xff] %v4654_v16  ;;  %1426 = vst [vmem:[#allocation2] sm:$0xff] %v4654_v16 }
  0xdf   : > { %1427 = vst [vmem:[#allocation2 + $0x18] sm:$0xff] %v4654_v16  ;;  %1428 = vst [vmem:[#allocation2 + $0x8] sm:$0xff] %v4654_v16 }
  0xe0 PF: > { %v4166_v17 = vld [vmem:[%s5373_s5 + $0x74] ss:$8 sps:$4 sm:$0xff]   ;;  %v4170_v19 = vld [vmem:[%s5373_s5 + $0x70] ss:$8 sps:$4 sm:$0xff]   ;;  %v4172_v21 = vld [vmem:[%s5373_s5 + $0x64] ss:$8 sps:$4 sm:$0xff]  }
  0xe1   : > { %v4168_v18 = vld [vmem:[%s5373_s5 + $0x174] ss:$8 sps:$4 sm:$0xff]   ;;  %3065 = vmatprep.subr.bf16.mxu0 %v4166_v17  ;;  %v4171_v20 = vld [vmem:[%s5373_s5 + $0x170] ss:$8 sps:$4 sm:$0xff]   ;;  %v4174_v22 = vld [vmem:[%s5373_s5 + $0x164] ss:$8 sps:$4 sm:$0xff]  }
  0xe2   : > { %3108 = vmatprep.subr.bf16.mxu1 %v4168_v18  ;;  %3066 = vmatpush1.bf16.msra.mxu0 %v4170_v19  ;;  %v4176_v23 = vld [vmem:[%s5373_s5 + $0x60] ss:$8 sps:$4 sm:$0xff]   ;;  %v4178_v25 = vld [vmem:[%s5373_s5 + $0x54] ss:$8 sps:$4 sm:$0xff]   ;;  %v4182_v27 = vld [vmem:[%s5373_s5 + $0x50] ss:$8 sps:$4 sm:$0xff]  }
  0xe3   : > { %3109 = vmatpush1.bf16.msra.mxu1 %v4171_v20  ;;  %3067 = vmatprep.subr.bf16.mxu0 %v4172_v21  ;;  %v4177_v24 = vld [vmem:[%s5373_s5 + $0x160] ss:$8 sps:$4 sm:$0xff]   ;;  %v4180_v26 = vld [vmem:[%s5373_s5 + $0x154] ss:$8 sps:$4 sm:$0xff]   ;;  %v4183_v28 = vld [vmem:[%s5373_s5 + $0x150] ss:$8 sps:$4 sm:$0xff]  }
  0xe4   : > { %3110 = vmatprep.subr.bf16.mxu1 %v4174_v22  ;;  %v4184_v29 = vld [vmem:[%s5373_s5 + $0x44] ss:$8 sps:$4 sm:$0xff]   ;;  %v4188_v31 = vld [vmem:[%s5373_s5 + $0x40] ss:$8 sps:$4 sm:$0xff]   ;;  %v4190_v33 = vld [vmem:[%s5373_s5 + $0x34] ss:$8 sps:$4 sm:$0xff]  }
  0xe5   : > { %v4186_v30 = vld [vmem:[%s5373_s5 + $0x144] ss:$8 sps:$4 sm:$0xff]   ;;  %v4189_v32 = vld [vmem:[%s5373_s5 + $0x140] ss:$8 sps:$4 sm:$0xff]   ;;  %v4192_v34 = vld [vmem:[%s5373_s5 + $0x134] ss:$8 sps:$4 sm:$0xff]  }
  0xe6   : > { %3068 = vmatpush1.bf16.msra.mxu0 %v4176_v23  ;;  %v4194_v35 = vld [vmem:[%s5373_s5 + $0x30] ss:$8 sps:$4 sm:$0xff]   ;;  %v4196_v37 = vld [vmem:[%s5373_s5 + $0x24] ss:$8 sps:$4 sm:$0xff]   ;;  %v4200_v39 = vld [vmem:[%s5373_s5 + $0x20] ss:$8 sps:$4 sm:$0xff]  }
  0xe7   : > { %3111 = vmatpush1.bf16.msra.mxu1 %v4177_v24  ;;  %3069 = vmatprep.subr.bf16.mxu0 %v4178_v25  ;;  %v4195_v36 = vld [vmem:[%s5373_s5 + $0x130] ss:$8 sps:$4 sm:$0xff]   ;;  %v4198_v38 = vld [vmem:[%s5373_s5 + $0x124] ss:$8 sps:$4 sm:$0xff]   ;;  %v4201_v40 = vld [vmem:[%s5373_s5 + $0x120] ss:$8 sps:$4 sm:$0xff]  }
  0xe8   : > { %3112 = vmatprep.subr.bf16.mxu1 %v4180_v26  ;;  %v4202_v41 = vld [vmem:[%s5373_s5 + $0x14] ss:$8 sps:$4 sm:$0xff]   ;;  %v4206_v43 = vld [vmem:[%s5373_s5 + $0x10] ss:$8 sps:$4 sm:$0xff]   ;;  %v4208_v45 = vld [vmem:[%s5373_s5 + $0x4] ss:$8 sps:$4 sm:$0xff]  }
  0xe9   : > { %v4204_v42 = vld [vmem:[%s5373_s5 + $0x114] ss:$8 sps:$4 sm:$0xff]   ;;  %v4207_v44 = vld [vmem:[%s5373_s5 + $0x110] ss:$8 sps:$4 sm:$0xff]   ;;  %v4210_v46 = vld [vmem:[%s5373_s5 + $0x104] ss:$8 sps:$4 sm:$0xff]  }
  0xea   : > { %3070 = vmatpush1.bf16.msra.mxu0 %v4182_v27  ;;  %v4212_v47 = vld [vmem:[%s5373_s5] ss:$8 sps:$4 sm:$0xff]   ;;  %v4214_v49 = vld [vmem:[%s5373_s5 + $0xf4] ss:$8 sps:$4 sm:$0xff]   ;;  %v4218_v51 = vld [vmem:[%s5373_s5 + $0xf0] ss:$8 sps:$4 sm:$0xff]  }
  0xeb   : > { %3113 = vmatpush1.bf16.msra.mxu1 %v4183_v28  ;;  %3071 = vmatprep.subr.bf16.mxu0 %v4184_v29  ;;  %v4213_v48 = vld [vmem:[%s5373_s5 + $0x100] ss:$8 sps:$4 sm:$0xff]   ;;  %v4216_v50 = vld [vmem:[%s5373_s5 + $0x1f4] ss:$8 sps:$4 sm:$0xff]   ;;  %v4219_v52 = vld [vmem:[%s5373_s5 + $0x1f0] ss:$8 sps:$4 sm:$0xff]  }
  0xec   : > { %3114 = vmatprep.subr.bf16.mxu1 %v4186_v30  ;;  %v4220_v53 = vld [vmem:[%s5373_s5 + $0xe4] ss:$8 sps:$4 sm:$0xff]   ;;  %v4224_v55 = vld [vmem:[%s5373_s5 + $0xe0] ss:$8 sps:$4 sm:$0xff]   ;;  %v4226_v57 = vld [vmem:[%s5373_s5 + $0xd4] ss:$8 sps:$4 sm:$0xff]  }
  0xed   : > { %v4222_v54 = vld [vmem:[%s5373_s5 + $0x1e4] ss:$8 sps:$4 sm:$0xff]   ;;  %v4225_v56 = vld [vmem:[%s5373_s5 + $0x1e0] ss:$8 sps:$4 sm:$0xff]   ;;  %v4228_v58 = vld [vmem:[%s5373_s5 + $0x1d4] ss:$8 sps:$4 sm:$0xff]  }
  0xee   : > { %3072 = vmatpush1.bf16.msra.mxu0 %v4188_v31  ;;  %v4230_v59 = vld [vmem:[%s5373_s5 + $0xd0] ss:$8 sps:$4 sm:$0xff]   ;;  %v4232_v61 = vld [vmem:[%s5373_s5 + $0xc4] ss:$8 sps:$4 sm:$0xff]   ;;  %v4236_v63 = vld [vmem:[%s5373_s5 + $0xc0] ss:$8 sps:$4 sm:$0xff]  }
  0xef   : > { %3115 = vmatpush1.bf16.msra.mxu1 %v4189_v32  ;;  %3073 = vmatprep.subr.bf16.mxu0 %v4190_v33  ;;  %v4231_v60 = vld [vmem:[%s5373_s5 + $0x1d0] ss:$8 sps:$4 sm:$0xff]   ;;  %v4234_v62 = vld [vmem:[%s5373_s5 + $0x1c4] ss:$8 sps:$4 sm:$0xff]   ;;  %v4237_v0 = vld [vmem:[%s5373_s5 + $0x1c0] ss:$8 sps:$4 sm:$0xff]  }
  0xf0   : > { %3116 = vmatprep.subr.bf16.mxu1 %v4192_v34  ;;  %v1433_v1 = vld [vmem:[%s5371_s0] sm:$0xff]  ;;  %v1434_v3 = vld [vmem:[%s5371_s0 + $0x8] sm:$0xff]  ;;  %v4238_v5 = vld [vmem:[%s5373_s5 + $0xb4] ss:$8 sps:$4 sm:$0xff]   ;;  %s5789_s25 = sld [smem:[#allocation6_spill]] }
  0xf1   : > { %v1441_v2 = vld [vmem:[%s5371_s0 + $0x40] sm:$0xff]  ;;  %v1442_v4 = vld [vmem:[%s5371_s0 + $0x48] sm:$0xff]  ;;  %v4240_v7 = vld [vmem:[%s5373_s5 + $0x1b4] ss:$8 sps:$4 sm:$0xff]  }
  0xf2   : > { %3074 = vmatpush1.bf16.msra.mxu0 %v4194_v35  ;;  %v3777_v6 = vcombine.high %v1433_v1, %v1441_v2  ;;  %v3779_v8 = vcombine.high %v1434_v3, %v1442_v4  ;;  %v4242_v9 = vld [vmem:[%s5373_s5 + $0xb0] ss:$8 sps:$4 sm:$0xff]   ;;  %v4244_v11 = vld [vmem:[%s5373_s5 + $0xa4] ss:$8 sps:$4 sm:$0xff]   ;;  %v4248_v13 = vld [vmem:[%s5373_s5 + $0xa0] ss:$8 sps:$4 sm:$0xff]   ;;  %v3776_v25 = vcombine.low %v1433_v1, %v1441_v2  ;;  %v3778_v26 = vcombine.low %v1434_v3, %v1442_v4 }
  0xf3   : > { %3117 = vmatpush1.bf16.msra.mxu1 %v4195_v36  ;;  %3075 = vmatprep.subr.bf16.mxu0 %v4196_v37  ;;  %v4243_v10 = vld [vmem:[%s5373_s5 + $0x1b0] ss:$8 sps:$4 sm:$0xff]   ;;  %v4246_v12 = vld [vmem:[%s5373_s5 + $0x1a4] ss:$8 sps:$4 sm:$0xff]   ;;  %v4249_v14 = vld [vmem:[%s5373_s5 + $0x1a0] ss:$8 sps:$4 sm:$0xff]  }
  0xf4   : > { %3118 = vmatprep.subr.bf16.mxu1 %v4198_v38  ;;  %3097 = vmatprep.mubr.bf16.mxu0 %v3777_v6  ;;  %v4250_v15 = vld [vmem:[%s5373_s5 + $0x94] ss:$8 sps:$4 sm:$0xff]   ;;  %v4254_v17 = vld [vmem:[%s5373_s5 + $0x90] ss:$8 sps:$4 sm:$0xff]   ;;  %v4256_v19 = vld [vmem:[%s5373_s5 + $0x84] ss:$8 sps:$4 sm:$0xff]  }
  0xf5   : > { %3140 = vmatprep.mubr.bf16.mxu1 %v3779_v8  ;;  %v4252_v16 = vld [vmem:[%s5373_s5 + $0x194] ss:$8 sps:$4 sm:$0xff]   ;;  %v4255_v18 = vld [vmem:[%s5373_s5 + $0x190] ss:$8 sps:$4 sm:$0xff]   ;;  %v4258_v20 = vld [vmem:[%s5373_s5 + $0x184] ss:$8 sps:$4 sm:$0xff]  }
  0xf6   : > { %3076 = vmatpush1.bf16.msra.mxu0 %v4200_v39  ;;  %v4260_v21 = vld [vmem:[%s5373_s5 + $0x80] ss:$8 sps:$4 sm:$0xff]   ;;  %v4264_v23 = vld [vmem:[%s5373_s5 + $0x274] ss:$8 sps:$4 sm:$0xff]   ;;  %v4262_v27 = vld [vmem:[%s5373_s5 + $0x270] ss:$8 sps:$4 sm:$0xff]  }
  0xf7   : > { %3119 = vmatpush1.bf16.msra.mxu1 %v4201_v40  ;;  %3077 = vmatprep.subr.bf16.mxu0 %v4202_v41  ;;  %v4261_v22 = vld [vmem:[%s5373_s5 + $0x180] ss:$8 sps:$4 sm:$0xff]   ;;  %v4267_v24 = vld [vmem:[%s5373_s5 + $0x374] ss:$8 sps:$4 sm:$0xff]   ;;  %v4265_v28 = vld [vmem:[%s5373_s5 + $0x370] ss:$8 sps:$4 sm:$0xff]  }
  0xf8   : > { %3120 = vmatprep.subr.bf16.mxu1 %v4204_v42  ;;  %v4270_v29 = vld [vmem:[%s5373_s5 + $0x264] ss:$8 sps:$4 sm:$0xff]   ;;  %v4268_v31 = vld [vmem:[%s5373_s5 + $0x260] ss:$8 sps:$4 sm:$0xff]   ;;  %v4276_v33 = vld [vmem:[%s5373_s5 + $0x254] ss:$8 sps:$4 sm:$0xff]  }
  0xf9   : > { %v4273_v30 = vld [vmem:[%s5373_s5 + $0x364] ss:$8 sps:$4 sm:$0xff]   ;;  %v4271_v32 = vld [vmem:[%s5373_s5 + $0x360] ss:$8 sps:$4 sm:$0xff]   ;;  %v4279_v34 = vld [vmem:[%s5373_s5 + $0x354] ss:$8 sps:$4 sm:$0xff]  }
  0xfa   : > { %3078 = vmatpush1.bf16.msra.mxu0 %v4206_v43  ;;  %v4274_v35 = vld [vmem:[%s5373_s5 + $0x250] ss:$8 sps:$4 sm:$0xff]   ;;  %v4282_v37 = vld [vmem:[%s5373_s5 + $0x244] ss:$8 sps:$4 sm:$0xff]   ;;  %v4280_v39 = vld [vmem:[%s5373_s5 + $0x240] ss:$8 sps:$4 sm:$0xff]  }
  0xfb   : > { %3121 = vmatpush1.bf16.msra.mxu1 %v4207_v44  ;;  %3079 = vmatprep.subr.bf16.mxu0 %v4208_v45  ;;  %v4277_v36 = vld [vmem:[%s5373_s5 + $0x350] ss:$8 sps:$4 sm:$0xff]   ;;  %v4285_v38 = vld [vmem:[%s5373_s5 + $0x344] ss:$8 sps:$4 sm:$0xff]   ;;  %v4283_v40 = vld [vmem:[%s5373_s5 + $0x340] ss:$8 sps:$4 sm:$0xff]  }
  0xfc   : > { %3122 = vmatprep.subr.bf16.mxu1 %v4210_v46  ;;  %v4288_v41 = vld [vmem:[%s5373_s5 + $0x234] ss:$8 sps:$4 sm:$0xff]   ;;  %v4286_v43 = vld [vmem:[%s5373_s5 + $0x230] ss:$8 sps:$4 sm:$0xff]   ;;  %v4294_v45 = vld [vmem:[%s5373_s5 + $0x224] ss:$8 sps:$4 sm:$0xff]  }
  0xfd   : > { %v4291_v42 = vld [vmem:[%s5373_s5 + $0x334] ss:$8 sps:$4 sm:$0xff]   ;;  %v4289_v44 = vld [vmem:[%s5373_s5 + $0x330] ss:$8 sps:$4 sm:$0xff]   ;;  %v4297_v46 = vld [vmem:[%s5373_s5 + $0x324] ss:$8 sps:$4 sm:$0xff]  }
  0xfe   : > { %3080 = vmatpush1.bf16.msra.mxu0 %v4212_v47  ;;  %v4292_v47 = vld [vmem:[%s5373_s5 + $0x220] ss:$8 sps:$4 sm:$0xff]   ;;  %v4310_v1 = vld [vmem:[%s5373_s5 + $0x2f0] ss:$8 sps:$4 sm:$0xff]   ;;  %v4318_v3 = vld [vmem:[%s5373_s5 + $0x2e4] ss:$8 sps:$4 sm:$0xff]  }
  0xff   : > { %3123 = vmatpush1.bf16.msra.mxu1 %v4213_v48  ;;  %3081 = vmatprep.subr.bf16.mxu0 %v4214_v49  ;;  %v4295_v48 = vld [vmem:[%s5373_s5 + $0x320] ss:$8 sps:$4 sm:$0xff]   ;;  %v4300_v49 = vld [vmem:[%s5373_s5 + $0x214] ss:$8 sps:$4 sm:$0xff]   ;;  %v4313_v2 = vld [vmem:[%s5373_s5 + $0x3f0] ss:$8 sps:$4 sm:$0xff]  }
 0x100   : > { %3124 = vmatprep.subr.bf16.mxu1 %v4216_v50  ;;  %v4303_v50 = vld [vmem:[%s5373_s5 + $0x314] ss:$8 sps:$4 sm:$0xff]   ;;  %v4321_v4 = vld [vmem:[%s5373_s5 + $0x3e4] ss:$8 sps:$4 sm:$0xff]   ;;  %v4319_v6 = vld [vmem:[%s5373_s5 + $0x3e0] ss:$8 sps:$4 sm:$0xff]  }
 0x101   : > { %v4327_v8 = vld [vmem:[%s5373_s5 + $0x3d4] ss:$8 sps:$4 sm:$0xff]   ;;  %p4048_p7 = scmp.ne.s32.totalorder %s5789_s25, 1 }
 0x102   : > { %3082 = vmatpush2.bf16.msra.mxu0 %v4218_v51  ;;  %v4298_v51 = vld [vmem:[%s5373_s5 + $0x210] ss:$8 sps:$4 sm:$0xff]  }
 0x103   : > { %3125 = vmatpush2.bf16.msra.mxu1 %v4219_v52  ;;  %3083 = vmatprep.subr.bf16.mxu0 %v4220_v53  ;;  %v4301_v52 = vld [vmem:[%s5373_s5 + $0x310] ss:$8 sps:$4 sm:$0xff]  }
 0x104   : > { %3126 = vmatprep.subr.bf16.mxu1 %v4222_v54  ;;  %v5475_v53 = vld [vmem:[%s5371_s0 + $0x10] sm:$0xff] }
 0x105   : > { %v5478_v54 = vld [vmem:[%s5371_s0 + $0x50] sm:$0xff] }
 0x106   : > { %3084 = vmatpush2.bf16.msra.mxu0 %v4224_v55  ;;  %v5481_v55 = vld [vmem:[%s5371_s0 + $0x18] sm:$0xff] }
 0x107   : > { %3127 = vmatpush2.bf16.msra.mxu1 %v4225_v56  ;;  %3085 = vmatprep.subr.bf16.mxu0 %v4226_v57  ;;  %v5484_v56 = vld [vmem:[%s5371_s0 + $0x58] sm:$0xff]  ;;  %v4306_v57 = vld [vmem:[%s5373_s5 + $0x204] ss:$8 sps:$4 sm:$0xff]  }
 0x108   : > { %3128 = vmatprep.subr.bf16.mxu1 %v4228_v58  ;;  %v3781_v58 = vcombine.high %v5475_v53, %v5478_v54 }
 0x10a   : > { %3086 = vmatpush2.bf16.msra.mxu0 %v4230_v59  ;;  %v4309_v59 = vld [vmem:[%s5373_s5 + $0x304] ss:$8 sps:$4 sm:$0xff]  }
 0x10b   : > { %3129 = vmatpush2.bf16.msra.mxu1 %v4231_v60  ;;  %3087 = vmatprep.subr.bf16.mxu0 %v4232_v61  ;;  %v3783_v60 = vcombine.high %v5481_v55, %v5484_v56  ;;  %v4304_v61 = vld [vmem:[%s5373_s5 + $0x200] ss:$8 sps:$4 sm:$0xff]  }
 0x10c   : > { %3130 = vmatprep.subr.bf16.mxu1 %v4234_v62  ;;  %v4307_v62 = vld [vmem:[%s5373_s5 + $0x300] ss:$8 sps:$4 sm:$0xff]  }
 0x10e   : > { %3088 = vmatpush2.bf16.msra.mxu0 %v4236_v63  ;;  %v4312_v63 = vld [vmem:[%s5373_s5 + $0x2f4] ss:$8 sps:$4 sm:$0xff]  }
 0x10f   : > { %3131 = vmatpush2.bf16.msra.mxu1 %v4237_v0  ;;  %3089 = vmatprep.subr.bf16.mxu0 %v4238_v5  ;;  %v4315_v0 = vld [vmem:[%s5373_s5 + $0x3f4] ss:$8 sps:$4 sm:$0xff]   ;;  %v4316_v5 = vld [vmem:[%s5373_s5 + $0x2e0] ss:$8 sps:$4 sm:$0xff]  }
 0x110   : > { %3132 = vmatprep.subr.bf16.mxu1 %v4240_v7  ;;  %v4324_v7 = vld [vmem:[%s5373_s5 + $0x2d4] ss:$8 sps:$4 sm:$0xff]  }
 0x112   : > { %3090 = vmatpush2.bf16.msra.mxu0 %v4242_v9  ;;  %v4322_v9 = vld [vmem:[%s5373_s5 + $0x2d0] ss:$8 sps:$4 sm:$0xff]  }
 0x113   : > { %3133 = vmatpush2.bf16.msra.mxu1 %v4243_v10  ;;  %3091 = vmatprep.subr.bf16.mxu0 %v4244_v11  ;;  %v4325_v10 = vld [vmem:[%s5373_s5 + $0x3d0] ss:$8 sps:$4 sm:$0xff]   ;;  %v4330_v11 = vld [vmem:[%s5373_s5 + $0x2c4] ss:$8 sps:$4 sm:$0xff]  }
 0x114   : > { %3134 = vmatprep.subr.bf16.mxu1 %v4246_v12  ;;  %v4333_v12 = vld [vmem:[%s5373_s5 + $0x3c4] ss:$8 sps:$4 sm:$0xff]  }
 0x116   : > { %3092 = vmatpush2.bf16.msra.mxu0 %v4248_v13  ;;  %v4328_v13 = vld [vmem:[%s5373_s5 + $0x2c0] ss:$8 sps:$4 sm:$0xff]  }
 0x117   : > { %3135 = vmatpush2.bf16.msra.mxu1 %v4249_v14  ;;  %3093 = vmatprep.subr.bf16.mxu0 %v4250_v15  ;;  %v4331_v14 = vld [vmem:[%s5373_s5 + $0x3c0] ss:$8 sps:$4 sm:$0xff]   ;;  %v4336_v15 = vld [vmem:[%s5373_s5 + $0x2b4] ss:$8 sps:$4 sm:$0xff]  }
 0x118   : > { %3136 = vmatprep.subr.bf16.mxu1 %v4252_v16  ;;  %v4339_v16 = vld [vmem:[%s5373_s5 + $0x3b4] ss:$8 sps:$4 sm:$0xff]  }
 0x11a   : > { %3094 = vmatpush2.bf16.msra.mxu0 %v4254_v17  ;;  %v4334_v17 = vld [vmem:[%s5373_s5 + $0x2b0] ss:$8 sps:$4 sm:$0xff]  }
 0x11b   : > { %3137 = vmatpush2.bf16.msra.mxu1 %v4255_v18  ;;  %3095 = vmatprep.subr.bf16.mxu0 %v4256_v19  ;;  %v4337_v18 = vld [vmem:[%s5373_s5 + $0x3b0] ss:$8 sps:$4 sm:$0xff]   ;;  %v4342_v19 = vld [vmem:[%s5373_s5 + $0x2a4] ss:$8 sps:$4 sm:$0xff]  }
 0x11c   : > { %3138 = vmatprep.subr.bf16.mxu1 %v4258_v20  ;;  %v4345_v20 = vld [vmem:[%s5373_s5 + $0x3a4] ss:$8 sps:$4 sm:$0xff]  }
 0x11e   : > { %3096 = vmatpush2.bf16.msra.mxu0 %v4260_v21  ;;  %v4340_v21 = vld [vmem:[%s5373_s5 + $0x2a0] ss:$8 sps:$4 sm:$0xff]  }
 0x11f   : > { %3139 = vmatpush2.bf16.msra.mxu1 %v4261_v22  ;;  %3151 = vmatprep.subr.bf16.mxu0 %v4264_v23  ;;  %v4343_v22 = vld [vmem:[%s5373_s5 + $0x3a0] ss:$8 sps:$4 sm:$0xff]   ;;  %v4348_v23 = vld [vmem:[%s5373_s5 + $0x294] ss:$8 sps:$4 sm:$0xff]  }
 0x120   : > { %3194 = vmatprep.subr.bf16.mxu1 %v4267_v24  ;;  %v4351_v24 = vld [vmem:[%s5373_s5 + $0x394] ss:$8 sps:$4 sm:$0xff]  }
 0x121   : > { %3098 = vmatmul.mubr.bf16.vlgmr.msra.gmra.mxu0 %v3776_v25  ;;  %v4346_v25 = vld [vmem:[%s5373_s5 + $0x290] ss:$8 sps:$4 sm:$0xff]  }
 0x122   : > { %3141 = vmatmul.mubr.bf16.vlgmr.msra.gmra.mxu1 %v3778_v26  ;;  %3152 = vmatpush1.bf16.msra.mxu0 %v4262_v27  ;;  %v4349_v26 = vld [vmem:[%s5373_s5 + $0x390] ss:$8 sps:$4 sm:$0xff]   ;;  %v4354_v27 = vld [vmem:[%s5373_s5 + $0x284] ss:$8 sps:$4 sm:$0xff]  }
 0x123   : > { %3195 = vmatpush1.bf16.msra.mxu1 %v4265_v28  ;;  %3153 = vmatprep.subr.bf16.mxu0 %v4270_v29  ;;  %v4357_v28 = vld [vmem:[%s5373_s5 + $0x384] ss:$8 sps:$4 sm:$0xff]   ;;  %v4352_v29 = vld [vmem:[%s5373_s5 + $0x280] ss:$8 sps:$4 sm:$0xff]  }
 0x124   : > { %3196 = vmatprep.subr.bf16.mxu1 %v4273_v30  ;;  %3183 = vmatprep.mubr.bf16.mxu0 %v3781_v58  ;;  %v4355_v30 = vld [vmem:[%s5373_s5 + $0x380] ss:$8 sps:$4 sm:$0xff]   ;;  %v4385_v58 = vld [vmem:[%s5373_s5 + $0x530] ss:$8 sps:$4 sm:$0xff]  }
 0x125   : > { %3226 = vmatprep.mubr.bf16.mxu1 %v3783_v60  ;;  %v4393_v60 = vld [vmem:[%s5373_s5 + $0x524] ss:$8 sps:$4 sm:$0xff]  }
 0x126   : > { %3154 = vmatpush1.bf16.msra.mxu0 %v4268_v31  ;;  %v4360_v31 = vld [vmem:[%s5373_s5 + $0x474] ss:$8 sps:$4 sm:$0xff]  }
 0x127   : > { %3197 = vmatpush1.bf16.msra.mxu1 %v4271_v32  ;;  %3155 = vmatprep.subr.bf16.mxu0 %v4276_v33  ;;  %v4363_v32 = vld [vmem:[%s5373_s5 + $0x574] ss:$8 sps:$4 sm:$0xff]   ;;  %v3780_v33 = vcombine.low %v5475_v53, %v5478_v54  ;;  %v4376_v53 = vld [vmem:[%s5373_s5 + $0x440] ss:$8 sps:$4 sm:$0xff]  }
 0x128   : > { %3198 = vmatprep.subr.bf16.mxu1 %v4279_v34  ;;  %v3782_v34 = vcombine.low %v5481_v55, %v5484_v56  ;;  %v4379_v54 = vld [vmem:[%s5373_s5 + $0x540] ss:$8 sps:$4 sm:$0xff]   ;;  %v4384_v55 = vld [vmem:[%s5373_s5 + $0x434] ss:$8 sps:$4 sm:$0xff]  }
 0x129   : > { %v4387_v56 = vld [vmem:[%s5373_s5 + $0x534] ss:$8 sps:$4 sm:$0xff]  }
 0x12a   : > { %3156 = vmatpush1.bf16.msra.mxu0 %v4274_v35  ;;  %v4358_v35 = vld [vmem:[%s5373_s5 + $0x470] ss:$8 sps:$4 sm:$0xff]  }
 0x12b   : > { %3199 = vmatpush1.bf16.msra.mxu1 %v4277_v36  ;;  %3157 = vmatprep.subr.bf16.mxu0 %v4282_v37  ;;  %v4361_v36 = vld [vmem:[%s5373_s5 + $0x570] ss:$8 sps:$4 sm:$0xff]   ;;  %v4366_v37 = vld [vmem:[%s5373_s5 + $0x464] ss:$8 sps:$4 sm:$0xff]  }
 0x12c   : > { %3200 = vmatprep.subr.bf16.mxu1 %v4285_v38  ;;  %v4369_v38 = vld [vmem:[%s5373_s5 + $0x564] ss:$8 sps:$4 sm:$0xff]  }
 0x12e   : > { %3158 = vmatpush1.bf16.msra.mxu0 %v4280_v39  ;;  %v4364_v39 = vld [vmem:[%s5373_s5 + $0x460] ss:$8 sps:$4 sm:$0xff]  }
 0x12f   : > { %3201 = vmatpush1.bf16.msra.mxu1 %v4283_v40  ;;  %3159 = vmatprep.subr.bf16.mxu0 %v4288_v41  ;;  %v4367_v40 = vld [vmem:[%s5373_s5 + $0x560] ss:$8 sps:$4 sm:$0xff]  }
 0x130   : > { %3202 = vmatprep.subr.bf16.mxu1 %v4291_v42  ;;  %v5539_v41 = vld [vmem:[%s5371_s0 + $0x20] sm:$0xff] }
 0x131   : > { %v5542_v42 = vld [vmem:[%s5371_s0 + $0x60] sm:$0xff] }
 0x132   : > { %3160 = vmatpush1.bf16.msra.mxu0 %v4286_v43  ;;  %v5545_v43 = vld [vmem:[%s5371_s0 + $0x28] sm:$0xff] }
 0x133   : > { %3203 = vmatpush1.bf16.msra.mxu1 %v4289_v44  ;;  %3161 = vmatprep.subr.bf16.mxu0 %v4294_v45  ;;  %v5548_v44 = vld [vmem:[%s5371_s0 + $0x68] sm:$0xff]  ;;  %v4372_v45 = vld [vmem:[%s5373_s5 + $0x454] ss:$8 sps:$4 sm:$0xff]  }
 0x134   : > { %3204 = vmatprep.subr.bf16.mxu1 %v4297_v46  ;;  %v3785_v46 = vcombine.high %v5539_v41, %v5542_v42 }
 0x136   : > { %3162 = vmatpush1.bf16.msra.mxu0 %v4292_v47  ;;  %v4375_v47 = vld [vmem:[%s5373_s5 + $0x554] ss:$8 sps:$4 sm:$0xff]  }
 0x137   : > { %3205 = vmatpush1.bf16.msra.mxu1 %v4295_v48  ;;  %3163 = vmatprep.subr.bf16.mxu0 %v4300_v49  ;;  %v3787_v48 = vcombine.high %v5545_v43, %v5548_v44  ;;  %v4370_v49 = vld [vmem:[%s5373_s5 + $0x450] ss:$8 sps:$4 sm:$0xff]  }
 0x138   : > { %3206 = vmatprep.subr.bf16.mxu1 %v4303_v50  ;;  %v4373_v50 = vld [vmem:[%s5373_s5 + $0x550] ss:$8 sps:$4 sm:$0xff]  }
 0x13a   : > { %3164 = vmatpush1.bf16.msra.mxu0 %v4298_v51  ;;  %v4378_v51 = vld [vmem:[%s5373_s5 + $0x444] ss:$8 sps:$4 sm:$0xff]  }
 0x13b   : > { %3207 = vmatpush1.bf16.msra.mxu1 %v4301_v52  ;;  %3165 = vmatprep.subr.bf16.mxu0 %v4306_v57  ;;  %v4381_v52 = vld [vmem:[%s5373_s5 + $0x544] ss:$8 sps:$4 sm:$0xff]   ;;  %v4382_v57 = vld [vmem:[%s5373_s5 + $0x430] ss:$8 sps:$4 sm:$0xff]  }
 0x13c   : > { %3208 = vmatprep.subr.bf16.mxu1 %v4309_v59  ;;  %v4390_v59 = vld [vmem:[%s5373_s5 + $0x424] ss:$8 sps:$4 sm:$0xff]  }
 0x13e   : > { %3166 = vmatpush1.bf16.msra.mxu0 %v4304_v61  ;;  %v4388_v61 = vld [vmem:[%s5373_s5 + $0x420] ss:$8 sps:$4 sm:$0xff]  }
 0x13f   : > { %3209 = vmatpush1.bf16.msra.mxu1 %v4307_v62  ;;  %3167 = vmatprep.subr.bf16.mxu0 %v4312_v63  ;;  %v4391_v62 = vld [vmem:[%s5373_s5 + $0x520] ss:$8 sps:$4 sm:$0xff]   ;;  %v4396_v63 = vld [vmem:[%s5373_s5 + $0x414] ss:$8 sps:$4 sm:$0xff]  }
 0x140   : > { %3210 = vmatprep.subr.bf16.mxu1 %v4315_v0  ;;  %v4399_v0 = vld [vmem:[%s5373_s5 + $0x514] ss:$8 sps:$4 sm:$0xff]  }
 0x142   : > { %3168 = vmatpush2.bf16.msra.mxu0 %v4310_v1  ;;  %v4394_v1 = vld [vmem:[%s5373_s5 + $0x410] ss:$8 sps:$4 sm:$0xff]  }
 0x143   : > { %3211 = vmatpush2.bf16.msra.mxu1 %v4313_v2  ;;  %3169 = vmatprep.subr.bf16.mxu0 %v4318_v3  ;;  %v4397_v2 = vld [vmem:[%s5373_s5 + $0x510] ss:$8 sps:$4 sm:$0xff]   ;;  %v4402_v3 = vld [vmem:[%s5373_s5 + $0x404] ss:$8 sps:$4 sm:$0xff]  }
 0x144   : > { %3212 = vmatprep.subr.bf16.mxu1 %v4321_v4  ;;  %v4405_v4 = vld [vmem:[%s5373_s5 + $0x504] ss:$8 sps:$4 sm:$0xff]  }
 0x146   : > { %3170 = vmatpush2.bf16.msra.mxu0 %v4316_v5  ;;  %v4400_v5 = vld [vmem:[%s5373_s5 + $0x400] ss:$8 sps:$4 sm:$0xff]  }
 0x147   : > { %3213 = vmatpush2.bf16.msra.mxu1 %v4319_v6  ;;  %3171 = vmatprep.subr.bf16.mxu0 %v4324_v7  ;;  %v4403_v6 = vld [vmem:[%s5373_s5 + $0x500] ss:$8 sps:$4 sm:$0xff]   ;;  %v4408_v7 = vld [vmem:[%s5373_s5 + $0x4f4] ss:$8 sps:$4 sm:$0xff]  }
 0x148   : > { %3214 = vmatprep.subr.bf16.mxu1 %v4327_v8  ;;  %v4411_v8 = vld [vmem:[%s5373_s5 + $0x5f4] ss:$8 sps:$4 sm:$0xff]  }
 0x14a   : > { %3172 = vmatpush2.bf16.msra.mxu0 %v4322_v9  ;;  %v4406_v9 = vld [vmem:[%s5373_s5 + $0x4f0] ss:$8 sps:$4 sm:$0xff]  }
 0x14b   : > { %3215 = vmatpush2.bf16.msra.mxu1 %v4325_v10  ;;  %3173 = vmatprep.subr.bf16.mxu0 %v4330_v11  ;;  %v4409_v10 = vld [vmem:[%s5373_s5 + $0x5f0] ss:$8 sps:$4 sm:$0xff]   ;;  %v4414_v11 = vld [vmem:[%s5373_s5 + $0x4e4] ss:$8 sps:$4 sm:$0xff]  }
 0x14c   : > { %3216 = vmatprep.subr.bf16.mxu1 %v4333_v12  ;;  %v4417_v12 = vld [vmem:[%s5373_s5 + $0x5e4] ss:$8 sps:$4 sm:$0xff]  }
 0x14e   : > { %3174 = vmatpush2.bf16.msra.mxu0 %v4328_v13  ;;  %v4412_v13 = vld [vmem:[%s5373_s5 + $0x4e0] ss:$8 sps:$4 sm:$0xff]  }
 0x14f   : > { %3217 = vmatpush2.bf16.msra.mxu1 %v4331_v14  ;;  %3175 = vmatprep.subr.bf16.mxu0 %v4336_v15  ;;  %v4415_v14 = vld [vmem:[%s5373_s5 + $0x5e0] ss:$8 sps:$4 sm:$0xff]   ;;  %v4420_v15 = vld [vmem:[%s5373_s5 + $0x4d4] ss:$8 sps:$4 sm:$0xff]  }
 0x150   : > { %3218 = vmatprep.subr.bf16.mxu1 %v4339_v16  ;;  %v4423_v16 = vld [vmem:[%s5373_s5 + $0x5d4] ss:$8 sps:$4 sm:$0xff]  }
 0x152   : > { %3176 = vmatpush2.bf16.msra.mxu0 %v4334_v17  ;;  %v4418_v17 = vld [vmem:[%s5373_s5 + $0x4d0] ss:$8 sps:$4 sm:$0xff]  }
 0x153   : > { %3219 = vmatpush2.bf16.msra.mxu1 %v4337_v18  ;;  %3177 = vmatprep.subr.bf16.mxu0 %v4342_v19  ;;  %v4421_v18 = vld [vmem:[%s5373_s5 + $0x5d0] ss:$8 sps:$4 sm:$0xff]   ;;  %v4426_v19 = vld [vmem:[%s5373_s5 + $0x4c4] ss:$8 sps:$4 sm:$0xff]  }
 0x154   : > { %3220 = vmatprep.subr.bf16.mxu1 %v4345_v20  ;;  %v4429_v20 = vld [vmem:[%s5373_s5 + $0x5c4] ss:$8 sps:$4 sm:$0xff]  }
 0x156   : > { %3178 = vmatpush2.bf16.msra.mxu0 %v4340_v21  ;;  %v4424_v21 = vld [vmem:[%s5373_s5 + $0x4c0] ss:$8 sps:$4 sm:$0xff]  }
 0x157   : > { %3221 = vmatpush2.bf16.msra.mxu1 %v4343_v22  ;;  %3179 = vmatprep.subr.bf16.mxu0 %v4348_v23  ;;  %v4427_v22 = vld [vmem:[%s5373_s5 + $0x5c0] ss:$8 sps:$4 sm:$0xff]   ;;  %v4432_v23 = vld [vmem:[%s5373_s5 + $0x4b4] ss:$8 sps:$4 sm:$0xff]  }
 0x158   : > { %3222 = vmatprep.subr.bf16.mxu1 %v4351_v24  ;;  %v4435_v24 = vld [vmem:[%s5373_s5 + $0x5b4] ss:$8 sps:$4 sm:$0xff]  }
 0x15a   : > { %3180 = vmatpush2.bf16.msra.mxu0 %v4346_v25  ;;  %v4430_v25 = vld [vmem:[%s5373_s5 + $0x4b0] ss:$8 sps:$4 sm:$0xff]  }
 0x15b   : > { %3223 = vmatpush2.bf16.msra.mxu1 %v4349_v26  ;;  %3181 = vmatprep.subr.bf16.mxu0 %v4354_v27  ;;  %v4433_v26 = vld [vmem:[%s5373_s5 + $0x5b0] ss:$8 sps:$4 sm:$0xff]   ;;  %v4438_v27 = vld [vmem:[%s5373_s5 + $0x4a4] ss:$8 sps:$4 sm:$0xff]  }
 0x15c   : > { %3224 = vmatprep.subr.bf16.mxu1 %v4357_v28  ;;  %v4441_v28 = vld [vmem:[%s5373_s5 + $0x5a4] ss:$8 sps:$4 sm:$0xff]  }
 0x15e   : > { %3182 = vmatpush2.bf16.msra.mxu0 %v4352_v29  ;;  %v4436_v29 = vld [vmem:[%s5373_s5 + $0x4a0] ss:$8 sps:$4 sm:$0xff]  }
 0x15f   : > { %3225 = vmatpush2.bf16.msra.mxu1 %v4355_v30  ;;  %3237 = vmatprep.subr.bf16.mxu0 %v4360_v31  ;;  %v4439_v30 = vld [vmem:[%s5373_s5 + $0x5a0] ss:$8 sps:$4 sm:$0xff]   ;;  %v4444_v31 = vld [vmem:[%s5373_s5 + $0x494] ss:$8 sps:$4 sm:$0xff]  }
 0x160   : > { %3280 = vmatprep.subr.bf16.mxu1 %v4363_v32  ;;  %v4447_v32 = vld [vmem:[%s5373_s5 + $0x594] ss:$8 sps:$4 sm:$0xff]  }
 0x161   : > { %3184 = vmatmul.mubr.bf16.vlgmr.msra.gmra.mxu0 %v3780_v33  ;;  %v4442_v33 = vld [vmem:[%s5373_s5 + $0x490] ss:$8 sps:$4 sm:$0xff]  }
 0x162   : > { %3227 = vmatmul.mubr.bf16.vlgmr.msra.gmra.mxu1 %v3782_v34  ;;  %3238 = vmatpush1.bf16.msra.mxu0 %v4358_v35  ;;  %v4445_v34 = vld [vmem:[%s5373_s5 + $0x590] ss:$8 sps:$4 sm:$0xff]   ;;  %v4450_v35 = vld [vmem:[%s5373_s5 + $0x484] ss:$8 sps:$4 sm:$0xff]  }
 0x163   : > { %3281 = vmatpush1.bf16.msra.mxu1 %v4361_v36  ;;  %3239 = vmatprep.subr.bf16.mxu0 %v4366_v37  ;;  %v4453_v36 = vld [vmem:[%s5373_s5 + $0x584] ss:$8 sps:$4 sm:$0xff]   ;;  %v4448_v37 = vld [vmem:[%s5373_s5 + $0x480] ss:$8 sps:$4 sm:$0xff]  }
 0x164   : > { %3282 = vmatprep.subr.bf16.mxu1 %v4369_v38  ;;  %3269 = vmatprep.mubr.bf16.mxu0 %v3785_v46  ;;  %v4451_v38 = vld [vmem:[%s5373_s5 + $0x580] ss:$8 sps:$4 sm:$0xff]   ;;  %v3784_v46 = vcombine.low %v5539_v41, %v5542_v42  ;;  %v4462_v41 = vld [vmem:[%s5373_s5 + $0x664] ss:$8 sps:$4 sm:$0xff]  }
 0x165   : > { %3312 = vmatprep.mubr.bf16.mxu1 %v3787_v48  ;;  %v5620_v48 = vld [vmem:[%s5371_s0 + $0x70] sm:$0xff]  ;;  %v4465_v42 = vld [vmem:[%s5373_s5 + $0x764] ss:$8 sps:$4 sm:$0xff]  }
 0x166   : > { %3240 = vmatpush1.bf16.msra.mxu0 %v4364_v39  ;;  %v4456_v39 = vld [vmem:[%s5373_s5 + $0x674] ss:$8 sps:$4 sm:$0xff]  }
 0x167   : > { %3283 = vmatpush1.bf16.msra.mxu1 %v4367_v40  ;;  %3241 = vmatprep.subr.bf16.mxu0 %v4372_v45  ;;  %v4459_v40 = vld [vmem:[%s5373_s5 + $0x774] ss:$8 sps:$4 sm:$0xff]  }
 0x168   : > { %3284 = vmatprep.subr.bf16.mxu1 %v4375_v47  ;;  %v5613_v45 = vld [vmem:[%s5371_s0 + $0x30] sm:$0xff]  ;;  %v3786_v47 = vcombine.low %v5545_v43, %v5548_v44 }
 0x169   : > { %v3789_v43 = vcombine.high %v5613_v45, %v5620_v48 }
 0x16a   : > { %3242 = vmatpush1.bf16.msra.mxu0 %v4370_v49  ;;  %v5623_v49 = vld [vmem:[%s5371_s0 + $0x38] sm:$0xff] }
 0x16b   : > { %3285 = vmatpush1.bf16.msra.mxu1 %v4373_v50  ;;  %3243 = vmatprep.subr.bf16.mxu0 %v4378_v51  ;;  %v5626_v50 = vld [vmem:[%s5371_s0 + $0x78] sm:$0xff] }
 0x16c   : > { %3286 = vmatprep.subr.bf16.mxu1 %v4381_v52  ;;  %v4454_v51 = vld [vmem:[%s5373_s5 + $0x670] ss:$8 sps:$4 sm:$0xff]   ;;  %v3791_v44 = vcombine.high %v5623_v49, %v5626_v50 }
 0x16d   : > { %v4457_v52 = vld [vmem:[%s5373_s5 + $0x770] ss:$8 sps:$4 sm:$0xff]  }
 0x16e   : > { %3244 = vmatpush1.bf16.msra.mxu0 %v4376_v53  ;;  %v4460_v53 = vld [vmem:[%s5373_s5 + $0x660] ss:$8 sps:$4 sm:$0xff]  }
 0x16f   : > { %3287 = vmatpush1.bf16.msra.mxu1 %v4379_v54  ;;  %3245 = vmatprep.subr.bf16.mxu0 %v4384_v55  ;;  %v4463_v54 = vld [vmem:[%s5373_s5 + $0x760] ss:$8 sps:$4 sm:$0xff]   ;;  %v4468_v55 = vld [vmem:[%s5373_s5 + $0x654] ss:$8 sps:$4 sm:$0xff]  }
 0x170   : > { %3288 = vmatprep.subr.bf16.mxu1 %v4387_v56  ;;  %v4471_v56 = vld [vmem:[%s5373_s5 + $0x754] ss:$8 sps:$4 sm:$0xff]  }
 0x172   : > { %3246 = vmatpush1.bf16.msra.mxu0 %v4382_v57  ;;  %v4466_v57 = vld [vmem:[%s5373_s5 + $0x650] ss:$8 sps:$4 sm:$0xff]  }
 0x173   : > { %3289 = vmatpush1.bf16.msra.mxu1 %v4385_v58  ;;  %3247 = vmatprep.subr.bf16.mxu0 %v4390_v59  ;;  %v4469_v58 = vld [vmem:[%s5373_s5 + $0x750] ss:$8 sps:$4 sm:$0xff]   ;;  %v4474_v59 = vld [vmem:[%s5373_s5 + $0x644] ss:$8 sps:$4 sm:$0xff]  }
 0x174   : > { %3290 = vmatprep.subr.bf16.mxu1 %v4393_v60  ;;  %v4477_v60 = vld [vmem:[%s5373_s5 + $0x744] ss:$8 sps:$4 sm:$0xff]  }
 0x176   : > { %3248 = vmatpush1.bf16.msra.mxu0 %v4388_v61  ;;  %v4472_v61 = vld [vmem:[%s5373_s5 + $0x640] ss:$8 sps:$4 sm:$0xff]  }
 0x177   : > { %3291 = vmatpush1.bf16.msra.mxu1 %v4391_v62  ;;  %3249 = vmatprep.subr.bf16.mxu0 %v4396_v63  ;;  %v4475_v62 = vld [vmem:[%s5373_s5 + $0x740] ss:$8 sps:$4 sm:$0xff]   ;;  %v4480_v63 = vld [vmem:[%s5373_s5 + $0x634] ss:$8 sps:$4 sm:$0xff]  }
 0x178   : > { %3292 = vmatprep.subr.bf16.mxu1 %v4399_v0  ;;  %v4483_v0 = vld [vmem:[%s5373_s5 + $0x734] ss:$8 sps:$4 sm:$0xff]  }
 0x17a   : > { %3250 = vmatpush1.bf16.msra.mxu0 %v4394_v1  ;;  %v4478_v1 = vld [vmem:[%s5373_s5 + $0x630] ss:$8 sps:$4 sm:$0xff]  }
 0x17b   : > { %3293 = vmatpush1.bf16.msra.mxu1 %v4397_v2  ;;  %3251 = vmatprep.subr.bf16.mxu0 %v4402_v3  ;;  %v4481_v2 = vld [vmem:[%s5373_s5 + $0x730] ss:$8 sps:$4 sm:$0xff]   ;;  %v4486_v3 = vld [vmem:[%s5373_s5 + $0x624] ss:$8 sps:$4 sm:$0xff]  }
 0x17c   : > { %3294 = vmatprep.subr.bf16.mxu1 %v4405_v4  ;;  %v4489_v4 = vld [vmem:[%s5373_s5 + $0x724] ss:$8 sps:$4 sm:$0xff]  }
 0x17e   : > { %3252 = vmatpush1.bf16.msra.mxu0 %v4400_v5  ;;  %v4484_v5 = vld [vmem:[%s5373_s5 + $0x620] ss:$8 sps:$4 sm:$0xff]  }
 0x17f   : > { %3295 = vmatpush1.bf16.msra.mxu1 %v4403_v6  ;;  %3253 = vmatprep.subr.bf16.mxu0 %v4408_v7  ;;  %v4487_v6 = vld [vmem:[%s5373_s5 + $0x720] ss:$8 sps:$4 sm:$0xff]   ;;  %v4492_v7 = vld [vmem:[%s5373_s5 + $0x614] ss:$8 sps:$4 sm:$0xff]  }
 0x180   : > { %3296 = vmatprep.subr.bf16.mxu1 %v4411_v8  ;;  %v4495_v8 = vld [vmem:[%s5373_s5 + $0x714] ss:$8 sps:$4 sm:$0xff]  }
 0x182   : > { %3254 = vmatpush2.bf16.msra.mxu0 %v4406_v9  ;;  %v4490_v9 = vld [vmem:[%s5373_s5 + $0x610] ss:$8 sps:$4 sm:$0xff]  }
 0x183   : > { %3297 = vmatpush2.bf16.msra.mxu1 %v4409_v10  ;;  %3255 = vmatprep.subr.bf16.mxu0 %v4414_v11  ;;  %v4493_v10 = vld [vmem:[%s5373_s5 + $0x710] ss:$8 sps:$4 sm:$0xff]   ;;  %v4498_v11 = vld [vmem:[%s5373_s5 + $0x604] ss:$8 sps:$4 sm:$0xff]  }
 0x184   : > { %3298 = vmatprep.subr.bf16.mxu1 %v4417_v12  ;;  %v4501_v12 = vld [vmem:[%s5373_s5 + $0x704] ss:$8 sps:$4 sm:$0xff]  }
 0x186   : > { %3256 = vmatpush2.bf16.msra.mxu0 %v4412_v13  ;;  %v4496_v13 = vld [vmem:[%s5373_s5 + $0x600] ss:$8 sps:$4 sm:$0xff]  }
 0x187   : > { %3299 = vmatpush2.bf16.msra.mxu1 %v4415_v14  ;;  %3257 = vmatprep.subr.bf16.mxu0 %v4420_v15  ;;  %v4499_v14 = vld [vmem:[%s5373_s5 + $0x700] ss:$8 sps:$4 sm:$0xff]   ;;  %v4504_v15 = vld [vmem:[%s5373_s5 + $0x6f4] ss:$8 sps:$4 sm:$0xff]  }
 0x188   : > { %3300 = vmatprep.subr.bf16.mxu1 %v4423_v16  ;;  %v4507_v16 = vld [vmem:[%s5373_s5 + $0x7f4] ss:$8 sps:$4 sm:$0xff]  }
 0x18a   : > { %3258 = vmatpush2.bf16.msra.mxu0 %v4418_v17  ;;  %v4502_v17 = vld [vmem:[%s5373_s5 + $0x6f0] ss:$8 sps:$4 sm:$0xff]  }
 0x18b   : > { %3301 = vmatpush2.bf16.msra.mxu1 %v4421_v18  ;;  %3259 = vmatprep.subr.bf16.mxu0 %v4426_v19  ;;  %v4505_v18 = vld [vmem:[%s5373_s5 + $0x7f0] ss:$8 sps:$4 sm:$0xff]   ;;  %v4510_v19 = vld [vmem:[%s5373_s5 + $0x6e4] ss:$8 sps:$4 sm:$0xff]  }
 0x18c   : > { %3302 = vmatprep.subr.bf16.mxu1 %v4429_v20  ;;  %v4513_v20 = vld [vmem:[%s5373_s5 + $0x7e4] ss:$8 sps:$4 sm:$0xff]  }
 0x18e   : > { %3260 = vmatpush2.bf16.msra.mxu0 %v4424_v21  ;;  %v4508_v21 = vld [vmem:[%s5373_s5 + $0x6e0] ss:$8 sps:$4 sm:$0xff]  }
 0x18f   : > { %3303 = vmatpush2.bf16.msra.mxu1 %v4427_v22  ;;  %3261 = vmatprep.subr.bf16.mxu0 %v4432_v23  ;;  %v4511_v22 = vld [vmem:[%s5373_s5 + $0x7e0] ss:$8 sps:$4 sm:$0xff]   ;;  %v4516_v23 = vld [vmem:[%s5373_s5 + $0x6d4] ss:$8 sps:$4 sm:$0xff]  }
 0x190   : > { %3304 = vmatprep.subr.bf16.mxu1 %v4435_v24  ;;  %v4519_v24 = vld [vmem:[%s5373_s5 + $0x7d4] ss:$8 sps:$4 sm:$0xff]  }
 0x192   : > { %3262 = vmatpush2.bf16.msra.mxu0 %v4430_v25  ;;  %v4514_v25 = vld [vmem:[%s5373_s5 + $0x6d0] ss:$8 sps:$4 sm:$0xff]  }
 0x193   : > { %3305 = vmatpush2.bf16.msra.mxu1 %v4433_v26  ;;  %3263 = vmatprep.subr.bf16.mxu0 %v4438_v27  ;;  %v4517_v26 = vld [vmem:[%s5373_s5 + $0x7d0] ss:$8 sps:$4 sm:$0xff]   ;;  %v4522_v27 = vld [vmem:[%s5373_s5 + $0x6c4] ss:$8 sps:$4 sm:$0xff]  }
 0x194   : > { %3306 = vmatprep.subr.bf16.mxu1 %v4441_v28  ;;  %v4525_v28 = vld [vmem:[%s5373_s5 + $0x7c4] ss:$8 sps:$4 sm:$0xff]  }
 0x196   : > { %3264 = vmatpush2.bf16.msra.mxu0 %v4436_v29  ;;  %v4520_v29 = vld [vmem:[%s5373_s5 + $0x6c0] ss:$8 sps:$4 sm:$0xff]  }
 0x197   : > { %3307 = vmatpush2.bf16.msra.mxu1 %v4439_v30  ;;  %3265 = vmatprep.subr.bf16.mxu0 %v4444_v31  ;;  %v4523_v30 = vld [vmem:[%s5373_s5 + $0x7c0] ss:$8 sps:$4 sm:$0xff]   ;;  %v4528_v31 = vld [vmem:[%s5373_s5 + $0x6b4] ss:$8 sps:$4 sm:$0xff]  }
 0x198   : > { %3308 = vmatprep.subr.bf16.mxu1 %v4447_v32  ;;  %v4531_v32 = vld [vmem:[%s5373_s5 + $0x7b4] ss:$8 sps:$4 sm:$0xff]  }
 0x19a   : > { %3266 = vmatpush2.bf16.msra.mxu0 %v4442_v33  ;;  %v4526_v33 = vld [vmem:[%s5373_s5 + $0x6b0] ss:$8 sps:$4 sm:$0xff]  }
 0x19b   : > { %3309 = vmatpush2.bf16.msra.mxu1 %v4445_v34  ;;  %3267 = vmatprep.subr.bf16.mxu0 %v4450_v35  ;;  %v4529_v34 = vld [vmem:[%s5373_s5 + $0x7b0] ss:$8 sps:$4 sm:$0xff]   ;;  %v4534_v35 = vld [vmem:[%s5373_s5 + $0x6a4] ss:$8 sps:$4 sm:$0xff]  }
 0x19c   : > { %3310 = vmatprep.subr.bf16.mxu1 %v4453_v36  ;;  %v4537_v36 = vld [vmem:[%s5373_s5 + $0x7a4] ss:$8 sps:$4 sm:$0xff]  }
 0x19e   : > { %3268 = vmatpush2.bf16.msra.mxu0 %v4448_v37  ;;  %v4532_v37 = vld [vmem:[%s5373_s5 + $0x6a0] ss:$8 sps:$4 sm:$0xff]  }
 0x19f   : > { %3311 = vmatpush2.bf16.msra.mxu1 %v4451_v38  ;;  %3323 = vmatprep.subr.bf16.mxu0 %v4456_v39  ;;  %v4535_v38 = vld [vmem:[%s5373_s5 + $0x7a0] ss:$8 sps:$4 sm:$0xff]   ;;  %v4540_v39 = vld [vmem:[%s5373_s5 + $0x694] ss:$8 sps:$4 sm:$0xff]  }
 0x1a0   : > { %3366 = vmatprep.subr.bf16.mxu1 %v4459_v40  ;;  %v4543_v40 = vld [vmem:[%s5373_s5 + $0x794] ss:$8 sps:$4 sm:$0xff]  }
 0x1a1   : > { %3270 = vmatmul.mubr.bf16.vlgmr.msra.gmra.mxu0 %v3784_v46  ;;  %v4538_v46 = vld [vmem:[%s5373_s5 + $0x690] ss:$8 sps:$4 sm:$0xff]  }
 0x1a2   : > { %3313 = vmatmul.mubr.bf16.vlgmr.msra.gmra.mxu1 %v3786_v47  ;;  %3324 = vmatpush1.bf16.msra.mxu0 %v4454_v51  ;;  %v4541_v47 = vld [vmem:[%s5373_s5 + $0x790] ss:$8 sps:$4 sm:$0xff]   ;;  %v4546_v51 = vld [vmem:[%s5373_s5 + $0x684] ss:$8 sps:$4 sm:$0xff]  }
 0x1a3   : > { %3367 = vmatpush1.bf16.msra.mxu1 %v4457_v52  ;;  %3325 = vmatprep.subr.bf16.mxu0 %v4462_v41  ;;  %v4549_v52 = vld [vmem:[%s5373_s5 + $0x784] ss:$8 sps:$4 sm:$0xff]   ;;  %v4544_v41 = vld [vmem:[%s5373_s5 + $0x680] ss:$8 sps:$4 sm:$0xff]  }
 0x1a4   : > { %3368 = vmatprep.subr.bf16.mxu1 %v4465_v42  ;;  %3355 = vmatprep.mubr.bf16.mxu0 %v3789_v43  ;;  %v4547_v42 = vld [vmem:[%s5373_s5 + $0x780] ss:$8 sps:$4 sm:$0xff]   ;;  %v3788_v43 = vcombine.low %v5613_v45, %v5620_v48 }
 0x1a5   : > { %3398 = vmatprep.mubr.bf16.mxu1 %v3791_v44  ;;  %v3790_v44 = vcombine.low %v5623_v49, %v5626_v50 }
 0x1a6   : > { %3326 = vmatpush1.bf16.msra.mxu0 %v4460_v53 }
 0x1a7   : > { %3369 = vmatpush1.bf16.msra.mxu1 %v4463_v54  ;;  %3327 = vmatprep.subr.bf16.mxu0 %v4468_v55 }
 0x1a8   : > { %3370 = vmatprep.subr.bf16.mxu1 %v4471_v56 }
 0x1aa   : > { %3328 = vmatpush1.bf16.msra.mxu0 %v4466_v57 }
 0x1ab   : > { %3371 = vmatpush1.bf16.msra.mxu1 %v4469_v58  ;;  %3329 = vmatprep.subr.bf16.mxu0 %v4474_v59 }
 0x1ac   : > { %3372 = vmatprep.subr.bf16.mxu1 %v4477_v60 }
 0x1ae   : > { %3330 = vmatpush1.bf16.msra.mxu0 %v4472_v61 }
 0x1af   : > { %3373 = vmatpush1.bf16.msra.mxu1 %v4475_v62  ;;  %3331 = vmatprep.subr.bf16.mxu0 %v4480_v63 }
 0x1b0   : > { %3374 = vmatprep.subr.bf16.mxu1 %v4483_v0 }
 0x1b2   : > { %3332 = vmatpush1.bf16.msra.mxu0 %v4478_v1 }
 0x1b3   : > { %3375 = vmatpush1.bf16.msra.mxu1 %v4481_v2  ;;  %3333 = vmatprep.subr.bf16.mxu0 %v4486_v3 }
 0x1b4   : > { %3376 = vmatprep.subr.bf16.mxu1 %v4489_v4 }
 0x1b6   : > { %3334 = vmatpush1.bf16.msra.mxu0 %v4484_v5 }
 0x1b7   : > { %3377 = vmatpush1.bf16.msra.mxu1 %v4487_v6  ;;  %3335 = vmatprep.subr.bf16.mxu0 %v4492_v7 }
 0x1b8   : > { %3378 = vmatprep.subr.bf16.mxu1 %v4495_v8 }
 0x1ba   : > { %3336 = vmatpush1.bf16.msra.mxu0 %v4490_v9 }
 0x1bb   : > { %3379 = vmatpush1.bf16.msra.mxu1 %v4493_v10  ;;  %3337 = vmatprep.subr.bf16.mxu0 %v4498_v11 }
 0x1bc   : > { %3380 = vmatprep.subr.bf16.mxu1 %v4501_v12 }
 0x1be   : > { %3338 = vmatpush1.bf16.msra.mxu0 %v4496_v13 }
 0x1bf   : > { %3381 = vmatpush1.bf16.msra.mxu1 %v4499_v14  ;;  %3339 = vmatprep.subr.bf16.mxu0 %v4504_v15 }
 0x1c0   : > { %3382 = vmatprep.subr.bf16.mxu1 %v4507_v16 }
 0x1c2   : > { %3340 = vmatpush2.bf16.msra.mxu0 %v4502_v17 }
 0x1c3   : > { %3383 = vmatpush2.bf16.msra.mxu1 %v4505_v18  ;;  %3341 = vmatprep.subr.bf16.mxu0 %v4510_v19 }
 0x1c4   : > { %3384 = vmatprep.subr.bf16.mxu1 %v4513_v20 }
 0x1c6   : > { %3342 = vmatpush2.bf16.msra.mxu0 %v4508_v21 }
 0x1c7   : > { %3385 = vmatpush2.bf16.msra.mxu1 %v4511_v22  ;;  %3343 = vmatprep.subr.bf16.mxu0 %v4516_v23 }
 0x1c8   : > { %3386 = vmatprep.subr.bf16.mxu1 %v4519_v24 }
 0x1ca   : > { %3344 = vmatpush2.bf16.msra.mxu0 %v4514_v25 }
 0x1cb   : > { %3387 = vmatpush2.bf16.msra.mxu1 %v4517_v26  ;;  %3345 = vmatprep.subr.bf16.mxu0 %v4522_v27 }
 0x1cc   : > { %3388 = vmatprep.subr.bf16.mxu1 %v4525_v28 }
 0x1ce   : > { %3346 = vmatpush2.bf16.msra.mxu0 %v4520_v29 }
 0x1cf   : > { %3389 = vmatpush2.bf16.msra.mxu1 %v4523_v30  ;;  %3347 = vmatprep.subr.bf16.mxu0 %v4528_v31  ;;  %v1429_v30 = vld [vmem:[#allocation2 + $0x10] sm:$0xff] }
 0x1d0   : > { %3390 = vmatprep.subr.bf16.mxu1 %v4531_v32 }
 0x1d2   : > { %3348 = vmatpush2.bf16.msra.mxu0 %v4526_v33 }
 0x1d3   : > { %3391 = vmatpush2.bf16.msra.mxu1 %v4529_v34  ;;  %3349 = vmatprep.subr.bf16.mxu0 %v4534_v35 }
 0x1d4   : > { %3392 = vmatprep.subr.bf16.mxu1 %v4537_v36  ;;  %v1430_v36 = vld [vmem:[#allocation2] sm:$0xff] }
 0x1d6   : > { %3350 = vmatpush2.bf16.msra.mxu0 %v4532_v37 }
 0x1d7   : > { %3393 = vmatpush2.bf16.msra.mxu1 %v4535_v38  ;;  %3351 = vmatprep.subr.bf16.mxu0 %v4540_v39 }
 0x1d8   : > { %3394 = vmatprep.subr.bf16.mxu1 %v4543_v40 }
 0x1da   : > { %3352 = vmatpush2.bf16.msra.mxu0 %v4538_v46 }
 0x1db   : > { %3395 = vmatpush2.bf16.msra.mxu1 %v4541_v47  ;;  %3353 = vmatprep.subr.bf16.mxu0 %v4546_v51  ;;  %v1431_v51 = vld [vmem:[#allocation2 + $0x18] sm:$0xff] }
 0x1dc   : > { %3396 = vmatprep.subr.bf16.mxu1 %v4549_v52 }
 0x1de   : > { %3354 = vmatpush2.bf16.msra.mxu0 %v4544_v41 }
 0x1df   : > { %3397 = vmatpush2.bf16.msra.mxu1 %v4547_v42 }
 0x1e1   : > { %3356 = vmatmul.mubr.bf16.vlgmr.msra.gmra.mxu0 %v3788_v43  ;;  %v3099_v53 = vpop.f32.mrf.mxu0 }
 0x1e2   : > { %3399 = vmatmul.mubr.bf16.vlgmr.msra.gmra.mxu1 %v3790_v44  ;;  %v3142_v54 = vpop.f32.mrf.mxu1  ;;  %v1432_v44 = vld [vmem:[#allocation2 + $0x8] sm:$0xff] }
 0x1e3   : > { %v3101_v55 = vpop.f32.mrf.mxu0  ;;  %v3143_v3 = vadd.f32 %v3142_v54, %v3099_v53 }
 0x1e4   : > { %v3144_v56 = vpop.f32.mrf.mxu1 }
 0x1e5   : > { %v3103_v57 = vpop.f32.mrf.mxu0  ;;  %v3145_v4 = vadd.f32 %v3144_v56, %v3101_v55 }
 0x1e6   : > { %v3146_v58 = vpop.f32.mrf.mxu1 }
 0x1e7   : > { %v3105_v59 = vpop.f32.mrf.mxu0  ;;  %v3147_v8 = vadd.f32 %v3146_v58, %v3103_v57 }
 0x1e8   : > { %v3148_v60 = vpop.f32.mrf.mxu1 }
 0x1e9   : > { %v3149_v10 = vadd.f32 %v3148_v60, %v3105_v59 }
 0x221   : > { %v3185_v61 = vpop.f32.mrf.mxu0 }
 0x222   : > { %v3228_v62 = vpop.f32.mrf.mxu1  ;;  %v3186_v5 = vadd.f32 %v3185_v61, %v3143_v3 }
 0x223   : > { %v3187_v63 = vpop.f32.mrf.mxu0 }
 0x224   : > { %v3230_v0 = vpop.f32.mrf.mxu1  ;;  %v3188_v9 = vadd.f32 %v3187_v63, %v3145_v4  ;;  %v3229_v11 = vadd.f32 %v3228_v62, %v3186_v5 }
 0x225   : > { %v3189_v45 = vpop.f32.mrf.mxu0 }
 0x226   : > { %v3232_v48 = vpop.f32.mrf.mxu1  ;;  %v3190_v12 = vadd.f32 %v3189_v45, %v3147_v8  ;;  %v3231_v15 = vadd.f32 %v3230_v0, %v3188_v9 }
 0x227   : > { %v3191_v1 = vpop.f32.mrf.mxu0 }
 0x228   : > { %v3234_v49 = vpop.f32.mrf.mxu1  ;;  %v3192_v16 = vadd.f32 %v3191_v1, %v3149_v10  ;;  %v3233_v18 = vadd.f32 %v3232_v48, %v3190_v12 }
 0x22a   : > { %v3235_v22 = vadd.f32 %v3234_v49, %v3192_v16 }
 0x261   : > { %v3271_v50 = vpop.f32.mrf.mxu0 }
 0x262   : > { %v3314_v2 = vpop.f32.mrf.mxu1  ;;  %v3272_v17 = vadd.f32 %v3271_v50, %v3229_v11 }
 0x263   : > { %v3273_v6 = vpop.f32.mrf.mxu0 }
 0x264   : > { %v3316_v7 = vpop.f32.mrf.mxu1  ;;  %v3274_v19 = vadd.f32 %v3273_v6, %v3231_v15  ;;  %v3315_v23 = vadd.f32 %v3314_v2, %v3272_v17 }
 0x265   : > { %v3275_v13 = vpop.f32.mrf.mxu0 }
 0x266   : > { %v3318_v14 = vpop.f32.mrf.mxu1  ;;  %v3276_v24 = vadd.f32 %v3275_v13, %v3233_v18  ;;  %v3317_v27 = vadd.f32 %v3316_v7, %v3274_v19 }
 0x267   : > { %v3277_v20 = vpop.f32.mrf.mxu0 }
 0x268   : > { %v3320_v21 = vpop.f32.mrf.mxu1  ;;  %v3278_v28 = vadd.f32 %v3277_v20, %v3235_v22  ;;  %v3319_v33 = vadd.f32 %v3318_v14, %v3276_v24 }
 0x26a   : > { %v3321_v39 = vadd.f32 %v3320_v21, %v3278_v28 }
 0x2a1   : > { %v3357_v25 = vpop.f32.mrf.mxu0 }
 0x2a2   : > { %v3400_v26 = vpop.f32.mrf.mxu1  ;;  %v3358_v29 = vadd.f32 %v3357_v25, %v3315_v23 }
 0x2a3   : > { %v3359_v31 = vpop.f32.mrf.mxu0 }
 0x2a4   : > { %v3402_v32 = vpop.f32.mrf.mxu1  ;;  %v3401_v34 = vadd.f32 %v3400_v26, %v3358_v29  ;;  %v3360_v35 = vadd.f32 %v3359_v31, %v3317_v27 }
 0x2a5   : > { %v3361_v37 = vpop.f32.mrf.mxu0 }
 0x2a6   : > { %v3404_v38 = vpop.f32.mrf.mxu1  ;;  %v3409_v40 = vadd.f32 %v3401_v34, %v1429_v30  ;;  %v3403_v46 = vadd.f32 %v3402_v32, %v3360_v35  ;;  %v3362_v47 = vadd.f32 %v3361_v37, %v3319_v33 }
 0x2a7   : > { %v3363_v52 = vpop.f32.mrf.mxu0 }
 0x2a8   : > { %3413 = vst [vmem:[#allocation2 + $0x10] sm:$0xff] %v3409_v40  ;;  %v3410_v41 = vadd.f32 %v3403_v46, %v1430_v36  ;;  %v3405_v42 = vadd.f32 %v3404_v38, %v3362_v47  ;;  %v3364_v43 = vadd.f32 %v3363_v52, %v3321_v39  ;;  %v3406_v53 = vpop.f32.mrf.mxu1 }
 0x2aa   : > { %3414 = vst [vmem:[#allocation2] sm:$0xff] %v3410_v41  ;;  %v3411_v54 = vadd.f32 %v3405_v42, %v1431_v51  ;;  %v3407_v55 = vadd.f32 %v3406_v53, %v3364_v43  ;;  %3420 = sbr.rel (%p4048_p7) target bundleno = 718 (0x2ce), region = 101 }
 0x2ac   : > { %3415 = vst [vmem:[#allocation2 + $0x18] sm:$0xff] %v3411_v54  ;;  %v3412_v56 = vadd.f32 %v3407_v55, %v1432_v44 }
 0x2ae   : > { %3416 = vst [vmem:[#allocation2 + $0x8] sm:$0xff] %v3412_v56 }
 0x2af   : > { %v3427_v57 = vlaneseq  ;;  %v3425_v59 = vld [vmem:[%s1403_s19] sm:$0x3]  ;;  %v3421_v60 = vld [vmem:[#allocation2 + $0x10] sm:$0xff]  ;;  %vm3490_vm0 = vcmask 1040384  }
 0x2b1   : > { %v3428_v58 = vshrl.u32 %v3427_v57, 7  ;;  %v3422_v63 = vld [vmem:[#allocation2] sm:$0xff] }
 0x2b3   : > { %v3429_v61 = vsub.s32 0, %v3428_v58  ;;  %v3433_v62 = vsub.s32 1, %v3428_v58  ;;  %v3423_v0 = vld [vmem:[#allocation2 + $0x18] sm:$0xff] }
 0x2b5   : > { %v3424_v45 = vld [vmem:[#allocation2 + $0x8] sm:$0xff]  ;;  %v3430_v48 = vrot.slane %v3425_v59, %v3429_v61  ;;  %v3434_v1 = vrot.slane %v3425_v59, %v3433_v62 }
 0x2b7   : > { %v3437_v49 = vadd.f32 %v3430_v48, %v3421_v60  ;;  %v3438_v50 = vadd.f32 %v3434_v1, %v3422_v63  ;;  %v3439_v2 = vadd.f32 %v3430_v48, %v3423_v0  ;;  %v3440_v3 = vadd.f32 %v3434_v1, %v3424_v45 }
 0x2b9   : > { %v3458_v4 = vadd.f32 %v3439_v2, %v3437_v49  ;;  %v3465_v5 = vadd.f32 %v3440_v3, %v3438_v50  ;;  %v3472_v6 = vmul.f32 %v3437_v49, %v3437_v49  ;;  %v3473_v7 = vmul.f32 %v3438_v50, %v3438_v50 }
 0x2ba   : > { %v3474_v8 = vmul.f32 %v3439_v2, %v3439_v2  ;;  %v3475_v9 = vmul.f32 %v3440_v3, %v3440_v3  ;;  %v4059_v10 = vpack.c.bf16 %v3438_v50, %v3437_v49  ;;  %v4060_v11 = vpack.c.bf16 %v3440_v3, %v3439_v2 }
 0x2bb   : > { %v3459_v12 = vrot.slane %v3458_v4, 4  ;;  %v3466_v13 = vrot.slane %v3465_v5, 4 }
 0x2bc   : > { %v3476_v14 = vadd.f32 %v3474_v8, %v3472_v6  ;;  %v3483_v15 = vadd.f32 %v3475_v9, %v3473_v7  ;;  %3517 = vst [vmem:[%s5375_s26] sm:$0xff] %v4059_v10  ;;  %3518 = vst [vmem:[%s5375_s26 + $0x8] sm:$0xff] %v4060_v11 }
 0x2bd   : > { %v3460_v16 = vadd.f32 %v3459_v12, %v3458_v4  ;;  %v3467_v17 = vadd.f32 %v3466_v13, %v3465_v5 }
 0x2be   : > { %v3477_v18 = vrot.slane %v3476_v14, 4  ;;  %v3484_v19 = vrot.slane %v3483_v15, 4 }
 0x2bf   : > { %v3461_v20 = vrot.slane %v3460_v16, 2  ;;  %v3468_v21 = vrot.slane %v3467_v17, 2 }
 0x2c0   : > { %v3478_v22 = vadd.f32 %v3477_v18, %v3476_v14  ;;  %v3485_v23 = vadd.f32 %v3484_v19, %v3483_v15 }
 0x2c1   : > { %v3462_v24 = vadd.f32 %v3461_v20, %v3460_v16  ;;  %v3469_v25 = vadd.f32 %v3468_v21, %v3467_v17 }
 0x2c2   : > { %v3479_v26 = vrot.slane %v3478_v22, 2  ;;  %v3486_v27 = vrot.slane %v3485_v23, 2 }
 0x2c3   : > { %v3463_v28 = vrot.slane %v3462_v24, 1  ;;  %v3470_v29 = vrot.slane %v3469_v25, 1 }
 0x2c4   : > { %v3480_v30 = vadd.f32 %v3479_v26, %v3478_v22  ;;  %v3487_v31 = vadd.f32 %v3486_v27, %v3485_v23 }
 0x2c5   : > { %v3464_v32 = vadd.f32 %v3463_v28, %v3462_v24  ;;  %v3471_v33 = vadd.f32 %v3470_v29, %v3469_v25 }
 0x2c6   : > { %v3481_v34 = vrot.slane %v3480_v30, 1  ;;  %v3488_v35 = vrot.slane %v3487_v31, 1 }
 0x2c8   : > { %v3482_v36 = vadd.f32 %v3481_v34, %v3480_v30  ;;  %v3489_v37 = vadd.f32 %v3488_v35, %v3487_v31 }
 0x2ca   : > { %v3491_v38 = vsel %vm3490_vm0, %v3464_v32, %v3482_v36  ;;  %v3492_v39 = vsel %vm3490_vm0, %v3471_v33, %v3489_v37 }
 0x2cb   : > { %v3495_v40 = vcombine.low %v3491_v38, %v3492_v39 }
 0x2cd   : > { %4049 = vst.sshfl [vmem:[%s5369_s1] sm:$0x33 pattern:$0x76325410] %v3495_v40 }
 0x2ce PF: > { %3538 = sbr.rel (!%p4792_p13) target bundleno = 727 (0x2d7), region = 105  ;;  %s4054_s29 = sshll.u32 (%p4792_p13), %s4636_s23, 3  ;;  %v3577_v46 = vld [vmem:[%s5375_s26] sm:$0xff] (%p4792_p13)  ;;  %v3579_v47 = vld [vmem:[%s5375_s26 + $0x8] sm:$0xff] (%p4792_p13) }
 0x2cf   : > { %s3544_s6 = sadd.s32 (%p4792_p13), %s4054_s29, %s5353_s30  ;;  %s5790_s10 = sld [smem:[#allocation14_spill]] (%p4792_p13) }
 0x2d0   : > { %s4055_s7 = sshll.u32 (%p4792_p13), %s3544_s6, 2 }
 0x2d5   : > { %s3546_s19 = scalar_lea.vmem %s5790_s10, %s4055_s7 }
 0x2d6   : > { %3578 = vst [vmem:[%s3546_s19] sm:$0xff] %v3577_v46  ;;  %3580 = vst [vmem:[%s3546_s19 + $0x10] sm:$0xff] %v3579_v47 }
 0x2d7 PF: > { %s15_s27 = sadd.s32 1, %s4652_s27   ;;  %s5792_s22 = sld [smem:[#allocation7_spill]] }
 0x2d8   : > { %p5717_p8 = scmp.ge.s32.totalorder %s15_s27, 10   ;;  %s5793_s23 = sld [smem:[#allocation8_spill]] }
 0x2d9   : > { %s5794_s4 = sld [smem:[#allocation9_spill]]  ;;  %s5797_s15 = smov %s4608_s16 }
 0x2da   : > { %s5795_s25 = sld [smem:[#allocation10_spill]]  ;;  %s5798_s16 = smov %s4790_s11 }
 0x2db   : > { %s5796_s26 = sld [smem:[#allocation11_spill]]  ;;  %s5799_s17 = smov %s4616_s18 }
 0x2dc   : > { %s5800_s18 = smov %s4777_s13  ;;  %s5801_s19 = smov %s4624_s20 }
 0x2dd   : > { %s5802_s20 = smov %s4787_s21  ;;  %s5803_s21 = smov %s4640_s24 }
 0x2de   :  { %14 = sbr.rel (!%p5717_p8) target bundleno = 12 (0xc), region = 197 }
 0x2df   : > { %s5804_s24 = smov %s5794_s4 }

// kernel: _lambda_.14
= control target key start
LH: loop header
LB: loop body
LE: loop exit
PB: predicated region body
PF: predicated region fallthrough
CT: control target
= control target key end

     0   :  { %s569_s9 = smov 0   ;;  %s571_s10 = smov 0   ;;  %s613_s0 = inlined_call_operand.vmem [shape: bf16[2,16,512], index: 0, kind: input, shape index: {}]   ;;  %s614_s1 = inlined_call_operand.vmem [shape: f32[2,2,512], index: 1, kind: input, shape index: {}]   ;;  %s615_s2 = inlined_call_operand.vmem [shape: bf16[2,16,512], index: 2, kind: output, shape index: {}]  }
   0x1   :  { %s573_s11 = smov 0  }
   0x2 LB: > { %s24_s12 = sadd.s32 1, %s548_s10  ;;  %p484_p0 = scmp.ge.s32.totalorder %s552_s11, 1  ;;  %s552_s11 = sphi %s573_s11, %s12_s11   ;;  %s548_s10 = sphi %s571_s10, %s617_s10   ;;  %s544_s9 = sphi %s569_s9, %s616_s9  }
   0x3   : > { %p26_p1 = scmp.ge.s32.totalorder %s24_s12, 2  ;;  %p144_p2 = scmp.lt.s32.totalorder %s552_s11, 3 }
   0x5   : > { %s619_s12 = smov (%p26_p1, %s24_s12), 0  ;;  %p145_p3 = pnand %p484_p0, %p144_p2 }
   0x6   : > { %p182_p4 = scmp.lt.s32.totalorder (!%p145_p3), %s544_s9, 1 }
   0x7   : > { %148 = sbr.rel (%p145_p3) target bundleno = 59 (0x3b), region = 28 }
   0xc   : > { %s621_s9 = smov (!%p182_p4, %s544_s9), 1  ;;  %v229_v4 = vlaneseq }
   0xd   : > { %s498_s13 = sshll.u32 %s621_s9, 3  ;;  %s497_s17 = sshll.u32 %s621_s9, 5 }
   0xe   : > { %s196_s16 = scalar_lea.vmem %s614_s1, %s498_s13  ;;  %v230_v7 = vshrl.u32 %v229_v4, 7  ;;  %s190_s20 = scalar_lea.vmem %s613_s0, %s497_s17 }
   0xf   : > { %v220_v0 = vld [vmem:[%s196_s16] sm:$0xff]  ;;  %v209_v14 = vld [vmem:[%s190_s20 + $0x8] sm:$0xff]  ;;  %v210_v19 = vld [vmem:[%s190_s20 + $0x10] sm:$0xff]  ;;  %s206_s23 = scalar_lea.vmem %s615_s2, %s497_s17 }
  0x10   : > { %v221_v1 = vmul.f32 0.0625, %v220_v0  ;;  %v231_v9 = vsub.s32 0, %v230_v7  ;;  %v235_v10 = vsub.s32 2, %v230_v7  ;;  %v239_v11 = vsub.s32 4, %v230_v7  ;;  %v208_v13 = vld [vmem:[%s190_s20] sm:$0xff]  ;;  %v211_v20 = vld [vmem:[%s190_s20 + $0x18] sm:$0xff] }
  0x11   : > { %v243_v12 = vsub.s32 6, %v230_v7  ;;  %v212_v21 = vunpack.c.l.bf16 %v208_v13  ;;  %v213_v22 = vunpack.c.h.bf16 %v208_v13  ;;  %v214_v23 = vunpack.c.l.bf16 %v209_v14 }
  0x12   : > { %v222_v2 = vmul.f32 %v221_v1, %v221_v1  ;;  %v232_v15 = vrot.slane %v221_v1, %v231_v9  ;;  %v236_v16 = vrot.slane %v221_v1, %v235_v10  ;;  %v240_v17 = vrot.slane %v221_v1, %v239_v11 }
  0x13   : > { %v244_v18 = vrot.slane %v221_v1, %v243_v12  ;;  %v215_v24 = vunpack.c.h.bf16 %v209_v14  ;;  %v278_v29 = vsub.s32 1, %v230_v7  ;;  %v282_v30 = vsub.s32 3, %v230_v7 }
  0x14   : > { %v224_v3 = vrot.slane %v222_v2, 7  ;;  %v252_v25 = vrot.slane %v232_v15, %v231_v9  ;;  %v256_v26 = vrot.slane %v236_v16, %v231_v9  ;;  %v260_v27 = vrot.slane %v240_v17, %v231_v9 }
  0x15   : > { %v264_v28 = vrot.slane %v244_v18, %v231_v9  ;;  %v286_v31 = vsub.s32 5, %v230_v7  ;;  %v290_v32 = vsub.s32 7, %v230_v7  ;;  %v216_v33 = vunpack.c.l.bf16 %v210_v19 }
  0x16   : > { %v226_v5 = vsub.f32 %v221_v1, %v224_v3  ;;  %v217_v34 = vunpack.c.h.bf16 %v210_v19  ;;  %v218_v35 = vunpack.c.l.bf16 %v211_v20  ;;  %v219_v36 = vunpack.c.h.bf16 %v211_v20 }
  0x17   : > { %v265_v38 = vsub.f32 %v212_v21, %v252_v25  ;;  %v266_v39 = vsub.f32 %v213_v22, %v256_v26  ;;  %v267_v40 = vsub.f32 %v214_v23, %v260_v27  ;;  %v268_v41 = vsub.f32 %v215_v24, %v264_v28 }
  0x18   : > { %v227_v6 = vmax.f32 %v226_v5, 0.0  ;;  %v269_v46 = vsub.f32 %v216_v33, %v252_v25  ;;  %v270_v47 = vsub.f32 %v217_v34, %v256_v26  ;;  %v271_v48 = vsub.f32 %v218_v35, %v260_v27 }
  0x19   : > { %v272_v49 = vsub.f32 %v219_v36, %v264_v28 }
  0x1a   : > { %v273_v8 = vadd.f32 1e-05, %v227_v6 }
  0x1c   : > { %528 = vrsqrt.f32 %v273_v8 }
  0x29   : > { %v529_v37 = vpop.eup %528 }
  0x2a   : > { %v279_v42 = vrot.slane %v529_v37, %v278_v29  ;;  %v283_v43 = vrot.slane %v529_v37, %v282_v30  ;;  %v287_v44 = vrot.slane %v529_v37, %v286_v31  ;;  %v291_v45 = vrot.slane %v529_v37, %v290_v32 }
  0x2c   : > { %v299_v50 = vrot.slane %v279_v42, %v278_v29  ;;  %v303_v51 = vrot.slane %v283_v43, %v278_v29  ;;  %v307_v52 = vrot.slane %v287_v44, %v278_v29  ;;  %v311_v53 = vrot.slane %v291_v45, %v278_v29 }
  0x2e   : > { %v312_v54 = vmul.f32 %v299_v50, %v265_v38  ;;  %v313_v55 = vmul.f32 %v303_v51, %v266_v39  ;;  %v314_v56 = vmul.f32 %v307_v52, %v267_v40  ;;  %v315_v57 = vmul.f32 %v311_v53, %v268_v41 }
  0x2f   : > { %v316_v58 = vmul.f32 %v299_v50, %v269_v46  ;;  %v317_v59 = vmul.f32 %v303_v51, %v270_v47  ;;  %v318_v60 = vmul.f32 %v307_v52, %v271_v48  ;;  %v319_v61 = vmul.f32 %v311_v53, %v272_v49 }
  0x30   : > { %vm320_vm0 = vcmp.gt.f32.partialorder %v312_v54, 0.0  ;;  %vm321_vm1 = vcmp.gt.f32.partialorder %v313_v55, 0.0  ;;  %v328_v62 = vmul.f32 0.2, %v312_v54  ;;  %v329_v63 = vmul.f32 0.2, %v313_v55 }
  0x31   : > { %vm322_vm2 = vcmp.gt.f32.partialorder %v314_v56, 0.0  ;;  %vm323_vm3 = vcmp.gt.f32.partialorder %v315_v57, 0.0  ;;  %v330_v0 = vmul.f32 0.2, %v314_v56  ;;  %v331_v1 = vmul.f32 0.2, %v315_v57 }
  0x32   : > { %v336_v2 = vsel %vm320_vm0, %v312_v54, %v328_v62  ;;  %v337_v3 = vsel %vm321_vm1, %v313_v55, %v329_v63  ;;  %vm324_vm4 = vcmp.gt.f32.partialorder %v316_v58, 0.0  ;;  %vm325_vm5 = vcmp.gt.f32.partialorder %v317_v59, 0.0 }
  0x33   : > { %v500_v4 = vpack.c.bf16 %v337_v3, %v336_v2  ;;  %v338_v5 = vsel %vm322_vm2, %v314_v56, %v330_v0  ;;  %v339_v6 = vsel %vm323_vm3, %v315_v57, %v331_v1  ;;  %v332_v7 = vmul.f32 0.2, %v316_v58 }
  0x34   : > { %v501_v8 = vpack.c.bf16 %v339_v6, %v338_v5  ;;  %v333_v9 = vmul.f32 0.2, %v317_v59  ;;  %vm326_vm6 = vcmp.gt.f32.partialorder %v318_v60, 0.0  ;;  %vm327_vm7 = vcmp.gt.f32.partialorder %v319_v61, 0.0 }
  0x35   : > { %368 = vst [vmem:[%s206_s23] sm:$0xff] %v500_v4  ;;  %v340_v10 = vsel %vm324_vm4, %v316_v58, %v332_v7  ;;  %v334_v11 = vmul.f32 0.2, %v318_v60  ;;  %v335_v12 = vmul.f32 0.2, %v319_v61 }
  0x36   : > { %369 = vst [vmem:[%s206_s23 + $0x8] sm:$0xff] %v501_v8  ;;  %v341_v13 = vsel %vm325_vm5, %v317_v59, %v333_v9 }
  0x37   : > { %v502_v14 = vpack.c.bf16 %v341_v13, %v340_v10  ;;  %v342_v15 = vsel %vm326_vm6, %v318_v60, %v334_v11  ;;  %v343_v16 = vsel %vm327_vm7, %v319_v61, %v335_v12 }
  0x38   : > { %v503_v17 = vpack.c.bf16 %v343_v16, %v342_v15 }
  0x39   : > { %370 = vst [vmem:[%s206_s23 + $0x10] sm:$0xff] %v502_v14 }
  0x3a   : > { %371 = vst [vmem:[%s206_s23 + $0x18] sm:$0xff] %v503_v17 }
  0x3b PF: > { %s12_s11 = sadd.s32 1, %s552_s11   ;;  %s616_s9 = smov %s548_s10 }
  0x3c   : > { %p9_p5 = scmp.ge.s32.totalorder %s12_s11, 4   ;;  %s617_s10 = smov %s619_s12 }
  0x3e   :  { %11 = sbr.rel (!%p9_p5) target bundleno = 2 (0x2), region = 61 }

// kernel: _lambda_.15
= control target key start
LH: loop header
LB: loop body
LE: loop exit
PB: predicated region body
PF: predicated region fallthrough
CT: control target
= control target key end

     0   :  { %s3471_s0 = inlined_call_operand.vmem [shape: bf16[2,32,8192], index: 0, kind: input, shape index: {}]   ;;  %s3472_s1 = inlined_call_operand.vmem [shape: bf16[8192,128], index: 1, kind: input, shape index: {}]   ;;  %s3473_s2 = inlined_call_operand.vmem [shape: f32[1,128], index: 2, kind: input, shape index: {}]   ;;  %s3474_s3 = inlined_call_operand.vmem [shape: f32[2,32,128], index: 3, kind: output, shape index: {0}]   ;;  %s3475_s4 = inlined_call_operand.hbm [shape: f32[2,1,2,128], index: 4, kind: output, shape index: {1}]  }
   0x1   :  { %3479 = sst [smem:[#allocation9_spill]] %s3471_s0 }
   0x2   :  { %10 = vsyncpa [#allocation5], 0 }
   0x3   :  { %12 = vsyncpa [#allocation5 + $0x1], 0  ;;  %s3055_s15 = smov 0   ;;  %s3057_s16 = smov 0  }
   0x4   :  { %s3059_s17 = smov 0   ;;  %s3061_s18 = smov 0  }
   0x5   :  { %s3063_s19 = smov 0   ;;  %s3065_s20 = smov 0  }
   0x6   :  { %s3067_s21 = smov 0   ;;  %s3069_s22 = smov 0  }
   0x7   :  { %s3071_s23 = smov 0   ;;  %s3073_s24 = smov 0  }
   0x8 LB: > { %s2294_s25 = sadd.s32 4294967295, %s3026_s24   ;;  %s2295_s26 = sadd.s32 4294967294, %s3026_s24   ;;  %s3026_s24 = sphi %s3073_s24, %s18_s24   ;;  %s3022_s23 = sphi %s3071_s23, %s3497_s23   ;;  %s3018_s22 = sphi %s3069_s22, %s3496_s22   ;;  %s3014_s21 = sphi %s3067_s21, %s3495_s21   ;;  %s3010_s20 = sphi %s3065_s20, %s3494_s20   ;;  %s3006_s19 = sphi %s3063_s19, %s3493_s19   ;;  %s3002_s18 = sphi %s3061_s18, %s3492_s18   ;;  %s2998_s17 = sphi %s3059_s17, %s3491_s17   ;;  %s2994_s16 = sphi %s3057_s16, %s3490_s16   ;;  %s2990_s15 = sphi %s3055_s15, %s3489_s15  }
   0x9   : > { %s33_s27 = sadd.s32 1, %s3018_s22  ;;  %s44_s28 = sadd.s32 1, %s3022_s23 }
   0xa   : > { %p34_p0 = scmp.ge.s32.totalorder %s33_s27, 4  ;;  %s55_s29 = sadd.s32 1, %s3006_s19 }
   0xb   : > { %p62_p1 = scmp.ne.s32.totalorder %s3006_s19, %s3002_s18  ;;  %p63_p2 = scmp.eq.s32.totalorder %s3026_s24, 0 }
   0xc   : > { %s3499_s27 = smov (%p34_p0, %s33_s27), 0  ;;  %s3501_s28 = smov (!%p34_p0, %s44_s28), %s3022_s23 }
   0xd   : > { %3480 = sst [smem:[#allocation7_spill]] %s3499_s27  ;;  %s51_s30 = ssub.s32 %s3018_s22, %s3499_s27 }
   0xe   : > { %p3118_p3 = por %p63_p2, %p62_p1  ;;  %p46_p4 = scmp.ge.s32.totalorder %s3501_s28, 2 }
   0xf   : > { %s169_s6 = sadd.s32 1, %s2998_s17  ;;  %p179_p5 = scmp.ne.s32.totalorder %s2998_s17, %s2994_s16 }
  0x10   : > { %p180_p6 = scmp.eq.s32.totalorder %s2294_s25, 7  ;;  %s3503_s28 = smov (%p46_p4, %s3501_s28), 0 }
  0x11   : > { %3482 = sst [smem:[#allocation8_spill]] %s3503_s28  ;;  %p185_p8 = scmp.ne.s32.totalorder %s2994_s16, %s2990_s15 }
  0x12   : > { %p3127_p7 = por %p180_p6, %p179_p5  ;;  %s48_s8 = ssub.s32 %s3022_s23, %s3503_s28 }
  0x13   : > { %p186_p9 = scmp.eq.s32.totalorder %s2295_s26, 7  ;;  %s52_s9 = sor.u32 %s51_s30, %s48_s8 }
  0x14   : > { %p167_p10 = scmp.eq.s32.totalorder %s48_s8, 0  ;;  %p53_p11 = scmp.eq.s32.totalorder %s52_s9, 0 }
  0x15   : > { %p3135_p12 = por %p186_p9, %p185_p8  ;;  %p2298_p13 = scmp.ge.s32.totalorder %s3026_s24, 8 }
  0x16   : > { %s3140_s11 = scalar_select %p167_p10, %s2998_s17, %s169_s6  }
  0x17   : > { %s3143_s12 = scalar_select %p53_p11, %s3006_s19, %s55_s29  }
  0x18   : > { %208 = sbr.rel (%p2298_p13) target bundleno = 55 (0x37), region = 20 }
  0x1d   : > { %211 = sbr.rel (!%p3118_p3) target bundleno = 55 (0x37), region = 24  ;;  %s213_s13 = sand.u32 (%p3118_p3), 1, %s3006_s19  }
  0x1e   : > { %s2300_s14 = sshll.u32 (%p3118_p3), %s3018_s22, 4  ;;  %s2299_s25 = sshll.u32 (%p3118_p3), %s213_s13, 8 }
  0x1f   : > { %s2301_s26 = sshll.u32 (%p3118_p3), %s3022_s23, 8  ;;  %s3485_s0 = sld [smem:[#allocation9_spill]] (%p3118_p3) }
  0x20   : > { %s221_s30 = sadd.s32 (%p3118_p3), %s2301_s26, %s2300_s14  ;;  %s3159_s5 = scalar_lea.vmem (%p3118_p3), [#allocation3], %s2299_s25 }
  0x21   : > { %s2302_s8 = sshll.u32 (%p3118_p3), %s221_s30, 2 }
  0x25   : > { %s3154_s29 = scalar_lea.vmem %s3485_s0, %s2302_s8 }
  0x26   : > { %v236_v0 = vld [vmem:[%s3154_s29] sm:$0xff]  ;;  %v238_v1 = vld [vmem:[%s3154_s29 + $0x8] sm:$0xff]  ;;  %v240_v2 = vld [vmem:[%s3154_s29 + $0x10] sm:$0xff] }
  0x27   : > { %237 = vst [vmem:[%s3159_s5] sm:$0xff] %v236_v0  ;;  %239 = vst [vmem:[%s3159_s5 + $0x8] sm:$0xff] %v238_v1  ;;  %v242_v3 = vld [vmem:[%s3154_s29 + $0x18] sm:$0xff]  ;;  %v244_v4 = vld [vmem:[%s3154_s29 + $0x20] sm:$0xff] }
  0x28   : > { %241 = vst [vmem:[%s3159_s5 + $0x10] sm:$0xff] %v240_v2  ;;  %v246_v5 = vld [vmem:[%s3154_s29 + $0x28] sm:$0xff]  ;;  %243 = vst [vmem:[%s3159_s5 + $0x18] sm:$0xff] %v242_v3  ;;  %v248_v6 = vld [vmem:[%s3154_s29 + $0x30] sm:$0xff] }
  0x29   : > { %245 = vst [vmem:[%s3159_s5 + $0x20] sm:$0xff] %v244_v4  ;;  %247 = vst [vmem:[%s3159_s5 + $0x28] sm:$0xff] %v246_v5  ;;  %v250_v7 = vld [vmem:[%s3154_s29 + $0x38] sm:$0xff]  ;;  %v252_v8 = vld [vmem:[%s3154_s29 + $0x100] sm:$0xff] }
  0x2a   : > { %249 = vst [vmem:[%s3159_s5 + $0x30] sm:$0xff] %v248_v6  ;;  %251 = vst [vmem:[%s3159_s5 + $0x38] sm:$0xff] %v250_v7  ;;  %v254_v9 = vld [vmem:[%s3154_s29 + $0x108] sm:$0xff]  ;;  %v256_v10 = vld [vmem:[%s3154_s29 + $0x110] sm:$0xff] }
  0x2b   : > { %253 = vst [vmem:[%s3159_s5 + $0x40] sm:$0xff] %v252_v8  ;;  %v258_v11 = vld [vmem:[%s3154_s29 + $0x118] sm:$0xff]  ;;  %255 = vst [vmem:[%s3159_s5 + $0x48] sm:$0xff] %v254_v9  ;;  %v260_v12 = vld [vmem:[%s3154_s29 + $0x120] sm:$0xff] }
  0x2c   : > { %257 = vst [vmem:[%s3159_s5 + $0x50] sm:$0xff] %v256_v10  ;;  %259 = vst [vmem:[%s3159_s5 + $0x58] sm:$0xff] %v258_v11  ;;  %v262_v13 = vld [vmem:[%s3154_s29 + $0x128] sm:$0xff]  ;;  %v264_v14 = vld [vmem:[%s3154_s29 + $0x130] sm:$0xff] }
  0x2d   : > { %261 = vst [vmem:[%s3159_s5 + $0x60] sm:$0xff] %v260_v12  ;;  %263 = vst [vmem:[%s3159_s5 + $0x68] sm:$0xff] %v262_v13  ;;  %v266_v15 = vld [vmem:[%s3154_s29 + $0x138] sm:$0xff]  ;;  %v268_v16 = vld [vmem:[%s3154_s29 + $0x200] sm:$0xff] }
  0x2e   : > { %265 = vst [vmem:[%s3159_s5 + $0x70] sm:$0xff] %v264_v14  ;;  %v270_v17 = vld [vmem:[%s3154_s29 + $0x208] sm:$0xff]  ;;  %267 = vst [vmem:[%s3159_s5 + $0x78] sm:$0xff] %v266_v15  ;;  %v272_v18 = vld [vmem:[%s3154_s29 + $0x210] sm:$0xff] }
  0x2f   : > { %269 = vst [vmem:[%s3159_s5 + $0x80] sm:$0xff] %v268_v16  ;;  %271 = vst [vmem:[%s3159_s5 + $0x88] sm:$0xff] %v270_v17  ;;  %v274_v19 = vld [vmem:[%s3154_s29 + $0x218] sm:$0xff]  ;;  %v276_v20 = vld [vmem:[%s3154_s29 + $0x220] sm:$0xff] }
  0x30   : > { %273 = vst [vmem:[%s3159_s5 + $0x90] sm:$0xff] %v272_v18  ;;  %275 = vst [vmem:[%s3159_s5 + $0x98] sm:$0xff] %v274_v19  ;;  %v278_v21 = vld [vmem:[%s3154_s29 + $0x228] sm:$0xff]  ;;  %v280_v22 = vld [vmem:[%s3154_s29 + $0x230] sm:$0xff] }
  0x31   : > { %277 = vst [vmem:[%s3159_s5 + $0xa0] sm:$0xff] %v276_v20  ;;  %v282_v23 = vld [vmem:[%s3154_s29 + $0x238] sm:$0xff]  ;;  %279 = vst [vmem:[%s3159_s5 + $0xa8] sm:$0xff] %v278_v21  ;;  %v284_v24 = vld [vmem:[%s3154_s29 + $0x300] sm:$0xff] }
  0x32   : > { %281 = vst [vmem:[%s3159_s5 + $0xb0] sm:$0xff] %v280_v22  ;;  %283 = vst [vmem:[%s3159_s5 + $0xb8] sm:$0xff] %v282_v23  ;;  %v286_v25 = vld [vmem:[%s3154_s29 + $0x308] sm:$0xff]  ;;  %v288_v26 = vld [vmem:[%s3154_s29 + $0x310] sm:$0xff] }
  0x33   : > { %285 = vst [vmem:[%s3159_s5 + $0xc0] sm:$0xff] %v284_v24  ;;  %287 = vst [vmem:[%s3159_s5 + $0xc8] sm:$0xff] %v286_v25  ;;  %v290_v27 = vld [vmem:[%s3154_s29 + $0x318] sm:$0xff]  ;;  %v292_v28 = vld [vmem:[%s3154_s29 + $0x320] sm:$0xff] }
  0x34   : > { %289 = vst [vmem:[%s3159_s5 + $0xd0] sm:$0xff] %v288_v26  ;;  %v294_v29 = vld [vmem:[%s3154_s29 + $0x328] sm:$0xff]  ;;  %291 = vst [vmem:[%s3159_s5 + $0xd8] sm:$0xff] %v290_v27  ;;  %v296_v30 = vld [vmem:[%s3154_s29 + $0x330] sm:$0xff] }
  0x35   : > { %293 = vst [vmem:[%s3159_s5 + $0xe0] sm:$0xff] %v292_v28  ;;  %295 = vst [vmem:[%s3159_s5 + $0xe8] sm:$0xff] %v294_v29  ;;  %v298_v31 = vld [vmem:[%s3154_s29 + $0x338] sm:$0xff] }
  0x36   : > { %297 = vst [vmem:[%s3159_s5 + $0xf0] sm:$0xff] %v296_v30  ;;  %299 = vst [vmem:[%s3159_s5 + $0xf8] sm:$0xff] %v298_v31 }
  0x37 PF: > { %p2303_p0 = scmp.ge.s32.totalorder %s3026_s24, 1  ;;  %p316_p1 = scmp.lt.s32.totalorder %s3026_s24, 9 }
  0x39   : > { %p317_p2 = pnand %p2303_p0, %p316_p1 }
  0x3a   : > { %s323_s13 = sand.u32 (!%p317_p2), 1, %s3002_s18   ;;  %s3477_s14 = sand.u32 (!%p317_p2), 1, %s2994_s16  }
  0x3b   : > { %320 = sbr.rel (%p317_p2) target bundleno = 471 (0x1d7), region = 51  ;;  %s2304_s25 = sshll.u32 (!%p317_p2), %s323_s13, 8 }
  0x3c   : > { %s3228_s26 = sshll.u32 (!%p317_p2), %s3477_s14, 1  ;;  %s2306_s30 = sshll.u32 (!%p317_p2), %s3010_s20, 8 }
  0x3d   : > { %p386_p3 = scmp.lt.s32.totalorder (!%p317_p2), %s3014_s21, 1  ;;  %p374_p4 = scmp.lt.s32.totalorder (!%p317_p2), %s2306_s30, 1023 }
  0x3e   : > { %s3243_s14 = scalar_lea.vmem (!%p317_p2), [#allocation3], %s2304_s25  ;;  %s370_s27 = scalar_lea.vmem (!%p317_p2), [#allocation4], %s3228_s26 }
  0x3f   : > { %p2310_p5 = scmp.ne.s32.totalorder (!%p317_p2), %s3010_s20, 0 }
  0x40   : > { %s387_s8 = scalar_select %p386_p3, %s3014_s21, 1 }
  0x41   : > { %s3505_s30 = smov (!%p374_p4, %s2306_s30), 1023  ;;  %402 = sbr.rel (%p2310_p5) target bundleno = 73 (0x49), region = 59 }
  0x42   : > { %s2477_s9 = sshll.u32 %s387_s8, 5  ;;  %s2307_s6 = sshll.u32 %s3505_s30, 2 }
  0x43   : > { %s3236_s0 = scalar_lea.vmem %s3474_s3, %s2477_s9  ;;  %s3241_s13 = scalar_lea.vmem %s3472_s1, %s2307_s6 }
  0x46   : > { %v3028_v32 = vmov 0.0  }
  0x47   : > { %403 = vst [vmem:[#allocation2 + $0x10] sm:$0xff] %v3028_v32  ;;  %404 = vst [vmem:[#allocation2] sm:$0xff] %v3028_v32 }
  0x48   : > { %405 = vst [vmem:[#allocation2 + $0x18] sm:$0xff] %v3028_v32  ;;  %406 = vst [vmem:[#allocation2 + $0x8] sm:$0xff] %v3028_v32 }
  0x49 PF: > { %v2790_v33 = vld [vmem:[%s3241_s13 + $0x78] sm:$0xff]   ;;  %v2794_v37 = vld [vmem:[%s3241_s13 + $0x70] sm:$0xff]   ;;  %v2798_v41 = vld [vmem:[%s3241_s13 + $0x68] sm:$0xff]   ;;  %p2471_p6 = scmp.ne.s32.totalorder %s3010_s20, 3 }
  0x4a   : > { %v2791_v34 = vld [vmem:[%s3241_s13 + $0xf8] sm:$0xff]   ;;  %2478 = vmatprep.subr.bf16.mxu0 %v2790_v33  ;;  %v2795_v38 = vld [vmem:[%s3241_s13 + $0xf0] sm:$0xff]   ;;  %v2799_v42 = vld [vmem:[%s3241_s13 + $0xe8] sm:$0xff]  }
  0x4b   : > { %v2792_v35 = vld [vmem:[%s3241_s13 + $0x38] sm:$0xff]   ;;  %2506 = vmatprep.subr.bf16.mxu1 %v2791_v34  ;;  %v2796_v39 = vld [vmem:[%s3241_s13 + $0x30] sm:$0xff]   ;;  %v2800_v43 = vld [vmem:[%s3241_s13 + $0x28] sm:$0xff]  }
  0x4c   : > { %v2793_v36 = vld [vmem:[%s3241_s13 + $0xb8] sm:$0xff]   ;;  %2479 = vmatpush3.bf16.msra.mxu0 %v2792_v35  ;;  %v2797_v40 = vld [vmem:[%s3241_s13 + $0xb0] sm:$0xff]   ;;  %v2801_v44 = vld [vmem:[%s3241_s13 + $0xa8] sm:$0xff]  }
  0x4d   : > { %2507 = vmatpush3.bf16.msra.mxu1 %v2793_v36  ;;  %2480 = vmatprep.subr.bf16.mxu0 %v2794_v37  ;;  %v2802_v45 = vld [vmem:[%s3241_s13 + $0x60] sm:$0xff]   ;;  %v2806_v49 = vld [vmem:[%s3241_s13 + $0x58] sm:$0xff]   ;;  %v2810_v53 = vld [vmem:[%s3241_s13 + $0x50] sm:$0xff]  }
  0x4e   : > { %2508 = vmatprep.subr.bf16.mxu1 %v2795_v38  ;;  %v2803_v46 = vld [vmem:[%s3241_s13 + $0xe0] sm:$0xff]   ;;  %v2807_v50 = vld [vmem:[%s3241_s13 + $0xd8] sm:$0xff]   ;;  %v2811_v54 = vld [vmem:[%s3241_s13 + $0xd0] sm:$0xff]  }
  0x4f   : > { %v2804_v47 = vld [vmem:[%s3241_s13 + $0x20] sm:$0xff]   ;;  %v2808_v51 = vld [vmem:[%s3241_s13 + $0x18] sm:$0xff]   ;;  %v2812_v55 = vld [vmem:[%s3241_s13 + $0x10] sm:$0xff]  }
  0x50   : > { %2481 = vmatpush3.bf16.msra.mxu0 %v2796_v39  ;;  %v2805_v48 = vld [vmem:[%s3241_s13 + $0xa0] sm:$0xff]   ;;  %v2809_v52 = vld [vmem:[%s3241_s13 + $0x98] sm:$0xff]   ;;  %v2813_v56 = vld [vmem:[%s3241_s13 + $0x90] sm:$0xff]  }
  0x51   : > { %2509 = vmatpush3.bf16.msra.mxu1 %v2797_v40  ;;  %2482 = vmatprep.subr.bf16.mxu0 %v2798_v41  ;;  %v2814_v57 = vld [vmem:[%s3241_s13 + $0x48] sm:$0xff]   ;;  %v2818_v61 = vld [vmem:[%s3241_s13 + $0x40] sm:$0xff]   ;;  %v2822_v9 = vld [vmem:[%s3241_s13 + $0x178] sm:$0xff]  }
  0x52   : > { %2510 = vmatprep.subr.bf16.mxu1 %v2799_v42  ;;  %v2815_v58 = vld [vmem:[%s3241_s13 + $0xc8] sm:$0xff]   ;;  %v2819_v62 = vld [vmem:[%s3241_s13 + $0xc0] sm:$0xff]   ;;  %v2823_v10 = vld [vmem:[%s3241_s13 + $0x1f8] sm:$0xff]  }
  0x53   : > { %v2816_v59 = vld [vmem:[%s3241_s13 + $0x8] sm:$0xff]   ;;  %v2820_v63 = vld [vmem:[%s3241_s13] sm:$0xff]   ;;  %v2824_v11 = vld [vmem:[%s3241_s13 + $0x138] sm:$0xff]  }
  0x54   : > { %2483 = vmatpush3.bf16.msra.mxu0 %v2800_v43  ;;  %v2817_v60 = vld [vmem:[%s3241_s13 + $0x88] sm:$0xff]   ;;  %v2821_v0 = vld [vmem:[%s3241_s13 + $0x80] sm:$0xff]   ;;  %v2825_v12 = vld [vmem:[%s3241_s13 + $0x1b8] sm:$0xff]  }
  0x55   : > { %2511 = vmatpush3.bf16.msra.mxu1 %v2801_v44  ;;  %2484 = vmatprep.subr.bf16.mxu0 %v2802_v45  ;;  %v411_v1 = vld [vmem:[%s3243_s14] sm:$0xff]  ;;  %v412_v3 = vld [vmem:[%s3243_s14 + $0x8] sm:$0xff]  ;;  %v2826_v13 = vld [vmem:[%s3241_s13 + $0x170] sm:$0xff]  }
  0x56   : > { %2512 = vmatprep.subr.bf16.mxu1 %v2803_v46  ;;  %v419_v2 = vld [vmem:[%s3243_s14 + $0x40] sm:$0xff]  ;;  %v420_v6 = vld [vmem:[%s3243_s14 + $0x48] sm:$0xff]  ;;  %v2827_v14 = vld [vmem:[%s3241_s13 + $0x1f0] sm:$0xff]  }
  0x57   : > { %v2311_v4 = vcombine.low %v411_v1, %v419_v2  ;;  %v2312_v5 = vcombine.high %v411_v1, %v419_v2  ;;  %v2313_v7 = vcombine.low %v412_v3, %v420_v6  ;;  %v2314_v8 = vcombine.high %v412_v3, %v420_v6  ;;  %v2828_v15 = vld [vmem:[%s3241_s13 + $0x130] sm:$0xff]   ;;  %v2830_v17 = vld [vmem:[%s3241_s13 + $0x168] sm:$0xff]   ;;  %v2834_v21 = vld [vmem:[%s3241_s13 + $0x160] sm:$0xff]  }
  0x58   : > { %2485 = vmatpush3.bf16.msra.mxu0 %v2804_v47  ;;  %v2829_v16 = vld [vmem:[%s3241_s13 + $0x1b0] sm:$0xff]   ;;  %v2831_v18 = vld [vmem:[%s3241_s13 + $0x1e8] sm:$0xff]   ;;  %v2835_v22 = vld [vmem:[%s3241_s13 + $0x1e0] sm:$0xff]  }
  0x59   : > { %2513 = vmatpush3.bf16.msra.mxu1 %v2805_v48  ;;  %2486 = vmatprep.subr.bf16.mxu0 %v2806_v49  ;;  %v2832_v19 = vld [vmem:[%s3241_s13 + $0x128] sm:$0xff]   ;;  %v2836_v23 = vld [vmem:[%s3241_s13 + $0x120] sm:$0xff]   ;;  %v2838_v25 = vld [vmem:[%s3241_s13 + $0x158] sm:$0xff]  }
  0x5a   : > { %2514 = vmatprep.subr.bf16.mxu1 %v2807_v50  ;;  %1659 = vmatprep.mubr.bf16.mxu0 %v2312_v5  ;;  %v2833_v20 = vld [vmem:[%s3241_s13 + $0x1a8] sm:$0xff]   ;;  %v2837_v24 = vld [vmem:[%s3241_s13 + $0x1a0] sm:$0xff]   ;;  %v2839_v26 = vld [vmem:[%s3241_s13 + $0x1d8] sm:$0xff]  }
  0x5b   : > { %1708 = vmatprep.mubr.bf16.mxu1 %v2314_v8  ;;  %v2840_v27 = vld [vmem:[%s3241_s13 + $0x118] sm:$0xff]   ;;  %v427_v29 = vld [vmem:[%s3243_s14 + $0x80] sm:$0xff]  ;;  %v428_v32 = vld [vmem:[%s3243_s14 + $0x88] sm:$0xff] }
  0x5c   : > { %2487 = vmatpush3.bf16.msra.mxu0 %v2808_v51  ;;  %v2841_v28 = vld [vmem:[%s3241_s13 + $0x198] sm:$0xff]   ;;  %v435_v30 = vld [vmem:[%s3243_s14 + $0xc0] sm:$0xff]  ;;  %v436_v33 = vld [vmem:[%s3243_s14 + $0xc8] sm:$0xff] }
  0x5d   : > { %2515 = vmatpush3.bf16.msra.mxu1 %v2809_v52  ;;  %2488 = vmatprep.subr.bf16.mxu0 %v2810_v53  ;;  %v2328_v31 = vcombine.high %v427_v29, %v435_v30  ;;  %v2327_v34 = vcombine.low %v427_v29, %v435_v30  ;;  %v2330_v35 = vcombine.high %v428_v32, %v436_v33  ;;  %v2842_v37 = vld [vmem:[%s3241_s13 + $0x150] sm:$0xff]   ;;  %v2846_v41 = vld [vmem:[%s3241_s13 + $0x148] sm:$0xff]   ;;  %v2850_v45 = vld [vmem:[%s3241_s13 + $0x140] sm:$0xff]  }
  0x5e   : > { %2516 = vmatprep.subr.bf16.mxu1 %v2811_v54  ;;  %v2329_v36 = vcombine.low %v428_v32, %v436_v33  ;;  %v2843_v38 = vld [vmem:[%s3241_s13 + $0x1d0] sm:$0xff]   ;;  %v2847_v42 = vld [vmem:[%s3241_s13 + $0x1c8] sm:$0xff]   ;;  %v2851_v46 = vld [vmem:[%s3241_s13 + $0x1c0] sm:$0xff]  }
  0x5f   : > { %v2844_v39 = vld [vmem:[%s3241_s13 + $0x110] sm:$0xff]   ;;  %v2848_v43 = vld [vmem:[%s3241_s13 + $0x108] sm:$0xff]   ;;  %v2852_v47 = vld [vmem:[%s3241_s13 + $0x100] sm:$0xff]  }
  0x60   : > { %2489 = vmatpush3.bf16.msra.mxu0 %v2812_v55  ;;  %v2845_v40 = vld [vmem:[%s3241_s13 + $0x190] sm:$0xff]   ;;  %v2849_v44 = vld [vmem:[%s3241_s13 + $0x188] sm:$0xff]   ;;  %v2853_v48 = vld [vmem:[%s3241_s13 + $0x180] sm:$0xff]  }
  0x61   : > { %2517 = vmatpush3.bf16.msra.mxu1 %v2813_v56  ;;  %2490 = vmatprep.subr.bf16.mxu0 %v2814_v57  ;;  %v413_v49 = vld [vmem:[%s3243_s14 + $0x10] sm:$0xff]  ;;  %v414_v51 = vld [vmem:[%s3243_s14 + $0x18] sm:$0xff]  ;;  %v2862_v5 = vld [vmem:[%s3241_s13 + $0x268] sm:$0xff]  }
  0x62   : > { %2518 = vmatprep.subr.bf16.mxu1 %v2815_v58  ;;  %v421_v50 = vld [vmem:[%s3243_s14 + $0x50] sm:$0xff]  ;;  %v422_v52 = vld [vmem:[%s3243_s14 + $0x58] sm:$0xff]  ;;  %v2863_v6 = vld [vmem:[%s3241_s13 + $0x2e8] sm:$0xff]  }
  0x63   : > { %v2315_v53 = vcombine.low %v413_v49, %v421_v50  ;;  %v2316_v54 = vcombine.high %v413_v49, %v421_v50  ;;  %v2317_v55 = vcombine.low %v414_v51, %v422_v52  ;;  %v2318_v56 = vcombine.high %v414_v51, %v422_v52  ;;  %v2854_v57 = vld [vmem:[%s3241_s13 + $0x278] sm:$0xff]   ;;  %v429_v1 = vld [vmem:[%s3243_s14 + $0x90] sm:$0xff]  ;;  %v2882_v29 = vld [vmem:[%s3241_s13 + $0x240] sm:$0xff]  }
  0x64   : > { %2491 = vmatpush3.bf16.msra.mxu0 %v2816_v59  ;;  %v2855_v58 = vld [vmem:[%s3241_s13 + $0x2f8] sm:$0xff]   ;;  %v437_v2 = vld [vmem:[%s3243_s14 + $0xd0] sm:$0xff]  ;;  %v2883_v30 = vld [vmem:[%s3241_s13 + $0x2c0] sm:$0xff]  }
  0x65   : > { %2519 = vmatpush3.bf16.msra.mxu1 %v2817_v60  ;;  %2492 = vmatprep.subr.bf16.mxu0 %v2818_v61  ;;  %v2856_v59 = vld [vmem:[%s3241_s13 + $0x238] sm:$0xff]   ;;  %v2858_v61 = vld [vmem:[%s3241_s13 + $0x270] sm:$0xff]   ;;  %v2332_v3 = vcombine.high %v429_v1, %v437_v2  ;;  %v2885_v32 = vld [vmem:[%s3241_s13 + $0x280] sm:$0xff]  }
  0x66   : > { %2520 = vmatprep.subr.bf16.mxu1 %v2819_v62  ;;  %v2857_v60 = vld [vmem:[%s3241_s13 + $0x2b8] sm:$0xff]   ;;  %v2859_v62 = vld [vmem:[%s3241_s13 + $0x2f0] sm:$0xff]   ;;  %v415_v33 = vld [vmem:[%s3243_s14 + $0x20] sm:$0xff] }
  0x67   : > { %v438_v8 = vld [vmem:[%s3243_s14 + $0xd8] sm:$0xff]  ;;  %v431_v49 = vld [vmem:[%s3243_s14 + $0xa0] sm:$0xff] }
  0x68   : > { %2493 = vmatpush3.bf16.msra.mxu0 %v2820_v63  ;;  %v2860_v63 = vld [vmem:[%s3241_s13 + $0x230] sm:$0xff]   ;;  %v439_v50 = vld [vmem:[%s3243_s14 + $0xe0] sm:$0xff] }
  0x69   : > { %2521 = vmatpush3.bf16.msra.mxu1 %v2821_v0  ;;  %2534 = vmatprep.subr.bf16.mxu0 %v2822_v9  ;;  %v2861_v0 = vld [vmem:[%s3241_s13 + $0x2b0] sm:$0xff]   ;;  %v2336_v51 = vcombine.high %v431_v49, %v439_v50  ;;  %v2335_v52 = vcombine.low %v431_v49, %v439_v50 }
  0x6a   : > { %2562 = vmatprep.subr.bf16.mxu1 %v2823_v10  ;;  %v2864_v10 = vld [vmem:[%s3241_s13 + $0x228] sm:$0xff]  }
  0x6b   : > { %1660 = vmatmul.mubr.bf16.vlgmr.msra.gmra.mxu0 %v2311_v4  ;;  %v2331_v4 = vcombine.low %v429_v1, %v437_v2  ;;  %v2902_v1 = vld [vmem:[%s3241_s13 + $0x358] sm:$0xff]  }
  0x6c   : > { %1709 = vmatmul.mubr.bf16.vlgmr.msra.gmra.mxu1 %v2313_v7  ;;  %2535 = vmatpush3.bf16.msra.mxu0 %v2824_v11  ;;  %v430_v7 = vld [vmem:[%s3243_s14 + $0x98] sm:$0xff] }
  0x6d   : > { %2563 = vmatpush3.bf16.msra.mxu1 %v2825_v12  ;;  %2536 = vmatprep.subr.bf16.mxu0 %v2826_v13  ;;  %v2334_v9 = vcombine.high %v430_v7, %v438_v8  ;;  %v2333_v11 = vcombine.low %v430_v7, %v438_v8  ;;  %v2865_v12 = vld [vmem:[%s3241_s13 + $0x2a8] sm:$0xff]   ;;  %v2866_v13 = vld [vmem:[%s3241_s13 + $0x260] sm:$0xff]   ;;  %v2903_v2 = vld [vmem:[%s3241_s13 + $0x3d8] sm:$0xff]  }
  0x6e   : > { %2564 = vmatprep.subr.bf16.mxu1 %v2827_v14  ;;  %1667 = vmatprep.mubr.bf16.mxu0 %v2328_v31  ;;  %v2867_v14 = vld [vmem:[%s3241_s13 + $0x2e0] sm:$0xff]   ;;  %v2908_v7 = vld [vmem:[%s3241_s13 + $0x310] sm:$0xff]  }
  0x6f   : > { %1716 = vmatprep.mubr.bf16.mxu1 %v2330_v35  ;;  %v2884_v31 = vld [vmem:[%s3241_s13 + $0x200] sm:$0xff]   ;;  %v2909_v8 = vld [vmem:[%s3241_s13 + $0x390] sm:$0xff]  }
  0x70   : > { %2537 = vmatpush3.bf16.msra.mxu0 %v2828_v15  ;;  %v2868_v15 = vld [vmem:[%s3241_s13 + $0x220] sm:$0xff]  }
  0x71   : > { %2565 = vmatpush3.bf16.msra.mxu1 %v2829_v16  ;;  %2538 = vmatprep.subr.bf16.mxu0 %v2830_v17  ;;  %v2869_v16 = vld [vmem:[%s3241_s13 + $0x2a0] sm:$0xff]   ;;  %v2870_v17 = vld [vmem:[%s3241_s13 + $0x258] sm:$0xff]  }
  0x72   : > { %2566 = vmatprep.subr.bf16.mxu1 %v2831_v18  ;;  %v2871_v18 = vld [vmem:[%s3241_s13 + $0x2d8] sm:$0xff]  }
  0x73   : > { %1668 = vmatmul.mubr.bf16.gmra.mxu0 %v2327_v34  ;;  %v423_v34 = vld [vmem:[%s3243_s14 + $0x60] sm:$0xff] }
  0x74   : > { %2539 = vmatpush3.bf16.msra.mxu0 %v2832_v19  ;;  %1717 = vmatmul.mubr.bf16.gmra.mxu1 %v2329_v36  ;;  %v2872_v19 = vld [vmem:[%s3241_s13 + $0x218] sm:$0xff]   ;;  %v2319_v35 = vcombine.low %v415_v33, %v423_v34  ;;  %v2320_v36 = vcombine.high %v415_v33, %v423_v34 }
  0x75   : > { %2567 = vmatpush3.bf16.msra.mxu1 %v2833_v20  ;;  %2540 = vmatprep.subr.bf16.mxu0 %v2834_v21  ;;  %v2873_v20 = vld [vmem:[%s3241_s13 + $0x298] sm:$0xff]   ;;  %v2874_v21 = vld [vmem:[%s3241_s13 + $0x250] sm:$0xff]  }
  0x76   : > { %2568 = vmatprep.subr.bf16.mxu1 %v2835_v22  ;;  %1757 = vmatprep.mubr.bf16.mxu0 %v2316_v54  ;;  %v2875_v22 = vld [vmem:[%s3241_s13 + $0x2d0] sm:$0xff]   ;;  %v2895_v54 = vld [vmem:[%s3241_s13 + $0x3e8] sm:$0xff]  }
  0x77   : > { %1806 = vmatprep.mubr.bf16.mxu1 %v2318_v56  ;;  %v440_v56 = vld [vmem:[%s3243_s14 + $0xe8] sm:$0xff] }
  0x78   : > { %2541 = vmatpush3.bf16.msra.mxu0 %v2836_v23  ;;  %v2876_v23 = vld [vmem:[%s3241_s13 + $0x210] sm:$0xff]  }
  0x79   : > { %2569 = vmatpush3.bf16.msra.mxu1 %v2837_v24  ;;  %2542 = vmatprep.subr.bf16.mxu0 %v2838_v25  ;;  %v2877_v24 = vld [vmem:[%s3241_s13 + $0x290] sm:$0xff]   ;;  %v2878_v25 = vld [vmem:[%s3241_s13 + $0x248] sm:$0xff]  }
  0x7a   : > { %2570 = vmatprep.subr.bf16.mxu1 %v2839_v26  ;;  %v2879_v26 = vld [vmem:[%s3241_s13 + $0x2c8] sm:$0xff]  }
  0x7c   : > { %2543 = vmatpush3.bf16.msra.mxu0 %v2840_v27  ;;  %v2880_v27 = vld [vmem:[%s3241_s13 + $0x208] sm:$0xff]  }
  0x7d   : > { %2571 = vmatpush3.bf16.msra.mxu1 %v2841_v28  ;;  %2544 = vmatprep.subr.bf16.mxu0 %v2842_v37  ;;  %v2881_v28 = vld [vmem:[%s3241_s13 + $0x288] sm:$0xff]  }
  0x7e   : > { %2572 = vmatprep.subr.bf16.mxu1 %v2843_v38  ;;  %v416_v37 = vld [vmem:[%s3243_s14 + $0x28] sm:$0xff] }
  0x7f   : > { %v424_v38 = vld [vmem:[%s3243_s14 + $0x68] sm:$0xff] }
  0x80   : > { %2545 = vmatpush3.bf16.msra.mxu0 %v2844_v39  ;;  %v2321_v39 = vcombine.low %v416_v37, %v424_v38 }
  0x81   : > { %2573 = vmatpush3.bf16.msra.mxu1 %v2845_v40  ;;  %2546 = vmatprep.subr.bf16.mxu0 %v2846_v41  ;;  %v2322_v40 = vcombine.high %v416_v37, %v424_v38  ;;  %v2886_v41 = vld [vmem:[%s3241_s13 + $0x378] sm:$0xff]  }
  0x82   : > { %2574 = vmatprep.subr.bf16.mxu1 %v2847_v42  ;;  %v2887_v42 = vld [vmem:[%s3241_s13 + $0x3f8] sm:$0xff]  }
  0x84   : > { %2547 = vmatpush3.bf16.msra.mxu0 %v2848_v43  ;;  %v2888_v43 = vld [vmem:[%s3241_s13 + $0x338] sm:$0xff]  }
  0x85   : > { %2575 = vmatpush3.bf16.msra.mxu1 %v2849_v44  ;;  %2548 = vmatprep.subr.bf16.mxu0 %v2850_v45  ;;  %v2889_v44 = vld [vmem:[%s3241_s13 + $0x3b8] sm:$0xff]   ;;  %v2890_v45 = vld [vmem:[%s3241_s13 + $0x370] sm:$0xff]  }
  0x86   : > { %2576 = vmatprep.subr.bf16.mxu1 %v2851_v46  ;;  %v2891_v46 = vld [vmem:[%s3241_s13 + $0x3f0] sm:$0xff]  }
  0x88   : > { %2549 = vmatpush3.bf16.msra.mxu0 %v2852_v47  ;;  %v2892_v47 = vld [vmem:[%s3241_s13 + $0x330] sm:$0xff]  }
  0x89   : > { %2577 = vmatpush3.bf16.msra.mxu1 %v2853_v48  ;;  %2590 = vmatprep.subr.bf16.mxu0 %v2854_v57  ;;  %v2893_v48 = vld [vmem:[%s3241_s13 + $0x3b0] sm:$0xff]  }
  0x8a   : > { %2618 = vmatprep.subr.bf16.mxu1 %v2855_v58  ;;  %v2896_v58 = vld [vmem:[%s3241_s13 + $0x328] sm:$0xff]  }
  0x8b   : > { %1758 = vmatmul.mubr.bf16.vlgmr.msra.gmra.mxu0 %v2315_v53  ;;  %v2894_v53 = vld [vmem:[%s3241_s13 + $0x368] sm:$0xff]  }
  0x8c   : > { %1807 = vmatmul.mubr.bf16.vlgmr.msra.gmra.mxu1 %v2317_v55  ;;  %2591 = vmatpush3.bf16.msra.mxu0 %v2856_v59  ;;  %v432_v55 = vld [vmem:[%s3243_s14 + $0xa8] sm:$0xff] }
  0x8d   : > { %2619 = vmatpush3.bf16.msra.mxu1 %v2857_v60  ;;  %2592 = vmatprep.subr.bf16.mxu0 %v2858_v61  ;;  %v2338_v57 = vcombine.high %v432_v55, %v440_v56  ;;  %v2337_v59 = vcombine.low %v432_v55, %v440_v56  ;;  %v2897_v60 = vld [vmem:[%s3241_s13 + $0x3a8] sm:$0xff]   ;;  %v2898_v61 = vld [vmem:[%s3241_s13 + $0x360] sm:$0xff]  }
  0x8e   : > { %2620 = vmatprep.subr.bf16.mxu1 %v2859_v62  ;;  %1765 = vmatprep.mubr.bf16.mxu0 %v2332_v3  ;;  %v2899_v62 = vld [vmem:[%s3241_s13 + $0x3e0] sm:$0xff]   ;;  %v2904_v3 = vld [vmem:[%s3241_s13 + $0x318] sm:$0xff]  }
  0x8f   : > { %1814 = vmatprep.mubr.bf16.mxu1 %v2334_v9  ;;  %v2910_v9 = vld [vmem:[%s3241_s13 + $0x348] sm:$0xff]  }
  0x90   : > { %2593 = vmatpush3.bf16.msra.mxu0 %v2860_v63  ;;  %v2900_v63 = vld [vmem:[%s3241_s13 + $0x320] sm:$0xff]  }
  0x91   : > { %2621 = vmatpush3.bf16.msra.mxu1 %v2861_v0  ;;  %2594 = vmatprep.subr.bf16.mxu0 %v2862_v5  ;;  %v2901_v0 = vld [vmem:[%s3241_s13 + $0x3a0] sm:$0xff]   ;;  %v2906_v5 = vld [vmem:[%s3241_s13 + $0x350] sm:$0xff]  }
  0x92   : > { %2622 = vmatprep.subr.bf16.mxu1 %v2863_v6  ;;  %v2907_v6 = vld [vmem:[%s3241_s13 + $0x3d0] sm:$0xff]  }
  0x93   : > { %1766 = vmatmul.mubr.bf16.gmra.mxu0 %v2331_v4  ;;  %v2905_v4 = vld [vmem:[%s3241_s13 + $0x398] sm:$0xff]  }
  0x94   : > { %2595 = vmatpush3.bf16.msra.mxu0 %v2864_v10  ;;  %1815 = vmatmul.mubr.bf16.gmra.mxu1 %v2333_v11  ;;  %v2911_v10 = vld [vmem:[%s3241_s13 + $0x3c8] sm:$0xff]  }
  0x95   : > { %2623 = vmatpush3.bf16.msra.mxu1 %v2865_v12  ;;  %2596 = vmatprep.subr.bf16.mxu0 %v2866_v13  ;;  %v2912_v11 = vld [vmem:[%s3241_s13 + $0x308] sm:$0xff]   ;;  %v2914_v13 = vld [vmem:[%s3241_s13 + $0x340] sm:$0xff]  }
  0x96   : > { %2624 = vmatprep.subr.bf16.mxu1 %v2867_v14  ;;  %1855 = vmatprep.mubr.bf16.mxu0 %v2320_v36  ;;  %v2913_v12 = vld [vmem:[%s3241_s13 + $0x388] sm:$0xff]   ;;  %v2915_v14 = vld [vmem:[%s3241_s13 + $0x3c0] sm:$0xff]  }
  0x97   : > { %1904 = vmatprep.mubr.bf16.mxu1 %v2322_v40 }
  0x98   : > { %2597 = vmatpush3.bf16.msra.mxu0 %v2868_v15  ;;  %v2916_v15 = vld [vmem:[%s3241_s13 + $0x300] sm:$0xff]  }
  0x99   : > { %2625 = vmatpush3.bf16.msra.mxu1 %v2869_v16  ;;  %2598 = vmatprep.subr.bf16.mxu0 %v2870_v17  ;;  %v2917_v16 = vld [vmem:[%s3241_s13 + $0x380] sm:$0xff]   ;;  %v417_v17 = vld [vmem:[%s3243_s14 + $0x30] sm:$0xff] }
  0x9a   : > { %2626 = vmatprep.subr.bf16.mxu1 %v2871_v18  ;;  %v425_v18 = vld [vmem:[%s3243_s14 + $0x70] sm:$0xff] }
  0x9c   : > { %2599 = vmatpush3.bf16.msra.mxu0 %v2872_v19  ;;  %v418_v19 = vld [vmem:[%s3243_s14 + $0x38] sm:$0xff] }
  0x9d   : > { %2627 = vmatpush3.bf16.msra.mxu1 %v2873_v20  ;;  %2600 = vmatprep.subr.bf16.mxu0 %v2874_v21  ;;  %v2323_v20 = vcombine.low %v417_v17, %v425_v18  ;;  %v2324_v21 = vcombine.high %v417_v17, %v425_v18 }
  0x9e   : > { %2628 = vmatprep.subr.bf16.mxu1 %v2875_v22  ;;  %v426_v22 = vld [vmem:[%s3243_s14 + $0x78] sm:$0xff] }
  0xa0   : > { %2601 = vmatpush3.bf16.msra.mxu0 %v2876_v23  ;;  %v433_v23 = vld [vmem:[%s3243_s14 + $0xb0] sm:$0xff] }
  0xa1   : > { %2629 = vmatpush3.bf16.msra.mxu1 %v2877_v24  ;;  %2602 = vmatprep.subr.bf16.mxu0 %v2878_v25  ;;  %v441_v24 = vld [vmem:[%s3243_s14 + $0xf0] sm:$0xff]  ;;  %v2325_v25 = vcombine.low %v418_v19, %v426_v22 }
  0xa2   : > { %2630 = vmatprep.subr.bf16.mxu1 %v2879_v26  ;;  %v2326_v26 = vcombine.high %v418_v19, %v426_v22 }
  0xa4   : > { %2603 = vmatpush3.bf16.msra.mxu0 %v2880_v27  ;;  %v2340_v27 = vcombine.high %v433_v23, %v441_v24 }
  0xa5   : > { %2631 = vmatpush3.bf16.msra.mxu1 %v2881_v28  ;;  %2604 = vmatprep.subr.bf16.mxu0 %v2882_v29  ;;  %v434_v28 = vld [vmem:[%s3243_s14 + $0xb8] sm:$0xff] }
  0xa6   : > { %2632 = vmatprep.subr.bf16.mxu1 %v2883_v30  ;;  %v442_v29 = vld [vmem:[%s3243_s14 + $0xf8] sm:$0xff] }
  0xa7   : > { %v2342_v30 = vcombine.high %v434_v28, %v442_v29 }
  0xa8   : > { %2605 = vmatpush3.bf16.msra.mxu0 %v2884_v31  ;;  %v2339_v31 = vcombine.low %v433_v23, %v441_v24 }
  0xa9   : > { %2633 = vmatpush3.bf16.msra.mxu1 %v2885_v32  ;;  %2646 = vmatprep.subr.bf16.mxu0 %v2886_v41  ;;  %v2341_v32 = vcombine.low %v434_v28, %v442_v29 }
  0xaa   : > { %2674 = vmatprep.subr.bf16.mxu1 %v2887_v42 }
  0xab   : > { %1856 = vmatmul.mubr.bf16.vlgmr.msra.gmra.mxu0 %v2319_v35 }
  0xac   : > { %1905 = vmatmul.mubr.bf16.vlgmr.msra.gmra.mxu1 %v2321_v39  ;;  %2647 = vmatpush3.bf16.msra.mxu0 %v2888_v43 }
  0xad   : > { %2675 = vmatpush3.bf16.msra.mxu1 %v2889_v44  ;;  %2648 = vmatprep.subr.bf16.mxu0 %v2890_v45 }
  0xae   : > { %2676 = vmatprep.subr.bf16.mxu1 %v2891_v46  ;;  %1863 = vmatprep.mubr.bf16.mxu0 %v2336_v51 }
  0xaf   : > { %1912 = vmatprep.mubr.bf16.mxu1 %v2338_v57 }
  0xb0   : > { %2649 = vmatpush3.bf16.msra.mxu0 %v2892_v47 }
  0xb1   : > { %2677 = vmatpush3.bf16.msra.mxu1 %v2893_v48  ;;  %2650 = vmatprep.subr.bf16.mxu0 %v2894_v53 }
  0xb2   : > { %2678 = vmatprep.subr.bf16.mxu1 %v2895_v54 }
  0xb3   : > { %1864 = vmatmul.mubr.bf16.gmra.mxu0 %v2335_v52 }
  0xb4   : > { %2651 = vmatpush3.bf16.msra.mxu0 %v2896_v58  ;;  %1913 = vmatmul.mubr.bf16.gmra.mxu1 %v2337_v59 }
  0xb5   : > { %2679 = vmatpush3.bf16.msra.mxu1 %v2897_v60  ;;  %2652 = vmatprep.subr.bf16.mxu0 %v2898_v61 }
  0xb6   : > { %2680 = vmatprep.subr.bf16.mxu1 %v2899_v62  ;;  %1953 = vmatprep.mubr.bf16.mxu0 %v2324_v21 }
  0xb7   : > { %2002 = vmatprep.mubr.bf16.mxu1 %v2326_v26 }
  0xb8   : > { %2653 = vmatpush3.bf16.msra.mxu0 %v2900_v63 }
  0xb9   : > { %2681 = vmatpush3.bf16.msra.mxu1 %v2901_v0  ;;  %2654 = vmatprep.subr.bf16.mxu0 %v2902_v1 }
  0xba   : > { %2682 = vmatprep.subr.bf16.mxu1 %v2903_v2 }
  0xbc   : > { %2655 = vmatpush3.bf16.msra.mxu0 %v2904_v3 }
  0xbd   : > { %2683 = vmatpush3.bf16.msra.mxu1 %v2905_v4  ;;  %2656 = vmatprep.subr.bf16.mxu0 %v2906_v5 }
  0xbe   : > { %2684 = vmatprep.subr.bf16.mxu1 %v2907_v6 }
  0xc0   : > { %2657 = vmatpush3.bf16.msra.mxu0 %v2908_v7 }
  0xc1   : > { %2685 = vmatpush3.bf16.msra.mxu1 %v2909_v8  ;;  %2658 = vmatprep.subr.bf16.mxu0 %v2910_v9 }
  0xc2   : > { %2686 = vmatprep.subr.bf16.mxu1 %v2911_v10 }
  0xc4   : > { %2659 = vmatpush3.bf16.msra.mxu0 %v2912_v11 }
  0xc5   : > { %2687 = vmatpush3.bf16.msra.mxu1 %v2913_v12  ;;  %2660 = vmatprep.subr.bf16.mxu0 %v2914_v13 }
  0xc6   : > { %2688 = vmatprep.subr.bf16.mxu1 %v2915_v14 }
  0xc8   : > { %2661 = vmatpush3.bf16.msra.mxu0 %v2916_v15 }
  0xc9   : > { %2689 = vmatpush3.bf16.msra.mxu1 %v2917_v16 }
  0xcb   : > { %1954 = vmatmul.mubr.bf16.vlgmr.msra.gmra.mxu0 %v2323_v20 }
  0xcc   : > { %2003 = vmatmul.mubr.bf16.vlgmr.msra.gmra.mxu1 %v2325_v25  ;;  %1961 = vmatprep.mubr.bf16.mxu0 %v2340_v27 }
  0xcd   : > { %2010 = vmatprep.mubr.bf16.mxu1 %v2342_v30 }
  0xd3   : > { %1962 = vmatmul.mubr.bf16.gmra.mxu0 %v2339_v31 }
  0xd4   : > { %2011 = vmatmul.mubr.bf16.gmra.mxu1 %v2341_v32 }
 0x12b   : > { %v2494_v33 = vpop.f32.mrf.mxu0 }
 0x12c   : > { %v2522_v35 = vpop.f32.mrf.mxu1 }
 0x12d   : > { %v2495_v34 = vpop.f32.mrf.mxu0 }
 0x12e   : > { %v2523_v37 = vpop.f32.mrf.mxu1  ;;  %v2496_v10 = vadd.f32 %v2495_v34, %v2494_v33 }
 0x12f   : > { %v2497_v36 = vpop.f32.mrf.mxu0  ;;  %v2524_v11 = vadd.f32 %v2523_v37, %v2522_v35 }
 0x130   : > { %v2525_v39 = vpop.f32.mrf.mxu1 }
 0x131   : > { %v2498_v38 = vpop.f32.mrf.mxu0  ;;  %v1711_v15 = vadd.f32 %v2524_v11, %v2496_v10 }
 0x132   : > { %v2526_v41 = vpop.f32.mrf.mxu1  ;;  %v2499_v16 = vadd.f32 %v2498_v38, %v2497_v36 }
 0x133   : > { %v2500_v40 = vpop.f32.mrf.mxu0  ;;  %v2527_v17 = vadd.f32 %v2526_v41, %v2525_v39 }
 0x134   : > { %v2528_v43 = vpop.f32.mrf.mxu1 }
 0x135   : > { %v2501_v42 = vpop.f32.mrf.mxu0  ;;  %v1714_v25 = vadd.f32 %v2527_v17, %v2499_v16 }
 0x136   : > { %v2529_v45 = vpop.f32.mrf.mxu1  ;;  %v2502_v22 = vadd.f32 %v2501_v42, %v2500_v40 }
 0x137   : > { %v2503_v44 = vpop.f32.mrf.mxu0  ;;  %v2530_v23 = vadd.f32 %v2529_v45, %v2528_v43 }
 0x138   : > { %v2531_v47 = vpop.f32.mrf.mxu1 }
 0x139   : > { %v2504_v46 = vpop.f32.mrf.mxu0  ;;  %v1719_v31 = vadd.f32 %v2530_v23, %v2502_v22 }
 0x13a   : > { %v2532_v49 = vpop.f32.mrf.mxu1  ;;  %v2505_v32 = vadd.f32 %v2504_v46, %v2503_v44 }
 0x13b   : > { %v2533_v33 = vadd.f32 %v2532_v49, %v2531_v47 }
 0x14b   : > { %v2550_v48 = vpop.f32.mrf.mxu0 }
 0x14c   : > { %v2578_v51 = vpop.f32.mrf.mxu1 }
 0x14d   : > { %v2551_v50 = vpop.f32.mrf.mxu0 }
 0x14e   : > { %v2579_v53 = vpop.f32.mrf.mxu1  ;;  %v2552_v13 = vadd.f32 %v2551_v50, %v2550_v48  ;;  %v1722_v50 = vadd.f32 %v2533_v33, %v2505_v32 }
 0x14f   : > { %v2553_v52 = vpop.f32.mrf.mxu0  ;;  %v2580_v20 = vadd.f32 %v2579_v53, %v2578_v51 }
 0x150   : > { %v2581_v55 = vpop.f32.mrf.mxu1  ;;  %v1760_v19 = vadd.f32 %v2552_v13, %v1711_v15 }
 0x151   : > { %v2554_v54 = vpop.f32.mrf.mxu0 }
 0x152   : > { %v2582_v57 = vpop.f32.mrf.mxu1  ;;  %v2555_v21 = vadd.f32 %v2554_v54, %v2553_v52  ;;  %v1809_v29 = vadd.f32 %v2580_v20, %v1760_v19 }
 0x153   : > { %v2556_v56 = vpop.f32.mrf.mxu0  ;;  %v2583_v35 = vadd.f32 %v2582_v57, %v2581_v55 }
 0x154   : > { %v2584_v58 = vpop.f32.mrf.mxu1  ;;  %v1763_v30 = vadd.f32 %v2555_v21, %v1714_v25  ;;  %v409_v25 = vld [vmem:[#allocation2 + $0x18] sm:$0xff] }
 0x155   : > { %v2557_v59 = vpop.f32.mrf.mxu0 }
 0x156   : > { %v2585_v60 = vpop.f32.mrf.mxu1  ;;  %v2558_v28 = vadd.f32 %v2557_v59, %v2556_v56  ;;  %v1812_v43 = vadd.f32 %v2583_v35, %v1763_v30 }
 0x157   : > { %v2559_v61 = vpop.f32.mrf.mxu0  ;;  %v2586_v48 = vadd.f32 %v2585_v60, %v2584_v58 }
 0x158   : > { %v2587_v62 = vpop.f32.mrf.mxu1  ;;  %v1768_v41 = vadd.f32 %v2558_v28, %v1719_v31 }
 0x159   : > { %v2560_v63 = vpop.f32.mrf.mxu0 }
 0x15a   : > { %v2588_v1 = vpop.f32.mrf.mxu1  ;;  %v2561_v40 = vadd.f32 %v2560_v63, %v2559_v61  ;;  %v1817_v46 = vadd.f32 %v2586_v48, %v1768_v41  ;;  %v407_v61 = vld [vmem:[#allocation2 + $0x10] sm:$0xff] }
 0x15b   : > { %v2589_v55 = vadd.f32 %v2588_v1, %v2587_v62  ;;  %v408_v1 = vld [vmem:[#allocation2] sm:$0xff] }
 0x15c   : > { %v1771_v47 = vadd.f32 %v2561_v40, %v1722_v50 }
 0x15e   : > { %v1820_v11 = vadd.f32 %v2589_v55, %v1771_v47 }
 0x16b   : > { %v2606_v0 = vpop.f32.mrf.mxu0 }
 0x16c   : > { %v2634_v2 = vpop.f32.mrf.mxu1 }
 0x16d   : > { %v2607_v3 = vpop.f32.mrf.mxu0 }
 0x16e   : > { %v2635_v4 = vpop.f32.mrf.mxu1  ;;  %v2608_v26 = vadd.f32 %v2607_v3, %v2606_v0 }
 0x16f   : > { %v2609_v5 = vpop.f32.mrf.mxu0  ;;  %v2636_v37 = vadd.f32 %v2635_v4, %v2634_v2 }
 0x170   : > { %v2637_v6 = vpop.f32.mrf.mxu1  ;;  %v1858_v36 = vadd.f32 %v2608_v26, %v1809_v29 }
 0x171   : > { %v2610_v7 = vpop.f32.mrf.mxu0 }
 0x172   : > { %v2638_v8 = vpop.f32.mrf.mxu1  ;;  %v2611_v38 = vadd.f32 %v2610_v7, %v2609_v5  ;;  %v1907_v53 = vadd.f32 %v2636_v37, %v1858_v36 }
 0x173   : > { %v2612_v9 = vpop.f32.mrf.mxu0  ;;  %v2639_v57 = vadd.f32 %v2638_v8, %v2637_v6 }
 0x174   : > { %v2640_v12 = vpop.f32.mrf.mxu1  ;;  %v1861_v54 = vadd.f32 %v2611_v38, %v1812_v43 }
 0x175   : > { %v2613_v14 = vpop.f32.mrf.mxu0 }
 0x176   : > { %v2641_v18 = vpop.f32.mrf.mxu1  ;;  %v2614_v51 = vadd.f32 %v2613_v14, %v2612_v9  ;;  %v1910_v3 = vadd.f32 %v2639_v57, %v1861_v54 }
 0x177   : > { %v2615_v24 = vpop.f32.mrf.mxu0  ;;  %v2642_v60 = vadd.f32 %v2641_v18, %v2640_v12 }
 0x178   : > { %v2643_v27 = vpop.f32.mrf.mxu1  ;;  %v1866_v58 = vadd.f32 %v2614_v51, %v1817_v46 }
 0x179   : > { %v2616_v34 = vpop.f32.mrf.mxu0 }
 0x17a   : > { %v2644_v39 = vpop.f32.mrf.mxu1  ;;  %v2617_v4 = vadd.f32 %v2616_v34, %v2615_v24  ;;  %v1915_v62 = vadd.f32 %v2642_v60, %v1866_v58 }
 0x17b   : > { %v2645_v17 = vadd.f32 %v2644_v39, %v2643_v27  ;;  %v410_v27 = vld [vmem:[#allocation2 + $0x8] sm:$0xff] }
 0x17c   : > { %v1869_v8 = vadd.f32 %v2617_v4, %v1820_v11 }
 0x17e   : > { %v1918_v28 = vadd.f32 %v2645_v17, %v1869_v8 }
 0x18b   : > { %v2662_v42 = vpop.f32.mrf.mxu0 }
 0x18c   : > { %v2690_v45 = vpop.f32.mrf.mxu1 }
 0x18d   : > { %v2663_v52 = vpop.f32.mrf.mxu0 }
 0x18e   : > { %v2664_v56 = vadd.f32 %v2663_v52, %v2662_v42  ;;  %v2691_v44 = vpop.f32.mrf.mxu1 }
 0x18f   : > { %v2665_v49 = vpop.f32.mrf.mxu0  ;;  %v2692_v0 = vadd.f32 %v2691_v44, %v2690_v45 }
 0x190   : > { %v1956_v59 = vadd.f32 %v2664_v56, %v1907_v53  ;;  %v2693_v2 = vpop.f32.mrf.mxu1 }
 0x191   : > { %v2666_v63 = vpop.f32.mrf.mxu0 }
 0x192   : > { %v2005_v5 = vadd.f32 %v2692_v0, %v1956_v59  ;;  %v2667_v7 = vadd.f32 %v2666_v63, %v2665_v49  ;;  %v2694_v9 = vpop.f32.mrf.mxu1 }
 0x193   : > { %v2668_v10 = vpop.f32.mrf.mxu0  ;;  %v2695_v15 = vadd.f32 %v2694_v9, %v2693_v2 }
 0x194   : > { %v2019_v13 = vadd.f32 %v2005_v5, %v407_v61  ;;  %v1959_v14 = vadd.f32 %v2667_v7, %v1910_v3  ;;  %v2696_v16 = vpop.f32.mrf.mxu1 }
 0x195   : > { %v2669_v6 = vpop.f32.mrf.mxu0 }
 0x196   : > { %2023 = vst [vmem:[#allocation2 + $0x10] sm:$0xff] %v2019_v13  ;;  %v2008_v12 = vadd.f32 %v2695_v15, %v1959_v14  ;;  %v2670_v18 = vadd.f32 %v2669_v6, %v2668_v10  ;;  %v2697_v19 = vpop.f32.mrf.mxu1 }
 0x197   : > { %v2671_v20 = vpop.f32.mrf.mxu0  ;;  %v2698_v23 = vadd.f32 %v2697_v19, %v2696_v16 }
 0x198   : > { %v2020_v21 = vadd.f32 %v2008_v12, %v408_v1  ;;  %v1964_v22 = vadd.f32 %v2670_v18, %v1915_v62  ;;  %v2699_v24 = vpop.f32.mrf.mxu1 }
 0x199   : > { %v2672_v26 = vpop.f32.mrf.mxu0 }
 0x19a   : > { %2024 = vst [vmem:[#allocation2] sm:$0xff] %v2020_v21  ;;  %v2013_v29 = vadd.f32 %v2698_v23, %v1964_v22  ;;  %v2673_v30 = vadd.f32 %v2672_v26, %v2671_v20  ;;  %v2700_v31 = vpop.f32.mrf.mxu1 }
 0x19b   : > { %v2701_v34 = vadd.f32 %v2700_v31, %v2699_v24 }
 0x19c   : > { %v2021_v32 = vadd.f32 %v2013_v29, %v409_v25  ;;  %v1967_v33 = vadd.f32 %v2673_v30, %v1918_v28 }
 0x19e   : > { %2025 = vst [vmem:[#allocation2 + $0x18] sm:$0xff] %v2021_v32  ;;  %v2016_v35 = vadd.f32 %v2701_v34, %v1967_v33  ;;  %2030 = sbr.rel (%p2471_p6) target bundleno = 447 (0x1bf), region = 63 }
 0x1a0   : > { %v2022_v36 = vadd.f32 %v2016_v35, %v410_v27 }
 0x1a2   : > { %2026 = vst [vmem:[#allocation2 + $0x8] sm:$0xff] %v2022_v36 }
 0x1a3   : > { %v2031_v37 = vld [vmem:[#allocation2 + $0x10] sm:$0xff]  ;;  %v2032_v38 = vld [vmem:[#allocation2] sm:$0xff]  ;;  %v2046_v41 = vlaneseq  ;;  %vm2095_vm1 = vcmask 1040384  }
 0x1a4   : > { %v2472_v40 = vld [vmem:[%s3473_s2] ss:$0 sm:$0xff] }
 0x1a5   : > { %v2033_v39 = vld [vmem:[#allocation2 + $0x18] sm:$0xff]  ;;  %v2042_v42 = vadd.f32 %v2472_v40, %v2031_v37  ;;  %v2043_v43 = vadd.f32 %v2472_v40, %v2032_v38  ;;  %v2047_v51 = vshrl.u32 %v2046_v41, 7 }
 0x1a6   : > { %v2044_v45 = vadd.f32 %v2472_v40, %v2033_v39 }
 0x1a7   : > { %v2073_v52 = vadd.f32 %v2043_v43, %v2042_v42  ;;  %v2082_v53 = vmul.f32 %v2042_v42, %v2042_v42  ;;  %v2083_v54 = vmul.f32 %v2043_v43, %v2043_v43  ;;  %2098 = vst [vmem:[%s3236_s0] sm:$0xff] %v2042_v42  ;;  %2099 = vst [vmem:[%s3236_s0 + $0x8] sm:$0xff] %v2043_v43  ;;  %v2050_v44 = vadd.s32 24, %v2047_v51 }
 0x1a8   : > { %v2084_v56 = vmul.f32 %v2044_v45, %v2044_v45  ;;  %2100 = vst [vmem:[%s3236_s0 + $0x10] sm:$0xff] %v2044_v45 }
 0x1a9   : > { %v2034_v48 = vld [vmem:[#allocation2 + $0x8] sm:$0xff]  ;;  %v2074_v46 = vadd.f32 %v2073_v52, %v2044_v45  ;;  %v2086_v47 = vadd.f32 %v2083_v54, %v2082_v53  ;;  %vm2060_vm0 = vcmp.lt.s32.totalorder %v2050_v44, 25 }
 0x1aa   : > { %v2045_v50 = vadd.f32 %v2472_v40, %v2034_v48 }
 0x1ab   : > { %v2087_v55 = vadd.f32 %v2086_v47, %v2084_v56 }
 0x1ac   : > { %2101 = vst [vmem:[%s3236_s0 + $0x18] sm:$0xff] %v2045_v50  ;;  %v2072_v49 = vsel %vm2060_vm0, %v2045_v50, 0.0 }
 0x1ad   : > { %v2075_v57 = vadd.f32 %v2074_v46, %v2072_v49  ;;  %v2085_v59 = vmul.f32 %v2072_v49, %v2072_v49 }
 0x1af   : > { %v2076_v0 = vrot.slane %v2075_v57, 4  ;;  %v2088_v2 = vadd.f32 %v2087_v55, %v2085_v59 }
 0x1b1   : > { %v2077_v58 = vadd.f32 %v2076_v0, %v2075_v57  ;;  %v2089_v60 = vrot.slane %v2088_v2, 4 }
 0x1b3   : > { %v2078_v61 = vrot.slane %v2077_v58, 2  ;;  %v2090_v63 = vadd.f32 %v2089_v60, %v2088_v2 }
 0x1b5   : > { %v2079_v3 = vadd.f32 %v2078_v61, %v2077_v58  ;;  %v2091_v4 = vrot.slane %v2090_v63, 2 }
 0x1b7   : > { %v2080_v5 = vrot.slane %v2079_v3, 1  ;;  %v2092_v7 = vadd.f32 %v2091_v4, %v2090_v63 }
 0x1b9   : > { %v2081_v9 = vadd.f32 %v2080_v5, %v2079_v3  ;;  %v2093_v10 = vrot.slane %v2092_v7, 1 }
 0x1bb   : > { %v2094_v11 = vadd.f32 %v2093_v10, %v2092_v7 }
 0x1bd   : > { %v2096_v13 = vsel %vm2095_vm1, %v2081_v9, %v2094_v11 }
 0x1be   : > { %2097 = vst [vmem:[%s370_s27] sm:$0x3] %v2096_v13 }
 0x1bf PF: > { %s2474_s0 = sshll.u32 %s3014_s21, 5  ;;  %s2134_s8 = sshll.u32 %s370_s27, 4  ;;  %s2135_s8 = int_to_ptr.vmem [resolvable:$true] %s2134_s8 }
 0x1c0   : > { %s2132_s30 = scalar_lea.hbm %s3475_s4, %s2474_s0  ;;  %s3486_s9 = sand.u32 1, %s2994_s16  }
 0x1c1   : > { %s2115_s6 = scalar_lea.sflag [#allocation5], %s3486_s9  ;;  %s2918_s29 = scalar_lea.vmem %s2135_s8, 32 }
 0x1c2   : > { %p2919_p8 = scmp.ne.s32.totalorder %s2135_s8, %s2918_s29  ;;  %s3029_s5 = smov [#allocation4]  }
 0x1c3   : > { %s2922_s18 = sshll.u32 %s3029_s5, 4  ;;  %s2923_s18 = int_to_ptr.vmem [resolvable:$false] %s2922_s18 }
 0x1c4   : > { %p2920_p9 = pnand %p2919_p8, %p3127_p7  ;;  %s2924_s13 = scalar_lea.vmem %s2923_s18, 64 }
 0x1c5   : > { %p2925_p11 = scmp.lt.s32.totalorder %s2135_s8, %s2923_s18  ;;  %p2926_p13 = scmp.lt.s32.totalorder %s2924_s13, %s2918_s29 }
 0x1c6   : > { %p2921_p10 = pneg %p2920_p9 }
 0x1c7   : > { %p2927_p0 = por %p2926_p13, %p2925_p11 }
 0x1c9   : > { %p2928_p1 = pnand %p2927_p0, %p2921_p10 }
 0x1cb   : > { %2931 = shalt.err (!%p2928_p1)
}
 0x1cc   : > { %s2932_s21 = scalar_lea.hbm %s2132_s30, 32  ;;  %s2936_s28 = scalar_lea.hbm %s3475_s4, 64 }
 0x1cd   : > { %p2933_p2 = scmp.ne.s32.totalorder %s2132_s30, %s2932_s21  ;;  %p2937_p5 = scmp.lt.s32.totalorder %s2132_s30, %s3475_s4 }
 0x1ce   : > { %p2938_p6 = scmp.lt.s32.totalorder %s2936_s28, %s2932_s21 }
 0x1cf   : > { %p2934_p3 = pnand %p2933_p2, %p3127_p7 }
 0x1d0   : > { %p2939_p8 = por %p2938_p6, %p2937_p5 }
 0x1d1   : > { %p2935_p4 = pneg %p2934_p3 }
 0x1d3   : > { %p2940_p9 = pnand %p2939_p8, %p2935_p4 }
 0x1d5   : > { %2943 = shalt.err (!%p2940_p9)
}
 0x1d6   : > { %2702 = dma.vmem_to_hbm [thread:$0]  (%p3127_p7), %s2135_s8, 32, %s2132_s30, %s2115_s6  }
 0x1d7 PF: > { %p2708_p10 = scmp.ge.s32.totalorder %s3026_s24, 2  ;;  %s2161_s20 = sand.u32 1, %s2990_s15  }
 0x1d8   : > { %s2162_s25 = scalar_lea.sflag [#allocation5], %s2161_s20 }
 0x1d9   : > { %p2705_p11 = pnand %p2708_p10, %p3135_p12 }
 0x1db   : > { %p2706_p13 = pneg %p2705_p11 }
 0x1dd   : > { %2985 = dma.done.wait (%p2706_p13), %s2162_s25, 32  }
 0x1de   : > { %2987 = vsyncadd (%p2706_p13), %s2162_s25, 4294967264  ;;  %s18_s24 = sadd.s32 1, %s3026_s24   ;;  %s3487_s7 = sld [smem:[#allocation7_spill]] }
 0x1df   : > { %p15_p0 = scmp.ge.s32.totalorder %s18_s24, 10   ;;  %s3488_s30 = sld [smem:[#allocation8_spill]] }
 0x1e0   : > { %s3489_s15 = smov %s2994_s16  ;;  %s3490_s16 = smov %s2998_s17 }
 0x1e1   : > { %s3491_s17 = smov %s3140_s11  ;;  %s3492_s18 = smov %s3006_s19 }
 0x1e2   : > { %s3493_s19 = smov %s3143_s12  ;;  %s3494_s20 = smov %s3018_s22 }
 0x1e3   : > { %s3495_s21 = smov %s3022_s23  ;;  %17 = sbr.rel (!%p15_p0) target bundleno = 8 (0x8), region = 121 }
 0x1e4   : > { %s3496_s22 = smov %s3487_s7 }
 0x1e5   : > { %s3497_s23 = smov %s3488_s30 }
 0x1e8   :  { %2167 = vsyncpa [#allocation5], 1 }
 0x1e9   :  { %2169 = vsyncpa [#allocation5 + $0x1], 1 }

</bundles_post_ra>
